<compile_context>
chip_gen: v7x
topology: tpu7x:2x2x1
jax: 0.10.0
libtpu: 0.0.40
codegen_flags: <defaults>
</compile_context>

<pallas_src>
import functools
import math

import jax
import jax.numpy as jnp
from jax.experimental import pallas as pl
from jax.experimental.pallas import tpu as pltpu


# ----------------------------------------------------------------------------
# One cross-attention branch (full batch), channel-major (D, B*N) layout.
# ----------------------------------------------------------------------------
def _branch_attention(xq, xk, w_slab, mask, *, num_heads):
    """xq, xk : (D, BN) channel-major query/value tokens and key tokens
       w_slab : (D, 4D) lane-dense weights, columns = [Wq*scale|Wv|Wk|Wo]^T
       mask   : (BN, BN) bool, True where attention is allowed
       returns: (D, BN) attention output, channel-major."""
    D, BN = xq.shape
    hd = D // num_heads
    c0 = (((0,), (0,)), ((), ()))          # contract dim-0 of both operands

    # Full-slab projections: weights stay lane-dense and unsliced; the unused
    # rows of these tiny (4D, BN) products cost less than any relayout.
    pq = jax.lax.dot_general(w_slab, xq, c0,
                             preferred_element_type=jnp.float32)   # (4D, BN)
    pk = jax.lax.dot_general(w_slab, xk, c0,
                             preferred_element_type=jnp.float32)   # (4D, BN)
    qh = pq[:D].reshape(num_heads, hd, BN)               # Wq(scaled) @ xq
    vh = pq[D:2 * D].reshape(num_heads, hd, BN)          # Wv @ xq
    kh = pk[2 * D:3 * D].reshape(num_heads, hd, BN)      # Wk @ xk

    # Scores for all heads in one batched dot, contracting the head_dim axis
    # directly (no transposes): (H, BN_q, BN_k).
    s = jax.lax.dot_general(qh, kh, (((1,), (1,)), ((0,), (0,))),
                            preferred_element_type=jnp.float32)
    s = jnp.where(mask[None], s, jnp.float32(-1e30))

    # Softmax in f32 (safe on v5e too); reciprocal runs on the EUP.
    s = s - jnp.max(s, axis=-1, keepdims=True)
    p = jnp.exp(s)
    p = p * pl.reciprocal(jnp.sum(p, axis=-1, keepdims=True), approx=False)

    # Context per head: (H, hd, BN); merging heads is a plain reshape.
    ctx = jax.lax.dot_general(vh, p, (((2,), (2,)), ((0,), (0,))),
                              preferred_element_type=jnp.float32)
    ctx = ctx.reshape(D, BN)

    # Output projection: full slab again, keep only the Wo rows.
    po = jax.lax.dot_general(w_slab, ctx, c0,
                             preferred_element_type=jnp.float32)   # (4D, BN)
    return po[3 * D:]


def _dual_cross_mha_kernel(x_ref, w_ref, o_ref, *, num_heads, seq,
                           branches_per_step):
    """x_ref: (2, D, BN)   channel-major tokens for BOTH branches
       w_ref: (bps, D, 4D) lane-dense weight slab(s) of branch(es) this step
       o_ref: (bps, D, BN) attention output(s), channel-major."""
    _, D, BN = x_ref.shape

    # Block-diagonal mask: batch elements are contiguous `seq`-token blocks on
    # the lane axis.  seq is a power of two here -> XOR compare, no int div.
    row = jax.lax.broadcasted_iota(jnp.int32, (BN, BN), 0)
    col = jax.lax.broadcasted_iota(jnp.int32, (BN, BN), 1)
    if seq & (seq - 1) == 0:
        mask = (row ^ col) < seq
    else:                                        # fallback for non-pow2 seq
        mask = (row // seq) == (col // seq)

    # Fused case (bps=2): static branch indices.  Grid case (bps=1): branch
    # id is the grid position (one branch per TensorCore on v7x).
    base = 0 if branches_per_step == 2 else pl.program_id(0)
    for j in range(branches_per_step):
        b = base + j
        xq = x_ref[b]                     # query/value tokens of this branch
        xk = x_ref[1 - b]                 # key tokens come from the OTHER one
        out = _branch_attention(xq, xk, w_ref[j], mask, num_heads=num_heads)
        o_ref[j] = out.astype(o_ref.dtype)


def _dual_cross_mha(xt, w_slab, *, num_heads, seq, branches_per_step):
    """xt: (2, D, B*N) channel-major tokens (branch 0 = xa1, 1 = xa2).
       w_slab: (2, D, 4D) per-branch lane-dense [Wq*scale|Wv|Wk|Wo]^T."""
    n_br, D, BN = xt.shape
    assert n_br == 2 and branches_per_step in (1, 2)
    grid = (2 // branches_per_step,)
    kernel = functools.partial(_dual_cross_mha_kernel, num_heads=num_heads,
                               seq=seq, branches_per_step=branches_per_step)
    return pl.pallas_call(
        kernel,
        out_shape=jax.ShapeDtypeStruct((2, D, BN), xt.dtype),
        grid_spec=pltpu.PrefetchScalarGridSpec(
            num_scalar_prefetch=0,
            grid=grid,
            in_specs=[
                # Full token slab, constant block index -> DMA'd only once.
                pl.BlockSpec((2, D, BN), lambda g: (0, 0, 0)),
                pl.BlockSpec((branches_per_step, D, 4 * D),
                             lambda g: (g, 0, 0)),
            ],
            out_specs=pl.BlockSpec((branches_per_step, D, BN),
                                   lambda g: (g, 0, 0)),
        ),
        compiler_params=pltpu.CompilerParams(
            dimension_semantics=("parallel",)),
    )(xt, w_slab)


def _branches_per_step_default():
    # v7x has two TensorCores per chip -> grid=(2,), one branch per core.
    # v5e / v6e have a single TC, where a 2-step grid is only serial overhead,
    # so both branches are fused into one kernel invocation there.
    try:
        kind = jax.devices()[0].device_kind.lower()
    except Exception:
        return 2
    return 1 if "v7" in kind else 2


# ----------------------------------------------------------------------------
# LowMixer2 forward (layout glue in XLA, both attentions in one pallas_call).
# ----------------------------------------------------------------------------
def low_mixer2(x1, x2, params, *, num_heads, pool_size=2,
               branches_per_step=None):
    B, C, H, W = x1.shape
    if branches_per_step is None:
        branches_per_step = _branches_per_step_default()
    Hp, Wp = H // pool_size, W // pool_size
    N = Hp * Wp
    hd = C // num_heads
    scale = 1.0 / math.sqrt(hd)

    # TODO(synk): avg-pool / NCHW<->token permutes and the nearest upsample
    # stay in XLA; a fully fused version would stream the pooled read and
    # replicate each row pool^2 times on store inside the kernel.
    def pool_to_tokens_cm(x):           # NCHW -> channel-major tokens (C, B*N)
        xp = x.reshape(B, C, Hp, pool_size, Wp, pool_size).mean(axis=(3, 5))
        return xp.reshape(B, C, N).transpose(1, 0, 2).reshape(C, B * N)

    xt = jnp.stack([pool_to_tokens_cm(x1), pool_to_tokens_cm(x2)])  # (2,C,B*N)

    # torch in_proj_weight rows are [Wq; Wk; Wv]; slab columns (lane-dense) are
    # [Wq*scale | Wv | Wk | Wo]^T, matching the kernel's row slicing order.
    def slab(w_in, w_o):
        rows = jnp.concatenate([w_in[:C] * scale,            # Wq (pre-scaled)
                                w_in[2 * C:3 * C],            # Wv
                                w_in[C:2 * C],                # Wk
                                w_o], axis=0)                 # Wo
        return rows.T                                         # (C, 4C)

    w_slab = jnp.stack([slab(params["w_in1"], params["w_o1"]),
                        slab(params["w_in2"], params["w_o2"])])      # (2,C,4C)

    out_cm = _dual_cross_mha(xt, w_slab, num_heads=num_heads, seq=N,
                             branches_per_step=branches_per_step)

    def to_image(o):                    # (C, B*N) -> NCHW, nearest x pool
        img = o.reshape(C, B, Hp, Wp).transpose(1, 0, 2, 3)
        img = jnp.broadcast_to(img[:, :, :, None, :, None],
                               (B, C, Hp, pool_size, Wp, pool_size))
        return img.reshape(B, C, Hp * pool_size, Wp * pool_size)

    return to_image(out_cm[0]), to_image(out_cm[1])


# ----------------------------------------------------------------------------
# Pure-JAX reference (mirrors torch.nn.MultiheadAttention, bias=False).
# ----------------------------------------------------------------------------
def _ref_mha(xq, xk, xv, w_in, w_o, num_heads):
    B, N, D = xq.shape
    hd = D // num_heads
    wq, wk, wv = w_in[:D], w_in[D:2 * D], w_in[2 * D:]
    q = (xq @ wq.T).reshape(B, N, num_heads, hd).transpose(0, 2, 1, 3)
    k = (xk @ wk.T).reshape(B, N, num_heads, hd).transpose(0, 2, 1, 3)
    v = (xv @ wv.T).reshape(B, N, num_heads, hd).transpose(0, 2, 1, 3)
    s = jnp.einsum("bhnd,bhmd->bhnm", q, k) / math.sqrt(hd)
    p = jax.nn.softmax(s, axis=-1)
    o = jnp.einsum("bhnm,bhmd->bhnd", p, v)
    o = o.transpose(0, 2, 1, 3).reshape(B, N, D)
    return o @ w_o.T


def _ref_low_mixer2(x1, x2, params, *, num_heads, pool_size=2):
    B, C, H, W = x1.shape
    Hp, Wp = H // pool_size, W // pool_size
    pool = lambda x: x.reshape(B, C, Hp, pool_size, Wp, pool_size).mean((3, 5))
    tok = lambda x: x.transpose(0, 2, 3, 1).reshape(B, Hp * Wp, C)
    xa1, xa2 = tok(pool(x1)), tok(pool(x2))
    a1 = _ref_mha(xa1, xa2, xa1, params["w_in1"], params["w_o1"], num_heads)
    a2 = _ref_mha(xa2, xa1, xa2, params["w_in2"], params["w_o2"], num_heads)

    def up(a):
        img = a.reshape(B, Hp, Wp, C).transpose(0, 3, 1, 2)
        return jnp.repeat(jnp.repeat(img, pool_size, 2), pool_size, 3)

    return up(a1), up(a2)


# ----------------------------------------------------------------------------
if __name__ == "__main__":
    B, dim, H, W = 2, 32, 16, 16
    num_heads, pool_size = 8, 2

    key = jax.random.PRNGKey(0)
    k_x1, k_x2, k_in1, k_o1, k_in2, k_o2 = jax.random.split(key, 6)

    x1 = jax.random.normal(k_x1, (B, dim, H, W), dtype=jnp.float32)
    x2 = jax.random.normal(k_x2, (B, dim, H, W), dtype=jnp.float32)

    # nn.MultiheadAttention parameter shapes (bias=False):
    #   in_proj_weight: (3*dim, dim), out_proj.weight: (dim, dim)
    a_in = math.sqrt(6.0 / (dim + dim))
    params = {
        "w_in1": jax.random.uniform(k_in1, (3 * dim, dim), jnp.float32,
                                    -a_in, a_in),
        "w_o1": jax.random.uniform(k_o1, (dim, dim), jnp.float32, -a_in, a_in),
        "w_in2": jax.random.uniform(k_in2, (3 * dim, dim), jnp.float32,
                                    -a_in, a_in),
        "w_o2": jax.random.uniform(k_o2, (dim, dim), jnp.float32, -a_in, a_in),
    }

    fwd = jax.jit(functools.partial(low_mixer2, num_heads=num_heads,
                                    pool_size=pool_size))
    out1, out2 = fwd(x1, x2, params)
    jax.block_until_ready((out1, out2))

    ref1, ref2 = _ref_low_mixer2(x1, x2, params, num_heads=num_heads,
                                 pool_size=pool_size)
    assert out1.shape == (B, dim, H, W) and out2.shape == (B, dim, H, W)
    assert jnp.allclose(out1, ref1, atol=1e-3, rtol=1e-3), \
        float(jnp.max(jnp.abs(out1 - ref1)))
    assert jnp.allclose(out2, ref2, atol=1e-3, rtol=1e-3), \
        float(jnp.max(jnp.abs(out2 - ref2)))

    print("KERNEL_OK")
</pallas_src>

<mosaic_0001>
module attributes {stable_mosaic.version = 11 : i64} {
  func.func @_dual_cross_mha_kernel(%arg0: i32, %arg1: memref<2x32x128xf32, #tpu.memory_space<vmem>>, %arg2: memref<2x32x128xf32, #tpu.memory_space<vmem>>, %arg3: memref<2x32x128xf32, #tpu.memory_space<vmem>>) attributes {dimension_semantics = [#tpu.dimension_semantics<parallel>], iteration_bounds = array<i64: 1>, scalar_prefetch = 0 : i64, scratch_operands = 0 : i64, tpu.core_type = #tpu.core_type<tc>, window_params = [{pipeline_mode = #tpu.pipeline_mode<synchronous>, transform_indices = @transform_0, window_bounds = array<i64: 2, 32, 128>}, {transform_indices = @transform_1, window_bounds = array<i64: 2, 32, 128>}, {transform_indices = @transform_2, window_bounds = array<i64: 2, 32, 128>}]} {
    %0 = tpu.iota {dimensions = array<i32: 0>} : vector<128x128xi32>
    %1 = tpu.iota {dimensions = array<i32: 1>} : vector<128x128xi32>
    %2 = arith.xori %0, %1 : vector<128x128xi32>
    %c64_i32 = arith.constant 64 : i32
    %3 = vector.broadcast %c64_i32 : i32 to vector<128x128xi32>
    %4 = arith.cmpi slt, %2, %3 : vector<128x128xi32>
    %c0 = arith.constant 0 : index
    %c0_0 = arith.constant 0 : index
    %c0_1 = arith.constant 0 : index
    %5 = vector.load %arg1[%c0, %c0_0, %c0_1] : memref<2x32x128xf32, #tpu.memory_space<vmem>>, vector<1x32x128xf32>
    %6 = vector.shape_cast %5 : vector<1x32x128xf32> to vector<32x128xf32>
    %c1 = arith.constant 1 : index
    %c0_2 = arith.constant 0 : index
    %c0_3 = arith.constant 0 : index
    %7 = vector.load %arg1[%c1, %c0_2, %c0_3] : memref<2x32x128xf32, #tpu.memory_space<vmem>>, vector<1x32x128xf32>
    %8 = vector.shape_cast %7 : vector<1x32x128xf32> to vector<32x128xf32>
    %c0_4 = arith.constant 0 : index
    %c0_5 = arith.constant 0 : index
    %c0_6 = arith.constant 0 : index
    %9 = vector.load %arg2[%c0_4, %c0_5, %c0_6] : memref<2x32x128xf32, #tpu.memory_space<vmem>>, vector<1x32x128xf32>
    %10 = vector.shape_cast %9 : vector<1x32x128xf32> to vector<32x128xf32>
    %cst = arith.constant dense<0.000000e+00> : vector<128x128xf32>
    %11 = tpu.matmul %10, %6, %cst {dimension_numbers = #tpu.dot_dimension_numbers<[0], [0], [1], [1], [0, 1, 1, 1], [], []>} : vector<32x128xf32>, vector<32x128xf32>, vector<128x128xf32> -> vector<128x128xf32>
    %cst_7 = arith.constant dense<0.000000e+00> : vector<128x128xf32>
    %12 = tpu.matmul %10, %8, %cst_7 {dimension_numbers = #tpu.dot_dimension_numbers<[0], [0], [1], [1], [0, 1, 1, 1], [], []>} : vector<32x128xf32>, vector<32x128xf32>, vector<128x128xf32> -> vector<128x128xf32>
    %13 = vector.extract_strided_slice %11 {offsets = [0, 0], sizes = [32, 128], strides = [1, 1]} : vector<128x128xf32> to vector<32x128xf32>
    %14 = vector.shape_cast %13 : vector<32x128xf32> to vector<8x4x128xf32>
    %15 = vector.extract_strided_slice %11 {offsets = [32, 0], sizes = [32, 128], strides = [1, 1]} : vector<128x128xf32> to vector<32x128xf32>
    %16 = vector.shape_cast %15 : vector<32x128xf32> to vector<8x4x128xf32>
    %17 = vector.extract_strided_slice %12 {offsets = [64, 0], sizes = [32, 128], strides = [1, 1]} : vector<128x128xf32> to vector<32x128xf32>
    %18 = vector.shape_cast %17 : vector<32x128xf32> to vector<8x4x128xf32>
    %cst_8 = arith.constant dense<0.000000e+00> : vector<8x128x128xf32>
    %19 = tpu.matmul %14, %18, %cst_8 {dimension_numbers = #tpu.dot_dimension_numbers<[1], [1], [2], [2], [0, 0, 0, 2, 1, 2], [0], [0]>} : vector<8x4x128xf32>, vector<8x4x128xf32>, vector<8x128x128xf32> -> vector<8x128x128xf32>
    %20 = vector.shape_cast %4 : vector<128x128xi1> to vector<1x128x128xi1>
    %cst_9 = arith.constant -1.000000e+30 : f32
    %21 = vector.shape_cast %20 : vector<1x128x128xi1> to vector<1x128x128xi1>
    %22 = vector.broadcast %21 : vector<1x128x128xi1> to vector<8x128x128xi1>
    %23 = vector.broadcast %cst_9 : f32 to vector<8x128x128xf32>
    %24 = arith.select %22, %19, %23 : vector<8x128x128xi1>, vector<8x128x128xf32>
    %cst_10 = arith.constant dense<0xFF800000> : vector<8x128xf32>
    %25 = vector.multi_reduction <maximumf>, %24, %cst_10 [2] : vector<8x128x128xf32> to vector<8x128xf32>
    %26 = vector.shape_cast %25 : vector<8x128xf32> to vector<8x128x1xf32>
    %27 = vector.broadcast %26 : vector<8x128x1xf32> to vector<8x128x128xf32>
    %28 = arith.subf %24, %27 : vector<8x128x128xf32>
    %29 = math.exp %28 : vector<8x128x128xf32>
    %cst_11 = arith.constant dense<0.000000e+00> : vector<8x128xf32>
    %30 = vector.multi_reduction <add>, %29, %cst_11 [2] : vector<8x128x128xf32> to vector<8x128xf32>
    %31 = vector.shape_cast %30 : vector<8x128xf32> to vector<8x128x1xf32>
    %32 = tpu.reciprocal %31 : vector<8x128x1xf32> -> vector<8x128x1xf32>
    %33 = vector.broadcast %32 : vector<8x128x1xf32> to vector<8x128x128xf32>
    %34 = arith.mulf %29, %33 : vector<8x128x128xf32>
    %cst_12 = arith.constant dense<0.000000e+00> : vector<8x4x128xf32>
    %35 = tpu.matmul %16, %34, %cst_12 {dimension_numbers = #tpu.dot_dimension_numbers<[2], [2], [1], [1], [0, 0, 0, 1, 1, 1], [0], [0]>} : vector<8x4x128xf32>, vector<8x128x128xf32>, vector<8x4x128xf32> -> vector<8x4x128xf32>
    %36 = vector.shape_cast %35 : vector<8x4x128xf32> to vector<32x128xf32>
    %cst_13 = arith.constant dense<0.000000e+00> : vector<128x128xf32>
    %37 = tpu.matmul %10, %36, %cst_13 {dimension_numbers = #tpu.dot_dimension_numbers<[0], [0], [1], [1], [0, 1, 1, 1], [], []>} : vector<32x128xf32>, vector<32x128xf32>, vector<128x128xf32> -> vector<128x128xf32>
    %38 = vector.extract_strided_slice %37 {offsets = [96, 0], sizes = [32, 128], strides = [1, 1]} : vector<128x128xf32> to vector<32x128xf32>
    %c0_14 = arith.constant 0 : index
    %c0_15 = arith.constant 0 : index
    %c0_16 = arith.constant 0 : index
    %39 = vector.load %arg3[%c0_14, %c0_15, %c0_16] : memref<2x32x128xf32, #tpu.memory_space<vmem>>, vector<1x32x128xf32>
    %40 = vector.shape_cast %39 : vector<1x32x128xf32> to vector<32x128xf32>
    %41 = vector.shape_cast %38 : vector<32x128xf32> to vector<1x32x128xf32>
    tpu.vector_store %arg3[%c0_14, %c0_15, %c0_16], %41 {strides = array<i32>} : memref<2x32x128xf32, #tpu.memory_space<vmem>>, vector<1x32x128xf32>,
    %c1_17 = arith.constant 1 : index
    %c0_18 = arith.constant 0 : index
    %c0_19 = arith.constant 0 : index
    %42 = vector.load %arg1[%c1_17, %c0_18, %c0_19] : memref<2x32x128xf32, #tpu.memory_space<vmem>>, vector<1x32x128xf32>
    %43 = vector.shape_cast %42 : vector<1x32x128xf32> to vector<32x128xf32>
    %c0_20 = arith.constant 0 : index
    %c0_21 = arith.constant 0 : index
    %c0_22 = arith.constant 0 : index
    %44 = vector.load %arg1[%c0_20, %c0_21, %c0_22] : memref<2x32x128xf32, #tpu.memory_space<vmem>>, vector<1x32x128xf32>
    %45 = vector.shape_cast %44 : vector<1x32x128xf32> to vector<32x128xf32>
    %c1_23 = arith.constant 1 : index
    %c0_24 = arith.constant 0 : index
    %c0_25 = arith.constant 0 : index
    %46 = vector.load %arg2[%c1_23, %c0_24, %c0_25] : memref<2x32x128xf32, #tpu.memory_space<vmem>>, vector<1x32x128xf32>
    %47 = vector.shape_cast %46 : vector<1x32x128xf32> to vector<32x128xf32>
    %cst_26 = arith.constant dense<0.000000e+00> : vector<128x128xf32>
    %48 = tpu.matmul %47, %43, %cst_26 {dimension_numbers = #tpu.dot_dimension_numbers<[0], [0], [1], [1], [0, 1, 1, 1], [], []>} : vector<32x128xf32>, vector<32x128xf32>, vector<128x128xf32> -> vector<128x128xf32>
    %cst_27 = arith.constant dense<0.000000e+00> : vector<128x128xf32>
    %49 = tpu.matmul %47, %45, %cst_27 {dimension_numbers = #tpu.dot_dimension_numbers<[0], [0], [1], [1], [0, 1, 1, 1], [], []>} : vector<32x128xf32>, vector<32x128xf32>, vector<128x128xf32> -> vector<128x128xf32>
    %50 = vector.extract_strided_slice %48 {offsets = [0, 0], sizes = [32, 128], strides = [1, 1]} : vector<128x128xf32> to vector<32x128xf32>
    %51 = vector.shape_cast %50 : vector<32x128xf32> to vector<8x4x128xf32>
    %52 = vector.extract_strided_slice %48 {offsets = [32, 0], sizes = [32, 128], strides = [1, 1]} : vector<128x128xf32> to vector<32x128xf32>
    %53 = vector.shape_cast %52 : vector<32x128xf32> to vector<8x4x128xf32>
    %54 = vector.extract_strided_slice %49 {offsets = [64, 0], sizes = [32, 128], strides = [1, 1]} : vector<128x128xf32> to vector<32x128xf32>
    %55 = vector.shape_cast %54 : vector<32x128xf32> to vector<8x4x128xf32>
    %cst_28 = arith.constant dense<0.000000e+00> : vector<8x128x128xf32>
    %56 = tpu.matmul %51, %55, %cst_28 {dimension_numbers = #tpu.dot_dimension_numbers<[1], [1], [2], [2], [0, 0, 0, 2, 1, 2], [0], [0]>} : vector<8x4x128xf32>, vector<8x4x128xf32>, vector<8x128x128xf32> -> vector<8x128x128xf32>
    %57 = vector.shape_cast %4 : vector<128x128xi1> to vector<1x128x128xi1>
    %cst_29 = arith.constant -1.000000e+30 : f32
    %58 = vector.shape_cast %57 : vector<1x128x128xi1> to vector<1x128x128xi1>
    %59 = vector.broadcast %58 : vector<1x128x128xi1> to vector<8x128x128xi1>
    %60 = vector.broadcast %cst_29 : f32 to vector<8x128x128xf32>
    %61 = arith.select %59, %56, %60 : vector<8x128x128xi1>, vector<8x128x128xf32>
    %cst_30 = arith.constant dense<0xFF800000> : vector<8x128xf32>
    %62 = vector.multi_reduction <maximumf>, %61, %cst_30 [2] : vector<8x128x128xf32> to vector<8x128xf32>
    %63 = vector.shape_cast %62 : vector<8x128xf32> to vector<8x128x1xf32>
    %64 = vector.broadcast %63 : vector<8x128x1xf32> to vector<8x128x128xf32>
    %65 = arith.subf %61, %64 : vector<8x128x128xf32>
    %66 = math.exp %65 : vector<8x128x128xf32>
    %cst_31 = arith.constant dense<0.000000e+00> : vector<8x128xf32>
    %67 = vector.multi_reduction <add>, %66, %cst_31 [2] : vector<8x128x128xf32> to vector<8x128xf32>
    %68 = vector.shape_cast %67 : vector<8x128xf32> to vector<8x128x1xf32>
    %69 = tpu.reciprocal %68 : vector<8x128x1xf32> -> vector<8x128x1xf32>
    %70 = vector.broadcast %69 : vector<8x128x1xf32> to vector<8x128x128xf32>
    %71 = arith.mulf %66, %70 : vector<8x128x128xf32>
    %cst_32 = arith.constant dense<0.000000e+00> : vector<8x4x128xf32>
    %72 = tpu.matmul %53, %71, %cst_32 {dimension_numbers = #tpu.dot_dimension_numbers<[2], [2], [1], [1], [0, 0, 0, 1, 1, 1], [0], [0]>} : vector<8x4x128xf32>, vector<8x128x128xf32>, vector<8x4x128xf32> -> vector<8x4x128xf32>
    %73 = vector.shape_cast %72 : vector<8x4x128xf32> to vector<32x128xf32>
    %cst_33 = arith.constant dense<0.000000e+00> : vector<128x128xf32>
    %74 = tpu.matmul %47, %73, %cst_33 {dimension_numbers = #tpu.dot_dimension_numbers<[0], [0], [1], [1], [0, 1, 1, 1], [], []>} : vector<32x128xf32>, vector<32x128xf32>, vector<128x128xf32> -> vector<128x128xf32>
    %75 = vector.extract_strided_slice %74 {offsets = [96, 0], sizes = [32, 128], strides = [1, 1]} : vector<128x128xf32> to vector<32x128xf32>
    %c1_34 = arith.constant 1 : index
    %c0_35 = arith.constant 0 : index
    %c0_36 = arith.constant 0 : index
    %76 = vector.load %arg3[%c1_34, %c0_35, %c0_36] : memref<2x32x128xf32, #tpu.memory_space<vmem>>, vector<1x32x128xf32>
    %77 = vector.shape_cast %76 : vector<1x32x128xf32> to vector<32x128xf32>
    %78 = vector.shape_cast %75 : vector<32x128xf32> to vector<1x32x128xf32>
    tpu.vector_store %arg3[%c1_34, %c0_35, %c0_36], %78 {strides = array<i32>} : memref<2x32x128xf32, #tpu.memory_space<vmem>>, vector<1x32x128xf32>,
    return
  }
  func.func @transform_0(%arg0: i32) -> (i32, i32, i32) {
    %c0_i32 = arith.constant 0 : i32
    %c0_i32_0 = arith.constant 0 : i32
    %c0_i32_1 = arith.constant 0 : i32
    %c0_i32_2 = arith.constant 0 : i32
    return %c0_i32, %c0_i32_0, %c0_i32_1 : i32, i32, i32
  }
  func.func @transform_1(%arg0: i32) -> (i32, i32, i32) {
    %c0_i32 = arith.constant 0 : i32
    %c0_i32_0 = arith.constant 0 : i32
    %c0_i32_1 = arith.constant 0 : i32
    return %arg0, %c0_i32, %c0_i32_0 : i32, i32, i32
  }
  func.func @transform_2(%arg0: i32) -> (i32, i32, i32) {
    %c0_i32 = arith.constant 0 : i32
    %c0_i32_0 = arith.constant 0 : i32
    %c0_i32_1 = arith.constant 0 : i32
    return %arg0, %c0_i32, %c0_i32_0 : i32, i32, i32
  }
}

</mosaic_0001>

<bundles_post_ra>
// kernel: low_mixer2.1
= control target key start
LH: loop header
LB: loop body
LE: loop exit
PB: predicated region body
PF: predicated region fallthrough
CT: control target
= control target key end

     0   :  { %vm17723_vm0 = vcmask 261120   ;;  %vm17714_vm1 = vcmask 1043456   ;;  %vm17719_vm2 = vcmask 31744   ;;  %s17682_s1 = inlined_call_operand.vmem [shape: f32[2,32,128], index: 1, kind: input, shape index: {}]   ;;  %s17683_s0 = inlined_call_operand.vmem [shape: f32[2,32,128], index: 0, kind: input, shape index: {}]   ;;  %s17684_s2 = inlined_call_operand.vmem [shape: f32[2,32,128], index: 2, kind: output, shape index: {}]  }
   0x1   :  { %v71_v0 = vld [vmem:[%s17682_s1] sm:$0xff]  ;;  %v72_v1 = vld [vmem:[%s17682_s1 + $0x8] sm:$0xff]  ;;  %v64_v7 = vld [vmem:[%s17683_s0 + $0x10] sm:$0xff] }
   0x2   :  { %75 = vxpose.xlu0.b32.start [1/4] (short) %v71_v0, 128  ;;  %v62_v2 = vld [vmem:[%s17683_s0] sm:$0xff]  ;;  %v63_v3 = vld [vmem:[%s17683_s0 + $0x8] sm:$0xff]  ;;  %v65_v9 = vld [vmem:[%s17683_s0 + $0x18] sm:$0xff] }
   0x3   :  { %v10726_v4 = vpack.c.bf16 %v63_v3, %v62_v2  ;;  %v8510_v5 = vld [vmem:[%s17683_s0 + $0x20] sm:$0xff]  ;;  %v8511_v6 = vld [vmem:[%s17683_s0 + $0x28] sm:$0xff]  ;;  %v8512_v10 = vld [vmem:[%s17683_s0 + $0x30] sm:$0xff]  ;;  %v10730_v12 = vpack.c.bf16 %v65_v9, %v64_v7 }
   0x4   :  { %v10734_v8 = vpack.c.bf16 %v8511_v6, %v8510_v5  ;;  %v8513_v11 = vld [vmem:[%s17683_s0 + $0x38] sm:$0xff]  ;;  %v73_v14 = vld [vmem:[%s17682_s1 + $0x10] sm:$0xff] }
   0x5   :  { %10727 = vmatprep.subr.bf16.mxu0 %v10726_v4  ;;  %v10738_v13 = vpack.c.bf16 %v8513_v11, %v8512_v10  ;;  %v74_v15 = vld [vmem:[%s17682_s1 + $0x18] sm:$0xff] }
   0x6   :  { %76 = vxpose.xlu0.b32.cont [2/4] (short) %v72_v1, 128  ;;  %10735 = vmatprep.subr.bf16.mxu1 %v10734_v8 }
   0x7   :  { %10729 = vmatpush3.bf16.msra.mxu0 %v10726_v4  ;;  %10737 = vmatpush3.bf16.msra.mxu1 %v10734_v8 }
   0x8   :  { %10731 = vmatprep.subr.bf16.mxu0 %v10730_v12  ;;  %10739 = vmatprep.subr.bf16.mxu1 %v10738_v13 }
   0xa   :  { %77 = vxpose.xlu0.b32.cont [3/4] (short) %v73_v14, 128 }
   0xb   :  { %10733 = vmatpush3.bf16.msra.mxu0 %v10730_v12  ;;  %10741 = vmatpush3.bf16.msra.mxu1 %v10738_v13 }
   0xe   :  { %78 = vxpose.xlu0.b32.end [4/4] (short) %v74_v15, 128 }
  0x82   :  { %v12239_v16 = vpop.trf.xlu0 }
  0x83   :  { %18212 = vst [vmem:[#allocation2_spill] sm:$0xff] %v12239_v16  ;;  %9566 = vmatprep.mubr.msk.f32.mxu0 %vm17723_vm0, %v12239_v16  ;;  %9598 = vmatprep.mubr.msk.f32.mxu1 %vm17723_vm0, %v12239_v16 }
  0x86   :  { %v12245_v17 = vpop.trf.xlu0 }
  0x87   :  { %18213 = vst [vmem:[#allocation3_spill] sm:$0xff] %v12245_v17  ;;  %9567 = vmatmul.mubr.msk.f32.vlgmr.msra.gmra.mrb[0].mxu0 %vm17723_vm0, %v12245_v17  ;;  %9599 = vmatmul.mubr.msk.f32.vlgmr.msra.gmra.mrb[0].mxu1 %vm17723_vm0, %v12245_v17 }
  0x8a   :  { %v12251_v18 = vpop.trf.xlu0 }
  0x8b   :  { %18214 = vst [vmem:[#allocation4_spill] sm:$0xff] %v12251_v18  ;;  %9601 = vmatprep.mubr.msk.f32.mxu1 %vm17723_vm0, %v12251_v18  ;;  %9569 = vmatprep.mubr.msk.f32.mxu0 %vm17723_vm0, %v12251_v18 }
  0x8e   :  { %v12257_v19 = vpop.trf.xlu0 }
  0x8f   :  { %18215 = vst [vmem:[#allocation5_spill] sm:$0xff] %v12257_v19  ;;  %9602 = vmatmul.mubr.msk.f32.gmra.mrb[2].mxu1 %vm17723_vm0, %v12257_v19  ;;  %9570 = vmatmul.mubr.msk.f32.gmra.mrb[2].mxu0 %vm17723_vm0, %v12257_v19 }
  0x92   :  { %v12263_v20 = vpop.trf.xlu0 }
  0x93   :  { %18216 = vst [vmem:[#allocation6_spill] sm:$0xff] %v12263_v20  ;;  %9604 = vmatprep.mubr.msk.f32.mxu1 %vm17723_vm0, %v12263_v20  ;;  %9572 = vmatprep.mubr.msk.f32.mxu0 %vm17723_vm0, %v12263_v20 }
  0x96   :  { %v12269_v21 = vpop.trf.xlu0 }
  0x97   :  { %18217 = vst [vmem:[#allocation7_spill] sm:$0xff] %v12269_v21  ;;  %9605 = vmatmul.mubr.msk.f32.gmra.mrb[4].mxu1 %vm17723_vm0, %v12269_v21  ;;  %9573 = vmatmul.mubr.msk.f32.gmra.mrb[4].mxu0 %vm17723_vm0, %v12269_v21 }
  0x9a   :  { %v12275_v22 = vpop.trf.xlu0 }
  0x9b   :  { %18218 = vst [vmem:[#allocation8_spill] sm:$0xff] %v12275_v22  ;;  %9607 = vmatprep.mubr.msk.f32.mxu1 %vm17723_vm0, %v12275_v22  ;;  %9575 = vmatprep.mubr.msk.f32.mxu0 %vm17723_vm0, %v12275_v22 }
  0x9e   :  { %v12281_v23 = vpop.trf.xlu0 }
  0x9f   :  { %18219 = vst [vmem:[#allocation9_spill] sm:$0xff] %v12281_v23  ;;  %9608 = vmatmul.mubr.msk.f32.gmra.mrb[6].mxu1 %vm17723_vm0, %v12281_v23  ;;  %9576 = vmatmul.mubr.msk.f32.gmra.mrb[6].mxu0 %vm17723_vm0, %v12281_v23 }
  0xa2   :  { %v12287_v24 = vpop.trf.xlu0 }
  0xa3   :  { %18220 = vst [vmem:[#allocation10_spill] sm:$0xff] %v12287_v24  ;;  %9610 = vmatprep.mubr.msk.f32.mxu1 %vm17723_vm0, %v12287_v24  ;;  %9578 = vmatprep.mubr.msk.f32.mxu0 %vm17723_vm0, %v12287_v24 }
  0xa6   :  { %v12293_v25 = vpop.trf.xlu0 }
  0xa7   :  { %18221 = vst [vmem:[#allocation11_spill] sm:$0xff] %v12293_v25  ;;  %9611 = vmatmul.mubr.msk.f32.gmra.mrb[8].mxu1 %vm17723_vm0, %v12293_v25  ;;  %9579 = vmatmul.mubr.msk.f32.gmra.mrb[8].mxu0 %vm17723_vm0, %v12293_v25 }
  0xaa   :  { %v12299_v26 = vpop.trf.xlu0 }
  0xab   :  { %18222 = vst [vmem:[#allocation12_spill] sm:$0xff] %v12299_v26  ;;  %9613 = vmatprep.mubr.msk.f32.mxu1 %vm17723_vm0, %v12299_v26  ;;  %9581 = vmatprep.mubr.msk.f32.mxu0 %vm17723_vm0, %v12299_v26 }
  0xae   :  { %v12305_v27 = vpop.trf.xlu0 }
  0xaf   :  { %18223 = vst [vmem:[#allocation13_spill] sm:$0xff] %v12305_v27  ;;  %9614 = vmatmul.mubr.msk.f32.gmra.mrb[10].mxu1 %vm17723_vm0, %v12305_v27  ;;  %9582 = vmatmul.mubr.msk.f32.gmra.mrb[10].mxu0 %vm17723_vm0, %v12305_v27 }
  0xb2   :  { %v12311_v28 = vpop.trf.xlu0 }
  0xb3   :  { %18224 = vst [vmem:[#allocation14_spill] sm:$0xff] %v12311_v28  ;;  %9584 = vmatprep.mubr.msk.f32.mxu0 %vm17723_vm0, %v12311_v28  ;;  %9616 = vmatprep.mubr.msk.f32.mxu1 %vm17723_vm0, %v12311_v28 }
  0xb6   :  { %v12317_v29 = vpop.trf.xlu0 }
  0xb7   :  { %18225 = vst [vmem:[#allocation15_spill] sm:$0xff] %v12317_v29  ;;  %9585 = vmatmul.mubr.msk.f32.gmra.mrb[12].mxu0 %vm17723_vm0, %v12317_v29  ;;  %9617 = vmatmul.mubr.msk.f32.gmra.mrb[12].mxu1 %vm17723_vm0, %v12317_v29 }
  0xba   :  { %v12323_v30 = vpop.trf.xlu0 }
  0xbb   :  { %18226 = vst [vmem:[#allocation16_spill] sm:$0xff] %v12323_v30  ;;  %9587 = vmatprep.mubr.msk.f32.mxu0 %vm17723_vm0, %v12323_v30  ;;  %9619 = vmatprep.mubr.msk.f32.mxu1 %vm17723_vm0, %v12323_v30 }
  0xbe   :  { %v12329_v31 = vpop.trf.xlu0 }
  0xbf   :  { %18227 = vst [vmem:[#allocation17_spill] sm:$0xff] %v12329_v31  ;;  %9588 = vmatmul.mubr.msk.f32.gmra.mrb[14].mxu0 %vm17723_vm0, %v12329_v31  ;;  %9620 = vmatmul.mubr.msk.f32.gmra.mrb[14].mxu1 %vm17723_vm0, %v12329_v31 }
 0x15a   :  { %v9568_v32 = vpop.f32.mrb[0].mxu0  ;;  %v9600_v33 = vpop.f32.mrb[0].mxu1 }
 0x15b   :  { %v359_v34 = vpop.f32.mrb[1].mxu1  ;;  %914 = vxpose.xlu0.b32.start.end [1/1] (short) %v9568_v32, 128  ;;  %v222_v35 = vpop.f32.mrb[1].mxu0  ;;  %v431_v54 = vcombine.high %v9568_v32, %v9568_v32 }
 0x15c   :  { %458 = vxpose.xlu1.b32.start.end [1/1] (short) %v222_v35, 128  ;;  %v430_v55 = vcombine.high %v222_v35, %v222_v35 }
 0x162   :  { %v9571_v36 = vpop.f32.mrb[2].mxu0  ;;  %v9603_v37 = vpop.f32.mrb[2].mxu1 }
 0x163   :  { %v367_v38 = vpop.f32.mrb[3].mxu1  ;;  %v12335_v43 = vpop.f32.mrb[3].mxu0  ;;  %v433_v56 = vcombine.high %v9571_v36, %v9571_v36 }
 0x16a   :  { %v9606_v39 = vpop.f32.mrb[4].mxu1  ;;  %v12344_v48 = vpop.f32.mrb[4].mxu0 }
 0x16b   :  { %v375_v40 = vpop.f32.mrb[5].mxu1  ;;  %18228 = vst [vmem:[#allocation18_spill] sm:$0xff] %v12344_v48  ;;  %v12348_v49 = vpop.f32.mrb[5].mxu0 }
 0x16c   :  { %18229 = vst [vmem:[#allocation19_spill] sm:$0xff] %v12348_v49 }
 0x172   :  { %v9609_v41 = vpop.f32.mrb[6].mxu1  ;;  %v12350_v50 = vpop.f32.mrb[6].mxu0 }
 0x173   :  { %v383_v42 = vpop.f32.mrb[7].mxu1  ;;  %18230 = vst [vmem:[#allocation20_spill] sm:$0xff] %v12350_v50  ;;  %v12352_v51 = vpop.f32.mrb[7].mxu0  ;;  %v432_v41 = vcombine.high %v12335_v43, %v12335_v43 }
 0x174   :  { %18231 = vst [vmem:[#allocation21_spill] sm:$0xff] %v12352_v51 }
 0x17a   :  { %v9612_v44 = vpop.f32.mrb[8].mxu1  ;;  %v9580_v52 = vpop.f32.mrb[8].mxu0 }
 0x17b   :  { %v391_v45 = vpop.f32.mrb[9].mxu1  ;;  %v12337_v46 = vcombine.high %v9612_v44, %v9612_v44  ;;  %v262_v53 = vpop.f32.mrb[9].mxu0 }
 0x17c   :  { %v454_v47 = vcombine.high %v391_v45, %v391_v45  ;;  %9622 = vmatprep.subr.msk.mxu0 %vm17714_vm1, %v391_v45 }
 0x17d   :  { %9623 = vmatpush3.msk.msra.mxu0 %vm17714_vm1, %v391_v45 }
 0x17e   :  { %9674 = vmatprep.subr.msk.mxu0 %vm17714_vm1, %v9612_v44  ;;  %9648 = vmatprep.subr.msk.mxu1 %vm17714_vm1, %v454_v47 }
 0x17f   :  { %9649 = vmatpush3.msk.msra.mxu1 %vm17714_vm1, %v454_v47 }
 0x180   :  { %9700 = vmatprep.subr.msk.mxu1 %vm17714_vm1, %v12337_v46 }
 0x182   :  { %v9583_v5 = vpop.f32.mrb[10].mxu0 }
 0x183   :  { %v270_v6 = vpop.f32.mrb[11].mxu0 }
 0x18a   :  { %v9586_v11 = vpop.f32.mrb[12].mxu0 }
 0x18b   :  { %v278_v12 = vpop.f32.mrb[13].mxu0 }
 0x198   :  { %1141 = vxpose.xlu0.b32.start.end [1/1] (short) %v431_v54, 128  ;;  %v12381_v54 = vpop.f32.mrb[10].mxu1 }
 0x199   :  { %687 = vxpose.xlu1.b32.start.end [1/1] (short) %v430_v55, 128  ;;  %v401_v55 = vpop.f32.mrb[11].mxu1 }
 0x1d5   :  { %2049 = vxpose.xlu0.b32.start.end [1/1] (short) %v433_v56, 128 }
 0x1d6   :  { %1822 = vxpose.xlu1.b32.start.end [1/1] (short) %v9571_v36, 128 }
 0x1db   :  { %v930_v57 = vpop.trf.xlu0 }
 0x1dc   :  { %v474_v58 = vpop.trf.xlu1 }
 0x1dd   :  { %9624 = vmatprep.mubr.msk.f32.mxu0 %vm17719_vm2, %v474_v58  ;;  %v12389_v58 = vcombine.high %v401_v55, %v401_v55 }
 0x1df   :  { %v931_v59 = vpop.trf.xlu0 }
 0x1e0   :  { %v475_v60 = vpop.trf.xlu1 }
 0x1e1   :  { %9625 = vmatmul.mubr.msk.f32.vlgmr.msra.gmra.mrb[16].mxu0 %vm17719_vm2, %v475_v60 }
 0x1e2   :  { %9675 = vmatpush3.msk.msra.mxu0 %vm17714_vm1, %v9612_v44 }
 0x1e3   :  { %v932_v61 = vpop.trf.xlu0  ;;  %9726 = vmatprep.subr.msk.mxu0 %vm17714_vm1, %v401_v55 }
 0x1e4   :  { %v476_v62 = vpop.trf.xlu1 }
 0x1e5   :  { %9627 = vmatprep.mubr.msk.f32.mxu0 %vm17719_vm2, %v476_v62 }
 0x1e7   :  { %v12358_v63 = vpop.trf.xlu0 }
 0x1e8   :  { %v477_v0 = vpop.trf.xlu1 }
 0x1e9   :  { %9628 = vmatmul.mubr.msk.f32.gmra.mrb[18].mxu0 %vm17719_vm2, %v477_v0 }
 0x1eb   :  { %v934_v1 = vpop.trf.xlu0 }
 0x1ec   :  { %v478_v2 = vpop.trf.xlu1 }
 0x1ed   :  { %9630 = vmatprep.mubr.msk.f32.mxu0 %vm17719_vm2, %v478_v2 }
 0x1ef   :  { %v12362_v3 = vpop.trf.xlu0 }
 0x1f0   :  { %v479_v4 = vpop.trf.xlu1 }
 0x1f1   :  { %9631 = vmatmul.mubr.msk.f32.gmra.mrb[20].mxu0 %vm17719_vm2, %v479_v4 }
 0x1f3   :  { %v936_v7 = vpop.trf.xlu0 }
 0x1f4   :  { %v480_v8 = vpop.trf.xlu1 }
 0x1f5   :  { %9633 = vmatprep.mubr.msk.f32.mxu0 %vm17719_vm2, %v480_v8  ;;  %v11_v8 = vlaneseq }
 0x1f7   :  { %v937_v9 = vpop.trf.xlu0  ;;  %v12430_v11 = vshrl.u32 %v11_v8, 7 }
 0x1f8   :  { %v481_v10 = vpop.trf.xlu1 }
 0x1f9   :  { %9634 = vmatmul.mubr.msk.f32.gmra.mrb[22].mxu0 %vm17719_vm2, %v481_v10 }
 0x1fb   :  { %v938_v13 = vpop.trf.xlu0 }
 0x1fc   :  { %v482_v14 = vpop.trf.xlu1 }
 0x1fd   :  { %9636 = vmatprep.mubr.msk.f32.mxu0 %vm17719_vm2, %v482_v14  ;;  %v12437_v14 = vadd.s32 24, %v12430_v11 }
 0x1ff   :  { %v939_v15 = vpop.trf.xlu0 }
 0x200   :  { %v483_v32 = vpop.trf.xlu1 }
 0x201   :  { %9637 = vmatmul.mubr.msk.f32.gmra.mrb[24].mxu0 %vm17719_vm2, %v483_v32 }
 0x203   :  { %v940_v33 = vpop.trf.xlu0 }
 0x204   :  { %v484_v34 = vpop.trf.xlu1 }
 0x205   :  { %9639 = vmatprep.mubr.msk.f32.mxu0 %vm17719_vm2, %v484_v34 }
 0x207   :  { %v941_v35 = vpop.trf.xlu0 }
 0x208   :  { %v485_v36 = vpop.trf.xlu1 }
 0x209   :  { %9640 = vmatmul.mubr.msk.f32.gmra.mrb[26].mxu0 %vm17719_vm2, %v485_v36 }
 0x20b   :  { %v942_v37 = vpop.trf.xlu0 }
 0x20c   :  { %v486_v38 = vpop.trf.xlu1 }
 0x20d   :  { %9642 = vmatprep.mubr.msk.f32.mxu0 %vm17719_vm2, %v486_v38  ;;  %v12453_v38 = vadd.s32 40, %v12430_v11 }
 0x20f   :  { %v943_v39 = vpop.trf.xlu0 }
 0x210   :  { %v487_v40 = vpop.trf.xlu1 }
 0x211   :  { %9643 = vmatmul.mubr.msk.f32.gmra.mrb[28].mxu0 %vm17719_vm2, %v487_v40 }
 0x213   :  { %v944_v42 = vpop.trf.xlu0  ;;  %1595 = vxpose.xlu0.b32.start.end [1/1] (short) %v432_v41, 128 }
 0x214   :  { %v488_v44 = vpop.trf.xlu1  ;;  %1368 = vxpose.xlu1.b32.start.end [1/1] (short) %v12335_v43, 128  ;;  %v9618_v43 = vpop.f32.mrb[12].mxu1 }
 0x215   :  { %9645 = vmatprep.mubr.msk.f32.mxu0 %vm17719_vm2, %v488_v44 }
 0x217   :  { %v945_v45 = vpop.trf.xlu0 }
 0x218   :  { %v489_v47 = vpop.trf.xlu1 }
 0x219   :  { %9646 = vmatmul.mubr.msk.f32.gmra.mrb[30].mxu0 %vm17719_vm2, %v489_v47 }
 0x21a   :  { %9676 = vmatprep.mubr.msk.f32.mxu0 %vm17719_vm2, %v930_v57  ;;  %v411_v57 = vpop.f32.mrb[13].mxu1 }
 0x21b   :  { %v12379_v52 = vpop.trf.xlu0  ;;  %v9621_v0 = vpop.f32.mrb[14].mxu1 }
 0x21c   :  { %v703_v53 = vpop.trf.xlu1  ;;  %v419_v2 = vpop.f32.mrb[15].mxu1  ;;  %v12479_v0 = vadd.s32 72, %v12430_v11 }
 0x21d   :  { %9650 = vmatprep.mubr.msk.f32.mxu1 %vm17719_vm2, %v703_v53  ;;  %9677 = vmatmul.mubr.msk.f32.vlgmr.msra.gmra.mrb[32].mxu0 %vm17719_vm2, %v931_v59  ;;  %v12467_v53 = vadd.s32 56, %v12430_v11 }
 0x21e   :  { %9679 = vmatprep.mubr.msk.f32.mxu0 %vm17719_vm2, %v932_v61  ;;  %9727 = vmatpush3.msk.msra.mxu0 %vm17714_vm1, %v401_v55  ;;  %v12470_v55 = vadd.s32 48, %v12430_v11 }
 0x21f   :  { %v12387_v56 = vpop.trf.xlu0  ;;  %9778 = vmatprep.subr.msk.mxu0 %vm17714_vm1, %v12381_v54 }
 0x220   :  { %v704_v60 = vpop.trf.xlu1 }
 0x221   :  { %9651 = vmatmul.mubr.msk.f32.vlgmr.msra.gmra.mrb[16].mxu1 %vm17719_vm2, %v704_v60  ;;  %9680 = vmatmul.mubr.msk.f32.gmra.mrb[34].mxu0 %vm17719_vm2, %v12358_v63 }
 0x222   :  { %9701 = vmatpush3.msk.msra.mxu1 %vm17714_vm1, %v12337_v46  ;;  %9682 = vmatprep.mubr.msk.f32.mxu0 %vm17719_vm2, %v934_v1  ;;  %v9589_v46 = vpop.f32.mrb[14].mxu0 }
 0x223   :  { %v12400_v59 = vpop.trf.xlu0  ;;  %9752 = vmatprep.subr.msk.mxu1 %vm17714_vm1, %v12389_v58  ;;  %v286_v1 = vpop.f32.mrb[15].mxu0 }
 0x224   :  { %v705_v61 = vpop.trf.xlu1  ;;  %v12482_v1 = vadd.s32 64, %v12430_v11 }
 0x225   :  { %9683 = vmatmul.mubr.msk.f32.gmra.mrb[36].mxu0 %vm17719_vm2, %v12362_v3  ;;  %9653 = vmatprep.mubr.msk.f32.mxu1 %vm17719_vm2, %v705_v61  ;;  %v12556_v61 = vadd.s32 112, %v12430_v11 }
 0x226   :  { %9685 = vmatprep.mubr.msk.f32.mxu0 %vm17719_vm2, %v936_v7 }
 0x227   :  { %v12408_v62 = vpop.trf.xlu0 }
 0x228   :  { %v706_v63 = vpop.trf.xlu1 }
 0x229   :  { %9686 = vmatmul.mubr.msk.f32.gmra.mrb[38].mxu0 %vm17719_vm2, %v937_v9  ;;  %9654 = vmatmul.mubr.msk.f32.gmra.mrb[18].mxu1 %vm17719_vm2, %v706_v63 }
 0x22a   :  { %9688 = vmatprep.mubr.msk.f32.mxu0 %vm17719_vm2, %v938_v13  ;;  %v12434_v13 = vand.u32 127, %v11_v8 }
 0x22b   :  { %v12413_v4 = vpop.trf.xlu0 }
 0x22c   :  { %v707_v3 = vpop.trf.xlu1 }
 0x22d   :  { %9689 = vmatmul.mubr.msk.f32.gmra.mrb[40].mxu0 %vm17719_vm2, %v939_v15  ;;  %9656 = vmatprep.mubr.msk.f32.mxu1 %vm17719_vm2, %v707_v3  ;;  %v12440_v15 = vadd.s32 16, %v12430_v11 }
 0x22e   :  { %9691 = vmatprep.mubr.msk.f32.mxu0 %vm17719_vm2, %v940_v33 }
 0x22f   :  { %v12418_v5 = vpop.trf.xlu0 }
 0x230   :  { %v708_v6 = vpop.trf.xlu1 }
 0x231   :  { %9692 = vmatmul.mubr.msk.f32.gmra.mrb[42].mxu0 %vm17719_vm2, %v941_v35  ;;  %9657 = vmatmul.mubr.msk.f32.gmra.mrb[20].mxu1 %vm17719_vm2, %v708_v6 }
 0x232   :  { %9694 = vmatprep.mubr.msk.f32.mxu0 %vm17719_vm2, %v942_v37 }
 0x233   :  { %v12423_v7 = vpop.trf.xlu0 }
 0x234   :  { %v709_v9 = vpop.trf.xlu1 }
 0x235   :  { %9695 = vmatmul.mubr.msk.f32.gmra.mrb[44].mxu0 %vm17719_vm2, %v943_v39  ;;  %9659 = vmatprep.mubr.msk.f32.mxu1 %vm17719_vm2, %v709_v9  ;;  %v12456_v39 = vadd.s32 32, %v12430_v11 }
 0x236   :  { %9697 = vmatprep.mubr.msk.f32.mxu0 %vm17719_vm2, %v944_v42 }
 0x237   :  { %v12428_v10 = vpop.trf.xlu0 }
 0x238   :  { %v710_v12 = vpop.trf.xlu1 }
 0x239   :  { %9698 = vmatmul.mubr.msk.f32.gmra.mrb[46].mxu0 %vm17719_vm2, %v945_v45  ;;  %9660 = vmatmul.mubr.msk.f32.gmra.mrb[22].mxu1 %vm17719_vm2, %v710_v12 }
 0x23b   :  { %v12442_v32 = vpop.trf.xlu0 }
 0x23c   :  { %v711_v34 = vpop.trf.xlu1 }
 0x23d   :  { %9662 = vmatprep.mubr.msk.f32.mxu1 %vm17719_vm2, %v711_v34  ;;  %v12491_v34 = vadd.s32 88, %v12430_v11 }
 0x23f   :  { %v12449_v36 = vpop.trf.xlu0 }
 0x240   :  { %v712_v37 = vpop.trf.xlu1 }
 0x241   :  { %9663 = vmatmul.mubr.msk.f32.gmra.mrb[24].mxu1 %vm17719_vm2, %v712_v37  ;;  %v12496_v37 = vadd.s32 80, %v12430_v11 }
 0x243   :  { %v12458_v40 = vpop.trf.xlu0 }
 0x244   :  { %v713_v42 = vpop.trf.xlu1 }
 0x245   :  { %9665 = vmatprep.mubr.msk.f32.mxu1 %vm17719_vm2, %v713_v42 }
 0x247   :  { %v1168_v45 = vpop.trf.xlu0 }
 0x248   :  { %v714_v47 = vpop.trf.xlu1 }
 0x249   :  { %9666 = vmatmul.mubr.msk.f32.gmra.mrb[26].mxu1 %vm17719_vm2, %v714_v47  ;;  %v12502_v47 = vcombine.high %v12381_v54, %v12381_v54 }
 0x24b   :  { %v1169_v43 = vpop.trf.xlu0 }
 0x24c   :  { %v715_v60 = vpop.trf.xlu1 }
 0x24d   :  { %9668 = vmatprep.mubr.msk.f32.mxu1 %vm17719_vm2, %v715_v60 }
 0x24f   :  { %v1170_v63 = vpop.trf.xlu0 }
 0x250   :  { %v716_v46 = vpop.trf.xlu1 }
 0x251   :  { %9669 = vmatmul.mubr.msk.f32.gmra.mrb[28].mxu1 %vm17719_vm2, %v716_v46 }
 0x253   :  { %v1171_v2 = vpop.trf.xlu0 }
 0x254   :  { %v717_v6 = vpop.trf.xlu1 }
 0x255   :  { %9671 = vmatprep.mubr.msk.f32.mxu1 %vm17719_vm2, %v717_v6  ;;  %v12525_v6 = vadd.s32 104, %v12430_v11 }
 0x257   :  { %v1172_v9 = vpop.trf.xlu0 }
 0x258   :  { %v718_v12 = vpop.trf.xlu1 }
 0x259   :  { %9672 = vmatmul.mubr.msk.f32.gmra.mrb[30].mxu1 %vm17719_vm2, %v718_v12 }
 0x25a   :  { %9702 = vmatprep.mubr.msk.f32.mxu1 %vm17719_vm2, %v12379_v52 }
 0x25b   :  { %v12498_v42 = vpop.trf.xlu0 }
 0x25c   :  { %v12506_v46 = vpop.trf.xlu1 }
 0x25d   :  { %9703 = vmatmul.mubr.msk.f32.vlgmr.msra.gmra.mrb[32].mxu1 %vm17719_vm2, %v12387_v56  ;;  %v12530_v56 = vadd.s32 96, %v12430_v11 }
 0x25e   :  { %9705 = vmatprep.mubr.msk.f32.mxu1 %vm17719_vm2, %v12400_v59  ;;  %9753 = vmatpush3.msk.msra.mxu1 %vm17714_vm1, %v12389_v58  ;;  %v12551_v59 = vadd.s32 120, %v12430_v11 }
 0x25f   :  { %v12516_v52 = vpop.trf.xlu0  ;;  %9804 = vmatprep.subr.msk.mxu1 %vm17714_vm1, %v12502_v47 }
 0x260   :  { %v12520_v12 = vpop.trf.xlu1 }
 0x261   :  { %9706 = vmatmul.mubr.msk.f32.gmra.mrb[34].mxu1 %vm17719_vm2, %v12408_v62 }
 0x262   :  { %9708 = vmatprep.mubr.msk.f32.mxu1 %vm17719_vm2, %v12413_v4 }
 0x263   :  { %v12532_v58 = vpop.trf.xlu0 }
 0x264   :  { %v12536_v8 = vpop.trf.xlu1 }
 0x265   :  { %9709 = vmatmul.mubr.msk.f32.gmra.mrb[36].mxu1 %vm17719_vm2, %v12418_v5 }
 0x266   :  { %9711 = vmatprep.mubr.msk.f32.mxu1 %vm17719_vm2, %v12423_v7 }
 0x267   :  { %v12544_v62 = vpop.trf.xlu0 }
 0x268   :  { %v12546_v4 = vpop.trf.xlu1 }
 0x269   :  { %9712 = vmatmul.mubr.msk.f32.gmra.mrb[38].mxu1 %vm17719_vm2, %v12428_v10 }
 0x26a   :  { %9714 = vmatprep.mubr.msk.f32.mxu1 %vm17719_vm2, %v12442_v32 }
 0x26b   :  { %v12558_v5 = vpop.trf.xlu0 }
 0x26c   :  { %v12562_v57 = vpop.trf.xlu1 }
 0x26d   :  { %9715 = vmatmul.mubr.msk.f32.gmra.mrb[40].mxu1 %vm17719_vm2, %v12449_v36 }
 0x26e   :  { %9717 = vmatprep.mubr.msk.f32.mxu1 %vm17719_vm2, %v12458_v40 }
 0x26f   :  { %v12570_v10 = vpop.trf.xlu0 }
 0x270   :  { %v12572_v32 = vpop.trf.xlu1 }
 0x271   :  { %9718 = vmatmul.mubr.msk.f32.gmra.mrb[42].mxu1 %vm17719_vm2, %v1168_v45 }
 0x272   :  { %9720 = vmatprep.mubr.msk.f32.mxu1 %vm17719_vm2, %v1169_v43 }
 0x273   :  { %v12576_v7 = vpop.trf.xlu0 }
 0x274   :  { %v12578_v3 = vpop.trf.xlu1 }
 0x275   :  { %9721 = vmatmul.mubr.msk.f32.gmra.mrb[44].mxu1 %vm17719_vm2, %v1170_v63 }
 0x276   :  { %9723 = vmatprep.mubr.msk.f32.mxu1 %vm17719_vm2, %v1171_v2 }
 0x277   :  { %v12582_v36 = vpop.trf.xlu0 }
 0x278   :  { %v12584_v60 = vpop.trf.xlu1 }
 0x279   :  { %9724 = vmatmul.mubr.msk.f32.gmra.mrb[46].mxu1 %vm17719_vm2, %v1172_v9 }
 0x27b   :  { %v12587_v40 = vpop.trf.xlu0 }
 0x27c   :  { %v12589_v44 = vpop.trf.xlu1 }
 0x27f   :  { %v12591_v45 = vpop.trf.xlu0 }
 0x280   :  { %v12593_v43 = vpop.trf.xlu1 }
 0x283   :  { %v12595_v41 = vpop.trf.xlu0 }
 0x284   :  { %v12597_v35 = vpop.trf.xlu1 }
 0x287   :  { %v12599_v63 = vpop.trf.xlu0 }
 0x288   :  { %v12601_v2 = vpop.trf.xlu1 }
 0x28b   :  { %v12603_v33 = vpop.trf.xlu0 }
 0x28c   :  { %v12605_v31 = vpop.trf.xlu1 }
 0x28f   :  { %v12607_v9 = vpop.trf.xlu0 }
 0x290   :  { %v12609_v30 = vpop.trf.xlu1 }
 0x293   :  { %v12611_v29 = vpop.trf.xlu0 }
 0x294   :  { %v12613_v28 = vpop.trf.xlu1 }
 0x297   :  { %v12615_v27 = vpop.trf.xlu0 }
 0x298   :  { %v12617_v26 = vpop.trf.xlu1 }
 0x29b   :  { %v1611_v25 = vpop.trf.xlu0 }
 0x29c   :  { %v1384_v24 = vpop.trf.xlu1  ;;  %9754 = vmatprep.mubr.msk.f32.mxu1 %vm17719_vm2, %v1611_v25 }
 0x29d   :  { %9728 = vmatprep.mubr.msk.f32.mxu0 %vm17719_vm2, %v1384_v24 }
 0x29f   :  { %v1612_v23 = vpop.trf.xlu0 }
 0x2a0   :  { %v1385_v22 = vpop.trf.xlu1  ;;  %9755 = vmatmul.mubr.msk.f32.vlgmr.msra.gmra.mrb[48].mxu1 %vm17719_vm2, %v1612_v23 }
 0x2a1   :  { %9729 = vmatmul.mubr.msk.f32.vlgmr.msra.gmra.mrb[48].mxu0 %vm17719_vm2, %v1385_v22  ;;  %9805 = vmatpush3.msk.msra.mxu1 %vm17714_vm1, %v12502_v47  ;;  %v13_v22 = vadd.s32 8, %v12430_v11 }
 0x2a2   :  { %9779 = vmatpush3.msk.msra.mxu0 %vm17714_vm1, %v12381_v54 }
 0x2a3   :  { %v1613_v21 = vpop.trf.xlu0  ;;  %v31_v54 = vxor.u32 %v12434_v13, %v13_v22 }
 0x2a4   :  { %v1386_v20 = vpop.trf.xlu1  ;;  %9757 = vmatprep.mubr.msk.f32.mxu1 %vm17719_vm2, %v1613_v21 }
 0x2a5   :  { %9731 = vmatprep.mubr.msk.f32.mxu0 %vm17719_vm2, %v1386_v20  ;;  %v30_v20 = vxor.u32 %v12434_v13, %v12430_v11  ;;  %vm12639_vm3 = vcmp.lt.s32.totalorder %v31_v54, 64 }
 0x2a7   :  { %v1614_v25 = vpop.trf.xlu0  ;;  %vm12643_vm4 = vcmp.lt.s32.totalorder %v30_v20, 64 }
 0x2a8   :  { %v1387_v24 = vpop.trf.xlu1  ;;  %9758 = vmatmul.mubr.msk.f32.gmra.mrb[50].mxu1 %vm17719_vm2, %v1614_v25  ;;  %v18232_v25 = vmov 0 }
 0x2a9   :  { %9732 = vmatmul.mubr.msk.f32.gmra.mrb[50].mxu0 %vm17719_vm2, %v1387_v24  ;;  %v18233_v25 = vsel %vm12639_vm3, 4294967295, %v18232_v25 }
 0x2aa   :  { %18234 = vst [vmem:[#allocation22_spill] sm:$0xff] %v18233_v25 }
 0x2ab   :  { %v1615_v23 = vpop.trf.xlu0 }
 0x2ac   :  { %v1388_v19 = vpop.trf.xlu1  ;;  %9760 = vmatprep.mubr.msk.f32.mxu1 %vm17719_vm2, %v1615_v23  ;;  %v18235_v23 = vmov 0 }
 0x2ad   :  { %9734 = vmatprep.mubr.msk.f32.mxu0 %vm17719_vm2, %v1388_v19  ;;  %v18236_v23 = vsel %vm12643_vm4, 4294967295, %v18235_v23 }
 0x2ae   :  { %18237 = vst [vmem:[#allocation23_spill] sm:$0xff] %v18236_v23 }
 0x2af   :  { %v1616_v47 = vpop.trf.xlu0 }
 0x2b0   :  { %v1389_v21 = vpop.trf.xlu1  ;;  %9761 = vmatmul.mubr.msk.f32.gmra.mrb[52].mxu1 %vm17719_vm2, %v1616_v47 }
 0x2b1   :  { %9735 = vmatmul.mubr.msk.f32.gmra.mrb[52].mxu0 %vm17719_vm2, %v1389_v21 }
 0x2b3   :  { %v1617_v24 = vpop.trf.xlu0 }
 0x2b4   :  { %v1390_v19 = vpop.trf.xlu1  ;;  %v9626_v22 = vpop.f32.mrb[16].mxu0  ;;  %9763 = vmatprep.mubr.msk.f32.mxu1 %vm17719_vm2, %v1617_v24 }
 0x2b5   :  { %v12650_v11 = vsel %vm12639_vm3, %v9626_v22, -1e+30  ;;  %v608_v47 = vpop.f32.mrb[17].mxu0  ;;  %9737 = vmatprep.mubr.msk.f32.mxu0 %vm17719_vm2, %v1390_v19 }
 0x2b6   :  { %18238 = vst [vmem:[#allocation24_spill] sm:$0xff] %v12650_v11  ;;  %v12655_v54 = vsel %vm12643_vm4, %v608_v47, -1e+30  ;;  %2438 = vmax.xlane.f32.xlu0 %v12650_v11 }
 0x2b7   :  { %18239 = vst [vmem:[#allocation25_spill] sm:$0xff] %v12655_v54  ;;  %v1618_v20 = vpop.trf.xlu0  ;;  %2436 = vmax.xlane.f32.xlu1 %v12655_v54 }
 0x2b8   :  { %v1391_v21 = vpop.trf.xlu1  ;;  %9764 = vmatmul.mubr.msk.f32.gmra.mrb[54].mxu1 %vm17719_vm2, %v1618_v20 }
 0x2b9   :  { %9738 = vmatmul.mubr.msk.f32.gmra.mrb[54].mxu0 %vm17719_vm2, %v1391_v21 }
 0x2bb   :  { %v1619_v24 = vpop.trf.xlu0 }
 0x2bc   :  { %v1392_v22 = vpop.trf.xlu1  ;;  %v12661_v18 = vpop.f32.mrb[18].mxu0  ;;  %9766 = vmatprep.mubr.msk.f32.mxu1 %vm17719_vm2, %v1619_v24 }
 0x2bd   :  { %v12664_v19 = vpop.f32.mrb[19].mxu0  ;;  %9740 = vmatprep.mubr.msk.f32.mxu0 %vm17719_vm2, %v1392_v22 }
 0x2bf   :  { %v1620_v47 = vpop.trf.xlu0 }
 0x2c0   :  { %v1393_v17 = vpop.trf.xlu1  ;;  %9767 = vmatmul.mubr.msk.f32.gmra.mrb[56].mxu1 %vm17719_vm2, %v1620_v47 }
 0x2c1   :  { %9741 = vmatmul.mubr.msk.f32.gmra.mrb[56].mxu0 %vm17719_vm2, %v1393_v17 }
 0x2c3   :  { %v1621_v16 = vpop.trf.xlu0 }
 0x2c4   :  { %v1394_v20 = vpop.trf.xlu1  ;;  %v12669_v50 = vpop.f32.mrb[20].mxu0  ;;  %9769 = vmatprep.mubr.msk.f32.mxu1 %vm17719_vm2, %v1621_v16 }
 0x2c5   :  { %v12672_v21 = vpop.f32.mrb[21].mxu0  ;;  %9743 = vmatprep.mubr.msk.f32.mxu0 %vm17719_vm2, %v1394_v20 }
 0x2c7   :  { %v1622_v24 = vpop.trf.xlu0 }
 0x2c8   :  { %v1395_v51 = vpop.trf.xlu1  ;;  %9770 = vmatmul.mubr.msk.f32.gmra.mrb[58].mxu1 %vm17719_vm2, %v1622_v24 }
 0x2c9   :  { %9744 = vmatmul.mubr.msk.f32.gmra.mrb[58].mxu0 %vm17719_vm2, %v1395_v51 }
 0x2cb   :  { %v1623_v22 = vpop.trf.xlu0 }
 0x2cc   :  { %v1396_v47 = vpop.trf.xlu1  ;;  %v12677_v48 = vpop.f32.mrb[22].mxu0  ;;  %9772 = vmatprep.mubr.msk.f32.mxu1 %vm17719_vm2, %v1623_v22 }
 0x2cd   :  { %v12680_v17 = vpop.f32.mrb[23].mxu0  ;;  %9746 = vmatprep.mubr.msk.f32.mxu0 %vm17719_vm2, %v1396_v47 }
 0x2cf   :  { %v1624_v16 = vpop.trf.xlu0 }
 0x2d0   :  { %v1397_v49 = vpop.trf.xlu1  ;;  %9773 = vmatmul.mubr.msk.f32.gmra.mrb[60].mxu1 %vm17719_vm2, %v1624_v16 }
 0x2d1   :  { %9747 = vmatmul.mubr.msk.f32.gmra.mrb[60].mxu0 %vm17719_vm2, %v1397_v49 }
 0x2d3   :  { %v1625_v20 = vpop.trf.xlu0 }
 0x2d4   :  { %v1398_v24 = vpop.trf.xlu1  ;;  %v12685_v54 = vpop.f32.mrb[24].mxu0  ;;  %9775 = vmatprep.mubr.msk.f32.mxu1 %vm17719_vm2, %v1625_v20 }
 0x2d5   :  { %v12688_v51 = vpop.f32.mrb[25].mxu0  ;;  %9749 = vmatprep.mubr.msk.f32.mxu0 %vm17719_vm2, %v1398_v24 }
 0x2d7   :  { %v1626_v22 = vpop.trf.xlu0 }
 0x2d8   :  { %v1399_v11 = vpop.trf.xlu1  ;;  %9776 = vmatmul.mubr.msk.f32.gmra.mrb[62].mxu1 %vm17719_vm2, %v1626_v22 }
 0x2d9   :  { %9750 = vmatmul.mubr.msk.f32.gmra.mrb[62].mxu0 %vm17719_vm2, %v1399_v11  ;;  %9806 = vmatprep.mubr.msk.f32.mxu1 %vm17719_vm2, %v12498_v42  ;;  %v18251_v11 = vmov 0 }
 0x2da   :  { %9780 = vmatprep.mubr.msk.f32.mxu0 %vm17719_vm2, %v12506_v46 }
 0x2dc   :  { %v12697_v49 = vpop.f32.mrb[26].mxu0  ;;  %9807 = vmatmul.mubr.msk.f32.vlgmr.msra.gmra.mrb[64].mxu1 %vm17719_vm2, %v12516_v52 }
 0x2dd   :  { %v12701_v47 = vpop.f32.mrb[27].mxu0  ;;  %9781 = vmatmul.mubr.msk.f32.vlgmr.msra.gmra.mrb[64].mxu0 %vm17719_vm2, %v12520_v12  ;;  %9809 = vmatprep.mubr.msk.f32.mxu1 %vm17719_vm2, %v12532_v58 }
 0x2de   :  { %9783 = vmatprep.mubr.msk.f32.mxu0 %vm17719_vm2, %v12536_v8 }
 0x2e0   :  { %9810 = vmatmul.mubr.msk.f32.gmra.mrb[66].mxu1 %vm17719_vm2, %v12544_v62 }
 0x2e1   :  { %9784 = vmatmul.mubr.msk.f32.gmra.mrb[66].mxu0 %vm17719_vm2, %v12546_v4  ;;  %9812 = vmatprep.mubr.msk.f32.mxu1 %vm17719_vm2, %v12558_v5  ;;  %v18245_v5 = vmov 0 }
 0x2e2   :  { %9786 = vmatprep.mubr.msk.f32.mxu0 %vm17719_vm2, %v12562_v57 }
 0x2e4   :  { %v12717_v42 = vpop.f32.mrb[28].mxu0  ;;  %9813 = vmatmul.mubr.msk.f32.gmra.mrb[68].mxu1 %vm17719_vm2, %v12570_v10 }
 0x2e5   :  { %v12721_v46 = vpop.f32.mrb[29].mxu0  ;;  %9787 = vmatmul.mubr.msk.f32.gmra.mrb[68].mxu0 %vm17719_vm2, %v12572_v32  ;;  %9815 = vmatprep.mubr.msk.f32.mxu1 %vm17719_vm2, %v12576_v7 }
 0x2e6   :  { %9789 = vmatprep.mubr.msk.f32.mxu0 %vm17719_vm2, %v12578_v3 }
 0x2e8   :  { %9816 = vmatmul.mubr.msk.f32.gmra.mrb[70].mxu1 %vm17719_vm2, %v12582_v36 }
 0x2e9   :  { %9790 = vmatmul.mubr.msk.f32.gmra.mrb[70].mxu0 %vm17719_vm2, %v12584_v60  ;;  %9818 = vmatprep.mubr.msk.f32.mxu1 %vm17719_vm2, %v12587_v40 }
 0x2ea   :  { %9792 = vmatprep.mubr.msk.f32.mxu0 %vm17719_vm2, %v12589_v44 }
 0x2ec   :  { %v12737_v57 = vpop.f32.mrb[30].mxu0  ;;  %9819 = vmatmul.mubr.msk.f32.gmra.mrb[72].mxu1 %vm17719_vm2, %v12591_v45 }
 0x2ed   :  { %v12741_v8 = vpop.f32.mrb[31].mxu0  ;;  %9793 = vmatmul.mubr.msk.f32.gmra.mrb[72].mxu0 %vm17719_vm2, %v12593_v43  ;;  %9821 = vmatprep.mubr.msk.f32.mxu1 %vm17719_vm2, %v12595_v41 }
 0x2ee   :  { %9795 = vmatprep.mubr.msk.f32.mxu0 %vm17719_vm2, %v12597_v35 }
 0x2f0   :  { %v12749_v3 = vpop.f32.mrb[32].mxu0  ;;  %9822 = vmatmul.mubr.msk.f32.gmra.mrb[74].mxu1 %vm17719_vm2, %v12599_v63 }
 0x2f1   :  { %v12753_v44 = vpop.f32.mrb[33].mxu0  ;;  %9796 = vmatmul.mubr.msk.f32.gmra.mrb[74].mxu0 %vm17719_vm2, %v12601_v2  ;;  %9824 = vmatprep.mubr.msk.f32.mxu1 %vm17719_vm2, %v12603_v33 }
 0x2f2   :  { %9798 = vmatprep.mubr.msk.f32.mxu0 %vm17719_vm2, %v12605_v31 }
 0x2f4   :  { %v9652_v41 = vpop.f32.mrb[16].mxu1  ;;  %v12761_v60 = vpop.f32.mrb[34].mxu0  ;;  %9825 = vmatmul.mubr.msk.f32.gmra.mrb[76].mxu1 %vm17719_vm2, %v12607_v9  ;;  %v18250_v9 = vxor.u32 %v12434_v13, %v12453_v38  ;;  %v18254_v38 = vxor.u32 %v12434_v13, %v12456_v39  ;;  %v18259_v39 = vxor.u32 %v12434_v13, %v12479_v0 }
 0x2f5   :  { %v12767_v35 = vsel %vm12639_vm3, %v9652_v41, -1e+30  ;;  %v835_v52 = vpop.f32.mrb[17].mxu1  ;;  %v12769_v12 = vpop.f32.mrb[35].mxu0  ;;  %9799 = vmatmul.mubr.msk.f32.gmra.mrb[76].mxu0 %vm17719_vm2, %v12609_v30  ;;  %9827 = vmatprep.mubr.msk.f32.mxu1 %vm17719_vm2, %v12611_v29  ;;  %v18240_v29 = vxor.u32 %v12434_v13, %v12437_v14  ;;  %v18244_v14 = vxor.u32 %v12434_v13, %v12440_v15  ;;  %v18255_v41 = vmov 0 }
 0x2f6   :  { %9801 = vmatprep.mubr.msk.f32.mxu0 %vm17719_vm2, %v12613_v28  ;;  %2470 = vmax.xlane.f32.xlu1 %v12767_v35  ;;  %v12784_v33 = vsel %vm12643_vm4, %v835_v52, -1e+30  ;;  %v18241_v28 = vmov 0  ;;  %vm12845_vm7 = vcmp.lt.s32.totalorder %v18250_v9, 64  ;;  %vm12862_vm8 = vcmp.lt.s32.totalorder %v18254_v38, 64 }
 0x2f7   :  { %vm12793_vm5 = vcmp.lt.s32.totalorder %v18240_v29, 64  ;;  %vm12810_vm6 = vcmp.lt.s32.totalorder %v18244_v14, 64  ;;  %v18252_v11 = vsel %vm12845_vm7, 4294967295, %v18251_v11  ;;  %v12855_v20 = vsel %vm12845_vm7, %v12669_v50, -1e+30 }
 0x2f8   :  { %v12778_v31 = vpop.f32.mrb[36].mxu0  ;;  %9828 = vmatmul.mubr.msk.f32.gmra.mrb[78].mxu1 %vm17719_vm2, %v12615_v27  ;;  %v18242_v28 = vsel %vm12793_vm5, 4294967295, %v18241_v28  ;;  %v12803_v62 = vsel %vm12793_vm5, %v12661_v18, -1e+30  ;;  %v18246_v5 = vsel %vm12810_vm6, 4294967295, %v18245_v5  ;;  %18253 = vst [vmem:[#allocation30_spill] sm:$0xff] %v18252_v11  ;;  %v18264_v14 = vxor.u32 %v12434_v13, %v12491_v34 }
 0x2f9   :  { %v12786_v58 = vpop.f32.mrb[37].mxu0  ;;  %9802 = vmatmul.mubr.msk.f32.gmra.mrb[78].mxu0 %vm17719_vm2, %v12617_v26  ;;  %18243 = vst [vmem:[#allocation26_spill] sm:$0xff] %v18242_v28  ;;  %18247 = vst [vmem:[#allocation27_spill] sm:$0xff] %v18246_v5  ;;  %v12820_v10 = vsel %vm12810_vm6, %v12664_v19, -1e+30  ;;  %v18256_v41 = vsel %vm12862_vm8, 4294967295, %v18255_v41  ;;  %v18270_v34 = vxor.u32 %v12434_v13, %v12467_v53  ;;  %v18275_v53 = vxor.u32 %v12434_v13, %v12470_v55 }
 0x2fa   :  { %2468 = vmax.xlane.f32.xlu1 %v12784_v33  ;;  %18248 = vst [vmem:[#allocation28_spill] sm:$0xff] %v12820_v10  ;;  %18257 = vst [vmem:[#allocation31_spill] sm:$0xff] %v18256_v41  ;;  %v12870_v52 = vsel %vm12862_vm8, %v12672_v21, -1e+30  ;;  %vm12880_vm9 = vcmp.lt.s32.totalorder %v18259_v39, 64  ;;  %v18260_v29 = vmov 0 }
 0x2fb   :  { %18258 = vst [vmem:[#allocation32_spill] sm:$0xff] %v12870_v52  ;;  %v18261_v29 = vsel %vm12880_vm9, 4294967295, %v18260_v29  ;;  %vm12891_vm10 = vcmp.lt.s32.totalorder %v18264_v14, 64  ;;  %v18265_v9 = vmov 0  ;;  %vm12909_vm11 = vcmp.lt.s32.totalorder %v18270_v34, 64 }
 0x2fc   :  { %v12798_v30 = vpop.f32.mrb[38].mxu0  ;;  %v9655_v27 = vpop.f32.mrb[18].mxu1  ;;  %18262 = vst [vmem:[#allocation33_spill] sm:$0xff] %v18261_v29  ;;  %v18266_v9 = vsel %vm12891_vm10, 4294967295, %v18265_v9  ;;  %v12900_v0 = vsel %vm12891_vm10, %v12697_v49, -1e+30  ;;  %v18279_v34 = vxor.u32 %v12434_v13, %v12525_v6 }
 0x2fd   :  { %v12805_v4 = vpop.f32.mrb[39].mxu0  ;;  %v845_v26 = vpop.f32.mrb[19].mxu1  ;;  %v12827_v15 = vsel %vm12793_vm5, %v9655_v27, -1e+30  ;;  %18267 = vst [vmem:[#allocation35_spill] sm:$0xff] %v18266_v9  ;;  %18268 = vst [vmem:[#allocation36_spill] sm:$0xff] %v12900_v0 }
 0x2fe   :  { %2442 = vmax.xlane.f32.xlu1 %v12803_v62  ;;  %v12838_v63 = vsel %vm12810_vm6, %v845_v26, -1e+30  ;;  %v18271_v38 = vmov 0  ;;  %v12918_v49 = vsel %vm12909_vm11, %v12677_v48, -1e+30  ;;  %vm12927_vm12 = vcmp.lt.s32.totalorder %v18275_v53, 64 }
 0x2ff   :  { %18249 = vst [vmem:[#allocation29_spill] sm:$0xff] %v12838_v63  ;;  %v18272_v38 = vsel %vm12909_vm11, 4294967295, %v18271_v38  ;;  %v18276_v14 = vmov 0  ;;  %vm12934_vm13 = vcmp.lt.s32.totalorder %v18279_v34, 64  ;;  %v12943_v48 = vsel %vm12927_vm12, %v12680_v17, -1e+30 }
 0x300   :  { %v12815_v7 = vpop.f32.mrb[40].mxu0  ;;  %18273 = vst [vmem:[#allocation38_spill] sm:$0xff] %v18272_v38  ;;  %v18277_v14 = vsel %vm12927_vm12, 4294967295, %v18276_v14  ;;  %18283 = vst [vmem:[#allocation42_spill] sm:$0xff] %v12943_v48  ;;  %v12948_v55 = vsel %vm12934_vm13, %v12717_v42, -1e+30  ;;  %v18286_v34 = vxor.u32 %v12434_v13, %v12551_v59 }
 0x301   :  { %v12822_v18 = vpop.f32.mrb[41].mxu0  ;;  %18278 = vst [vmem:[#allocation40_spill] sm:$0xff] %v18277_v14  ;;  %18284 = vst [vmem:[#allocation43_spill] sm:$0xff] %v12948_v55  ;;  %v18287_v42 = vmov 0 }
 0x302   :  { %2440 = vmax.xlane.f32.xlu1 %v12820_v10  ;;  %vm12963_vm14 = vcmp.lt.s32.totalorder %v18286_v34, 64  ;;  %v12983_v34 = vsel %vm12880_vm9, %v12685_v54, -1e+30 }
 0x303   :  { %v18288_v42 = vsel %vm12963_vm14, 4294967295, %v18287_v42 }
 0x304   :  { %v12829_v32 = vpop.f32.mrb[42].mxu0  ;;  %v9658_v36 = vpop.f32.mrb[20].mxu1  ;;  %18289 = vst [vmem:[#allocation45_spill] sm:$0xff] %v18288_v42 }
 0x305   :  { %v12831_v40 = vpop.f32.mrb[43].mxu0  ;;  %v855_v45 = vpop.f32.mrb[21].mxu1  ;;  %v12875_v50 = vsel %vm12845_vm7, %v9658_v36, -1e+30 }
 0x306   :  { %2474 = vmax.xlane.f32.xlu1 %v12827_v15  ;;  %v12904_v36 = vsel %vm12862_vm8, %v855_v45, -1e+30 }
 0x307   :  { %18269 = vst [vmem:[#allocation37_spill] sm:$0xff] %v12904_v36 }
 0x308   :  { %v12834_v43 = vpop.f32.mrb[44].mxu0 }
 0x309   :  { %v12840_v2 = vpop.f32.mrb[45].mxu0 }
 0x30a   :  { %2472 = vmax.xlane.f32.xlu1 %v12838_v63 }
 0x30c   :  { %v12850_v19 = vpop.f32.mrb[46].mxu0  ;;  %v9661_v16 = vpop.f32.mrb[22].mxu1 }
 0x30d   :  { %v12857_v24 = vpop.f32.mrb[47].mxu0  ;;  %v865_v22 = vpop.f32.mrb[23].mxu1  ;;  %v12954_v6 = vsel %vm12909_vm11, %v9661_v16, -1e+30  ;;  %v12972_v16 = vsel %vm12963_vm14, %v12737_v57, -1e+30 }
 0x30e   :  { %2446 = vmax.xlane.f32.xlu1 %v12855_v20  ;;  %18290 = vst [vmem:[#allocation46_spill] sm:$0xff] %v12972_v16 }
 0x312   :  { %2444 = vmax.xlane.f32.xlu1 %v12870_v52 }
 0x314   :  { %v9664_v27 = vpop.f32.mrb[24].mxu1 }
 0x315   :  { %v12886_v26 = vsel %vm12880_vm9, %v9664_v27, -1e+30  ;;  %v875_v21 = vpop.f32.mrb[25].mxu1 }
 0x316   :  { %18263 = vst [vmem:[#allocation34_spill] sm:$0xff] %v12886_v26  ;;  %2486 = vmax.xlane.f32.xlu0 %v12886_v26  ;;  %2478 = vmax.xlane.f32.xlu1 %v12875_v50 }
 0x31a   :  { %2476 = vmax.xlane.f32.xlu1 %v12904_v36  ;;  %2458 = vmax.xlane.f32.xlu0 %v12900_v0  ;;  %v18280_v36 = vmov 0 }
 0x31b   :  { %v18281_v36 = vsel %vm12934_vm13, 4294967295, %v18280_v36 }
 0x31c   :  { %v9667_v39 = vpop.f32.mrb[26].mxu1  ;;  %18282 = vst [vmem:[#allocation41_spill] sm:$0xff] %v18281_v36  ;;  %v18435_v36 = vld [vmem:[#allocation25_spill] sm:$0xff] }
 0x31d   :  { %v12922_v45 = vsel %vm12891_vm10, %v9667_v39, -1e+30  ;;  %v885_v27 = vpop.f32.mrb[27].mxu1 }
 0x31e   :  { %18274 = vst [vmem:[#allocation39_spill] sm:$0xff] %v12922_v45  ;;  %2450 = vmax.xlane.f32.xlu1 %v12918_v49  ;;  %2490 = vmax.xlane.f32.xlu0 %v12922_v45 }
 0x322   :  { %2448 = vmax.xlane.f32.xlu1 %v12943_v48  ;;  %2462 = vmax.xlane.f32.xlu0 %v12948_v55  ;;  %v18293_v48 = vxor.u32 %v12434_v13, %v12482_v1  ;;  %v18301_v55 = vxor.u32 %v12434_v13, %v12496_v37 }
 0x324   :  { %v9670_v39 = vpop.f32.mrb[28].mxu1  ;;  %vm12992_vm15 = vcmp.lt.s32.totalorder %v18293_v48, 64  ;;  %vm13021_vm1 = vcmp.lt.s32.totalorder %v18301_v55, 64 }
 0x325   :  { %v12958_v53 = vsel %vm12934_vm13, %v9670_v39, -1e+30  ;;  %v895_v17 = vpop.f32.mrb[29].mxu1  ;;  %v12976_v39 = vsel %vm12927_vm12, %v865_v22, -1e+30  ;;  %v18294_v22 = vmov 0 }
 0x326   :  { %18285 = vst [vmem:[#allocation44_spill] sm:$0xff] %v12958_v53  ;;  %2482 = vmax.xlane.f32.xlu1 %v12954_v6  ;;  %2494 = vmax.xlane.f32.xlu0 %v12958_v53  ;;  %18291 = vst [vmem:[#allocation47_spill] sm:$0xff] %v12976_v39  ;;  %v18295_v22 = vsel %vm12992_vm15, 4294967295, %v18294_v22  ;;  %v13001_v54 = vsel %vm12992_vm15, %v12688_v51, -1e+30 }
 0x327   :  { %18296 = vst [vmem:[#allocation49_spill] sm:$0xff] %v18295_v22  ;;  %18297 = vst [vmem:[#allocation50_spill] sm:$0xff] %v13001_v54 }
 0x32a   :  { %2480 = vmax.xlane.f32.xlu1 %v12976_v39  ;;  %2466 = vmax.xlane.f32.xlu0 %v12972_v16 }
 0x32c   :  { %v9673_v59 = vpop.f32.mrb[30].mxu1 }
 0x32d   :  { %v12987_v53 = vsel %vm12963_vm14, %v9673_v59, -1e+30  ;;  %v905_v57 = vpop.f32.mrb[31].mxu1  ;;  %v13006_v59 = vsel %vm12639_vm3, %v12749_v3, -1e+30  ;;  %v18302_v3 = vmov 0 }
 0x32e   :  { %18292 = vst [vmem:[#allocation48_spill] sm:$0xff] %v12987_v53  ;;  %2454 = vmax.xlane.f32.xlu1 %v12983_v34  ;;  %2498 = vmax.xlane.f32.xlu0 %v12987_v53  ;;  %18298 = vst [vmem:[#allocation51_spill] sm:$0xff] %v13006_v59  ;;  %v13012_v53 = vsel %vm12992_vm15, %v875_v21, -1e+30  ;;  %v18303_v3 = vsel %vm13021_vm1, 4294967295, %v18302_v3 }
 0x32f   :  { %18299 = vst [vmem:[#allocation52_spill] sm:$0xff] %v13012_v53  ;;  %18304 = vst [vmem:[#allocation54_spill] sm:$0xff] %v18303_v3  ;;  %v13030_v21 = vsel %vm13021_vm1, %v12701_v47, -1e+30 }
 0x330   :  { %v9704_v16 = vpop.f32.mrb[32].mxu1  ;;  %18305 = vst [vmem:[#allocation55_spill] sm:$0xff] %v13030_v21 }
 0x331   :  { %v1289_v1 = vpop.f32.mrb[33].mxu1  ;;  %v13016_v39 = vsel %vm12639_vm3, %v9704_v16, -1e+30  ;;  %v13035_v16 = vsel %vm12793_vm5, %v12761_v60, -1e+30  ;;  %v18310_v60 = vmov 0 }
 0x332   :  { %2452 = vmax.xlane.f32.xlu1 %v13001_v54  ;;  %2502 = vmax.xlane.f32.xlu0 %v13006_v59  ;;  %18300 = vst [vmem:[#allocation53_spill] sm:$0xff] %v13016_v39  ;;  %18306 = vst [vmem:[#allocation56_spill] sm:$0xff] %v13035_v16  ;;  %v18309_v54 = vxor.u32 %v12434_v13, %v12530_v56 }
 0x334   :  { %v9707_v48 = vpop.f32.mrb[34].mxu1  ;;  %vm13050_vm2 = vcmp.lt.s32.totalorder %v18309_v54, 64 }
 0x335   :  { %v1299_v51 = vpop.f32.mrb[35].mxu1  ;;  %v18311_v60 = vsel %vm13050_vm2, 4294967295, %v18310_v60 }
 0x336   :  { %2484 = vmax.xlane.f32.xlu1 %v13012_v53  ;;  %2534 = vmax.xlane.f32.xlu0 %v13016_v39  ;;  %v13041_v39 = vsel %vm13021_vm1, %v885_v27, -1e+30  ;;  %v13045_v53 = vsel %vm12793_vm5, %v9707_v48, -1e+30  ;;  %18312 = vst [vmem:[#allocation59_spill] sm:$0xff] %v18311_v60 }
 0x337   :  { %18307 = vst [vmem:[#allocation57_spill] sm:$0xff] %v13041_v39  ;;  %18308 = vst [vmem:[#allocation58_spill] sm:$0xff] %v13045_v53  ;;  %v13059_v27 = vsel %vm13050_vm2, %v12721_v46, -1e+30  ;;  %v13064_v48 = vsel %vm12845_vm7, %v12778_v31, -1e+30  ;;  %v18317_v31 = vxor.u32 %v12434_v13, %v12556_v61 }
 0x338   :  { %v9710_v59 = vpop.f32.mrb[36].mxu1  ;;  %18313 = vst [vmem:[#allocation60_spill] sm:$0xff] %v13059_v27  ;;  %18314 = vst [vmem:[#allocation61_spill] sm:$0xff] %v13064_v48 }
 0x339   :  { %v1309_v37 = vpop.f32.mrb[37].mxu1  ;;  %vm13081_vm0 = vcmp.lt.s32.totalorder %v18317_v31, 64 }
 0x33a   :  { %2456 = vmax.xlane.f32.xlu1 %v13030_v21  ;;  %2506 = vmax.xlane.f32.xlu0 %v13035_v16  ;;  %v18318_v21 = vmov 0  ;;  %v13103_v31 = vsel %vm13081_vm0, %v905_v57, -1e+30  ;;  %v13121_v57 = vsel %vm12880_vm9, %v12815_v7, -1e+30 }
 0x33b   :  { %v18319_v21 = vsel %vm13081_vm0, 4294967295, %v18318_v21  ;;  %18323 = vst [vmem:[#allocation67_spill] sm:$0xff] %v13103_v31  ;;  %18326 = vst [vmem:[#allocation70_spill] sm:$0xff] %v13121_v57  ;;  %v13143_v7 = vsel %vm12891_vm10, %v12829_v32, -1e+30 }
 0x33c   :  { %v9713_v55 = vpop.f32.mrb[38].mxu1  ;;  %18320 = vst [vmem:[#allocation64_spill] sm:$0xff] %v18319_v21  ;;  %18330 = vst [vmem:[#allocation74_spill] sm:$0xff] %v13143_v7  ;;  %v13165_v32 = vsel %vm12934_vm13, %v12834_v43, -1e+30 }
 0x33d   :  { %v1319_v47 = vpop.f32.mrb[39].mxu1  ;;  %18334 = vst [vmem:[#allocation78_spill] sm:$0xff] %v13165_v32  ;;  %v13187_v43 = vsel %vm12963_vm14, %v12850_v19, -1e+30 }
 0x33e   :  { %2488 = vmax.xlane.f32.xlu1 %v13041_v39  ;;  %2538 = vmax.xlane.f32.xlu0 %v13045_v53  ;;  %v13070_v53 = vsel %vm13050_vm2, %v895_v17, -1e+30  ;;  %v13074_v39 = vsel %vm12845_vm7, %v9710_v59, -1e+30  ;;  %v13090_v17 = vsel %vm13081_vm0, %v12741_v8, -1e+30 }
 0x33f   :  { %18315 = vst [vmem:[#allocation62_spill] sm:$0xff] %v13070_v53  ;;  %18316 = vst [vmem:[#allocation63_spill] sm:$0xff] %v13074_v39  ;;  %v13095_v59 = vsel %vm12909_vm11, %v12798_v30, -1e+30  ;;  %v13107_v8 = vsel %vm12909_vm11, %v9713_v55, -1e+30 }
 0x340   :  { %v9716_v16 = vpop.f32.mrb[40].mxu1  ;;  %18321 = vst [vmem:[#allocation65_spill] sm:$0xff] %v13090_v17  ;;  %18322 = vst [vmem:[#allocation66_spill] sm:$0xff] %v13095_v59  ;;  %v13116_v30 = vsel %vm12643_vm4, %v12753_v44, -1e+30 }
 0x341   :  { %v1329_v56 = vpop.f32.mrb[41].mxu1  ;;  %18324 = vst [vmem:[#allocation68_spill] sm:$0xff] %v13107_v8  ;;  %18325 = vst [vmem:[#allocation69_spill] sm:$0xff] %v13116_v30  ;;  %v13127_v55 = vsel %vm12643_vm4, %v1289_v1, -1e+30 }
 0x342   :  { %2460 = vmax.xlane.f32.xlu1 %v13059_v27  ;;  %2510 = vmax.xlane.f32.xlu0 %v13064_v48  ;;  %18327 = vst [vmem:[#allocation71_spill] sm:$0xff] %v13127_v55  ;;  %v13138_v44 = vsel %vm12810_vm6, %v12769_v12, -1e+30  ;;  %v13149_v1 = vsel %vm12810_vm6, %v1299_v51, -1e+30  ;;  %18338 = vst [vmem:[#allocation82_spill] sm:$0xff] %v13187_v43 }
 0x343   :  { %18329 = vst [vmem:[#allocation73_spill] sm:$0xff] %v13138_v44  ;;  %18331 = vst [vmem:[#allocation75_spill] sm:$0xff] %v13149_v1  ;;  %v13160_v12 = vsel %vm12862_vm8, %v12786_v58, -1e+30  ;;  %v13171_v51 = vsel %vm12862_vm8, %v1309_v37, -1e+30 }
 0x344   :  { %v9719_v54 = vpop.f32.mrb[42].mxu1  ;;  %18333 = vst [vmem:[#allocation77_spill] sm:$0xff] %v13160_v12  ;;  %18335 = vst [vmem:[#allocation79_spill] sm:$0xff] %v13171_v51  ;;  %v13182_v58 = vsel %vm12927_vm12, %v12805_v4, -1e+30 }
 0x345   :  { %v13076_v46 = vpop.f32.mrb[43].mxu1  ;;  %18337 = vst [vmem:[#allocation81_spill] sm:$0xff] %v13182_v58  ;;  %v13193_v37 = vsel %vm12927_vm12, %v1319_v47, -1e+30  ;;  %v13204_v4 = vsel %vm12992_vm15, %v12822_v18, -1e+30 }
 0x346   :  { %2492 = vmax.xlane.f32.xlu1 %v13070_v53  ;;  %2542 = vmax.xlane.f32.xlu0 %v13074_v39  ;;  %18339 = vst [vmem:[#allocation83_spill] sm:$0xff] %v13193_v37  ;;  %18341 = vst [vmem:[#allocation85_spill] sm:$0xff] %v13204_v4  ;;  %v13209_v47 = vsel %vm12992_vm15, %v1329_v56, -1e+30 }
 0x347   :  { %18342 = vst [vmem:[#allocation86_spill] sm:$0xff] %v13209_v47 }
 0x348   :  { %v9722_v48 = vpop.f32.mrb[44].mxu1 }
 0x349   :  { %v13097_v13 = vpop.f32.mrb[45].mxu1 }
 0x34a   :  { %2464 = vmax.xlane.f32.xlu1 %v13090_v17  ;;  %2514 = vmax.xlane.f32.xlu0 %v13095_v59 }
 0x34c   :  { %v9725_v61 = vpop.f32.mrb[46].mxu1 }
 0x34d   :  { %v13109_v39 = vpop.f32.mrb[47].mxu1 }
 0x34e   :  { %2496 = vmax.xlane.f32.xlu1 %v13103_v31  ;;  %2546 = vmax.xlane.f32.xlu0 %v13107_v8  ;;  %v13131_v8 = vsel %vm12880_vm9, %v9716_v16, -1e+30  ;;  %v13153_v16 = vsel %vm12891_vm10, %v9719_v54, -1e+30  ;;  %v13175_v54 = vsel %vm12934_vm13, %v9722_v48, -1e+30 }
 0x34f   :  { %18328 = vst [vmem:[#allocation72_spill] sm:$0xff] %v13131_v8  ;;  %18332 = vst [vmem:[#allocation76_spill] sm:$0xff] %v13153_v16  ;;  %v13197_v48 = vsel %vm12963_vm14, %v9725_v61, -1e+30 }
 0x350   :  { %18336 = vst [vmem:[#allocation80_spill] sm:$0xff] %v13175_v54  ;;  %18340 = vst [vmem:[#allocation84_spill] sm:$0xff] %v13197_v48 }
 0x352   :  { %2500 = vmax.xlane.f32.xlu1 %v13116_v30  ;;  %2518 = vmax.xlane.f32.xlu0 %v13121_v57 }
 0x356   :  { %2532 = vmax.xlane.f32.xlu1 %v13127_v55  ;;  %2550 = vmax.xlane.f32.xlu0 %v13131_v8 }
 0x35a   :  { %2504 = vmax.xlane.f32.xlu1 %v13138_v44  ;;  %2522 = vmax.xlane.f32.xlu0 %v13143_v7 }
 0x35e   :  { %2536 = vmax.xlane.f32.xlu1 %v13149_v1  ;;  %2554 = vmax.xlane.f32.xlu0 %v13153_v16 }
 0x362   :  { %2508 = vmax.xlane.f32.xlu1 %v13160_v12  ;;  %2526 = vmax.xlane.f32.xlu0 %v13165_v32  ;;  %v13283_v32 = vsel %vm13081_vm0, %v13109_v39, -1e+30 }
 0x363   :  { %18354 = vst [vmem:[#allocation98_spill] sm:$0xff] %v13283_v32 }
 0x366   :  { %2540 = vmax.xlane.f32.xlu1 %v13171_v51  ;;  %2558 = vmax.xlane.f32.xlu0 %v13175_v54  ;;  %v13257_v54 = vsel %vm13050_vm2, %v13097_v13, -1e+30  ;;  %v13274_v13 = vsel %vm13081_vm0, %v12857_v24, -1e+30 }
 0x367   :  { %18350 = vst [vmem:[#allocation94_spill] sm:$0xff] %v13257_v54  ;;  %18353 = vst [vmem:[#allocation97_spill] sm:$0xff] %v13274_v13 }
 0x36a   :  { %2512 = vmax.xlane.f32.xlu1 %v13182_v58  ;;  %2530 = vmax.xlane.f32.xlu0 %v13187_v43 }
 0x36e   :  { %2544 = vmax.xlane.f32.xlu1 %v13193_v37  ;;  %2562 = vmax.xlane.f32.xlu0 %v13197_v48 }
 0x372   :  { %2516 = vmax.xlane.f32.xlu1 %v13204_v4  ;;  %v13224_v4 = vsel %vm13021_vm1, %v12831_v40, -1e+30  ;;  %v13239_v40 = vpop.xlane.xlu1 %2436 }
 0x373   :  { %v9756_v19 = vpop.f32.mrb[48].mxu1  ;;  %18345 = vst [vmem:[#allocation89_spill] sm:$0xff] %v13224_v4  ;;  %v2692_v14 = vsub.f32 %v18435_v36, %v13239_v40 }
 0x374   :  { %v9730_v43 = vpop.f32.mrb[48].mxu0  ;;  %v1743_v58 = vpop.f32.mrb[49].mxu1  ;;  %v13219_v18 = vsel %vm12639_vm3, %v9756_v19, -1e+30 }
 0x375   :  { %v13213_v61 = vsel %vm12639_vm3, %v9730_v43, -1e+30  ;;  %v1516_v37 = vpop.f32.mrb[49].mxu0  ;;  %18344 = vst [vmem:[#allocation88_spill] sm:$0xff] %v13219_v18  ;;  %v13305_v39 = vsel %vm12643_vm4, %v1743_v58, -1e+30 }
 0x376   :  { %18343 = vst [vmem:[#allocation87_spill] sm:$0xff] %v13213_v61  ;;  %2548 = vmax.xlane.f32.xlu1 %v13209_v47  ;;  %2566 = vmax.xlane.f32.xlu0 %v13213_v61  ;;  %v13231_v61 = vsel %vm13021_vm1, %v13076_v46, -1e+30  ;;  %v13248_v46 = vsel %vm13050_vm2, %v12840_v2, -1e+30  ;;  %18359 = vst [vmem:[#allocation103_spill] sm:$0xff] %v13305_v39 }
 0x377   :  { %18346 = vst [vmem:[#allocation90_spill] sm:$0xff] %v13231_v61  ;;  %18349 = vst [vmem:[#allocation93_spill] sm:$0xff] %v13248_v46  ;;  %v2820_v36 = vmul.f32 1.442695, %v2692_v14 }
 0x37a   :  { %2520 = vmax.xlane.f32.xlu1 %v13224_v4  ;;  %2598 = vmax.xlane.f32.xlu0 %v13219_v18 }
 0x37b   :  { %v9759_v56 = vpop.f32.mrb[50].mxu1 }
 0x37c   :  { %v9733_v43 = vpop.f32.mrb[50].mxu0  ;;  %v1753_v48 = vpop.f32.mrb[51].mxu1  ;;  %v13243_v18 = vsel %vm12793_vm5, %v9759_v56, -1e+30 }
 0x37d   :  { %v13235_v19 = vsel %vm12793_vm5, %v9733_v43, -1e+30  ;;  %v1526_v47 = vpop.f32.mrb[51].mxu0  ;;  %18348 = vst [vmem:[#allocation92_spill] sm:$0xff] %v13243_v18 }
 0x37e   :  { %18347 = vst [vmem:[#allocation91_spill] sm:$0xff] %v13235_v19  ;;  %2552 = vmax.xlane.f32.xlu1 %v13231_v61  ;;  %2570 = vmax.xlane.f32.xlu0 %v13235_v19 }
 0x382   :  { %2524 = vmax.xlane.f32.xlu1 %v13248_v46  ;;  %2602 = vmax.xlane.f32.xlu0 %v13243_v18 }
 0x383   :  { %v13252_v43 = vpop.xlane.xlu1 %2470  ;;  %v9762_v61 = vpop.f32.mrb[52].mxu1 }
 0x384   :  { %v9736_v4 = vpop.f32.mrb[52].mxu0  ;;  %v1763_v19 = vpop.f32.mrb[53].mxu1  ;;  %v13269_v46 = vsel %vm12845_vm7, %v9762_v61, -1e+30 }
 0x385   :  { %v13261_v56 = vsel %vm12845_vm7, %v9736_v4, -1e+30  ;;  %v1536_v2 = vpop.f32.mrb[53].mxu0  ;;  %18352 = vst [vmem:[#allocation96_spill] sm:$0xff] %v13269_v46 }
 0x386   :  { %18351 = vst [vmem:[#allocation95_spill] sm:$0xff] %v13261_v56  ;;  %2556 = vmax.xlane.f32.xlu1 %v13257_v54  ;;  %2574 = vmax.xlane.f32.xlu0 %v13261_v56 }
 0x387   :  { %v13265_v18 = vpop.xlane.xlu1 %2468 }
 0x388   :  { %v2708_v40 = vsub.f32 %v12784_v33, %v13265_v18 }
 0x38a   :  { %2528 = vmax.xlane.f32.xlu1 %v13274_v13  ;;  %2606 = vmax.xlane.f32.xlu0 %v13269_v46  ;;  %v13293_v46 = vsel %vm12643_vm4, %v1516_v37, -1e+30  ;;  %v2852_v33 = vmul.f32 1.442695, %v2708_v40 }
 0x38b   :  { %v13278_v4 = vpop.xlane.xlu1 %2442  ;;  %v9765_v54 = vpop.f32.mrb[54].mxu1  ;;  %18356 = vst [vmem:[#allocation100_spill] sm:$0xff] %v13293_v46 }
 0x38c   :  { %v9739_v51 = vpop.f32.mrb[54].mxu0  ;;  %v1773_v56 = vpop.f32.mrb[55].mxu1  ;;  %v13299_v12 = vsel %vm12909_vm11, %v9765_v54, -1e+30  ;;  %v13317_v54 = vsel %vm12810_vm6, %v1526_v47, -1e+30 }
 0x38d   :  { %v13287_v61 = vsel %vm12909_vm11, %v9739_v51, -1e+30  ;;  %v1546_v24 = vpop.f32.mrb[55].mxu0  ;;  %18358 = vst [vmem:[#allocation102_spill] sm:$0xff] %v13299_v12  ;;  %18361 = vst [vmem:[#allocation105_spill] sm:$0xff] %v13317_v54 }
 0x38e   :  { %18355 = vst [vmem:[#allocation99_spill] sm:$0xff] %v13287_v61  ;;  %2560 = vmax.xlane.f32.xlu1 %v13283_v32  ;;  %2578 = vmax.xlane.f32.xlu0 %v13287_v61 }
 0x38f   :  { %v13295_v13 = vpop.xlane.xlu1 %2440 }
 0x390   :  { %18357 = vst [vmem:[#allocation101_spill] sm:$0xff] %v13295_v13 }
 0x392   :  { %2564 = vmax.xlane.f32.xlu1 %v13293_v46  ;;  %2610 = vmax.xlane.f32.xlu0 %v13299_v12 }
 0x393   :  { %v13307_v51 = vpop.xlane.xlu1 %2474  ;;  %v9768_v61 = vpop.f32.mrb[56].mxu1 }
 0x394   :  { %v9742_v32 = vpop.f32.mrb[56].mxu0  ;;  %v1783_v37 = vpop.f32.mrb[57].mxu1  ;;  %v13323_v12 = vsel %vm12880_vm9, %v9768_v61, -1e+30 }
 0x395   :  { %v13311_v16 = vsel %vm12880_vm9, %v9742_v32, -1e+30  ;;  %v1556_v1 = vpop.f32.mrb[57].mxu0  ;;  %18363 = vst [vmem:[#allocation107_spill] sm:$0xff] %v13323_v12  ;;  %v13329_v32 = vsel %vm12810_vm6, %v1753_v48, -1e+30 }
 0x396   :  { %18360 = vst [vmem:[#allocation104_spill] sm:$0xff] %v13311_v16  ;;  %2596 = vmax.xlane.f32.xlu1 %v13305_v39  ;;  %2582 = vmax.xlane.f32.xlu0 %v13311_v16  ;;  %18364 = vst [vmem:[#allocation108_spill] sm:$0xff] %v13329_v32  ;;  %v13345_v48 = vsel %vm12862_vm8, %v1536_v2, -1e+30 }
 0x397   :  { %v13319_v58 = vpop.xlane.xlu1 %2472  ;;  %18366 = vst [vmem:[#allocation110_spill] sm:$0xff] %v13345_v48  ;;  %v18441_v18 = vld [vmem:[#allocation101_spill] sm:$0xff] }
 0x398   :  { %18362 = vst [vmem:[#allocation106_spill] sm:$0xff] %v13319_v58 }
 0x39a   :  { %2568 = vmax.xlane.f32.xlu1 %v13317_v54  ;;  %2614 = vmax.xlane.f32.xlu0 %v13323_v12  ;;  %v13341_v12 = vpop.xlane.xlu0 %2438 }
 0x39b   :  { %v13331_v39 = vpop.xlane.xlu1 %2446  ;;  %v9771_v16 = vpop.f32.mrb[58].mxu1 }
 0x39c   :  { %v9745_v46 = vpop.f32.mrb[58].mxu0  ;;  %v13333_v47 = vpop.f32.mrb[59].mxu1  ;;  %v13351_v44 = vsel %vm12891_vm10, %v9771_v16, -1e+30 }
 0x39d   :  { %v13337_v7 = vsel %vm12891_vm10, %v9745_v46, -1e+30  ;;  %v1566_v61 = vpop.f32.mrb[59].mxu0  ;;  %18368 = vst [vmem:[#allocation112_spill] sm:$0xff] %v13351_v44  ;;  %v13357_v46 = vsel %vm12862_vm8, %v1763_v19, -1e+30 }
 0x39e   :  { %18365 = vst [vmem:[#allocation109_spill] sm:$0xff] %v13337_v7  ;;  %2600 = vmax.xlane.f32.xlu1 %v13329_v32  ;;  %2586 = vmax.xlane.f32.xlu0 %v13337_v7  ;;  %18369 = vst [vmem:[#allocation113_spill] sm:$0xff] %v13357_v46  ;;  %v13373_v19 = vsel %vm12927_vm12, %v1546_v24, -1e+30 }
 0x39f   :  { %v13347_v54 = vpop.xlane.xlu1 %2444  ;;  %18372 = vst [vmem:[#allocation116_spill] sm:$0xff] %v13373_v19  ;;  %v18447_v40 = vld [vmem:[#allocation106_spill] sm:$0xff] }
 0x3a0   :  { %18367 = vst [vmem:[#allocation111_spill] sm:$0xff] %v13347_v54 }
 0x3a2   :  { %2572 = vmax.xlane.f32.xlu1 %v13345_v48  ;;  %2618 = vmax.xlane.f32.xlu0 %v13351_v44 }
 0x3a3   :  { %v13359_v7 = vpop.xlane.xlu0 %2486  ;;  %v13361_v32 = vpop.xlane.xlu1 %2478 }
 0x3a4   :  { %18370 = vst [vmem:[#allocation114_spill] sm:$0xff] %v13359_v7  ;;  %v9748_v2 = vpop.f32.mrb[60].mxu0  ;;  %v9774_v8 = vpop.f32.mrb[60].mxu1 }
 0x3a5   :  { %v13365_v55 = vsel %vm12934_vm13, %v9748_v2, -1e+30  ;;  %v1576_v16 = vpop.f32.mrb[61].mxu0  ;;  %v13367_v57 = vpop.f32.mrb[61].mxu1  ;;  %v13381_v30 = vsel %vm12934_vm13, %v9774_v8, -1e+30 }
 0x3a6   :  { %18371 = vst [vmem:[#allocation115_spill] sm:$0xff] %v13365_v55  ;;  %2604 = vmax.xlane.f32.xlu1 %v13357_v46  ;;  %2590 = vmax.xlane.f32.xlu0 %v13365_v55  ;;  %18375 = vst [vmem:[#allocation119_spill] sm:$0xff] %v13381_v30  ;;  %v13387_v2 = vsel %vm12927_vm12, %v1773_v56, -1e+30  ;;  %v13405_v56 = vsel %vm12992_vm15, %v1556_v1, -1e+30 }
 0x3a7   :  { %v13375_v44 = vpop.xlane.xlu1 %2476  ;;  %v13377_v48 = vpop.xlane.xlu0 %2458  ;;  %18376 = vst [vmem:[#allocation120_spill] sm:$0xff] %v13387_v2  ;;  %18379 = vst [vmem:[#allocation123_spill] sm:$0xff] %v13405_v56  ;;  %v13423_v1 = vsel %vm12992_vm15, %v1783_v37, -1e+30  ;;  %v13441_v37 = vsel %vm13021_vm1, %v1566_v61, -1e+30 }
 0x3a8   :  { %18373 = vst [vmem:[#allocation117_spill] sm:$0xff] %v13375_v44  ;;  %18374 = vst [vmem:[#allocation118_spill] sm:$0xff] %v13377_v48  ;;  %v13460_v61 = vsel %vm13021_vm1, %v13333_v47, -1e+30  ;;  %v13478_v47 = vsel %vm13050_vm2, %v1576_v16, -1e+30 }
 0x3a9   :  { %18383 = vst [vmem:[#allocation127_spill] sm:$0xff] %v13423_v1  ;;  %18386 = vst [vmem:[#allocation130_spill] sm:$0xff] %v13441_v37  ;;  %v13497_v16 = vsel %vm13050_vm2, %v13367_v57, -1e+30 }
 0x3aa   :  { %2576 = vmax.xlane.f32.xlu1 %v13373_v19  ;;  %2622 = vmax.xlane.f32.xlu0 %v13381_v30  ;;  %18390 = vst [vmem:[#allocation134_spill] sm:$0xff] %v13460_v61  ;;  %18393 = vst [vmem:[#allocation137_spill] sm:$0xff] %v13478_v47 }
 0x3ab   :  { %v13389_v55 = vpop.xlane.xlu1 %2450  ;;  %v13391_v24 = vpop.xlane.xlu0 %2490  ;;  %18397 = vst [vmem:[#allocation141_spill] sm:$0xff] %v13497_v16 }
 0x3ac   :  { %18377 = vst [vmem:[#allocation121_spill] sm:$0xff] %v13391_v24  ;;  %v9751_v46 = vpop.f32.mrb[62].mxu0  ;;  %v9777_v31 = vpop.f32.mrb[62].mxu1 }
 0x3ad   :  { %v13395_v59 = vsel %vm12963_vm14, %v9751_v46, -1e+30  ;;  %v13397_v8 = vpop.f32.mrb[63].mxu1  ;;  %v13399_v17 = vpop.f32.mrb[63].mxu0  ;;  %v13409_v30 = vsel %vm12963_vm14, %v9777_v31, -1e+30 }
 0x3ae   :  { %18378 = vst [vmem:[#allocation122_spill] sm:$0xff] %v13395_v59  ;;  %2608 = vmax.xlane.f32.xlu1 %v13387_v2  ;;  %2594 = vmax.xlane.f32.xlu0 %v13395_v59  ;;  %18380 = vst [vmem:[#allocation124_spill] sm:$0xff] %v13409_v30  ;;  %v13516_v57 = vsel %vm13081_vm0, %v13399_v17, -1e+30  ;;  %v13535_v17 = vsel %vm13081_vm0, %v13397_v8, -1e+30 }
 0x3af   :  { %v9808_v19 = vpop.f32.mrb[64].mxu1  ;;  %v13411_v53 = vpop.xlane.xlu1 %2448  ;;  %18401 = vst [vmem:[#allocation145_spill] sm:$0xff] %v13516_v57  ;;  %18406 = vst [vmem:[#allocation150_spill] sm:$0xff] %v13535_v17 }
 0x3b0   :  { %18381 = vst [vmem:[#allocation125_spill] sm:$0xff] %v13411_v53  ;;  %v13413_v46 = vpop.xlane.xlu0 %2462  ;;  %v9782_v27 = vpop.f32.mrb[64].mxu0 }
 0x3b1   :  { %18382 = vst [vmem:[#allocation126_spill] sm:$0xff] %v13413_v46  ;;  %v13415_v44 = vpop.f32.mrb[65].mxu1  ;;  %v13417_v45 = vpop.f32.mrb[65].mxu0  ;;  %v13431_v46 = vsel %vm12639_vm3, %v9782_v27, -1e+30 }
 0x3b2   :  { %2580 = vmax.xlane.f32.xlu1 %v13405_v56  ;;  %2626 = vmax.xlane.f32.xlu0 %v13409_v30  ;;  %18385 = vst [vmem:[#allocation129_spill] sm:$0xff] %v13431_v46  ;;  %v13449_v27 = vsel %vm12639_vm3, %v9808_v19, -1e+30 }
 0x3b3   :  { %v9811_v31 = vpop.f32.mrb[66].mxu1  ;;  %v13425_v59 = vpop.xlane.xlu1 %2482  ;;  %18389 = vst [vmem:[#allocation133_spill] sm:$0xff] %v13449_v27 }
 0x3b4   :  { %v13427_v2 = vpop.xlane.xlu0 %2494  ;;  %v9785_v53 = vpop.f32.mrb[66].mxu0 }
 0x3b5   :  { %18384 = vst [vmem:[#allocation128_spill] sm:$0xff] %v13427_v2  ;;  %v13433_v24 = vpop.f32.mrb[67].mxu1  ;;  %v13435_v52 = vpop.f32.mrb[67].mxu0  ;;  %v13468_v25 = vsel %vm12793_vm5, %v9785_v53, -1e+30 }
 0x3b6   :  { %2612 = vmax.xlane.f32.xlu1 %v13423_v1  ;;  %2630 = vmax.xlane.f32.xlu0 %v13431_v46  ;;  %18392 = vst [vmem:[#allocation136_spill] sm:$0xff] %v13468_v25  ;;  %v13486_v53 = vsel %vm12793_vm5, %v9811_v31, -1e+30 }
 0x3b7   :  { %v9814_v30 = vpop.f32.mrb[68].mxu1  ;;  %v13443_v56 = vpop.xlane.xlu1 %2480  ;;  %18396 = vst [vmem:[#allocation140_spill] sm:$0xff] %v13486_v53 }
 0x3b8   :  { %18387 = vst [vmem:[#allocation131_spill] sm:$0xff] %v13443_v56  ;;  %v13445_v2 = vpop.xlane.xlu0 %2466  ;;  %v9788_v54 = vpop.f32.mrb[68].mxu0  ;;  %v13524_v10 = vsel %vm12845_vm7, %v9814_v30, -1e+30 }
 0x3b9   :  { %18388 = vst [vmem:[#allocation132_spill] sm:$0xff] %v13445_v2  ;;  %v13451_v0 = vpop.f32.mrb[69].mxu1  ;;  %v13453_v48 = vpop.f32.mrb[69].mxu0  ;;  %v13505_v28 = vsel %vm12845_vm7, %v9788_v54, -1e+30  ;;  %18404 = vst [vmem:[#allocation148_spill] sm:$0xff] %v13524_v10 }
 0x3ba   :  { %2584 = vmax.xlane.f32.xlu1 %v13441_v37  ;;  %2662 = vmax.xlane.f32.xlu0 %v13449_v27  ;;  %18400 = vst [vmem:[#allocation144_spill] sm:$0xff] %v13505_v28 }
 0x3bb   :  { %v9817_v46 = vpop.f32.mrb[70].mxu1  ;;  %v13462_v1 = vpop.xlane.xlu1 %2454 }
 0x3bc   :  { %v13464_v2 = vpop.xlane.xlu0 %2498  ;;  %v9791_v19 = vpop.f32.mrb[70].mxu0 }
 0x3bd   :  { %18391 = vst [vmem:[#allocation135_spill] sm:$0xff] %v13464_v2  ;;  %v13470_v56 = vpop.f32.mrb[71].mxu1  ;;  %v13472_v37 = vpop.f32.mrb[71].mxu0 }
 0x3be   :  { %2616 = vmax.xlane.f32.xlu1 %v13460_v61  ;;  %2634 = vmax.xlane.f32.xlu0 %v13468_v25 }
 0x3bf   :  { %v9820_v27 = vpop.f32.mrb[72].mxu1  ;;  %v13480_v63 = vpop.xlane.xlu1 %2452 }
 0x3c0   :  { %18394 = vst [vmem:[#allocation138_spill] sm:$0xff] %v13480_v63  ;;  %v13482_v2 = vpop.xlane.xlu0 %2502  ;;  %v9794_v58 = vpop.f32.mrb[72].mxu0 }
 0x3c1   :  { %18395 = vst [vmem:[#allocation139_spill] sm:$0xff] %v13482_v2  ;;  %v13488_v26 = vpop.f32.mrb[73].mxu1  ;;  %v13490_v7 = vpop.f32.mrb[73].mxu0 }
 0x3c2   :  { %2588 = vmax.xlane.f32.xlu1 %v13478_v47  ;;  %2666 = vmax.xlane.f32.xlu0 %v13486_v53 }
 0x3c3   :  { %v9823_v25 = vpop.f32.mrb[74].mxu1  ;;  %v13499_v61 = vpop.xlane.xlu1 %2484 }
 0x3c4   :  { %18398 = vst [vmem:[#allocation142_spill] sm:$0xff] %v13499_v61  ;;  %v13501_v2 = vpop.xlane.xlu0 %2534  ;;  %v9797_v31 = vpop.f32.mrb[74].mxu0 }
 0x3c5   :  { %18399 = vst [vmem:[#allocation143_spill] sm:$0xff] %v13501_v2  ;;  %v13507_v63 = vpop.f32.mrb[75].mxu1  ;;  %v13509_v47 = vpop.f32.mrb[75].mxu0 }
 0x3c6   :  { %2620 = vmax.xlane.f32.xlu1 %v13497_v16  ;;  %2638 = vmax.xlane.f32.xlu0 %v13505_v28  ;;  %v13721_v42 = vsel %vm13021_vm1, %v13509_v47, -1e+30  ;;  %v13736_v47 = vsel %vm13021_vm1, %v13507_v63, -1e+30 }
 0x3c7   :  { %v9826_v53 = vpop.f32.mrb[76].mxu1  ;;  %v13518_v2 = vpop.xlane.xlu1 %2456  ;;  %18432 = vst [vmem:[#allocation174_spill] sm:$0xff] %v13721_v42  ;;  %18434 = vst [vmem:[#allocation176_spill] sm:$0xff] %v13736_v47 }
 0x3c8   :  { %18402 = vst [vmem:[#allocation146_spill] sm:$0xff] %v13518_v2  ;;  %v13520_v61 = vpop.xlane.xlu0 %2506  ;;  %v9800_v54 = vpop.f32.mrb[76].mxu0  ;;  %v13545_v2 = vsel %vm12909_vm11, %v9791_v19, -1e+30  ;;  %v13564_v19 = vsel %vm12909_vm11, %v9817_v46, -1e+30 }
 0x3c9   :  { %18403 = vst [vmem:[#allocation147_spill] sm:$0xff] %v13520_v61  ;;  %v13526_v13 = vpop.f32.mrb[77].mxu1  ;;  %v13528_v16 = vpop.f32.mrb[77].mxu0  ;;  %18408 = vst [vmem:[#allocation152_spill] sm:$0xff] %v13545_v2 }
 0x3ca   :  { %18405 = vst [vmem:[#allocation149_spill] sm:$0xff] %v13526_v13  ;;  %2592 = vmax.xlane.f32.xlu1 %v13516_v57  ;;  %2670 = vmax.xlane.f32.xlu0 %v13524_v10  ;;  %18411 = vst [vmem:[#allocation155_spill] sm:$0xff] %v13564_v19  ;;  %v13753_v63 = vsel %vm13050_vm2, %v13528_v16, -1e+30 }
 0x3cb   :  { %v13537_v28 = vpop.f32.mrb[78].mxu1  ;;  %v13539_v61 = vpop.xlane.xlu1 %2488  ;;  %18437 = vst [vmem:[#allocation177_spill] sm:$0xff] %v13753_v63 }
 0x3cc   :  { %v13541_v11 = vpop.xlane.xlu0 %2538  ;;  %v9803_v30 = vpop.f32.mrb[78].mxu0 }
 0x3cd   :  { %18407 = vst [vmem:[#allocation151_spill] sm:$0xff] %v13541_v11  ;;  %v13547_v13 = vpop.f32.mrb[79].mxu1  ;;  %v13549_v57 = vpop.f32.mrb[79].mxu0  ;;  %v13560_v11 = vsel %vm12643_vm4, %v13417_v45, -1e+30 }
 0x3ce   :  { %2624 = vmax.xlane.f32.xlu1 %v13535_v17  ;;  %2642 = vmax.xlane.f32.xlu0 %v13545_v2  ;;  %18410 = vst [vmem:[#allocation154_spill] sm:$0xff] %v13560_v11  ;;  %v13579_v45 = vsel %vm12880_vm9, %v9794_v58, -1e+30 }
 0x3cf   :  { %v13553_v8 = vpop.xlane.xlu1 %2460  ;;  %18413 = vst [vmem:[#allocation157_spill] sm:$0xff] %v13579_v45 }
 0x3d0   :  { %v13555_v10 = vpop.xlane.xlu0 %2510 }
 0x3d1   :  { %18409 = vst [vmem:[#allocation153_spill] sm:$0xff] %v13555_v10  ;;  %v13575_v10 = vsel %vm12643_vm4, %v13415_v44, -1e+30  ;;  %v13594_v44 = vsel %vm12880_vm9, %v9820_v27, -1e+30  ;;  %v18439_v16 = vld [vmem:[#allocation149_spill] sm:$0xff] }
 0x3d2   :  { %2628 = vmax.xlane.f32.xlu1 %v13560_v11  ;;  %2674 = vmax.xlane.f32.xlu0 %v13564_v19  ;;  %18412 = vst [vmem:[#allocation156_spill] sm:$0xff] %v13575_v10  ;;  %v13590_v19 = vsel %vm12810_vm6, %v13435_v52, -1e+30  ;;  %18415 = vst [vmem:[#allocation159_spill] sm:$0xff] %v13594_v44  ;;  %v13609_v52 = vsel %vm12891_vm10, %v9797_v31, -1e+30 }
 0x3d3   :  { %v13568_v17 = vpop.xlane.xlu1 %2492  ;;  %18414 = vst [vmem:[#allocation158_spill] sm:$0xff] %v13590_v19  ;;  %18417 = vst [vmem:[#allocation161_spill] sm:$0xff] %v13609_v52  ;;  %v18420_v31 = vld [vmem:[#allocation24_spill] sm:$0xff]  ;;  %v13770_v14 = vsel %vm13050_vm2, %v18439_v16, -1e+30 }
 0x3d4   :  { %v13570_v2 = vpop.xlane.xlu0 %2542  ;;  %v2693_v5 = vsub.f32 %v18420_v31, %v13341_v12  ;;  %v2709_v12 = vsub.f32 %v12767_v35, %v13252_v43  ;;  %v2695_v35 = vsub.f32 %v12803_v62, %v13278_v4  ;;  %v2711_v62 = vsub.f32 %v12827_v15, %v13307_v51  ;;  %18440 = vst [vmem:[#allocation149_spill] sm:$0xff] %v13770_v14 }
 0x3d5   :  { %v2697_v51 = vsub.f32 %v12855_v20, %v13331_v39  ;;  %v2713_v20 = vsub.f32 %v12875_v50, %v13361_v32  ;;  %v2699_v50 = vsub.f32 %v12918_v49, %v13389_v55  ;;  %v2715_v49 = vsub.f32 %v12954_v6, %v13425_v59 }
 0x3d6   :  { %2660 = vmax.xlane.f32.xlu1 %v13575_v10  ;;  %2646 = vmax.xlane.f32.xlu0 %v13579_v45  ;;  %v13605_v45 = vsel %vm12810_vm6, %v13433_v24, -1e+30  ;;  %v13624_v24 = vsel %vm12891_vm10, %v9823_v25, -1e+30  ;;  %v13641_v25 = vsel %vm12934_vm13, %v9800_v54, -1e+30  ;;  %v2701_v59 = vsub.f32 %v12983_v34, %v13462_v1 }
 0x3d7   :  { %v13583_v46 = vpop.xlane.xlu1 %2464  ;;  %18416 = vst [vmem:[#allocation160_spill] sm:$0xff] %v13605_v45  ;;  %18419 = vst [vmem:[#allocation163_spill] sm:$0xff] %v13624_v24  ;;  %v2822_v9 = vmul.f32 1.442695, %v2693_v5  ;;  %v13658_v54 = vsel %vm12934_vm13, %v9826_v53, -1e+30 }
 0x3d8   :  { %v13585_v38 = vpop.xlane.xlu0 %2514  ;;  %18422 = vst [vmem:[#allocation164_spill] sm:$0xff] %v13641_v25  ;;  %18424 = vst [vmem:[#allocation166_spill] sm:$0xff] %v13658_v54  ;;  %v2854_v5 = vmul.f32 1.442695, %v2709_v12  ;;  %v13675_v53 = vsel %vm12963_vm14, %v9803_v30, -1e+30 }
 0x3d9   :  { %11161 = vpow2.f32 %v2822_v9  ;;  %18426 = vst [vmem:[#allocation168_spill] sm:$0xff] %v13675_v53  ;;  %v2826_v9 = vmul.f32 1.442695, %v2695_v35  ;;  %v13693_v30 = vsel %vm12963_vm14, %v13537_v28, -1e+30  ;;  %v18443_v34 = vld [vmem:[#allocation114_spill] sm:$0xff] }
 0x3da   :  { %2632 = vmax.xlane.f32.xlu1 %v13590_v19  ;;  %2678 = vmax.xlane.f32.xlu0 %v13594_v44  ;;  %v13620_v44 = vsel %vm12862_vm8, %v13453_v48, -1e+30  ;;  %v13637_v48 = vsel %vm12862_vm8, %v13451_v0, -1e+30  ;;  %v13654_v0 = vsel %vm12927_vm12, %v13472_v37, -1e+30  ;;  %11163 = vpow2.f32 %v2854_v5 }
 0x3db   :  { %v13598_v58 = vpop.xlane.xlu1 %2496  ;;  %18418 = vst [vmem:[#allocation162_spill] sm:$0xff] %v13620_v44  ;;  %18421 = vst [vmem:[#allocation24_spill] sm:$0xff] %v13637_v48  ;;  %v13671_v37 = vsel %vm12927_vm12, %v13470_v56, -1e+30  ;;  %v13688_v56 = vsel %vm12992_vm15, %v13490_v7, -1e+30  ;;  %11165 = vpow2.f32 %v2826_v9 }
 0x3dc   :  { %v13600_v23 = vpop.xlane.xlu0 %2546  ;;  %18423 = vst [vmem:[#allocation165_spill] sm:$0xff] %v13654_v0  ;;  %18425 = vst [vmem:[#allocation167_spill] sm:$0xff] %v13671_v37  ;;  %v2858_v15 = vmul.f32 1.442695, %v2711_v62  ;;  %v13708_v28 = vsel %vm12992_vm15, %v13488_v26, -1e+30 }
 0x3dd   :  { %18427 = vst [vmem:[#allocation169_spill] sm:$0xff] %v13688_v56  ;;  %18428 = vst [vmem:[#allocation170_spill] sm:$0xff] %v13693_v30  ;;  %v2830_v9 = vmul.f32 1.442695, %v2697_v51  ;;  %v2866_v6 = vmul.f32 1.442695, %v2715_v49 }
 0x3de   :  { %2664 = vmax.xlane.f32.xlu1 %v13605_v45  ;;  %2650 = vmax.xlane.f32.xlu0 %v13609_v52  ;;  %18430 = vst [vmem:[#allocation172_spill] sm:$0xff] %v13708_v28  ;;  %11167 = vpow2.f32 %v2858_v15  ;;  %v2862_v15 = vmul.f32 1.442695, %v2713_v20  ;;  %v18444_v1 = vld [vmem:[#allocation34_spill] sm:$0xff]  ;;  %vm17954_vm14 = vmmov 0  }
 0x3df   :  { %v13613_v27 = vpop.xlane.xlu1 %2500  ;;  %11169 = vpow2.f32 %v2830_v9  ;;  %v2834_v9 = vmul.f32 1.442695, %v2699_v50  ;;  %v2717_v49 = vsub.f32 %v18444_v1, %v18443_v34  ;;  %v18450_v34 = vld [vmem:[#allocation36_spill] sm:$0xff] }
 0x3e0   :  { %v13615_v29 = vpop.xlane.xlu0 %2518  ;;  %11171 = vpow2.f32 %v2862_v15 }
 0x3e1   :  { %11173 = vpow2.f32 %v2834_v9 }
 0x3e2   :  { %2636 = vmax.xlane.f32.xlu1 %v13620_v44  ;;  %2682 = vmax.xlane.f32.xlu0 %v13624_v24  ;;  %11175 = vpow2.f32 %v2820_v36  ;;  %v13787_v36 = vsel %vm13081_vm0, %v13549_v57, -1e+30 }
 0x3e3   :  { %v13630_v52 = vpop.xlane.xlu1 %2532  ;;  %v13703_v7 = vpop.eup %11161  ;;  %11177 = vpow2.f32 %v2866_v6  ;;  %v2870_v6 = vmul.f32 1.442695, %v2717_v49 }
 0x3e4   :  { %v13632_v45 = vpop.xlane.xlu0 %2550  ;;  %18429 = vst [vmem:[#allocation171_spill] sm:$0xff] %v13703_v7  ;;  %v13716_v62 = vpop.eup %11163  ;;  %11179 = vpow2.f32 %v2852_v33  ;;  %v13804_v33 = vsel %vm13081_vm0, %v13547_v13, -1e+30 }
 0x3e5   :  { %18431 = vst [vmem:[#allocation173_spill] sm:$0xff] %v13716_v62  ;;  %v13731_v51 = vpop.eup %11165  ;;  %18452 = vst [vmem:[#allocation34_spill] sm:$0xff] %v13804_v33 }
 0x3e6   :  { %2668 = vmax.xlane.f32.xlu1 %v13637_v48  ;;  %2654 = vmax.xlane.f32.xlu0 %v13641_v25  ;;  %18433 = vst [vmem:[#allocation175_spill] sm:$0xff] %v13731_v51 }
 0x3e7   :  { %v13647_v31 = vpop.xlane.xlu1 %2504 }
 0x3e8   :  { %v13649_v24 = vpop.xlane.xlu0 %2522  ;;  %v13748_v22 = vpop.eup %11167 }
 0x3e9   :  { %18436 = vst [vmem:[#allocation25_spill] sm:$0xff] %v13748_v22  ;;  %v13765_v3 = vpop.eup %11169 }
 0x3ea   :  { %2640 = vmax.xlane.f32.xlu1 %v13654_v0  ;;  %2686 = vmax.xlane.f32.xlu0 %v13658_v54  ;;  %18438 = vst [vmem:[#allocation178_spill] sm:$0xff] %v13765_v3  ;;  %v13782_v16 = vpop.eup %11171 }
 0x3eb   :  { %v13664_v43 = vpop.xlane.xlu1 %2536  ;;  %18445 = vst [vmem:[#allocation101_spill] sm:$0xff] %v13782_v16  ;;  %v13799_v57 = vpop.eup %11173 }
 0x3ec   :  { %v13666_v41 = vpop.xlane.xlu0 %2554  ;;  %18451 = vst [vmem:[#allocation114_spill] sm:$0xff] %v13799_v57  ;;  %v13816_v13 = vpop.eup %11175 }
 0x3ee   :  { %2672 = vmax.xlane.f32.xlu1 %v13671_v37  ;;  %2658 = vmax.xlane.f32.xlu0 %v13675_v53 }
 0x3ef   :  { %v13681_v4 = vpop.xlane.xlu1 %2508 }
 0x3f0   :  { %v13683_v12 = vpop.xlane.xlu0 %2526 }
 0x3f2   :  { %2644 = vmax.xlane.f32.xlu1 %v13688_v56  ;;  %2690 = vmax.xlane.f32.xlu0 %v13693_v30 }
 0x3f3   :  { %v13699_v5 = vpop.xlane.xlu1 %2540 }
 0x3f4   :  { %v13701_v35 = vpop.xlane.xlu0 %2558 }
 0x3f6   :  { %2676 = vmax.xlane.f32.xlu1 %v13708_v28  ;;  %3078 = vadd.xlane.f32.xlu0 %v13703_v7 }
 0x3f7   :  { %v13714_v39 = vpop.xlane.xlu1 %2512 }
 0x3f8   :  { %v13723_v26 = vpop.xlane.xlu0 %2530 }
 0x3fa   :  { %2648 = vmax.xlane.f32.xlu1 %v13721_v42  ;;  %3110 = vadd.xlane.f32.xlu0 %v13716_v62 }
 0x3fb   :  { %v13729_v32 = vpop.xlane.xlu1 %2544 }
 0x3fc   :  { %v13744_v55 = vpop.xlane.xlu0 %2562 }
 0x3fe   :  { %2680 = vmax.xlane.f32.xlu1 %v13736_v47  ;;  %3082 = vadd.xlane.f32.xlu0 %v13731_v51  ;;  %v2838_v47 = vmul.f32 1.442695, %v2701_v59  ;;  %v18449_v59 = vld [vmem:[#allocation118_spill] sm:$0xff] }
 0x3ff   :  { %v13746_v20 = vpop.xlane.xlu1 %2516  ;;  %v2703_v1 = vsub.f32 %v18450_v34, %v18449_v59  ;;  %v18455_v59 = vld [vmem:[#allocation121_spill] sm:$0xff]  ;;  %v18456_v34 = vld [vmem:[#allocation39_spill] sm:$0xff] }
 0x400   :  { %11181 = vpow2.f32 %v2838_v47 }
 0x401   :  { %v2842_v47 = vmul.f32 1.442695, %v2703_v1  ;;  %v18460_v1 = vld [vmem:[#allocation126_spill] sm:$0xff] }
 0x402   :  { %2652 = vmax.xlane.f32.xlu1 %v13753_v63  ;;  %3114 = vadd.xlane.f32.xlu0 %v13748_v22  ;;  %v18442_v63 = vld [vmem:[#allocation28_spill] sm:$0xff] }
 0x403   :  { %v13761_v15 = vpop.xlane.xlu1 %2548  ;;  %v13763_v50 = vpop.xlane.xlu0 %2566  ;;  %v2694_v9 = vsub.f32 %v18442_v63, %v18441_v18  ;;  %18446 = vst [vmem:[#allocation28_spill] sm:$0xff] %v13787_v36  ;;  %v18448_v18 = vld [vmem:[#allocation29_spill] sm:$0xff] }
 0x404   :  { %v2710_v60 = vsub.f32 %v18448_v18, %v18447_v40  ;;  %v18453_v40 = vld [vmem:[#allocation111_spill] sm:$0xff]  ;;  %v18454_v18 = vld [vmem:[#allocation32_spill] sm:$0xff] }
 0x405   :  { %v2824_v63 = vmul.f32 1.442695, %v2694_v9  ;;  %v2696_v49 = vsub.f32 %v18454_v18, %v18453_v40  ;;  %v18458_v40 = vld [vmem:[#allocation117_spill] sm:$0xff] }
 0x406   :  { %2684 = vmax.xlane.f32.xlu1 %v13770_v14  ;;  %3086 = vadd.xlane.f32.xlu0 %v13765_v3  ;;  %v2856_v9 = vmul.f32 1.442695, %v2710_v60  ;;  %v18459_v18 = vld [vmem:[#allocation37_spill] sm:$0xff] }
 0x407   :  { %v13778_v42 = vpop.xlane.xlu1 %2520  ;;  %v13780_v28 = vpop.xlane.xlu0 %2598  ;;  %11183 = vpow2.f32 %v2824_v63  ;;  %v2828_v60 = vmul.f32 1.442695, %v2696_v49  ;;  %v2712_v21 = vsub.f32 %v18459_v18, %v18458_v40  ;;  %v18464_v40 = vld [vmem:[#allocation125_spill] sm:$0xff]  ;;  %v18465_v18 = vld [vmem:[#allocation42_spill] sm:$0xff] }
 0x408   :  { %11185 = vpow2.f32 %v2870_v6  ;;  %v13818_v63 = vpop.eup %11177  ;;  %v2698_v0 = vsub.f32 %v18465_v18, %v18464_v40  ;;  %v18470_v40 = vld [vmem:[#allocation131_spill] sm:$0xff] }
 0x409   :  { %18457 = vst [vmem:[#allocation106_spill] sm:$0xff] %v13818_v63  ;;  %11187 = vpow2.f32 %v2856_v9  ;;  %v13830_v54 = vpop.eup %11179  ;;  %v2860_v49 = vmul.f32 1.442695, %v2712_v21  ;;  %v18471_v18 = vld [vmem:[#allocation47_spill] sm:$0xff] }
 0x40a   :  { %3118 = vadd.xlane.f32.xlu0 %v13782_v16  ;;  %2656 = vmax.xlane.f32.xlu1 %v13787_v36  ;;  %v2719_v36 = vsub.f32 %v18456_v34, %v18455_v59  ;;  %11189 = vpow2.f32 %v2842_v47  ;;  %v18461_v59 = vld [vmem:[#allocation43_spill] sm:$0xff]  ;;  %18462 = vst [vmem:[#allocation29_spill] sm:$0xff] %v13830_v54  ;;  %v13832_v9 = vpop.eup %11181  ;;  %v18466_v47 = vld [vmem:[#allocation128_spill] sm:$0xff]  ;;  %v2832_v21 = vmul.f32 1.442695, %v2698_v0 }
 0x40b   :  { %v13795_v14 = vpop.xlane.xlu1 %2552  ;;  %v13797_v30 = vpop.xlane.xlu0 %2570  ;;  %v2705_v34 = vsub.f32 %v18461_v59, %v18460_v1  ;;  %18463 = vst [vmem:[#allocation118_spill] sm:$0xff] %v13832_v9  ;;  %11191 = vpow2.f32 %v2828_v60  ;;  %v18467_v1 = vld [vmem:[#allocation44_spill] sm:$0xff] }
 0x40c   :  { %v2874_v6 = vmul.f32 1.442695, %v2719_v36  ;;  %v2721_v59 = vsub.f32 %v18467_v1, %v18466_v47  ;;  %v18473_v47 = vld [vmem:[#allocation46_spill] sm:$0xff] }
 0x40d   :  { %v2846_v36 = vmul.f32 1.442695, %v2705_v34  ;;  %v18472_v34 = vld [vmem:[#allocation132_spill] sm:$0xff] }
 0x40e   :  { %3090 = vadd.xlane.f32.xlu0 %v13799_v57  ;;  %2688 = vmax.xlane.f32.xlu1 %v13804_v33  ;;  %11193 = vpow2.f32 %v2874_v6  ;;  %v2878_v6 = vmul.f32 1.442695, %v2721_v59  ;;  %v2707_v1 = vsub.f32 %v18473_v47, %v18472_v34  ;;  %v18478_v59 = vld [vmem:[#allocation138_spill] sm:$0xff] }
 0x40f   :  { %v13812_v56 = vpop.xlane.xlu1 %2524  ;;  %v13814_v53 = vpop.xlane.xlu0 %2602  ;;  %11195 = vpow2.f32 %v2860_v49  ;;  %v18479_v34 = vld [vmem:[#allocation50_spill] sm:$0xff] }
 0x410   :  { %11197 = vpow2.f32 %v2846_v36  ;;  %v2850_v36 = vmul.f32 1.442695, %v2707_v1  ;;  %v2700_v47 = vsub.f32 %v18479_v34, %v18478_v59  ;;  %v18484_v1 = vld [vmem:[#allocation142_spill] sm:$0xff]  ;;  %v18485_v59 = vld [vmem:[#allocation52_spill] sm:$0xff] }
 0x411   :  { %v13844_v44 = vpop.eup %11183  ;;  %11199 = vpow2.f32 %v2832_v21  ;;  %v2716_v34 = vsub.f32 %v18485_v59, %v18484_v1  ;;  %v18491_v1 = vld [vmem:[#allocation55_spill] sm:$0xff] }
 0x412   :  { %3122 = vadd.xlane.f32.xlu0 %v13818_v63  ;;  %3076 = vadd.xlane.f32.xlu1 %v13816_v13  ;;  %18468 = vst [vmem:[#allocation36_spill] sm:$0xff] %v13844_v44  ;;  %v13846_v60 = vpop.eup %11185  ;;  %11201 = vpow2.f32 %v2878_v6  ;;  %v2836_v6 = vmul.f32 1.442695, %v2700_v47  ;;  %v18490_v47 = vld [vmem:[#allocation146_spill] sm:$0xff] }
 0x413   :  { %v13826_v33 = vpop.xlane.xlu1 %2556  ;;  %v13828_v37 = vpop.xlane.xlu0 %2574  ;;  %18469 = vst [vmem:[#allocation111_spill] sm:$0xff] %v13846_v60  ;;  %v2702_v59 = vsub.f32 %v18491_v1, %v18490_v47 }
 0x414   :  { %v13858_v16 = vpop.eup %11187 }
 0x415   :  { %18474 = vst [vmem:[#allocation32_spill] sm:$0xff] %v13858_v16  ;;  %v13860_v49 = vpop.eup %11189 }
 0x416   :  { %3094 = vadd.xlane.f32.xlu0 %v13832_v9  ;;  %3108 = vadd.xlane.f32.xlu1 %v13830_v54  ;;  %v2714_v9 = vsub.f32 %v18471_v18, %v18470_v40  ;;  %18475 = vst [vmem:[#allocation121_spill] sm:$0xff] %v13860_v49  ;;  %v18476_v40 = vld [vmem:[#allocation135_spill] sm:$0xff]  ;;  %v18477_v18 = vld [vmem:[#allocation48_spill] sm:$0xff]  ;;  %v13872_v10 = vpop.eup %11191  ;;  %v17880_v54 = vmov 0.0|0.0  }
 0x417   :  { %v13840_v25 = vpop.xlane.xlu1 %2528  ;;  %v13842_v48 = vpop.xlane.xlu0 %2606  ;;  %18480 = vst [vmem:[#allocation39_spill] sm:$0xff] %v13872_v10  ;;  %10742 = vmatprep.subr.bf16.mxu0 %v17880_v54  ;;  %10766 = vmatprep.subr.bf16.mxu1 %v17880_v54 }
 0x418   :  { %v2864_v0 = vmul.f32 1.442695, %v2714_v9  ;;  %v13874_v21 = vpop.eup %11193 }
 0x419   :  { %18481 = vst [vmem:[#allocation117_spill] sm:$0xff] %v13874_v21  ;;  %v13886_v11 = vpop.eup %11195 }
 0x41a   :  { %3126 = vadd.xlane.f32.xlu0 %v13846_v60  ;;  %3080 = vadd.xlane.f32.xlu1 %v13844_v44  ;;  %v2723_v60 = vsub.f32 %v18477_v18, %v18476_v40  ;;  %11203 = vpow2.f32 %v2864_v0  ;;  %v18482_v40 = vld [vmem:[#allocation139_spill] sm:$0xff]  ;;  %18486 = vst [vmem:[#allocation37_spill] sm:$0xff] %v13886_v11  ;;  %v13888_v0 = vpop.eup %11197 }
 0x41b   :  { %v13854_v63 = vpop.xlane.xlu1 %2560  ;;  %v13856_v57 = vpop.xlane.xlu0 %2578  ;;  %v18483_v18 = vld [vmem:[#allocation51_spill] sm:$0xff]  ;;  %11205 = vpow2.f32 %v2850_v36  ;;  %18487 = vst [vmem:[#allocation126_spill] sm:$0xff] %v13888_v0  ;;  %v2868_v36 = vmul.f32 1.442695, %v2716_v34  ;;  %v18496_v34 = vld [vmem:[#allocation57_spill] sm:$0xff] }
 0x41c   :  { %v2882_v9 = vmul.f32 1.442695, %v2723_v60  ;;  %v13900_v44 = vpop.eup %11199  ;;  %v2718_v47 = vsub.f32 %v18496_v34, %v13539_v61  ;;  %v18501_v61 = vld [vmem:[#allocation60_spill] sm:$0xff] }
 0x41d   :  { %18492 = vst [vmem:[#allocation43_spill] sm:$0xff] %v13900_v44 }
 0x41e   :  { %3098 = vadd.xlane.f32.xlu0 %v13860_v49  ;;  %3112 = vadd.xlane.f32.xlu1 %v13858_v16  ;;  %v2725_v49 = vsub.f32 %v18483_v18, %v18482_v40  ;;  %11207 = vpow2.f32 %v2882_v9  ;;  %v18488_v40 = vld [vmem:[#allocation143_spill] sm:$0xff]  ;;  %v18489_v18 = vld [vmem:[#allocation53_spill] sm:$0xff]  ;;  %v13902_v9 = vpop.eup %11201 }
 0x41f   :  { %v13868_v19 = vpop.xlane.xlu1 %2564  ;;  %v13870_v3 = vpop.xlane.xlu0 %2610  ;;  %11209 = vpow2.f32 %v2836_v6  ;;  %18493 = vst [vmem:[#allocation125_spill] sm:$0xff] %v13902_v9  ;;  %v2840_v6 = vmul.f32 1.442695, %v2702_v59  ;;  %v2704_v59 = vsub.f32 %v18501_v61, %v13553_v8  ;;  %v18506_v61 = vld [vmem:[#allocation62_spill] sm:$0xff] }
 0x420   :  { %v2886_v60 = vmul.f32 1.442695, %v2725_v49 }
 0x421   :  { %v2844_v8 = vmul.f32 1.442695, %v2704_v59 }
 0x422   :  { %3130 = vadd.xlane.f32.xlu0 %v13874_v21  ;;  %3084 = vadd.xlane.f32.xlu1 %v13872_v10  ;;  %v2741_v21 = vsub.f32 %v18489_v18, %v18488_v40  ;;  %11211 = vpow2.f32 %v2886_v60  ;;  %v18494_v40 = vld [vmem:[#allocation147_spill] sm:$0xff]  ;;  %v18495_v18 = vld [vmem:[#allocation56_spill] sm:$0xff] }
 0x423   :  { %v13882_v22 = vpop.xlane.xlu1 %2596  ;;  %v13884_v16 = vpop.xlane.xlu0 %2582  ;;  %11213 = vpow2.f32 %v2868_v36  ;;  %v2872_v36 = vmul.f32 1.442695, %v2718_v47  ;;  %v18505_v47 = vld [vmem:[#allocation61_spill] sm:$0xff] }
 0x424   :  { %v2918_v49 = vmul.f32 1.442695, %v2741_v21  ;;  %v13914_v62 = vpop.eup %11203 }
 0x425   :  { %18497 = vst [vmem:[#allocation42_spill] sm:$0xff] %v13914_v62  ;;  %v13916_v60 = vpop.eup %11205 }
 0x426   :  { %3102 = vadd.xlane.f32.xlu0 %v13888_v0  ;;  %3116 = vadd.xlane.f32.xlu1 %v13886_v11  ;;  %v2727_v0 = vsub.f32 %v18495_v18, %v18494_v40  ;;  %18498 = vst [vmem:[#allocation128_spill] sm:$0xff] %v13916_v60  ;;  %11215 = vpow2.f32 %v2918_v49  ;;  %v18499_v40 = vld [vmem:[#allocation151_spill] sm:$0xff]  ;;  %v18500_v18 = vld [vmem:[#allocation58_spill] sm:$0xff] }
 0x427   :  { %v13896_v10 = vpop.xlane.xlu1 %2568  ;;  %v13898_v51 = vpop.xlane.xlu0 %2614  ;;  %11217 = vpow2.f32 %v2840_v6  ;;  %v18504_v6 = vld [vmem:[#allocation153_spill] sm:$0xff] }
 0x428   :  { %v2890_v21 = vmul.f32 1.442695, %v2727_v0  ;;  %v13930_v0 = vpop.eup %11207 }
 0x429   :  { %18502 = vst [vmem:[#allocation44_spill] sm:$0xff] %v13930_v0  ;;  %v13932_v49 = vpop.eup %11209 }
 0x42a   :  { %3134 = vadd.xlane.f32.xlu0 %v13902_v9  ;;  %3088 = vadd.xlane.f32.xlu1 %v13900_v44  ;;  %v2743_v9 = vsub.f32 %v18500_v18, %v18499_v40  ;;  %18503 = vst [vmem:[#allocation131_spill] sm:$0xff] %v13932_v49  ;;  %11219 = vpow2.f32 %v2890_v21  ;;  %v2729_v18 = vsub.f32 %v18505_v47, %v18504_v6  ;;  %v18509_v6 = vld [vmem:[#allocation63_spill] sm:$0xff] }
 0x42b   :  { %v13910_v1 = vpop.xlane.xlu1 %2600  ;;  %v13912_v11 = vpop.xlane.xlu0 %2586  ;;  %11221 = vpow2.f32 %v2872_v36  ;;  %v2745_v47 = vsub.f32 %v18509_v6, %v13570_v2  ;;  %v18513_v2 = vld [vmem:[#allocation66_spill] sm:$0xff] }
 0x42c   :  { %v2922_v40 = vmul.f32 1.442695, %v2743_v9  ;;  %v13944_v7 = vpop.eup %11211  ;;  %v2894_v9 = vmul.f32 1.442695, %v2729_v18  ;;  %v2731_v6 = vsub.f32 %v18513_v2, %v13585_v38  ;;  %v18517_v38 = vld [vmem:[#allocation68_spill] sm:$0xff] }
 0x42d   :  { %18507 = vst [vmem:[#allocation47_spill] sm:$0xff] %v13944_v7  ;;  %v13946_v21 = vpop.eup %11213  ;;  %v2926_v18 = vmul.f32 1.442695, %v2745_v47  ;;  %v2747_v2 = vsub.f32 %v18517_v38, %v13600_v23  ;;  %v18521_v23 = vld [vmem:[#allocation70_spill] sm:$0xff] }
 0x42e   :  { %3106 = vadd.xlane.f32.xlu0 %v13916_v60  ;;  %3120 = vadd.xlane.f32.xlu1 %v13914_v62  ;;  %v2720_v60 = vsub.f32 %v18506_v61, %v13568_v17  ;;  %18508 = vst [vmem:[#allocation132_spill] sm:$0xff] %v13946_v21  ;;  %11223 = vpow2.f32 %v2922_v40  ;;  %v18510_v17 = vld [vmem:[#allocation65_spill] sm:$0xff]  ;;  %v2898_v47 = vmul.f32 1.442695, %v2731_v6  ;;  %v2733_v38 = vsub.f32 %v18521_v23, %v13615_v29  ;;  %v18525_v29 = vld [vmem:[#allocation72_spill] sm:$0xff] }
 0x42f   :  { %v13924_v34 = vpop.xlane.xlu1 %2572  ;;  %v13926_v44 = vpop.xlane.xlu0 %2618  ;;  %11225 = vpow2.f32 %v2844_v8  ;;  %v2706_v59 = vsub.f32 %v18510_v17, %v13583_v46  ;;  %v18514_v46 = vld [vmem:[#allocation67_spill] sm:$0xff]  ;;  %v2930_v6 = vmul.f32 1.442695, %v2747_v2  ;;  %v2749_v23 = vsub.f32 %v18525_v29, %v13632_v45  ;;  %v18529_v45 = vld [vmem:[#allocation74_spill] sm:$0xff] }
 0x430   :  { %v2876_v36 = vmul.f32 1.442695, %v2720_v60  ;;  %11227 = vpow2.f32 %v2894_v9  ;;  %v2722_v8 = vsub.f32 %v18514_v46, %v13598_v58  ;;  %v18518_v58 = vld [vmem:[#allocation69_spill] sm:$0xff]  ;;  %v2902_v2 = vmul.f32 1.442695, %v2733_v38 }
 0x431   :  { %v2848_v60 = vmul.f32 1.442695, %v2706_v59  ;;  %v2724_v59 = vsub.f32 %v18518_v58, %v13613_v27  ;;  %v18522_v27 = vld [vmem:[#allocation71_spill] sm:$0xff]  ;;  %v2934_v38 = vmul.f32 1.442695, %v2749_v23  ;;  %v2735_v29 = vsub.f32 %v18529_v45, %v13649_v24  ;;  %v18533_v24 = vld [vmem:[#allocation76_spill] sm:$0xff] }
 0x432   :  { %3138 = vadd.xlane.f32.xlu0 %v13930_v0  ;;  %3092 = vadd.xlane.f32.xlu1 %v13932_v49  ;;  %v13958_v49 = vpop.eup %11215  ;;  %11229 = vpow2.f32 %v2876_v36  ;;  %v2880_v36 = vmul.f32 1.442695, %v2722_v8  ;;  %v2740_v8 = vsub.f32 %v18522_v27, %v13630_v52  ;;  %v18526_v52 = vld [vmem:[#allocation73_spill] sm:$0xff]  ;;  %v2751_v45 = vsub.f32 %v18533_v24, %v13666_v41  ;;  %v18537_v41 = vld [vmem:[#allocation78_spill] sm:$0xff] }
 0x433   :  { %v13940_v62 = vpop.xlane.xlu1 %2604  ;;  %v13942_v54 = vpop.xlane.xlu0 %2590  ;;  %18511 = vst [vmem:[#allocation46_spill] sm:$0xff] %v13958_v49  ;;  %11231 = vpow2.f32 %v2926_v18  ;;  %v2906_v23 = vmul.f32 1.442695, %v2735_v29  ;;  %v2737_v24 = vsub.f32 %v18537_v41, %v13683_v12  ;;  %v18541_v12 = vld [vmem:[#allocation80_spill] sm:$0xff] }
 0x434   :  { %v13960_v40 = vpop.eup %11217  ;;  %11233 = vpow2.f32 %v2848_v60  ;;  %v2884_v60 = vmul.f32 1.442695, %v2724_v59  ;;  %v2726_v59 = vsub.f32 %v18526_v52, %v13647_v31  ;;  %v18530_v31 = vld [vmem:[#allocation75_spill] sm:$0xff]  ;;  %v2938_v29 = vmul.f32 1.442695, %v2751_v45 }
 0x435   :  { %18512 = vst [vmem:[#allocation135_spill] sm:$0xff] %v13960_v40  ;;  %11235 = vpow2.f32 %v2898_v47  ;;  %v2910_v45 = vmul.f32 1.442695, %v2737_v24  ;;  %v2753_v41 = vsub.f32 %v18541_v12, %v13701_v35  ;;  %v18545_v35 = vld [vmem:[#allocation82_spill] sm:$0xff] }
 0x436   :  { %3142 = vadd.xlane.f32.xlu0 %v13944_v7  ;;  %3124 = vadd.xlane.f32.xlu1 %v13946_v21  ;;  %v13972_v21 = vpop.eup %11219  ;;  %11237 = vpow2.f32 %v2880_v36  ;;  %v2916_v36 = vmul.f32 1.442695, %v2740_v8  ;;  %v2742_v8 = vsub.f32 %v18530_v31, %v13664_v43  ;;  %v18534_v43 = vld [vmem:[#allocation77_spill] sm:$0xff]  ;;  %v2739_v12 = vsub.f32 %v18545_v35, %v13723_v26  ;;  %v18549_v26 = vld [vmem:[#allocation84_spill] sm:$0xff] }
 0x437   :  { %v13954_v61 = vpop.xlane.xlu1 %2576  ;;  %v13956_v0 = vpop.xlane.xlu0 %2622  ;;  %18515 = vst [vmem:[#allocation48_spill] sm:$0xff] %v13972_v21  ;;  %11239 = vpow2.f32 %v2930_v6  ;;  %v2942_v24 = vmul.f32 1.442695, %v2753_v41  ;;  %v2755_v35 = vsub.f32 %v18549_v26, %v13744_v55  ;;  %v18553_v55 = vld [vmem:[#allocation86_spill] sm:$0xff] }
 0x438   :  { %v13974_v9 = vpop.eup %11221  ;;  %11241 = vpow2.f32 %v2884_v60  ;;  %v2888_v60 = vmul.f32 1.442695, %v2726_v59  ;;  %v2728_v59 = vsub.f32 %v18534_v43, %v13681_v4  ;;  %v18538_v4 = vld [vmem:[#allocation79_spill] sm:$0xff]  ;;  %v2914_v41 = vmul.f32 1.442695, %v2739_v12 }
 0x439   :  { %18516 = vst [vmem:[#allocation138_spill] sm:$0xff] %v13974_v9  ;;  %11243 = vpow2.f32 %v2902_v2  ;;  %v2946_v12 = vmul.f32 1.442695, %v2755_v35  ;;  %v2748_v26 = vsub.f32 %v18553_v55, %v13761_v15  ;;  %v18557_v15 = vld [vmem:[#allocation89_spill] sm:$0xff] }
 0x43a   :  { %3174 = vadd.xlane.f32.xlu0 %v13958_v49  ;;  %3096 = vadd.xlane.f32.xlu1 %v13960_v40  ;;  %v13986_v40 = vpop.eup %11223  ;;  %11245 = vpow2.f32 %v2916_v36  ;;  %v2920_v36 = vmul.f32 1.442695, %v2742_v8  ;;  %v2744_v8 = vsub.f32 %v18538_v4, %v13699_v5  ;;  %v18542_v5 = vld [vmem:[#allocation81_spill] sm:$0xff]  ;;  %v2734_v55 = vsub.f32 %v18557_v15, %v13778_v42  ;;  %v18561_v42 = vld [vmem:[#allocation90_spill] sm:$0xff] }
 0x43b   :  { %v13968_v17 = vpop.xlane.xlu1 %2608  ;;  %v13970_v7 = vpop.xlane.xlu0 %2594  ;;  %18519 = vst [vmem:[#allocation50_spill] sm:$0xff] %v13986_v40  ;;  %11247 = vpow2.f32 %v2934_v38  ;;  %v2932_v35 = vmul.f32 1.442695, %v2748_v26  ;;  %v2750_v15 = vsub.f32 %v18561_v42, %v13795_v14  ;;  %v18565_v14 = vld [vmem:[#allocation93_spill] sm:$0xff] }
 0x43c   :  { %v13988_v18 = vpop.eup %11225  ;;  %11249 = vpow2.f32 %v2888_v60  ;;  %v2892_v60 = vmul.f32 1.442695, %v2728_v59  ;;  %v2730_v59 = vsub.f32 %v18542_v5, %v13714_v39  ;;  %v18546_v39 = vld [vmem:[#allocation83_spill] sm:$0xff]  ;;  %v2904_v26 = vmul.f32 1.442695, %v2734_v55 }
 0x43d   :  { %18520 = vst [vmem:[#allocation139_spill] sm:$0xff] %v13988_v18  ;;  %11251 = vpow2.f32 %v2906_v23  ;;  %v2936_v55 = vmul.f32 1.442695, %v2750_v15  ;;  %v2736_v42 = vsub.f32 %v18565_v14, %v13812_v56  ;;  %v18570_v14 = vld [vmem:[#allocation95_spill] sm:$0xff] }
 0x43e   :  { %3146 = vadd.xlane.f32.xlu0 %v13972_v21  ;;  %3128 = vadd.xlane.f32.xlu1 %v13974_v9  ;;  %v14000_v9 = vpop.eup %11227  ;;  %11253 = vpow2.f32 %v2920_v36  ;;  %v2924_v36 = vmul.f32 1.442695, %v2744_v8  ;;  %v2746_v8 = vsub.f32 %v18546_v39, %v13729_v32  ;;  %v18550_v32 = vld [vmem:[#allocation85_spill] sm:$0xff] }
 0x43f   :  { %v13982_v46 = vpop.xlane.xlu1 %2580  ;;  %v13984_v49 = vpop.xlane.xlu0 %2626  ;;  %18523 = vst [vmem:[#allocation51_spill] sm:$0xff] %v14000_v9  ;;  %11255 = vpow2.f32 %v2938_v29  ;;  %v2908_v15 = vmul.f32 1.442695, %v2736_v42 }
 0x440   :  { %v14002_v47 = vpop.eup %11229  ;;  %11257 = vpow2.f32 %v2892_v60  ;;  %v2896_v60 = vmul.f32 1.442695, %v2730_v59  ;;  %v2732_v59 = vsub.f32 %v18550_v32, %v13746_v20  ;;  %v18554_v20 = vld [vmem:[#allocation87_spill] sm:$0xff] }
 0x441   :  { %18524 = vst [vmem:[#allocation142_spill] sm:$0xff] %v14002_v47  ;;  %11259 = vpow2.f32 %v2910_v45 }
 0x442   :  { %3178 = vadd.xlane.f32.xlu0 %v13986_v40  ;;  %3100 = vadd.xlane.f32.xlu1 %v13988_v18  ;;  %v14014_v18 = vpop.eup %11231  ;;  %11261 = vpow2.f32 %v2924_v36  ;;  %v2928_v36 = vmul.f32 1.442695, %v2746_v8  ;;  %v2757_v8 = vsub.f32 %v18554_v20, %v13763_v50  ;;  %v18558_v50 = vld [vmem:[#allocation88_spill] sm:$0xff] }
 0x443   :  { %v13996_v58 = vpop.xlane.xlu1 %2612  ;;  %v13998_v21 = vpop.xlane.xlu0 %2630  ;;  %18527 = vst [vmem:[#allocation52_spill] sm:$0xff] %v14014_v18  ;;  %11263 = vpow2.f32 %v2942_v24 }
 0x444   :  { %v14016_v6 = vpop.eup %11233  ;;  %11265 = vpow2.f32 %v2896_v60  ;;  %v2900_v60 = vmul.f32 1.442695, %v2732_v59  ;;  %v2773_v59 = vsub.f32 %v18558_v50, %v13780_v28  ;;  %v18562_v28 = vld [vmem:[#allocation91_spill] sm:$0xff] }
 0x445   :  { %18528 = vst [vmem:[#allocation143_spill] sm:$0xff] %v14016_v6 }
 0x446   :  { %3150 = vadd.xlane.f32.xlu0 %v14000_v9  ;;  %3132 = vadd.xlane.f32.xlu1 %v14002_v47  ;;  %v14028_v47 = vpop.eup %11235  ;;  %11267 = vpow2.f32 %v2914_v41 }
 0x447   :  { %v14010_v27 = vpop.xlane.xlu1 %2584  ;;  %v14012_v40 = vpop.xlane.xlu0 %2662  ;;  %18531 = vst [vmem:[#allocation53_spill] sm:$0xff] %v14028_v47 }
 0x448   :  { %v14030_v2 = vpop.eup %11237  ;;  %11269 = vpow2.f32 %v2928_v36  ;;  %v2950_v36 = vmul.f32 1.442695, %v2757_v8  ;;  %v2759_v8 = vsub.f32 %v18562_v28, %v13797_v30  ;;  %v18566_v30 = vld [vmem:[#allocation92_spill] sm:$0xff] }
 0x449   :  { %18532 = vst [vmem:[#allocation146_spill] sm:$0xff] %v14030_v2 }
 0x44a   :  { %3182 = vadd.xlane.f32.xlu0 %v14014_v18  ;;  %3104 = vadd.xlane.f32.xlu1 %v14016_v6  ;;  %v14042_v6 = vpop.eup %11239  ;;  %11271 = vpow2.f32 %v2946_v12 }
 0x44b   :  { %v14024_v52 = vpop.xlane.xlu1 %2616  ;;  %v14026_v9 = vpop.xlane.xlu0 %2634  ;;  %18535 = vst [vmem:[#allocation55_spill] sm:$0xff] %v14042_v6 }
 0x44c   :  { %v14044_v38 = vpop.eup %11241  ;;  %11273 = vpow2.f32 %v2900_v60  ;;  %v2982_v60 = vmul.f32 1.442695, %v2773_v59  ;;  %v2775_v59 = vsub.f32 %v18566_v30, %v13814_v53  ;;  %v18569_v53 = vld [vmem:[#allocation94_spill] sm:$0xff]  ;;  %v2761_v30 = vsub.f32 %v18570_v14, %v13828_v37  ;;  %v18574_v37 = vld [vmem:[#allocation96_spill] sm:$0xff] }
 0x44d   :  { %18536 = vst [vmem:[#allocation147_spill] sm:$0xff] %v14044_v38 }
 0x44e   :  { %3154 = vadd.xlane.f32.xlu0 %v14028_v47  ;;  %3136 = vadd.xlane.f32.xlu1 %v14030_v2  ;;  %v14056_v2 = vpop.eup %11243  ;;  %11275 = vpow2.f32 %v2932_v35 }
 0x44f   :  { %v14038_v31 = vpop.xlane.xlu1 %2588  ;;  %v14040_v18 = vpop.xlane.xlu0 %2666  ;;  %18539 = vst [vmem:[#allocation56_spill] sm:$0xff] %v14056_v2 }
 0x450   :  { %v14058_v23 = vpop.eup %11245  ;;  %11277 = vpow2.f32 %v2950_v36  ;;  %v2954_v36 = vmul.f32 1.442695, %v2759_v8  ;;  %v2986_v8 = vmul.f32 1.442695, %v2775_v59  ;;  %v2777_v59 = vsub.f32 %v18574_v37, %v13842_v48  ;;  %v18578_v48 = vld [vmem:[#allocation99_spill] sm:$0xff] }
 0x451   :  { %18540 = vst [vmem:[#allocation57_spill] sm:$0xff] %v14058_v23 }
 0x452   :  { %3186 = vadd.xlane.f32.xlu0 %v14042_v6  ;;  %3140 = vadd.xlane.f32.xlu1 %v14044_v38  ;;  %v14070_v38 = vpop.eup %11247  ;;  %11279 = vpow2.f32 %v2904_v26 }
 0x453   :  { %v14052_v43 = vpop.xlane.xlu1 %2620  ;;  %v14054_v47 = vpop.xlane.xlu0 %2638  ;;  %18543 = vst [vmem:[#allocation151_spill] sm:$0xff] %v14070_v38 }
 0x454   :  { %v14072_v29 = vpop.eup %11249  ;;  %11281 = vpow2.f32 %v2982_v60  ;;  %v2752_v60 = vsub.f32 %v18569_v53, %v13826_v33  ;;  %v18573_v33 = vld [vmem:[#allocation97_spill] sm:$0xff] }
 0x455   :  { %18544 = vst [vmem:[#allocation58_spill] sm:$0xff] %v14072_v29  ;;  %v2738_v53 = vsub.f32 %v18573_v33, %v13840_v25  ;;  %v18577_v25 = vld [vmem:[#allocation98_spill] sm:$0xff] }
 0x456   :  { %3158 = vadd.xlane.f32.xlu0 %v14056_v2  ;;  %3172 = vadd.xlane.f32.xlu1 %v14058_v23  ;;  %v14084_v23 = vpop.eup %11251  ;;  %11283 = vpow2.f32 %v2936_v55  ;;  %v2940_v42 = vmul.f32 1.442695, %v2752_v60  ;;  %v2754_v33 = vsub.f32 %v18577_v25, %v13854_v63  ;;  %v18581_v63 = vld [vmem:[#allocation100_spill] sm:$0xff] }
 0x457   :  { %v14066_v4 = vpop.xlane.xlu1 %2592  ;;  %v14068_v6 = vpop.xlane.xlu0 %2670  ;;  %18547 = vst [vmem:[#allocation60_spill] sm:$0xff] %v14084_v23  ;;  %v2912_v60 = vmul.f32 1.442695, %v2738_v53  ;;  %v2756_v25 = vsub.f32 %v18581_v63, %v13868_v19  ;;  %v18585_v19 = vld [vmem:[#allocation103_spill] sm:$0xff] }
 0x458   :  { %v14086_v45 = vpop.eup %11253  ;;  %11285 = vpow2.f32 %v2954_v36  ;;  %v2958_v36 = vmul.f32 1.442695, %v2761_v30  ;;  %v2763_v30 = vsub.f32 %v18578_v48, %v13856_v57  ;;  %v2944_v53 = vmul.f32 1.442695, %v2754_v33  ;;  %v18582_v57 = vld [vmem:[#allocation102_spill] sm:$0xff] }
 0x459   :  { %18548 = vst [vmem:[#allocation153_spill] sm:$0xff] %v14086_v45  ;;  %v2948_v33 = vmul.f32 1.442695, %v2756_v25  ;;  %v2772_v63 = vsub.f32 %v18585_v19, %v13882_v22  ;;  %v18589_v22 = vld [vmem:[#allocation105_spill] sm:$0xff] }
 0x45a   :  { %3190 = vadd.xlane.f32.xlu0 %v14070_v38  ;;  %3144 = vadd.xlane.f32.xlu1 %v14072_v29  ;;  %v14098_v29 = vpop.eup %11255  ;;  %11287 = vpow2.f32 %v2908_v15  ;;  %v2758_v19 = vsub.f32 %v18589_v22, %v13896_v10  ;;  %v18594_v10 = vld [vmem:[#allocation108_spill] sm:$0xff] }
 0x45b   :  { %v14080_v5 = vpop.xlane.xlu1 %2624  ;;  %v14082_v2 = vpop.xlane.xlu0 %2642  ;;  %18551 = vst [vmem:[#allocation61_spill] sm:$0xff] %v14098_v29  ;;  %v2980_v25 = vmul.f32 1.442695, %v2772_v63  ;;  %v2774_v22 = vsub.f32 %v18594_v10, %v13910_v1 }
 0x45c   :  { %v14100_v24 = vpop.eup %11257  ;;  %11289 = vpow2.f32 %v2986_v8  ;;  %v2990_v8 = vmul.f32 1.442695, %v2777_v59  ;;  %v2779_v59 = vsub.f32 %v18582_v57, %v13870_v3  ;;  %v18586_v3 = vld [vmem:[#allocation104_spill] sm:$0xff]  ;;  %v2952_v63 = vmul.f32 1.442695, %v2758_v19  ;;  %v18599_v19 = vld [vmem:[#allocation110_spill] sm:$0xff] }
 0x45d   :  { %18552 = vst [vmem:[#allocation62_spill] sm:$0xff] %v14100_v24  ;;  %v2760_v1 = vsub.f32 %v18599_v19, %v13924_v34  ;;  %v2984_v10 = vmul.f32 1.442695, %v2774_v22  ;;  %v18602_v34 = vld [vmem:[#allocation115_spill] sm:$0xff] }
 0x45e   :  { %3162 = vadd.xlane.f32.xlu0 %v14084_v23  ;;  %3176 = vadd.xlane.f32.xlu1 %v14086_v45  ;;  %v14112_v45 = vpop.eup %11259  ;;  %11291 = vpow2.f32 %v2940_v42 }
 0x45f   :  { %v14094_v39 = vpop.xlane.xlu1 %2628  ;;  %v14096_v38 = vpop.xlane.xlu0 %2674  ;;  %18555 = vst [vmem:[#allocation63_spill] sm:$0xff] %v14112_v45 }
 0x460   :  { %v14114_v41 = vpop.eup %11261  ;;  %11293 = vpow2.f32 %v2958_v36  ;;  %v2962_v36 = vmul.f32 1.442695, %v2763_v30  ;;  %v2765_v30 = vsub.f32 %v18586_v3, %v13884_v16  ;;  %v18590_v16 = vld [vmem:[#allocation107_spill] sm:$0xff] }
 0x461   :  { %18556 = vst [vmem:[#allocation65_spill] sm:$0xff] %v14114_v41 }
 0x462   :  { %3194 = vadd.xlane.f32.xlu0 %v14098_v29  ;;  %3148 = vadd.xlane.f32.xlu1 %v14100_v24  ;;  %v14126_v24 = vpop.eup %11263  ;;  %11295 = vpow2.f32 %v2912_v60 }
 0x463   :  { %v14108_v32 = vpop.xlane.xlu1 %2660  ;;  %v14110_v23 = vpop.xlane.xlu0 %2646  ;;  %18559 = vst [vmem:[#allocation66_spill] sm:$0xff] %v14126_v24 }
 0x464   :  { %v14128_v12 = vpop.eup %11265  ;;  %11297 = vpow2.f32 %v2990_v8  ;;  %v2994_v8 = vmul.f32 1.442695, %v2779_v59  ;;  %v2781_v59 = vsub.f32 %v18590_v16, %v13898_v51  ;;  %v18595_v51 = vld [vmem:[#allocation109_spill] sm:$0xff] }
 0x465   :  { %18560 = vst [vmem:[#allocation67_spill] sm:$0xff] %v14128_v12 }
 0x466   :  { %3166 = vadd.xlane.f32.xlu0 %v14112_v45  ;;  %3180 = vadd.xlane.f32.xlu1 %v14114_v41  ;;  %v14140_v41 = vpop.eup %11267  ;;  %11299 = vpow2.f32 %v2944_v53 }
 0x467   :  { %v14122_v20 = vpop.xlane.xlu1 %2632  ;;  %v14124_v29 = vpop.xlane.xlu0 %2678  ;;  %18563 = vst [vmem:[#allocation68_spill] sm:$0xff] %v14140_v41 }
 0x468   :  { %v14142_v35 = vpop.eup %11269  ;;  %11301 = vpow2.f32 %v2962_v36  ;;  %v2966_v36 = vmul.f32 1.442695, %v2765_v30  ;;  %v2767_v30 = vsub.f32 %v18595_v51, %v13912_v11 }
 0x469   :  { %18564 = vst [vmem:[#allocation69_spill] sm:$0xff] %v14142_v35  ;;  %v14158_v56 = vpop.eup %11271  ;;  %11303 = vpow2.f32 %v2948_v33 }
 0x46a   :  { %3198 = vadd.xlane.f32.xlu0 %v14126_v24  ;;  %3152 = vadd.xlane.f32.xlu1 %v14128_v12  ;;  %v17916_v12 = vmov 0.0   ;;  %18567 = vst [vmem:[#allocation70_spill] sm:$0xff] %v14158_v56  ;;  %v14160_v26 = vpop.eup %11273  ;;  %11305 = vpow2.f32 %v2994_v8  ;;  %v2998_v8 = vmul.f32 1.442695, %v2781_v59  ;;  %v2970_v11 = vmul.f32 1.442695, %v2767_v30 }
 0x46b   :  { %v14136_v50 = vpop.xlane.xlu1 %2664  ;;  %v14138_v45 = vpop.xlane.xlu0 %2650  ;;  %9862 = vmatprep.mubr.msk.f32.mxu0 %vm17954_vm14, %v17916_v12  ;;  %9897 = vmatprep.mubr.msk.f32.mxu1 %vm17954_vm14, %v17916_v12  ;;  %18568 = vst [vmem:[#allocation71_spill] sm:$0xff] %v14160_v26  ;;  %v18601_v59 = vld [vmem:[#allocation113_spill] sm:$0xff]  ;;  %v18605_v30 = vld [vmem:[#allocation119_spill] sm:$0xff] }
 0x46c   :  { %v2776_v51 = vsub.f32 %v18601_v59, %v13940_v62  ;;  %v2785_v62 = vsub.f32 %v18605_v30, %v13956_v0 }
 0x46e   :  { %3170 = vadd.xlane.f32.xlu0 %v14140_v41  ;;  %3184 = vadd.xlane.f32.xlu1 %v14142_v35  ;;  %v14172_v35 = vpop.eup %11275  ;;  %11307 = vpow2.f32 %v2980_v25  ;;  %v2988_v59 = vmul.f32 1.442695, %v2776_v51  ;;  %v3006_v30 = vmul.f32 1.442695, %v2785_v62  ;;  %v18613_v62 = vld [vmem:[#allocation129_spill] sm:$0xff] }
 0x46f   :  { %v14150_v28 = vpop.xlane.xlu1 %2636  ;;  %v14152_v24 = vpop.xlane.xlu0 %2682  ;;  %18571 = vst [vmem:[#allocation72_spill] sm:$0xff] %v14172_v35 }
 0x470   :  { %v14174_v55 = vpop.eup %11277  ;;  %11309 = vpow2.f32 %v2966_v36 }
 0x471   :  { %18572 = vst [vmem:[#allocation73_spill] sm:$0xff] %v14174_v55 }
 0x472   :  { %3202 = vadd.xlane.f32.xlu0 %v14158_v56  ;;  %3156 = vadd.xlane.f32.xlu1 %v14160_v26  ;;  %v14186_v26 = vpop.eup %11279  ;;  %11311 = vpow2.f32 %v2952_v63  ;;  %v2769_v63 = vsub.f32 %v18602_v34, %v13942_v54 }
 0x473   :  { %v14168_v41 = vpop.xlane.xlu1 %2668  ;;  %v14170_v12 = vpop.xlane.xlu0 %2654  ;;  %18575 = vst [vmem:[#allocation74_spill] sm:$0xff] %v14186_v26 }
 0x474   :  { %v14188_v15 = vpop.eup %11281  ;;  %11313 = vpow2.f32 %v2998_v8 }
 0x475   :  { %18576 = vst [vmem:[#allocation75_spill] sm:$0xff] %v14188_v15 }
 0x476   :  { %3206 = vadd.xlane.f32.xlu0 %v14174_v55  ;;  %3188 = vadd.xlane.f32.xlu1 %v14172_v35  ;;  %v14200_v35 = vpop.eup %11283  ;;  %11315 = vpow2.f32 %v2984_v10  ;;  %v18607_v10 = vld [vmem:[#allocation122_spill] sm:$0xff] }
 0x477   :  { %v14182_v14 = vpop.xlane.xlu1 %2640  ;;  %v14184_v56 = vpop.xlane.xlu0 %2686  ;;  %18579 = vst [vmem:[#allocation76_spill] sm:$0xff] %v14200_v35 }
 0x478   :  { %v14202_v42 = vpop.eup %11285  ;;  %11317 = vpow2.f32 %v2970_v11  ;;  %v18609_v11 = vld [vmem:[#allocation123_spill] sm:$0xff] }
 0x479   :  { %18580 = vst [vmem:[#allocation77_spill] sm:$0xff] %v14202_v42  ;;  %v2764_v51 = vsub.f32 %v18609_v11, %v13982_v46  ;;  %v2789_v11 = vsub.f32 %v18613_v62, %v13998_v21 }
 0x47a   :  { %3238 = vadd.xlane.f32.xlu0 %v14188_v15  ;;  %3160 = vadd.xlane.f32.xlu1 %v14186_v26  ;;  %v14214_v26 = vpop.eup %11287 }
 0x47b   :  { %v14196_v37 = vpop.xlane.xlu1 %2672  ;;  %v14198_v55 = vpop.xlane.xlu0 %2658  ;;  %18583 = vst [vmem:[#allocation78_spill] sm:$0xff] %v14214_v26  ;;  %v3014_v21 = vmul.f32 1.442695, %v2789_v11 }
 0x47c   :  { %v14216_v60 = vpop.eup %11289 }
 0x47d   :  { %18584 = vst [vmem:[#allocation79_spill] sm:$0xff] %v14216_v60 }
 0x47e   :  { %3210 = vadd.xlane.f32.xlu0 %v14202_v42  ;;  %3192 = vadd.xlane.f32.xlu1 %v14200_v35  ;;  %v14228_v35 = vpop.eup %11291 }
 0x47f   :  { %v14210_v48 = vpop.xlane.xlu1 %2644  ;;  %v14212_v15 = vpop.xlane.xlu0 %2690  ;;  %18587 = vst [vmem:[#allocation80_spill] sm:$0xff] %v14228_v35 }
 0x480   :  { %v14230_v53 = vpop.eup %11293 }
 0x481   :  { %18588 = vst [vmem:[#allocation81_spill] sm:$0xff] %v14230_v53 }
 0x482   :  { %3242 = vadd.xlane.f32.xlu0 %v14216_v60  ;;  %3164 = vadd.xlane.f32.xlu1 %v14214_v26  ;;  %v14242_v26 = vpop.eup %11295 }
 0x483   :  { %v14224_v57 = vpop.xlane.xlu1 %2676  ;;  %v14226_v42 = vpop.xlane.xlu0 %3078  ;;  %18592 = vst [vmem:[#allocation83_spill] sm:$0xff] %v14242_v26 }
 0x484   :  { %v14244_v33 = vpop.eup %11297 }
 0x485   :  { %18593 = vst [vmem:[#allocation84_spill] sm:$0xff] %v14244_v33 }
 0x486   :  { %3214 = vadd.xlane.f32.xlu0 %v14230_v53  ;;  %3196 = vadd.xlane.f32.xlu1 %v14228_v35  ;;  %v14256_v35 = vpop.eup %11299 }
 0x487   :  { %v14238_v3 = vpop.xlane.xlu1 %2648  ;;  %v14240_v60 = vpop.xlane.xlu0 %3110  ;;  %18597 = vst [vmem:[#allocation86_spill] sm:$0xff] %v14256_v35 }
 0x488   :  { %18591 = vst [vmem:[#allocation82_spill] sm:$0xff] %v14238_v3  ;;  %v14258_v25 = vpop.eup %11301 }
 0x489   :  { %18598 = vst [vmem:[#allocation87_spill] sm:$0xff] %v14258_v25  ;;  %v14272_v3 = vpop.eup %11303 }
 0x48a   :  { %3246 = vadd.xlane.f32.xlu0 %v14244_v33  ;;  %3168 = vadd.xlane.f32.xlu1 %v14242_v26  ;;  %v18600_v33 = vld [vmem:[#allocation112_spill] sm:$0xff]  ;;  %v14276_v22 = vpop.eup %11305 }
 0x48b   :  { %v14252_v16 = vpop.xlane.xlu1 %2680  ;;  %v14254_v53 = vpop.xlane.xlu0 %3082  ;;  %v2783_v36 = vsub.f32 %v18600_v33, %v13926_v44  ;;  %18603 = vst [vmem:[#allocation89_spill] sm:$0xff] %v14276_v22  ;;  %v2956_v44 = vmul.f32 1.442695, %v2760_v1  ;;  %v18604_v33 = vld [vmem:[#allocation116_spill] sm:$0xff] }
 0x48c   :  { %18596 = vst [vmem:[#allocation85_spill] sm:$0xff] %v14252_v16  ;;  %v2762_v19 = vsub.f32 %v18604_v33, %v13954_v61  ;;  %v2974_v61 = vmul.f32 1.442695, %v2769_v63 }
 0x48d   :  { %v3002_v8 = vmul.f32 1.442695, %v2783_v36  ;;  %v2771_v36 = vsub.f32 %v18607_v10, %v13970_v7  ;;  %11319 = vpow2.f32 %v2956_v44  ;;  %v18611_v7 = vld [vmem:[#allocation127_spill] sm:$0xff] }
 0x48e   :  { %3218 = vadd.xlane.f32.xlu0 %v14258_v25  ;;  %3200 = vadd.xlane.f32.xlu1 %v14256_v35  ;;  %v18606_v25 = vld [vmem:[#allocation120_spill] sm:$0xff]  ;;  %v14290_v35 = vpop.eup %11307  ;;  %v2960_v33 = vmul.f32 1.442695, %v2762_v19  ;;  %v2780_v10 = vsub.f32 %v18611_v7, %v13996_v58 }
 0x48f   :  { %v14268_v26 = vpop.xlane.xlu1 %2652  ;;  %v14270_v16 = vpop.xlane.xlu0 %3114  ;;  %v2778_v54 = vsub.f32 %v18606_v25, %v13968_v17  ;;  %11321 = vpow2.f32 %v3002_v8  ;;  %v18610_v17 = vld [vmem:[#allocation124_spill] sm:$0xff]  ;;  %v2978_v46 = vmul.f32 1.442695, %v2771_v36  ;;  %v18614_v36 = vld [vmem:[#allocation130_spill] sm:$0xff] }
 0x490   :  { %v14294_v0 = vpop.eup %11309  ;;  %v2787_v25 = vsub.f32 %v18610_v17, %v13984_v49  ;;  %11323 = vpow2.f32 %v2988_v59  ;;  %v2964_v49 = vmul.f32 1.442695, %v2764_v51  ;;  %v2996_v58 = vmul.f32 1.442695, %v2780_v10 }
 0x491   :  { %18608 = vst [vmem:[#allocation88_spill] sm:$0xff] %v14294_v0  ;;  %v2992_v63 = vmul.f32 1.442695, %v2778_v54  ;;  %v14308_v19 = vpop.eup %11311  ;;  %11325 = vpow2.f32 %v2974_v61 }
 0x492   :  { %3250 = vadd.xlane.f32.xlu0 %v14276_v22  ;;  %3204 = vadd.xlane.f32.xlu1 %v14272_v3  ;;  %v14310_v8 = vpop.eup %11313  ;;  %11327 = vpow2.f32 %v2960_v33  ;;  %v3010_v59 = vmul.f32 1.442695, %v2787_v25  ;;  %v2766_v33 = vsub.f32 %v18614_v36, %v14010_v27  ;;  %v18621_v36 = vld [vmem:[#allocation136_spill] sm:$0xff] }
 0x493   :  { %v14286_v34 = vpop.xlane.xlu1 %2684  ;;  %v14288_v1 = vpop.xlane.xlu0 %3086  ;;  %18612 = vst [vmem:[#allocation90_spill] sm:$0xff] %v14310_v8  ;;  %11329 = vpow2.f32 %v3006_v30  ;;  %v18616_v30 = vld [vmem:[#allocation133_spill] sm:$0xff] }
 0x494   :  { %11331 = vpow2.f32 %v2992_v63  ;;  %v14320_v61 = vpop.eup %11315  ;;  %v2805_v25 = vsub.f32 %v18616_v30, %v14012_v40  ;;  %v2968_v27 = vmul.f32 1.442695, %v2766_v33 }
 0x495   :  { %11333 = vpow2.f32 %v2978_v46  ;;  %v14324_v51 = vpop.eup %11317 }
 0x496   :  { %3222 = vadd.xlane.f32.xlu0 %v14294_v0  ;;  %3236 = vadd.xlane.f32.xlu1 %v14290_v35  ;;  %18615 = vst [vmem:[#allocation91_spill] sm:$0xff] %v14324_v51  ;;  %11335 = vpow2.f32 %v2964_v49  ;;  %v18618_v49 = vld [vmem:[#allocation134_spill] sm:$0xff] }
 0x497   :  { %v14304_v22 = vpop.xlane.xlu0 %3118  ;;  %v14306_v44 = vpop.xlane.xlu1 %2656  ;;  %11337 = vpow2.f32 %v3010_v59  ;;  %v2782_v62 = vsub.f32 %v18618_v49, %v14024_v52  ;;  %v3046_v59 = vmul.f32 1.442695, %v2805_v25  ;;  %v18624_v25 = vld [vmem:[#allocation137_spill] sm:$0xff] }
 0x498   :  { %v14330_v63 = vpop.eup %11319  ;;  %11339 = vpow2.f32 %v2996_v58  ;;  %v2791_v58 = vsub.f32 %v18621_v36, %v14026_v9  ;;  %v2768_v49 = vsub.f32 %v18624_v25, %v14038_v31 }
 0x499   :  { %v14334_v46 = vpop.eup %11321  ;;  %11341 = vrcp.f32 %v14226_v42 }
 0x49a   :  { %3254 = vadd.xlane.f32.xlu0 %v14310_v8  ;;  %3208 = vadd.xlane.f32.xlu1 %v14308_v19  ;;  %18617 = vst [vmem:[#allocation93_spill] sm:$0xff] %v14334_v46  ;;  %v14339_v11 = vpop.eup %11323  ;;  %11343 = vpow2.f32 %v3014_v21  ;;  %v3000_v21 = vmul.f32 1.442695, %v2782_v62  ;;  %v3018_v36 = vmul.f32 1.442695, %v2791_v58 }
 0x49b   :  { %v14316_v54 = vpop.xlane.xlu0 %3090  ;;  %v14318_v17 = vpop.xlane.xlu1 %2688  ;;  %18619 = vst [vmem:[#allocation92_spill] sm:$0xff] %v14339_v11 }
 0x49c   :  { %v14341_v40 = vpop.eup %11325 }
 0x49d   :  { %18620 = vst [vmem:[#allocation94_spill] sm:$0xff] %v14341_v40  ;;  %v14347_v33 = vpop.eup %11327 }
 0x49e   :  { %3226 = vadd.xlane.f32.xlu0 %v14324_v51  ;;  %3240 = vadd.xlane.f32.xlu1 %v14320_v61  ;;  %18622 = vst [vmem:[#allocation95_spill] sm:$0xff] %v14347_v33  ;;  %v14352_v30 = vpop.eup %11329 }
 0x49f   :  { %v14332_v7 = vpop.xlane.xlu0 %3122  ;;  %v3077_v10 = vpop.xlane.xlu1 %3076  ;;  %18623 = vst [vmem:[#allocation97_spill] sm:$0xff] %v14352_v30 }
 0x4a0   :  { %11345 = vrcp.f32 %v3077_v10  ;;  %v14356_v9 = vpop.eup %11331 }
 0x4a1   :  { %11347 = vrcp.f32 %v14240_v60  ;;  %v14358_v10 = vpop.eup %11333 }
 0x4a2   :  { %3258 = vadd.xlane.f32.xlu0 %v14334_v46  ;;  %3212 = vadd.xlane.f32.xlu1 %v14330_v63  ;;  %11349 = vpow2.f32 %v2968_v27  ;;  %18625 = vst [vmem:[#allocation96_spill] sm:$0xff] %v14358_v10  ;;  %v18626_v46 = vld [vmem:[#allocation140_spill] sm:$0xff]  ;;  %v14364_v51 = vpop.eup %11335 }
 0x4a3   :  { %v14350_v52 = vpop.xlane.xlu0 %3094  ;;  %v3109_v42 = vpop.xlane.xlu1 %3108  ;;  %v2807_v60 = vsub.f32 %v18626_v46, %v14040_v18 }
 0x4a4   :  { %11351 = vrcp.f32 %v3109_v42  ;;  %v14369_v62 = vpop.eup %11337  ;;  %v2972_v42 = vmul.f32 1.442695, %v2768_v49 }
 0x4a5   :  { %11353 = vpow2.f32 %v3046_v59  ;;  %v18627_v59 = vld [vmem:[#allocation141_spill] sm:$0xff]  ;;  %v14373_v25 = vpop.eup %11339  ;;  %v3050_v46 = vmul.f32 1.442695, %v2807_v60 }
 0x4a6   :  { %3230 = vadd.xlane.f32.xlu0 %v14341_v40  ;;  %3244 = vadd.xlane.f32.xlu1 %v14339_v11  ;;  %11355 = vrcp.f32 %v14254_v53  ;;  %v2784_v58 = vsub.f32 %v18627_v59, %v14052_v43  ;;  %v11342_v18 = vpop.eup %11341  ;;  %v18628_v40 = vld [vmem:[#allocation144_spill] sm:$0xff] }
 0x4a7   :  { %v14367_v27 = vpop.xlane.xlu0 %3126  ;;  %v3081_v31 = vpop.xlane.xlu1 %3080  ;;  %11357 = vpow2.f32 %v3000_v21  ;;  %v2793_v8 = vsub.f32 %v18628_v40, %v14054_v47  ;;  %v18631_v40 = vld [vmem:[#allocation171_spill] sm:$0xff] }
 0x4a8   :  { %11359 = vrcp.f32 %v3081_v31  ;;  %v14379_v53 = vpop.eup %11343  ;;  %v3004_v31 = vmul.f32 1.442695, %v2784_v58 }
 0x4a9   :  { %11361 = vpow2.f32 %v3018_v36  ;;  %18629 = vst [vmem:[#allocation98_spill] sm:$0xff] %v14379_v53  ;;  %v18630_v36 = vld [vmem:[#allocation145_spill] sm:$0xff] }
 0x4aa   :  { %3262 = vadd.xlane.f32.xlu0 %v14352_v30  ;;  %3216 = vadd.xlane.f32.xlu1 %v14347_v33  ;;  %11363 = vrcp.f32 %v14270_v16  ;;  %v11346_v49 = vpop.eup %11345  ;;  %v2770_v60 = vsub.f32 %v18630_v36, %v14066_v4  ;;  %v3461_v30 = vmul.f32 %v11342_v18, %v18631_v40  ;;  %v3022_v33 = vmul.f32 1.442695, %v2793_v8  ;;  %v18632_v16 = vld [vmem:[#allocation148_spill] sm:$0xff] }
 0x4ab   :  { %v14382_v21 = vpop.xlane.xlu0 %3098  ;;  %v3113_v43 = vpop.xlane.xlu1 %3112  ;;  %11365 = vpow2.f32 %v2972_v42  ;;  %v3460_v47 = vmul.f32 %v11346_v49, %v13816_v13  ;;  %v2809_v11 = vsub.f32 %v18632_v16, %v14068_v6  ;;  %v18634_v49 = vld [vmem:[#allocation173_spill] sm:$0xff] }
 0x4ac   :  { %v11348_v59 = vpop.eup %11347  ;;  %11367 = vrcp.f32 %v3113_v43  ;;  %v2976_v18 = vmul.f32 1.442695, %v2770_v60 }
 0x4ad   :  { %v14388_v0 = vpop.eup %11349  ;;  %11369 = vpow2.f32 %v3050_v46  ;;  %v10743_v58 = vpack.c.bf16 %v3461_v30, %v3460_v47  ;;  %v18633_v46 = vld [vmem:[#allocation29_spill] sm:$0xff]  ;;  %v3477_v36 = vmul.f32 %v11348_v59, %v18634_v49  ;;  %v3054_v16 = vmul.f32 1.442695, %v2809_v11  ;;  %v18637_v11 = vld [vmem:[#allocation152_spill] sm:$0xff] }
 0x4ae   :  { %3234 = vadd.xlane.f32.xlu0 %v14358_v10  ;;  %3248 = vadd.xlane.f32.xlu1 %v14356_v9  ;;  %v11352_v42 = vpop.eup %11351  ;;  %11371 = vrcp.f32 %v14288_v1  ;;  %v18635_v1 = vld [vmem:[#allocation150_spill] sm:$0xff]  ;;  %v18636_v47 = vmov 0.0|0.0  }
 0x4af   :  { %v14395_v4 = vpop.xlane.xlu0 %3130  ;;  %v3085_v13 = vpop.xlane.xlu1 %3084  ;;  %11373 = vpow2.f32 %v3004_v31  ;;  %v3476_v8 = vmul.f32 %v11352_v42, %v18633_v46  ;;  %10744 = vmatpush3.bf16.xpose.msra.mxu0 %v10743_v58  ;;  %v2786_v10 = vsub.f32 %v18635_v1, %v14080_v5  ;;  %v18638_v5 = vld [vmem:[#allocation36_spill] sm:$0xff] }
 0x4b0   :  { %v14397_v43 = vpop.eup %11353  ;;  %11375 = vrcp.f32 %v3085_v13  ;;  %10745 = vmatprep.subr.bf16.mxu0 %v18636_v47  ;;  %v18639_v13 = vld [vmem:[#allocation175_spill] sm:$0xff] }
 0x4b1   :  { %v11356_v6 = vpop.eup %11355  ;;  %11377 = vpow2.f32 %v3022_v33  ;;  %v10767_v30 = vpack.c.bf16 %v3477_v36, %v3476_v8  ;;  %v2795_v33 = vsub.f32 %v18637_v11, %v14082_v2  ;;  %v3008_v49 = vmul.f32 1.442695, %v2786_v10  ;;  %v18640_v36 = vld [vmem:[#allocation154_spill] sm:$0xff]  ;;  %v18642_v11 = vld [vmem:[#allocation32_spill] sm:$0xff] }
 0x4b2   :  { %v14401_v40 = vpop.eup %11357  ;;  %3266 = vadd.xlane.f32.xlu0 %v14369_v62  ;;  %3220 = vadd.xlane.f32.xlu1 %v14364_v51  ;;  %11379 = vrcp.f32 %v14304_v22  ;;  %v3463_v46 = vmul.f32 %v11356_v6, %v18639_v13  ;;  %v2788_v1 = vsub.f32 %v18640_v36, %v14094_v39  ;;  %v18643_v39 = vld [vmem:[#allocation25_spill] sm:$0xff] }
 0x4b3   :  { %v11360_v31 = vpop.eup %11359  ;;  %v14408_v60 = vpop.xlane.xlu0 %3102  ;;  %11381 = vpow2.f32 %v2976_v18  ;;  %10768 = vmatpush3.bf16.xpose.msra.mxu1 %v10767_v30 }
 0x4b4   :  { %v3117_v59 = vpop.xlane.xlu1 %3116  ;;  %v14411_v42 = vpop.eup %11361  ;;  %v3462_v58 = vmul.f32 %v11360_v31, %v18638_v5  ;;  %10769 = vmatprep.subr.bf16.mxu1 %v18636_v47 }
 0x4b5   :  { %v11364_v8 = vpop.eup %11363  ;;  %11383 = vrcp.f32 %v3117_v59  ;;  %v3026_v59 = vmul.f32 1.442695, %v2795_v33 }
 0x4b6   :  { %v14418_v22 = vpop.eup %11365  ;;  %11385 = vpow2.f32 %v3054_v16  ;;  %3270 = vadd.xlane.f32.xlu0 %v14379_v53  ;;  %3252 = vadd.xlane.f32.xlu1 %v14373_v25  ;;  %v10746_v2 = vpack.c.bf16 %v3463_v46, %v3462_v58  ;;  %v18641_v16 = vld [vmem:[#allocation155_spill] sm:$0xff]  ;;  %v3479_v13 = vmul.f32 %v11364_v8, %v18643_v39  ;;  %v18644_v46 = vld [vmem:[#allocation156_spill] sm:$0xff]  ;;  %v18647_v39 = vld [vmem:[#allocation157_spill] sm:$0xff] }
 0x4b7   :  { %v11368_v18 = vpop.eup %11367  ;;  %11387 = vrcp.f32 %v14316_v54  ;;  %v14425_v6 = vpop.xlane.xlu0 %3134  ;;  %v2811_v10 = vsub.f32 %v18641_v16, %v14096_v38  ;;  %v3012_v54 = vmul.f32 1.442695, %v2788_v1  ;;  %v2804_v53 = vsub.f32 %v18644_v46, %v14108_v32  ;;  %v18645_v1 = vld [vmem:[#allocation39_spill] sm:$0xff] }
 0x4b8   :  { %v3089_v30 = vpop.xlane.xlu1 %3088  ;;  %v14427_v31 = vpop.eup %11369  ;;  %v3478_v5 = vmul.f32 %v11368_v18, %v18642_v11  ;;  %10747 = vmatpush3.bf16.xpose.msra.mxu0 %v10746_v2 }
 0x4b9   :  { %v11372_v36 = vpop.eup %11371  ;;  %11389 = vrcp.f32 %v3089_v30  ;;  %10748 = vmatprep.subr.bf16.mxu0 %v18636_v47  ;;  %v18646_v30 = vld [vmem:[#allocation178_spill] sm:$0xff] }
 0x4ba   :  { %v14433_v58 = vpop.eup %11373  ;;  %11391 = vpow2.f32 %v3008_v49  ;;  %3302 = vadd.xlane.f32.xlu0 %v14397_v43  ;;  %3224 = vadd.xlane.f32.xlu1 %v14388_v0  ;;  %v10770_v33 = vpack.c.bf16 %v3479_v13, %v3478_v5  ;;  %v3058_v49 = vmul.f32 1.442695, %v2811_v10  ;;  %v3465_v16 = vmul.f32 %v11372_v36, %v18646_v30 }
 0x4bb   :  { %v11376_v38 = vpop.eup %11375  ;;  %11393 = vrcp.f32 %v14332_v7  ;;  %v14440_v18 = vpop.xlane.xlu0 %3106  ;;  %v3044_v7 = vmul.f32 1.442695, %v2804_v53  ;;  %v2797_v13 = vsub.f32 %v18647_v39, %v14110_v23  ;;  %v18650_v23 = vld [vmem:[#allocation101_spill] sm:$0xff] }
 0x4bc   :  { %v3121_v8 = vpop.xlane.xlu1 %3120  ;;  %v14443_v2 = vpop.eup %11377  ;;  %11395 = vpow2.f32 %v3026_v59  ;;  %10771 = vmatpush3.bf16.xpose.msra.mxu1 %v10770_v33  ;;  %v3464_v32 = vmul.f32 %v11376_v38, %v18645_v1  ;;  %v18649_v38 = vld [vmem:[#allocation37_spill] sm:$0xff] }
 0x4bd   :  { %v11380_v11 = vpop.eup %11379  ;;  %11397 = vrcp.f32 %v3121_v8  ;;  %10772 = vmatprep.subr.bf16.mxu1 %v18636_v47 }
 0x4be   :  { %v14448_v5 = vpop.eup %11381  ;;  %11399 = vpow2.f32 %v3012_v54  ;;  %3274 = vadd.xlane.f32.xlu0 %v14411_v42  ;;  %3256 = vadd.xlane.f32.xlu1 %v14401_v40  ;;  %v10749_v59 = vpack.c.bf16 %v3465_v16, %v3464_v32  ;;  %v18648_v54 = vld [vmem:[#allocation158_spill] sm:$0xff]  ;;  %v3481_v1 = vmul.f32 %v11380_v11, %v18650_v23  ;;  %v3030_v32 = vmul.f32 1.442695, %v2797_v13  ;;  %v18652_v13 = vld [vmem:[#allocation160_spill] sm:$0xff] }
 0x4bf   :  { %v11384_v10 = vpop.eup %11383  ;;  %11401 = vrcp.f32 %v14350_v52  ;;  %v14455_v36 = vpop.xlane.xlu0 %3138  ;;  %v2790_v53 = vsub.f32 %v18648_v54, %v14122_v20  ;;  %v18651_v52 = vld [vmem:[#allocation159_spill] sm:$0xff]  ;;  %v18654_v54 = vld [vmem:[#allocation114_spill] sm:$0xff] }
 0x4c0   :  { %v3093_v46 = vpop.xlane.xlu1 %3092  ;;  %v14457_v33 = vpop.eup %11385  ;;  %11403 = vpow2.f32 %v3058_v49  ;;  %v3480_v8 = vmul.f32 %v11384_v10, %v18649_v38  ;;  %10750 = vmatpush3.bf16.xpose.msra.mxu0 %v10749_v59  ;;  %v2813_v16 = vsub.f32 %v18651_v52, %v14124_v29  ;;  %v2806_v59 = vsub.f32 %v18652_v13, %v14136_v50  ;;  %v18653_v29 = vld [vmem:[#allocation43_spill] sm:$0xff]  ;;  %v18657_v13 = vld [vmem:[#allocation106_spill] sm:$0xff] }
 0x4c1   :  { %v11388_v30 = vpop.eup %11387  ;;  %11405 = vrcp.f32 %v3093_v46  ;;  %10751 = vmatprep.subr.bf16.mxu0 %v18636_v47 }
 0x4c2   :  { %11407 = vpow2.f32 %v3044_v7  ;;  %3306 = vadd.xlane.f32.xlu0 %v14427_v31  ;;  %3228 = vadd.xlane.f32.xlu1 %v14418_v22  ;;  %v10773_v49 = vpack.c.bf16 %v3481_v1, %v3480_v8  ;;  %v3016_v7 = vmul.f32 1.442695, %v2790_v53  ;;  %v3467_v38 = vmul.f32 %v11388_v30, %v18654_v54  ;;  %v18655_v1 = vld [vmem:[#allocation161_spill] sm:$0xff] }
 0x4c3   :  { %v11390_v39 = vpop.eup %11389  ;;  %11409 = vrcp.f32 %v14367_v27  ;;  %v14468_v20 = vpop.xlane.xlu0 %3142  ;;  %v3062_v23 = vmul.f32 1.442695, %v2813_v16  ;;  %v2799_v52 = vsub.f32 %v18655_v1, %v14138_v45 }
 0x4c4   :  { %v3125_v10 = vpop.xlane.xlu1 %3124  ;;  %v14471_v11 = vpop.eup %11391  ;;  %10774 = vmatpush3.bf16.xpose.msra.mxu1 %v10773_v49  ;;  %v3466_v46 = vmul.f32 %v11390_v39, %v18653_v29 }
 0x4c5   :  { %v11394_v8 = vpop.eup %11393  ;;  %11411 = vrcp.f32 %v3125_v10  ;;  %10775 = vmatprep.subr.bf16.mxu1 %v18636_v47  ;;  %v3048_v10 = vmul.f32 1.442695, %v2806_v59 }
 0x4c6   :  { %v14478_v27 = vpop.eup %11395  ;;  %11413 = vpow2.f32 %v3030_v32  ;;  %3278 = vadd.xlane.f32.xlu0 %v14443_v2  ;;  %3260 = vadd.xlane.f32.xlu1 %v14433_v58  ;;  %v10752_v50 = vpack.c.bf16 %v3467_v38, %v3466_v46  ;;  %v18656_v32 = vld [vmem:[#allocation42_spill] sm:$0xff]  ;;  %v3483_v29 = vmul.f32 %v11394_v8, %v18657_v13  ;;  %v3034_v46 = vmul.f32 1.442695, %v2799_v52  ;;  %v18662_v13 = vld [vmem:[#allocation24_spill] sm:$0xff] }
 0x4c7   :  { %v11398_v53 = vpop.eup %11397  ;;  %11415 = vrcp.f32 %v14382_v21  ;;  %v14485_v30 = vpop.xlane.xlu0 %3174  ;;  %v18658_v21 = vld [vmem:[#allocation162_spill] sm:$0xff] }
 0x4c8   :  { %v3097_v49 = vpop.xlane.xlu1 %3096  ;;  %v14487_v39 = vpop.eup %11399  ;;  %11417 = vpow2.f32 %v3016_v7  ;;  %v3482_v16 = vmul.f32 %v11398_v53, %v18656_v32  ;;  %10753 = vmatpush3.bf16.xpose.msra.mxu0 %v10752_v50  ;;  %v2792_v38 = vsub.f32 %v18658_v21, %v14150_v28  ;;  %v18660_v28 = vld [vmem:[#allocation131_spill] sm:$0xff] }
 0x4c9   :  { %v11402_v45 = vpop.eup %11401  ;;  %11419 = vrcp.f32 %v3097_v49  ;;  %10754 = vmatprep.subr.bf16.mxu0 %v18636_v47  ;;  %v18661_v49 = vld [vmem:[#allocation118_spill] sm:$0xff] }
 0x4ca   :  { %v14491_v54 = vpop.eup %11403  ;;  %11421 = vpow2.f32 %v3062_v23  ;;  %3310 = vadd.xlane.f32.xlu0 %v14457_v33  ;;  %3232 = vadd.xlane.f32.xlu1 %v14448_v5  ;;  %v10776_v7 = vpack.c.bf16 %v3483_v29, %v3482_v16  ;;  %v18659_v23 = vld [vmem:[#allocation163_spill] sm:$0xff]  ;;  %v3469_v32 = vmul.f32 %v11402_v45, %v18661_v49  ;;  %v2808_v29 = vsub.f32 %v18662_v13, %v14168_v41 }
 0x4cb   :  { %v11406_v59 = vpop.eup %11405  ;;  %11423 = vrcp.f32 %v14395_v4  ;;  %v14498_v1 = vpop.xlane.xlu0 %3146  ;;  %v2815_v52 = vsub.f32 %v18659_v23, %v14152_v24  ;;  %v3020_v4 = vmul.f32 1.442695, %v2792_v38  ;;  %v18665_v41 = vld [vmem:[#allocation111_spill] sm:$0xff] }
 0x4cc   :  { %v3129_v8 = vpop.xlane.xlu1 %3128  ;;  %v14501_v50 = vpop.eup %11407  ;;  %11425 = vpow2.f32 %v3048_v10  ;;  %10777 = vmatpush3.bf16.xpose.msra.mxu1 %v10776_v7  ;;  %v3468_v53 = vmul.f32 %v11406_v59, %v18660_v28 }
 0x4cd   :  { %v11410_v16 = vpop.eup %11409  ;;  %11427 = vrcp.f32 %v3129_v8  ;;  %10778 = vmatprep.subr.bf16.mxu1 %v18636_v47  ;;  %v3066_v59 = vmul.f32 1.442695, %v2815_v52  ;;  %v18664_v8 = vld [vmem:[#allocation132_spill] sm:$0xff] }
 0x4ce   :  { %11429 = vpow2.f32 %v3034_v46  ;;  %3282 = vadd.xlane.f32.xlu0 %v14478_v27  ;;  %3264 = vadd.xlane.f32.xlu1 %v14471_v11  ;;  %v10755_v10 = vpack.c.bf16 %v3469_v32, %v3468_v53  ;;  %v18663_v46 = vld [vmem:[#allocation164_spill] sm:$0xff]  ;;  %v3485_v28 = vmul.f32 %v11410_v16, %v18665_v41  ;;  %v18666_v32 = vld [vmem:[#allocation165_spill] sm:$0xff]  ;;  %v18669_v41 = vld [vmem:[#allocation166_spill] sm:$0xff] }
 0x4cf   :  { %v11412_v24 = vpop.eup %11411  ;;  %11431 = vrcp.f32 %v14408_v60  ;;  %v14513_v21 = vpop.xlane.xlu0 %3178  ;;  %v2801_v38 = vsub.f32 %v18663_v46, %v14170_v12  ;;  %v3052_v60 = vmul.f32 1.442695, %v2808_v29  ;;  %v2794_v13 = vsub.f32 %v18666_v32, %v14182_v14  ;;  %v18667_v29 = vld [vmem:[#allocation135_spill] sm:$0xff] }
 0x4d0   :  { %v3101_v45 = vpop.xlane.xlu1 %3100  ;;  %v14515_v7 = vpop.eup %11413  ;;  %v3484_v23 = vmul.f32 %v11412_v24, %v18664_v8  ;;  %10756 = vmatpush3.bf16.xpose.msra.mxu0 %v10755_v10 }
 0x4d1   :  { %v11416_v49 = vpop.eup %11415  ;;  %11433 = vrcp.f32 %v3101_v45  ;;  %10757 = vmatprep.subr.bf16.mxu0 %v18636_v47  ;;  %v18668_v45 = vld [vmem:[#allocation121_spill] sm:$0xff] }
 0x4d2   :  { %v14521_v53 = vpop.eup %11417  ;;  %11435 = vpow2.f32 %v3020_v4  ;;  %3314 = vadd.xlane.f32.xlu0 %v14491_v54  ;;  %3268 = vadd.xlane.f32.xlu1 %v14487_v39  ;;  %v10779_v52 = vpack.c.bf16 %v3485_v28, %v3484_v23  ;;  %v3038_v4 = vmul.f32 1.442695, %v2801_v38  ;;  %v3471_v46 = vmul.f32 %v11416_v49, %v18668_v45 }
 0x4d3   :  { %v11420_v12 = vpop.eup %11419  ;;  %11437 = vrcp.f32 %v14425_v6  ;;  %v14528_v24 = vpop.xlane.xlu0 %3150  ;;  %v3024_v6 = vmul.f32 1.442695, %v2794_v13  ;;  %v2817_v28 = vsub.f32 %v18669_v41, %v14184_v56  ;;  %v18672_v56 = vld [vmem:[#allocation117_spill] sm:$0xff] }
 0x4d4   :  { %v3133_v16 = vpop.xlane.xlu1 %3132  ;;  %v14531_v10 = vpop.eup %11421  ;;  %11439 = vpow2.f32 %v3066_v59  ;;  %10780 = vmatpush3.bf16.xpose.msra.mxu1 %v10779_v52  ;;  %v3470_v14 = vmul.f32 %v11420_v12, %v18667_v29  ;;  %v18671_v12 = vld [vmem:[#allocation138_spill] sm:$0xff] }
 0x4d5   :  { %v11424_v8 = vpop.eup %11423  ;;  %11441 = vrcp.f32 %v3133_v16  ;;  %10781 = vmatprep.subr.bf16.mxu1 %v18636_v47 }
 0x4d6   :  { %v14536_v23 = vpop.eup %11425  ;;  %11443 = vpow2.f32 %v3052_v60  ;;  %3286 = vadd.xlane.f32.xlu0 %v14515_v7  ;;  %3300 = vadd.xlane.f32.xlu1 %v14501_v50  ;;  %v10758_v59 = vpack.c.bf16 %v3471_v46, %v3470_v14  ;;  %v18670_v60 = vld [vmem:[#allocation167_spill] sm:$0xff]  ;;  %v3487_v29 = vmul.f32 %v11424_v8, %v18672_v56  ;;  %v3070_v14 = vmul.f32 1.442695, %v2817_v28  ;;  %v18674_v28 = vld [vmem:[#allocation169_spill] sm:$0xff] }
 0x4d7   :  { %v11428_v38 = vpop.eup %11427  ;;  %11445 = vrcp.f32 %v14440_v18  ;;  %v14543_v49 = vpop.xlane.xlu0 %3182  ;;  %v2810_v13 = vsub.f32 %v18670_v60, %v14196_v37  ;;  %v18673_v18 = vld [vmem:[#allocation168_spill] sm:$0xff]  ;;  %v18676_v60 = vld [vmem:[#allocation126_spill] sm:$0xff] }
 0x4d8   :  { %v3105_v32 = vpop.xlane.xlu1 %3104  ;;  %v14545_v52 = vpop.eup %11429  ;;  %11447 = vpow2.f32 %v3038_v4  ;;  %v3486_v16 = vmul.f32 %v11428_v38, %v18671_v12  ;;  %10759 = vmatpush3.bf16.xpose.msra.mxu0 %v10758_v59  ;;  %v2803_v46 = vsub.f32 %v18673_v18, %v14198_v55  ;;  %v2796_v59 = vsub.f32 %v18674_v28, %v14210_v48  ;;  %v18675_v55 = vld [vmem:[#allocation139_spill] sm:$0xff]  ;;  %v18679_v28 = vld [vmem:[#allocation125_spill] sm:$0xff] }
 0x4d9   :  { %v11432_v45 = vpop.eup %11431  ;;  %11449 = vrcp.f32 %v3105_v32  ;;  %10760 = vmatprep.subr.bf16.mxu0 %v18636_v47 }
 0x4da   :  { %11451 = vpow2.f32 %v3024_v6  ;;  %3318 = vadd.xlane.f32.xlu0 %v14531_v10  ;;  %3272 = vadd.xlane.f32.xlu1 %v14521_v53  ;;  %v10782_v4 = vpack.c.bf16 %v3487_v29, %v3486_v16  ;;  %v3056_v6 = vmul.f32 1.442695, %v2810_v13  ;;  %v3473_v12 = vmul.f32 %v11432_v45, %v18676_v60  ;;  %v18677_v29 = vld [vmem:[#allocation170_spill] sm:$0xff] }
 0x4db   :  { %v11434_v41 = vpop.eup %11433  ;;  %11453 = vrcp.f32 %v14455_v36  ;;  %v14556_v37 = vpop.xlane.xlu0 %3154  ;;  %v3042_v56 = vmul.f32 1.442695, %v2803_v46  ;;  %v2819_v18 = vsub.f32 %v18677_v29, %v14212_v15 }
 0x4dc   :  { %v3137_v38 = vpop.xlane.xlu1 %3136  ;;  %v14559_v8 = vpop.eup %11435  ;;  %10783 = vmatpush3.bf16.xpose.msra.mxu1 %v10782_v4  ;;  %v3472_v32 = vmul.f32 %v11434_v41, %v18675_v55 }
 0x4dd   :  { %v11438_v16 = vpop.eup %11437  ;;  %11455 = vrcp.f32 %v3137_v38  ;;  %10784 = vmatprep.subr.bf16.mxu1 %v18636_v47  ;;  %v3028_v38 = vmul.f32 1.442695, %v2796_v59 }
 0x4de   :  { %v14566_v36 = vpop.eup %11439  ;;  %11457 = vpow2.f32 %v3070_v14  ;;  %3290 = vadd.xlane.f32.xlu0 %v14545_v52  ;;  %3304 = vadd.xlane.f32.xlu1 %v14536_v23  ;;  %v10761_v48 = vpack.c.bf16 %v3473_v12, %v3472_v32  ;;  %v18678_v14 = vld [vmem:[#allocation142_spill] sm:$0xff]  ;;  %v3489_v55 = vmul.f32 %v11438_v16, %v18679_v28  ;;  %v3074_v32 = vmul.f32 1.442695, %v2819_v18 }
 0x4df   :  { %v11442_v13 = vpop.eup %11441  ;;  %11459 = vrcp.f32 %v14468_v20  ;;  %v14573_v45 = vpop.xlane.xlu0 %3186  ;;  %v18681_v20 = vld [vmem:[#allocation172_spill] sm:$0xff] }
 0x4e0   :  { %v3141_v4 = vpop.xlane.xlu1 %3140  ;;  %v14575_v41 = vpop.eup %11443  ;;  %11461 = vpow2.f32 %v3056_v6  ;;  %v3488_v46 = vmul.f32 %v11442_v13, %v18678_v14  ;;  %10762 = vmatpush3.bf16.xpose.msra.mxu0 %v10761_v48  ;;  %v2812_v12 = vsub.f32 %v18681_v20, %v14224_v57  ;;  %v18683_v57 = vld [vmem:[#allocation128_spill] sm:$0xff] }
 0x4e1   :  { %v11446_v15 = vpop.eup %11445  ;;  %11463 = vrcp.f32 %v3141_v4  ;;  %10763 = vmatprep.subr.bf16.mxu0 %v18636_v47 }
 0x4e2   :  { %v14579_v60 = vpop.eup %11447  ;;  %11465 = vpow2.f32 %v3042_v56  ;;  %3322 = vadd.xlane.f32.xlu0 %v14566_v36  ;;  %3276 = vadd.xlane.f32.xlu1 %v14559_v8  ;;  %v10785_v6 = vpack.c.bf16 %v3489_v55, %v3488_v46  ;;  %v18682_v56 = vld [vmem:[#allocation143_spill] sm:$0xff]  ;;  %v3475_v13 = vmul.f32 %v11446_v15, %v18683_v57  ;;  %v3060_v14 = vmul.f32 1.442695, %v2812_v12  ;;  %v18685_v46 = vld [vmem:[#allocation174_spill] sm:$0xff] }
 0x4e3   :  { %18680 = vst [vmem:[#allocation99_spill] sm:$0xff] %v14579_v60  ;;  %v11450_v59 = vpop.eup %11449  ;;  %11467 = vrcp.f32 %v14485_v30  ;;  %v14586_v29 = vpop.xlane.xlu0 %3158  ;;  %v18684_v30 = vld [vmem:[#allocation82_spill] sm:$0xff] }
 0x4e4   :  { %v3173_v16 = vpop.xlane.xlu1 %3172  ;;  %v14589_v48 = vpop.eup %11451  ;;  %11469 = vpow2.f32 %v3028_v38  ;;  %10786 = vmatpush3.bf16.xpose.msra.mxu1 %v10785_v6  ;;  %v3474_v18 = vmul.f32 %v11450_v59, %v18682_v56  ;;  %v2798_v28 = vsub.f32 %v18685_v46, %v18684_v30  ;;  %v18687_v59 = vld [vmem:[#allocation146_spill] sm:$0xff] }
 0x4e5   :  { %v11454_v4 = vpop.eup %11453  ;;  %11471 = vrcp.f32 %v3173_v16  ;;  %10787 = vmatprep.subr.bf16.mxu1 %v18636_v47 }
 0x4e6   :  { %11473 = vpow2.f32 %v3074_v32  ;;  %3294 = vadd.xlane.f32.xlu0 %v14579_v60  ;;  %3308 = vadd.xlane.f32.xlu1 %v14575_v41  ;;  %v10764_v55 = vpack.c.bf16 %v3475_v13, %v3474_v18  ;;  %v18688_v32 = vld [vmem:[#allocation44_spill] sm:$0xff]  ;;  %v3032_v30 = vmul.f32 1.442695, %v2798_v28  ;;  %v18689_v18 = vld [vmem:[#allocation85_spill] sm:$0xff] }
 0x4e7   :  { %v11456_v38 = vpop.eup %11455  ;;  %11475 = vrcp.f32 %v14498_v1  ;;  %v14599_v20 = vpop.xlane.xlu0 %3190  ;;  %v3491_v12 = vmul.f32 %v11454_v4, %v18688_v32  ;;  %v18690_v13 = vld [vmem:[#allocation176_spill] sm:$0xff] }
 0x4e8   :  { %v3145_v15 = vpop.xlane.xlu1 %3144  ;;  %v14601_v6 = vpop.eup %11457  ;;  %v3490_v16 = vmul.f32 %v11456_v38, %v18687_v59  ;;  %10765 = vmatpush3.bf16.xpose.msra.mxu0 %v10764_v55  ;;  %v2814_v46 = vsub.f32 %v18690_v13, %v18689_v18 }
 0x4e9   :  { %18686 = vst [vmem:[#allocation100_spill] sm:$0xff] %v14601_v6  ;;  %v11460_v56 = vpop.eup %11459  ;;  %11477 = vrcp.f32 %v3145_v15  ;;  %10790 = vmatprep.subr.bf16.mxu0 %v18636_v47  ;;  %v18693_v15 = vld [vmem:[#allocation47_spill] sm:$0xff] }
 0x4ea   :  { %v14605_v57 = vpop.eup %11461  ;;  %11479 = vpow2.f32 %v3060_v14  ;;  %3326 = vadd.xlane.f32.xlu0 %v14601_v6  ;;  %3280 = vadd.xlane.f32.xlu1 %v14589_v48  ;;  %v10788_v1 = vpack.c.bf16 %v3491_v12, %v3490_v16  ;;  %v18692_v14 = vld [vmem:[#allocation147_spill] sm:$0xff]  ;;  %v3493_v59 = vmul.f32 %v11460_v56, %v18693_v15  ;;  %v18694_v12 = vld [vmem:[#allocation177_spill] sm:$0xff]  ;;  %v18698_v15 = vld [vmem:[#allocation46_spill] sm:$0xff] }
 0x4eb   :  { %v11464_v60 = vpop.eup %11463  ;;  %11481 = vrcp.f32 %v14513_v21  ;;  %v14612_v38 = vpop.xlane.xlu0 %3162  ;;  %v3064_v21 = vmul.f32 1.442695, %v2814_v46  ;;  %v2800_v18 = vsub.f32 %v18694_v12, %v14268_v26 }
 0x4ec   :  { %v3177_v4 = vpop.xlane.xlu1 %3176  ;;  %v14615_v55 = vpop.eup %11465  ;;  %10789 = vmatpush3.bf16.xpose.msra.mxu1 %v10788_v1  ;;  %v3492_v28 = vmul.f32 %v11464_v60, %v18692_v14  ;;  %v18696_v14 = vld [vmem:[#allocation19_spill] sm:$0xff] }
 0x4ed   :  { %18691 = vst [vmem:[#allocation102_spill] sm:$0xff] %v14615_v55  ;;  %v11468_v32 = vpop.eup %11467  ;;  %11483 = vrcp.f32 %v3177_v4  ;;  %10814 = vmatprep.subr.bf16.mxu1 %v18636_v47  ;;  %v442_v12 = vcombine.high %v18696_v14, %v18696_v14 }
 0x4ee   :  { %v14620_v16 = vpop.eup %11469  ;;  %11485 = vpow2.f32 %v3032_v30  ;;  %3298 = vadd.xlane.f32.xlu0 %v14615_v55  ;;  %3312 = vadd.xlane.f32.xlu1 %v14605_v57  ;;  %v10791_v13 = vpack.c.bf16 %v3493_v59, %v3492_v28  ;;  %v18697_v30 = vld [vmem:[#allocation57_spill] sm:$0xff]  ;;  %v3509_v6 = vmul.f32 %v11468_v32, %v18698_v15  ;;  %v18699_v28 = vmov 0.0  }
 0x4ef   :  { %v11472_v1 = vpop.eup %11471  ;;  %11487 = vrcp.f32 %v14528_v24  ;;  %v14627_v60 = vpop.xlane.xlu0 %3194  ;;  %9863 = vmatmul.mubr.f32.vlgmr.msra.gmra.mrb[80].mxu0 %v18696_v14  ;;  %v3036_v24 = vmul.f32 1.442695, %v2800_v18  ;;  %v18700_v59 = vld [vmem:[#allocation149_spill] sm:$0xff] }
 0x4f0   :  { %v3149_v56 = vpop.xlane.xlu1 %3148  ;;  %v14629_v4 = vpop.eup %11473  ;;  %v3508_v46 = vmul.f32 %v11472_v1, %v18697_v30  ;;  %10792 = vmatpush3.bf16.xpose.msra.mxu0 %v10791_v13  ;;  %9932 = vmatprep.mubr.msk.f32.mxu0 %vm17954_vm14, %v18699_v28  ;;  %v2816_v55 = vsub.f32 %v18700_v59, %v14286_v34  ;;  %v18702_v34 = vld [vmem:[#allocation48_spill] sm:$0xff] }
 0x4f1   :  { %18695 = vst [vmem:[#allocation103_spill] sm:$0xff] %v14629_v4  ;;  %v11476_v26 = vpop.eup %11475  ;;  %11489 = vrcp.f32 %v3149_v56  ;;  %10793 = vmatprep.subr.bf16.mxu0 %v18636_v47 }
 0x4f2   :  { %11491 = vpow2.f32 %v3064_v21  ;;  %3330 = vadd.xlane.f32.xlu0 %v14629_v4  ;;  %3284 = vadd.xlane.f32.xlu1 %v14620_v16  ;;  %v10815_v1 = vpack.c.bf16 %v3509_v6, %v3508_v46  ;;  %v18701_v21 = vld [vmem:[#allocation58_spill] sm:$0xff]  ;;  %v3495_v30 = vmul.f32 %v11476_v26, %v18702_v34  ;;  %v18703_v46 = vld [vmem:[#allocation28_spill] sm:$0xff] }
 0x4f3   :  { %v11478_v32 = vpop.eup %11477  ;;  %11493 = vrcp.f32 %v14543_v49  ;;  %9898 = vmatmul.mubr.f32.vlgmr.msra.gmra.mrb[80].mxu1 %v442_v12  ;;  %v14643_v14 = vpop.xlane.xlu0 %3166  ;;  %v3068_v49 = vmul.f32 1.442695, %v2816_v55  ;;  %v2802_v15 = vsub.f32 %v18703_v46, %v14306_v44  ;;  %v18705_v34 = vld [vmem:[#allocation50_spill] sm:$0xff] }
 0x4f4   :  { %v3181_v13 = vpop.xlane.xlu1 %3180  ;;  %v14646_v56 = vpop.eup %11479  ;;  %10816 = vmatpush3.bf16.xpose.msra.mxu1 %v10815_v1  ;;  %v3494_v18 = vmul.f32 %v11478_v32, %v18701_v21  ;;  %9967 = vmatprep.mubr.msk.f32.mxu1 %vm17954_vm14, %v18699_v28  ;;  %v18704_v21 = vld [vmem:[#allocation153_spill] sm:$0xff]  ;;  %v18706_v55 = vld [vmem:[#allocation34_spill] sm:$0xff] }
 0x4f5   :  { %v11482_v6 = vpop.eup %11481  ;;  %11495 = vrcp.f32 %v3181_v13  ;;  %10817 = vmatprep.subr.bf16.mxu1 %v18636_v47  ;;  %v3040_v44 = vmul.f32 1.442695, %v2802_v15  ;;  %v18708_v15 = vld [vmem:[#allocation51_spill] sm:$0xff] }
 0x4f6   :  { %11497 = vpow2.f32 %v3036_v24  ;;  %3316 = vadd.xlane.f32.xlu1 %v14646_v56  ;;  %v10794_v12 = vpack.c.bf16 %v3495_v30, %v3494_v18  ;;  %v3511_v4 = vmul.f32 %v11482_v6, %v18705_v34  ;;  %v2818_v18 = vsub.f32 %v18706_v55, %v14318_v17 }
 0x4f7   :  { %v11484_v59 = vpop.eup %11483  ;;  %11499 = vrcp.f32 %v14556_v37  ;;  %v14657_v1 = vpop.xlane.xlu0 %3198 }
 0x4f8   :  { %v3153_v26 = vpop.xlane.xlu1 %3152  ;;  %v14659_v32 = vpop.eup %11485  ;;  %v3510_v13 = vmul.f32 %v11484_v59, %v18704_v21  ;;  %10795 = vmatpush3.bf16.xpose.msra.mxu0 %v10794_v12  ;;  %v18707_v12 = vld [vmem:[#allocation62_spill] sm:$0xff]  ;;  %v3072_v17 = vmul.f32 1.442695, %v2818_v18 }
 0x4f9   :  { %v11488_v24 = vpop.eup %11487  ;;  %11501 = vrcp.f32 %v3153_v26  ;;  %10796 = vmatprep.subr.bf16.mxu0 %v18636_v47 }
 0x4fa   :  { %11503 = vpow2.f32 %v3068_v49  ;;  %3288 = vadd.xlane.f32.xlu1 %v14659_v32  ;;  %v10818_v37 = vpack.c.bf16 %v3511_v4, %v3510_v13  ;;  %v3497_v26 = vmul.f32 %v11488_v24, %v18708_v15  ;;  %v18711_v24 = vld [vmem:[#allocation52_spill] sm:$0xff] }
 0x4fb   :  { %v11490_v30 = vpop.eup %11489  ;;  %11505 = vrcp.f32 %v14573_v45  ;;  %v14668_v46 = vpop.xlane.xlu0 %3170 }
 0x4fc   :  { %v3185_v59 = vpop.xlane.xlu1 %3184  ;;  %v14670_v6 = vpop.eup %11491  ;;  %10819 = vmatpush3.bf16.xpose.msra.mxu1 %v10818_v37  ;;  %v3496_v49 = vmul.f32 %v11490_v30, %v18707_v12  ;;  %v18710_v37 = vld [vmem:[#allocation65_spill] sm:$0xff] }
 0x4fd   :  { %v11494_v21 = vpop.eup %11493  ;;  %11507 = vrcp.f32 %v3185_v59  ;;  %10820 = vmatprep.subr.bf16.mxu1 %v18636_v47 }
 0x4fe   :  { %11509 = vpow2.f32 %v3040_v44  ;;  %3320 = vadd.xlane.f32.xlu1 %v14670_v6  ;;  %v10797_v4 = vpack.c.bf16 %v3497_v26, %v3496_v49  ;;  %v3513_v12 = vmul.f32 %v11494_v21, %v18711_v24  ;;  %v18713_v26 = vld [vmem:[#allocation67_spill] sm:$0xff] }
 0x4ff   :  { %v11496_v45 = vpop.eup %11495  ;;  %11511 = vrcp.f32 %v14586_v29  ;;  %v14677_v13 = vpop.xlane.xlu0 %3202 }
 0x500   :  { %v3157_v34 = vpop.xlane.xlu1 %3156  ;;  %v14679_v55 = vpop.eup %11497  ;;  %v3512_v30 = vmul.f32 %v11496_v45, %v18710_v37  ;;  %10798 = vmatpush3.bf16.xpose.msra.mxu0 %v10797_v4  ;;  %v18714_v45 = vld [vmem:[#allocation53_spill] sm:$0xff] }
 0x501   :  { %18709 = vst [vmem:[#allocation104_spill] sm:$0xff] %v14679_v55  ;;  %v11500_v59 = vpop.eup %11499  ;;  %11513 = vrcp.f32 %v3157_v34  ;;  %10799 = vmatprep.subr.bf16.mxu0 %v18636_v47 }
 0x502   :  { %11515 = vpow2.f32 %v3072_v17  ;;  %3292 = vadd.xlane.f32.xlu1 %v14679_v55  ;;  %v10821_v44 = vpack.c.bf16 %v3513_v12, %v3512_v30  ;;  %v3499_v4 = vmul.f32 %v11500_v59, %v18714_v45  ;;  %v18716_v12 = vld [vmem:[#allocation69_spill] sm:$0xff] }
 0x503   :  { %v11502_v18 = vpop.eup %11501  ;;  %11517 = vrcp.f32 %v14599_v20  ;;  %v14686_v29 = vpop.xlane.xlu0 %3206 }
 0x504   :  { %v3189_v49 = vpop.xlane.xlu1 %3188  ;;  %v14688_v15 = vpop.eup %11503  ;;  %10822 = vmatpush3.bf16.xpose.msra.mxu1 %v10821_v44  ;;  %v3498_v21 = vmul.f32 %v11502_v18, %v18713_v26  ;;  %v18717_v18 = vld [vmem:[#allocation55_spill] sm:$0xff] }
 0x505   :  { %18712 = vst [vmem:[#allocation105_spill] sm:$0xff] %v14688_v15  ;;  %v11506_v34 = vpop.eup %11505  ;;  %11519 = vrcp.f32 %v3189_v49  ;;  %10823 = vmatprep.subr.bf16.mxu1 %v18636_v47 }
 0x506   :  { %3324 = vadd.xlane.f32.xlu1 %v14688_v15  ;;  %v10800_v17 = vpack.c.bf16 %v3499_v4, %v3498_v21  ;;  %11521 = vrcp.f32 %v14612_v38  ;;  %v3515_v26 = vmul.f32 %v11506_v34, %v18717_v18  ;;  %v18720_v34 = vld [vmem:[#allocation56_spill] sm:$0xff] }
 0x507   :  { %v11508_v37 = vpop.eup %11507  ;;  %v14695_v20 = vpop.xlane.xlu0 %3238 }
 0x508   :  { %v3161_v30 = vpop.xlane.xlu1 %3160  ;;  %v14697_v24 = vpop.eup %11509  ;;  %v3514_v44 = vmul.f32 %v11508_v37, %v18716_v12  ;;  %10801 = vmatpush3.bf16.xpose.msra.mxu0 %v10800_v17  ;;  %v18719_v37 = vld [vmem:[#allocation71_spill] sm:$0xff] }
 0x509   :  { %18715 = vst [vmem:[#allocation107_spill] sm:$0xff] %v14697_v24  ;;  %v11512_v59 = vpop.eup %11511  ;;  %11523 = vrcp.f32 %v3161_v30  ;;  %10802 = vmatprep.subr.bf16.mxu0 %v18636_v47 }
 0x50a   :  { %3296 = vadd.xlane.f32.xlu1 %v14697_v24  ;;  %v10824_v49 = vpack.c.bf16 %v3515_v26, %v3514_v44  ;;  %11525 = vrcp.f32 %v14627_v60  ;;  %v3501_v18 = vmul.f32 %v11512_v59, %v18720_v34  ;;  %v18721_v24 = vld [vmem:[#allocation72_spill] sm:$0xff] }
 0x50b   :  { %v11514_v21 = vpop.eup %11513  ;;  %v14704_v38 = vpop.xlane.xlu0 %3210 }
 0x50c   :  { %v3193_v45 = vpop.xlane.xlu1 %3192  ;;  %v14706_v4 = vpop.eup %11515  ;;  %10825 = vmatpush3.bf16.xpose.msra.mxu1 %v10824_v49  ;;  %v3500_v12 = vmul.f32 %v11514_v21, %v18719_v37  ;;  %v18722_v49 = vld [vmem:[#allocation151_spill] sm:$0xff] }
 0x50d   :  { %18718 = vst [vmem:[#allocation108_spill] sm:$0xff] %v14706_v4  ;;  %v11518_v17 = vpop.eup %11517  ;;  %11527 = vrcp.f32 %v3193_v45  ;;  %10826 = vmatprep.subr.bf16.mxu1 %v18636_v47 }
 0x50e   :  { %3328 = vadd.xlane.f32.xlu1 %v14706_v4  ;;  %v10803_v30 = vpack.c.bf16 %v3501_v18, %v3500_v12  ;;  %11529 = vrcp.f32 %v14643_v14  ;;  %v3517_v55 = vmul.f32 %v11518_v17, %v18722_v49  ;;  %v18723_v14 = vld [vmem:[#allocation74_spill] sm:$0xff]  ;;  %v18724_v18 = vld [vmem:[#allocation60_spill] sm:$0xff] }
 0x50f   :  { %v11520_v44 = vpop.eup %11519  ;;  %v14713_v60 = vpop.xlane.xlu0 %3242 }
 0x510   :  { %v3165_v26 = vpop.xlane.xlu1 %3164  ;;  %v3516_v15 = vmul.f32 %v11520_v44, %v18721_v24  ;;  %v11522_v21 = vpop.eup %11521  ;;  %10804 = vmatpush3.bf16.xpose.msra.mxu0 %v10803_v30 }
 0x511   :  { %11531 = vrcp.f32 %v3165_v26  ;;  %10805 = vmatprep.subr.bf16.mxu0 %v18636_v47  ;;  %v3503_v4 = vmul.f32 %v11522_v21, %v18724_v18  ;;  %v18726_v26 = vld [vmem:[#allocation61_spill] sm:$0xff] }
 0x512   :  { %v10827_v59 = vpack.c.bf16 %v3517_v55, %v3516_v15  ;;  %11533 = vrcp.f32 %v14657_v1  ;;  %v18725_v1 = vld [vmem:[#allocation76_spill] sm:$0xff] }
 0x513   :  { %v11524_v45 = vpop.eup %11523  ;;  %v14719_v37 = vpop.xlane.xlu0 %3214 }
 0x514   :  { %v3197_v12 = vpop.xlane.xlu1 %3196  ;;  %10828 = vmatpush3.bf16.xpose.msra.mxu1 %v10827_v59  ;;  %v3502_v34 = vmul.f32 %v11524_v45, %v18723_v14  ;;  %v11526_v24 = vpop.eup %11525 }
 0x515   :  { %11535 = vrcp.f32 %v3197_v12  ;;  %10829 = vmatprep.subr.bf16.mxu1 %v18636_v47  ;;  %v3519_v49 = vmul.f32 %v11526_v24, %v18726_v26  ;;  %v18730_v26 = vld [vmem:[#allocation66_spill] sm:$0xff] }
 0x516   :  { %v10806_v17 = vpack.c.bf16 %v3503_v4, %v3502_v34  ;;  %11537 = vrcp.f32 %v14668_v46  ;;  %v18727_v46 = vld [vmem:[#allocation78_spill] sm:$0xff]  ;;  %v18728_v34 = vld [vmem:[#allocation63_spill] sm:$0xff] }
 0x517   :  { %v11528_v30 = vpop.eup %11527  ;;  %v14725_v55 = vpop.xlane.xlu0 %3246 }
 0x518   :  { %v3169_v15 = vpop.xlane.xlu1 %3168  ;;  %v3518_v44 = vmul.f32 %v11528_v30, %v18725_v1  ;;  %v11530_v59 = vpop.eup %11529  ;;  %10807 = vmatpush3.bf16.xpose.msra.mxu0 %v10806_v17 }
 0x519   :  { %11539 = vrcp.f32 %v3169_v15  ;;  %10808 = vmatprep.subr.bf16.mxu0 %v18636_v47  ;;  %v3505_v18 = vmul.f32 %v11530_v59, %v18728_v34  ;;  %v18732_v34 = vld [vmem:[#allocation68_spill] sm:$0xff] }
 0x51a   :  { %v10830_v45 = vpack.c.bf16 %v3519_v49, %v3518_v44  ;;  %11541 = vrcp.f32 %v14677_v13  ;;  %v18729_v13 = vld [vmem:[#allocation80_spill] sm:$0xff] }
 0x51b   :  { %v11532_v21 = vpop.eup %11531  ;;  %v14731_v4 = vpop.xlane.xlu0 %3218 }
 0x51c   :  { %v3201_v12 = vpop.xlane.xlu1 %3200  ;;  %10831 = vmatpush3.bf16.xpose.msra.mxu1 %v10830_v45  ;;  %v3504_v14 = vmul.f32 %v11532_v21, %v18727_v46  ;;  %v11534_v30 = vpop.eup %11533 }
 0x51d   :  { %11543 = vrcp.f32 %v3201_v12  ;;  %10832 = vmatprep.subr.bf16.mxu1 %v18636_v47  ;;  %v3521_v49 = vmul.f32 %v11534_v30, %v18730_v26  ;;  %v18734_v26 = vld [vmem:[#allocation70_spill] sm:$0xff] }
 0x51e   :  { %v10809_v24 = vpack.c.bf16 %v3505_v18, %v3504_v14  ;;  %11545 = vrcp.f32 %v14686_v29  ;;  %v18731_v29 = vld [vmem:[#allocation83_spill] sm:$0xff] }
 0x51f   :  { %v11536_v17 = vpop.eup %11535  ;;  %v14737_v15 = vpop.xlane.xlu0 %3250 }
 0x520   :  { %v3205_v1 = vpop.xlane.xlu1 %3204  ;;  %v3520_v44 = vmul.f32 %v11536_v17, %v18729_v13  ;;  %v11538_v45 = vpop.eup %11537  ;;  %10810 = vmatpush3.bf16.xpose.msra.mxu0 %v10809_v24 }
 0x521   :  { %11547 = vrcp.f32 %v3205_v1  ;;  %10811 = vmatprep.subr.bf16.mxu0 %v18636_v47  ;;  %v3507_v18 = vmul.f32 %v11538_v45, %v18732_v34 }
 0x522   :  { %v10833_v21 = vpack.c.bf16 %v3521_v49, %v3520_v44  ;;  %11549 = vrcp.f32 %v14695_v20  ;;  %v18733_v20 = vld [vmem:[#allocation86_spill] sm:$0xff] }
 0x523   :  { %v11540_v59 = vpop.eup %11539  ;;  %v14743_v12 = vpop.xlane.xlu0 %3222 }
 0x524   :  { %v3237_v46 = vpop.xlane.xlu1 %3236  ;;  %10834 = vmatpush3.bf16.xpose.msra.mxu1 %v10833_v21  ;;  %v3506_v14 = vmul.f32 %v11540_v59, %v18731_v29  ;;  %v11542_v17 = vpop.eup %11541 }
 0x525   :  { %11551 = vrcp.f32 %v3237_v46  ;;  %10835 = vmatprep.subr.bf16.mxu1 %v18636_v47  ;;  %v3523_v49 = vmul.f32 %v11542_v17, %v18734_v26 }
 0x526   :  { %v10812_v30 = vpack.c.bf16 %v3507_v18, %v3506_v14  ;;  %11553 = vrcp.f32 %v14704_v38  ;;  %v18735_v14 = vld [vmem:[#allocation73_spill] sm:$0xff] }
 0x527   :  { %v11544_v24 = vpop.eup %11543  ;;  %v14749_v1 = vpop.xlane.xlu0 %3254 }
 0x528   :  { %v3209_v13 = vpop.xlane.xlu1 %3208  ;;  %v3522_v44 = vmul.f32 %v11544_v24, %v18733_v20  ;;  %v11546_v21 = vpop.eup %11545  ;;  %10813 = vmatpush3.bf16.xpose.msra.mxu0 %v10812_v30 }
 0x529   :  { %11555 = vrcp.f32 %v3209_v13  ;;  %10838 = vmatprep.subr.bf16.mxu0 %v18636_v47  ;;  %v3525_v34 = vmul.f32 %v11546_v21, %v18735_v14 }
 0x52a   :  { %v10836_v59 = vpack.c.bf16 %v3523_v49, %v3522_v44  ;;  %11557 = vrcp.f32 %v14713_v60  ;;  %v18736_v60 = vld [vmem:[#allocation18_spill] sm:$0xff]  ;;  %v18737_v44 = vld [vmem:[#allocation75_spill] sm:$0xff] }
 0x52b   :  { %v11548_v45 = vpop.eup %11547  ;;  %v14755_v46 = vpop.xlane.xlu0 %3226  ;;  %v443_v49 = vcombine.high %v18736_v60, %v18736_v60 }
 0x52c   :  { %v3241_v29 = vpop.xlane.xlu1 %3240  ;;  %10837 = vmatpush3.bf16.xpose.msra.mxu1 %v10836_v59  ;;  %v3524_v38 = vmul.f32 %v11548_v45, %v14272_v3  ;;  %v11550_v18 = vpop.eup %11549 }
 0x52d   :  { %11559 = vrcp.f32 %v3241_v29  ;;  %10862 = vmatprep.subr.bf16.mxu1 %v18636_v47  ;;  %v3541_v26 = vmul.f32 %v11550_v18, %v18737_v44  ;;  %v18738_v29 = vld [vmem:[#allocation77_spill] sm:$0xff] }
 0x52e   :  { %v10839_v17 = vpack.c.bf16 %v3525_v34, %v3524_v38  ;;  %11561 = vrcp.f32 %v14719_v37 }
 0x52f   :  { %v11552_v30 = vpop.eup %11551  ;;  %v14761_v24 = vpop.xlane.xlu0 %3258  ;;  %9933 = vmatmul.mubr.f32.vlgmr.msra.gmra.mrb[82].mxu0 %v18736_v60 }
 0x530   :  { %v3213_v13 = vpop.xlane.xlu1 %3212  ;;  %v3540_v20 = vmul.f32 %v11552_v30, %v14290_v35  ;;  %v11554_v3 = vpop.eup %11553  ;;  %10840 = vmatpush3.bf16.xpose.msra.mxu0 %v10839_v17  ;;  %10002 = vmatprep.mubr.msk.f32.mxu0 %vm17954_vm14, %v18699_v28 }
 0x531   :  { %11563 = vrcp.f32 %v3213_v13  ;;  %10841 = vmatprep.subr.bf16.mxu0 %v18636_v47  ;;  %v3527_v38 = vmul.f32 %v11554_v3, %v18738_v29  ;;  %v18739_v13 = vld [vmem:[#allocation79_spill] sm:$0xff] }
 0x532   :  { %v10863_v21 = vpack.c.bf16 %v3541_v26, %v3540_v20  ;;  %11565 = vrcp.f32 %v14725_v55 }
 0x533   :  { %v11556_v37 = vpop.eup %11555  ;;  %9968 = vmatmul.mubr.f32.vlgmr.msra.gmra.mrb[82].mxu1 %v443_v49  ;;  %v14772_v59 = vpop.xlane.xlu0 %3230  ;;  %v18740_v49 = vld [vmem:[#allocation81_spill] sm:$0xff] }
 0x534   :  { %v3245_v35 = vpop.xlane.xlu1 %3244  ;;  %10864 = vmatpush3.bf16.xpose.msra.mxu1 %v10863_v21  ;;  %v3526_v45 = vmul.f32 %v11556_v37, %v14308_v19  ;;  %10037 = vmatprep.mubr.msk.f32.mxu1 %vm17954_vm14, %v18699_v28  ;;  %v11558_v14 = vpop.eup %11557 }
 0x535   :  { %11567 = vrcp.f32 %v3245_v35  ;;  %10865 = vmatprep.subr.bf16.mxu1 %v18636_v47  ;;  %v3543_v19 = vmul.f32 %v11558_v14, %v18739_v13  ;;  %v8702_v35 = vld [vmem:[%s17682_s1 + $0x20] sm:$0xff] }
 0x536   :  { %v10842_v34 = vpack.c.bf16 %v3527_v38, %v3526_v45  ;;  %11569 = vrcp.f32 %v14731_v4  ;;  %v18741_v38 = vld [vmem:[#allocation92_spill] sm:$0xff] }
 0x537   :  { %v11560_v18 = vpop.eup %11559  ;;  %v14780_v55 = vpop.xlane.xlu0 %3262 }
 0x538   :  { %v3217_v17 = vpop.xlane.xlu1 %3216  ;;  %v3542_v30 = vmul.f32 %v11560_v18, %v14320_v61  ;;  %v11562_v60 = vpop.eup %11561  ;;  %10843 = vmatpush3.bf16.xpose.msra.mxu0 %v10842_v34 }
 0x539   :  { %11571 = vrcp.f32 %v3217_v17  ;;  %10844 = vmatprep.subr.bf16.mxu0 %v18636_v47  ;;  %v3529_v21 = vmul.f32 %v11562_v60, %v18740_v49  ;;  %v18743_v60 = vld [vmem:[#allocation95_spill] sm:$0xff] }
 0x53a   :  { %v10866_v20 = vpack.c.bf16 %v3543_v19, %v3542_v30  ;;  %11573 = vrcp.f32 %v14737_v15  ;;  %v8703_v30 = vld [vmem:[%s17682_s1 + $0x28] sm:$0xff] }
 0x53b   :  { %v11564_v44 = vpop.eup %11563  ;;  %v14786_v26 = vpop.xlane.xlu0 %3234 }
 0x53c   :  { %v3249_v3 = vpop.xlane.xlu1 %3248  ;;  %10867 = vmatpush3.bf16.xpose.msra.mxu1 %v10866_v20  ;;  %v3528_v4 = vmul.f32 %v11564_v44, %v14330_v63  ;;  %v11566_v61 = vpop.eup %11565  ;;  %v18742_v63 = vld [vmem:[#allocation84_spill] sm:$0xff]  ;;  %v18744_v44 = vld [vmem:[#allocation87_spill] sm:$0xff] }
 0x53d   :  { %11575 = vrcp.f32 %v3249_v3  ;;  %10868 = vmatprep.subr.bf16.mxu1 %v18636_v47  ;;  %v3545_v34 = vmul.f32 %v11566_v61, %v18742_v63  ;;  %v8705_v63 = vld [vmem:[%s17682_s1 + $0x38] sm:$0xff] }
 0x53e   :  { %v10845_v37 = vpack.c.bf16 %v3529_v21, %v3528_v4  ;;  %11577 = vrcp.f32 %v14743_v12  ;;  %v8704_v21 = vld [vmem:[%s17682_s1 + $0x30] sm:$0xff] }
 0x53f   :  { %v11568_v45 = vpop.eup %11567  ;;  %v14795_v15 = vpop.xlane.xlu0 %3266 }
 0x540   :  { %v3221_v29 = vpop.xlane.xlu1 %3220  ;;  %v3544_v14 = vmul.f32 %v11568_v45, %v18741_v38  ;;  %v11570_v18 = vpop.eup %11569  ;;  %10846 = vmatpush3.bf16.xpose.msra.mxu0 %v10845_v37  ;;  %v18745_v45 = vld [vmem:[#allocation89_spill] sm:$0xff] }
 0x541   :  { %11579 = vrcp.f32 %v3221_v29  ;;  %4314 = vxpose.xlu1.b32.start [1/4] (short) %v8702_v35, 128  ;;  %10847 = vmatprep.subr.bf16.mxu0 %v18636_v47  ;;  %v3531_v3 = vmul.f32 %v11570_v18, %v18744_v44 }
 0x542   :  { %v10869_v17 = vpack.c.bf16 %v3545_v34, %v3544_v14  ;;  %11581 = vrcp.f32 %v14749_v1 }
 0x543   :  { %v11572_v13 = vpop.eup %11571  ;;  %v14804_v12 = vpop.xlane.xlu0 %3270 }
 0x544   :  { %v3253_v19 = vpop.xlane.xlu1 %3252  ;;  %10870 = vmatpush3.bf16.xpose.msra.mxu1 %v10869_v17  ;;  %v3530_v20 = vmul.f32 %v11572_v13, %v18743_v60  ;;  %v11574_v4 = vpop.eup %11573  ;;  %v18746_v17 = vld [vmem:[#allocation88_spill] sm:$0xff] }
 0x545   :  { %11583 = vrcp.f32 %v3253_v19  ;;  %4315 = vxpose.xlu1.b32.cont [2/4] (short) %v8703_v30, 128  ;;  %10871 = vmatprep.subr.bf16.mxu1 %v18636_v47  ;;  %v3547_v29 = vmul.f32 %v11574_v4, %v18745_v45 }
 0x546   :  { %v10848_v49 = vpack.c.bf16 %v3531_v3, %v3530_v20  ;;  %11585 = vrcp.f32 %v14755_v46  ;;  %v18747_v3 = vld [vmem:[#allocation90_spill] sm:$0xff] }
 0x547   :  { %v11576_v61 = vpop.eup %11575  ;;  %v14813_v1 = vpop.xlane.xlu0 %3302 }
 0x548   :  { %v3225_v37 = vpop.xlane.xlu1 %3224  ;;  %v3546_v35 = vmul.f32 %v11576_v61, %v14356_v9  ;;  %v11578_v38 = vpop.eup %11577  ;;  %10849 = vmatpush3.bf16.xpose.msra.mxu0 %v10848_v49 }
 0x549   :  { %11587 = vrcp.f32 %v3225_v37  ;;  %4316 = vxpose.xlu1.b32.cont [3/4] (short) %v8704_v21, 128  ;;  %10850 = vmatprep.subr.bf16.mxu0 %v18636_v47  ;;  %v3533_v30 = vmul.f32 %v11578_v38, %v18746_v17  ;;  %v18748_v37 = vld [vmem:[#allocation91_spill] sm:$0xff] }
 0x54a   :  { %v10872_v14 = vpack.c.bf16 %v3547_v29, %v3546_v35  ;;  %11589 = vrcp.f32 %v14761_v24 }
 0x54b   :  { %v11580_v34 = vpop.eup %11579  ;;  %v14822_v46 = vpop.xlane.xlu0 %3274 }
 0x54c   :  { %v3257_v18 = vpop.xlane.xlu1 %3256  ;;  %10873 = vmatpush3.bf16.xpose.msra.mxu1 %v10872_v14  ;;  %v3532_v9 = vmul.f32 %v11580_v34, %v14364_v51  ;;  %v11582_v13 = vpop.eup %11581 }
 0x54d   :  { %11591 = vrcp.f32 %v3257_v18  ;;  %4317 = vxpose.xlu1.b32.end [4/4] (short) %v8705_v63, 128  ;;  %10874 = vmatprep.subr.bf16.mxu1 %v18636_v47  ;;  %v3549_v4 = vmul.f32 %v11582_v13, %v18747_v3  ;;  %v18750_v13 = vld [vmem:[#allocation94_spill] sm:$0xff] }
 0x54e   :  { %v10851_v19 = vpack.c.bf16 %v3533_v30, %v3532_v9  ;;  %11593 = vrcp.f32 %v14772_v59 }
 0x54f   :  { %v11584_v60 = vpop.eup %11583  ;;  %v14828_v20 = vpop.xlane.xlu0 %3306 }
 0x550   :  { %v3229_v24 = vpop.xlane.xlu1 %3228  ;;  %v3548_v44 = vmul.f32 %v11584_v60, %v14373_v25  ;;  %v11586_v49 = vpop.eup %11585  ;;  %10852 = vmatpush3.bf16.xpose.msra.mxu0 %v10851_v19 }
 0x551   :  { %11595 = vrcp.f32 %v3229_v24  ;;  %10853 = vmatprep.subr.bf16.mxu0 %v18636_v47  ;;  %v3535_v35 = vmul.f32 %v11586_v49, %v18748_v37 }
 0x552   :  { %v10875_v51 = vpack.c.bf16 %v3549_v4, %v3548_v44  ;;  %11597 = vrcp.f32 %v14780_v55  ;;  %v18749_v55 = vld [vmem:[#allocation93_spill] sm:$0xff] }
 0x553   :  { %v11588_v21 = vpop.eup %11587  ;;  %v14836_v29 = vpop.xlane.xlu0 %3278 }
 0x554   :  { %v3261_v61 = vpop.xlane.xlu1 %3260  ;;  %10876 = vmatpush3.bf16.xpose.msra.mxu1 %v10875_v51  ;;  %v3534_v59 = vmul.f32 %v11588_v21, %v14388_v0  ;;  %v11590_v45 = vpop.eup %11589 }
 0x555   :  { %11599 = vrcp.f32 %v3261_v61  ;;  %10877 = vmatprep.subr.bf16.mxu1 %v18636_v47  ;;  %v3551_v34 = vmul.f32 %v11590_v45, %v18749_v55 }
 0x556   :  { %v10854_v25 = vpack.c.bf16 %v3535_v35, %v3534_v59  ;;  %11601 = vrcp.f32 %v14786_v26  ;;  %v18752_v59 = vld [vmem:[#allocation96_spill] sm:$0xff] }
 0x557   :  { %v11592_v38 = vpop.eup %11591  ;;  %v14844_v17 = vpop.xlane.xlu0 %3310 }
 0x558   :  { %v3233_v14 = vpop.xlane.xlu1 %3232  ;;  %v3550_v63 = vmul.f32 %v11592_v38, %v14401_v40  ;;  %v11594_v18 = vpop.eup %11593  ;;  %10855 = vmatpush3.bf16.xpose.msra.mxu0 %v10854_v25 }
 0x559   :  { %11603 = vrcp.f32 %v3233_v14  ;;  %10856 = vmatprep.subr.bf16.mxu0 %v18636_v47  ;;  %v3537_v19 = vmul.f32 %v11594_v18, %v18750_v13  ;;  %v18754_v13 = vld [vmem:[#allocation21_spill] sm:$0xff] }
 0x55a   :  { %v10878_v0 = vpack.c.bf16 %v3551_v34, %v3550_v63  ;;  %11605 = vrcp.f32 %v14795_v15  ;;  %v18751_v15 = vld [vmem:[#allocation97_spill] sm:$0xff] }
 0x55b   :  { %v11596_v9 = vpop.eup %11595  ;;  %v14852_v51 = vpop.xlane.xlu0 %3282 }
 0x55c   :  { %v3265_v30 = vpop.xlane.xlu1 %3264  ;;  %10879 = vmatpush3.bf16.xpose.msra.mxu1 %v10878_v0  ;;  %v3536_v26 = vmul.f32 %v11596_v9, %v14418_v22  ;;  %v11598_v40 = vpop.eup %11597 }
 0x55d   :  { %11607 = vrcp.f32 %v3265_v30  ;;  %10880 = vmatprep.subr.bf16.mxu1 %v18636_v47  ;;  %v3553_v4 = vmul.f32 %v11598_v40, %v18751_v15 }
 0x55e   :  { %v10857_v60 = vpack.c.bf16 %v3537_v19, %v3536_v26  ;;  %11609 = vrcp.f32 %v14804_v12 }
 0x55f   :  { %v11600_v24 = vpop.eup %11599  ;;  %v3315_v25 = vpop.xlane.xlu0 %3314 }
 0x560   :  { %v3269_v44 = vpop.xlane.xlu1 %3268  ;;  %v3552_v3 = vmul.f32 %v11600_v24, %v14433_v58  ;;  %v11602_v49 = vpop.eup %11601  ;;  %10858 = vmatpush3.bf16.xpose.msra.mxu0 %v10857_v60 }
 0x561   :  { %11611 = vrcp.f32 %v3269_v44  ;;  %10859 = vmatprep.subr.bf16.mxu0 %v18636_v47  ;;  %v3539_v37 = vmul.f32 %v11602_v49, %v18752_v59 }
 0x562   :  { %v10881_v22 = vpack.c.bf16 %v3553_v4, %v3552_v3  ;;  %11613 = vrcp.f32 %v14813_v1 }
 0x563   :  { %v11604_v21 = vpop.eup %11603  ;;  %v3287_v30 = vpop.xlane.xlu0 %3286 }
 0x564   :  { %v3301_v61 = vpop.xlane.xlu1 %3300  ;;  %10882 = vmatpush3.bf16.xpose.msra.mxu1 %v10881_v22  ;;  %v3538_v12 = vmul.f32 %v11604_v21, %v14448_v5  ;;  %v11606_v58 = vpop.eup %11605 }
 0x565   :  { %11615 = vrcp.f32 %v3301_v61  ;;  %10883 = vmatprep.subr.bf16.mxu1 %v18636_v47  ;;  %v3555_v1 = vmul.f32 %v11606_v58, %v14369_v62 }
 0x566   :  { %v10860_v35 = vpack.c.bf16 %v3539_v37, %v3538_v12  ;;  %11617 = vrcp.f32 %v14822_v46  ;;  %v18753_v46 = vld [vmem:[#allocation98_spill] sm:$0xff] }
 0x567   :  { %v11608_v45 = vpop.eup %11607  ;;  %v3319_v24 = vpop.xlane.xlu0 %3318 }
 0x568   :  { %v3273_v38 = vpop.xlane.xlu1 %3272  ;;  %v3554_v14 = vmul.f32 %v11608_v45, %v14471_v11  ;;  %v11610_v63 = vpop.eup %11609  ;;  %10861 = vmatpush3.bf16.xpose.msra.mxu0 %v10860_v35 }
 0x569   :  { %11619 = vrcp.f32 %v3273_v38  ;;  %10886 = vmatprep.subr.bf16.mxu0 %v18636_v47  ;;  %v3557_v0 = vmul.f32 %v11610_v63, %v18753_v46 }
 0x56a   :  { %v10884_v5 = vpack.c.bf16 %v3555_v1, %v3554_v14  ;;  %11621 = vrcp.f32 %v14828_v20 }
 0x56b   :  { %v11612_v55 = vpop.eup %11611 }
 0x56c   :  { %v3305_v34 = vpop.xlane.xlu1 %3304  ;;  %10885 = vmatpush3.bf16.xpose.msra.mxu1 %v10884_v5  ;;  %v3556_v18 = vmul.f32 %v11612_v55, %v14487_v39  ;;  %v11614_v9 = vpop.eup %11613  ;;  %v444_v39 = vcombine.high %v18754_v13, %v18754_v13 }
 0x56d   :  { %11623 = vrcp.f32 %v3305_v34  ;;  %10910 = vmatprep.subr.bf16.mxu1 %v18636_v47  ;;  %v3573_v19 = vmul.f32 %v11614_v9, %v14397_v43 }
 0x56e   :  { %v10887_v62 = vpack.c.bf16 %v3557_v0, %v3556_v18  ;;  %11625 = vrcp.f32 %v14836_v29 }
 0x56f   :  { %v11616_v11 = vpop.eup %11615  ;;  %10003 = vmatmul.mubr.f32.vlgmr.msra.gmra.mrb[84].mxu0 %v18754_v13 }
 0x570   :  { %v3277_v26 = vpop.xlane.xlu1 %3276  ;;  %v3572_v20 = vmul.f32 %v11616_v11, %v14501_v50  ;;  %v11618_v40 = vpop.eup %11617  ;;  %10888 = vmatpush3.bf16.xpose.msra.mxu0 %v10887_v62  ;;  %10072 = vmatprep.mubr.msk.f32.mxu0 %vm17954_vm14, %v18699_v28 }
 0x571   :  { %11627 = vrcp.f32 %v3277_v26  ;;  %10889 = vmatprep.subr.bf16.mxu0 %v18636_v47  ;;  %v3559_v44 = vmul.f32 %v11618_v40, %v14411_v42 }
 0x572   :  { %v10911_v60 = vpack.c.bf16 %v3573_v19, %v3572_v20  ;;  %11629 = vrcp.f32 %v14844_v17 }
 0x573   :  { %v11620_v29 = vpop.eup %11619  ;;  %10038 = vmatmul.mubr.f32.vlgmr.msra.gmra.mrb[84].mxu1 %v444_v39 }
 0x574   :  { %v3309_v50 = vpop.xlane.xlu1 %3308  ;;  %10912 = vmatpush3.bf16.xpose.msra.mxu1 %v10911_v60  ;;  %v3558_v43 = vmul.f32 %v11620_v29, %v14521_v53  ;;  %10107 = vmatprep.mubr.msk.f32.mxu1 %vm17954_vm14, %v18699_v28  ;;  %v11622_v3 = vpop.eup %11621  ;;  %vm18765_vm14 = vcmask 261120  }
 0x575   :  { %11631 = vrcp.f32 %v3309_v50  ;;  %10913 = vmatprep.subr.bf16.mxu1 %v18636_v47  ;;  %v3575_v22 = vmul.f32 %v11622_v3, %v14427_v31  ;;  %v3291_v53 = vpop.xlane.xlu0 %3290  ;;  %vm18767_vm13 = vmmov %vm18765_vm14 }
 0x576   :  { %v10890_v15 = vpack.c.bf16 %v3559_v44, %v3558_v43  ;;  %11633 = vrcp.f32 %v14852_v51  ;;  %vm18769_vm10 = vmmov %vm18767_vm13 }
 0x577   :  { %v11624_v4 = vpop.eup %11623  ;;  %vm18773_vm9 = vmmov %vm18769_vm10 }
 0x578   :  { %v3281_v17 = vpop.xlane.xlu1 %3280  ;;  %v3574_v49 = vmul.f32 %v11624_v4, %v14536_v23  ;;  %v11626_v21 = vpop.eup %11625  ;;  %10891 = vmatpush3.bf16.xpose.msra.mxu0 %v10890_v15  ;;  %vm18782_vm0 = vmmov %vm18773_vm9 }
 0x579   :  { %11635 = vrcp.f32 %v3281_v17  ;;  %10892 = vmatprep.subr.bf16.mxu0 %v18636_v47  ;;  %v3561_v51 = vmul.f32 %v11626_v21, %v14443_v2  ;;  %v3323_v58 = vpop.xlane.xlu0 %3322  ;;  %v18756_v21 = vld [vmem:[#allocation99_spill] sm:$0xff]  ;;  %vm18802_vm2 = vmmov %vm18782_vm0 }
 0x57a   :  { %v10914_v42 = vpack.c.bf16 %v3575_v22, %v3574_v49  ;;  %11637 = vrcp.f32 %v3315_v25  ;;  %v18755_v49 = vld [vmem:[#allocation104_spill] sm:$0xff]  ;;  %vm18820_vm12 = vmmov %vm18782_vm0 }
 0x57b   :  { %v11628_v61 = vpop.eup %11627 }
 0x57c   :  { %v3313_v12 = vpop.xlane.xlu1 %3312  ;;  %10915 = vmatpush3.bf16.xpose.msra.mxu1 %v10914_v42  ;;  %v3560_v59 = vmul.f32 %v11628_v61, %v14559_v8  ;;  %v11630_v37 = vpop.eup %11629 }
 0x57d   :  { %11639 = vrcp.f32 %v3313_v12  ;;  %10916 = vmatprep.subr.bf16.mxu1 %v18636_v47  ;;  %v3577_v38 = vmul.f32 %v11630_v37, %v14457_v33  ;;  %v3295_v55 = vpop.xlane.xlu0 %3294 }
 0x57e   :  { %v10893_v31 = vpack.c.bf16 %v3561_v51, %v3560_v59  ;;  %11641 = vrcp.f32 %v3287_v30  ;;  %v18758_v59 = vld [vmem:[#allocation100_spill] sm:$0xff] }
 0x57f   :  { %v11632_v23 = vpop.eup %11631 }
 0x580   :  { %v3285_v35 = vpop.xlane.xlu1 %3284  ;;  %v3576_v45 = vmul.f32 %v11632_v23, %v14575_v41  ;;  %v11634_v25 = vpop.eup %11633  ;;  %10894 = vmatpush3.bf16.xpose.msra.mxu0 %v10893_v31 }
 0x581   :  { %11643 = vrcp.f32 %v3285_v35  ;;  %10895 = vmatprep.subr.bf16.mxu0 %v18636_v47  ;;  %v3563_v63 = vmul.f32 %v11634_v25, %v14478_v27 }
 0x582   :  { %11645 = vrcp.f32 %v3319_v24  ;;  %v10917_v8 = vpack.c.bf16 %v3577_v38, %v3576_v45  ;;  %v18760_v45 = vld [vmem:[#allocation102_spill] sm:$0xff] }
 0x583   :  { %v11636_v2 = vpop.eup %11635 }
 0x584   :  { %v3317_v14 = vpop.xlane.xlu1 %3316  ;;  %10918 = vmatpush3.bf16.xpose.msra.mxu1 %v10917_v8  ;;  %v3562_v1 = vmul.f32 %v11636_v2, %v14589_v48  ;;  %v11638_v5 = vpop.eup %11637 }
 0x585   :  { %11647 = vrcp.f32 %v3317_v14  ;;  %10919 = vmatprep.subr.bf16.mxu1 %v18636_v47  ;;  %v3579_v46 = vmul.f32 %v11638_v5, %v14491_v54  ;;  %v3327_v48 = vpop.xlane.xlu0 %3326  ;;  %v8698_v14 = vld [vmem:[%s17683_s0 + $0x20] sm:$0xff] }
 0x586   :  { %11649 = vrcp.f32 %v3291_v53  ;;  %v10896_v33 = vpack.c.bf16 %v3563_v63, %v3562_v1  ;;  %v8699_v1 = vld [vmem:[%s17683_s0 + $0x28] sm:$0xff]  ;;  %v18761_v63 = vld [vmem:[#allocation108_spill] sm:$0xff] }
 0x587   :  { %v11640_v41 = vpop.eup %11639 }
 0x588   :  { %v3289_v34 = vpop.xlane.xlu1 %3288  ;;  %v3578_v18 = vmul.f32 %v11640_v41, %v14605_v57  ;;  %v11642_v0 = vpop.eup %11641  ;;  %10897 = vmatpush3.bf16.xpose.msra.mxu0 %v10896_v33 }
 0x589   :  { %11651 = vrcp.f32 %v3289_v34  ;;  %10898 = vmatprep.subr.bf16.mxu0 %v18636_v47  ;;  %v3565_v26 = vmul.f32 %v11642_v0, %v14515_v7  ;;  %v3299_v39 = vpop.xlane.xlu0 %3298  ;;  %v10942_v34 = vpack.c.bf16 %v8699_v1, %v8698_v14  ;;  %v18763_v0 = vld [vmem:[#allocation20_spill] sm:$0xff] }
 0x58a   :  { %11653 = vrcp.f32 %v3323_v58  ;;  %v10920_v9 = vpack.c.bf16 %v3579_v46, %v3578_v18  ;;  %v18759_v58 = vld [vmem:[#allocation107_spill] sm:$0xff]  ;;  %v8700_v18 = vld [vmem:[%s17683_s0 + $0x30] sm:$0xff]  ;;  %v8701_v46 = vld [vmem:[%s17683_s0 + $0x38] sm:$0xff] }
 0x58b   :  { %v11644_v27 = vpop.eup %11643 }
 0x58c   :  { %v3321_v30 = vpop.xlane.xlu1 %3320  ;;  %v11646_v62 = vpop.eup %11645  ;;  %10921 = vmatpush3.bf16.xpose.msra.mxu1 %v10920_v9  ;;  %v3564_v11 = vmul.f32 %v11644_v27, %v14620_v16  ;;  %v445_v9 = vcombine.high %v18763_v0, %v18763_v0  ;;  %v18764_v27 = vld [vmem:[#allocation2_spill] sm:$0xff] }
 0x58d   :  { %11655 = vrcp.f32 %v3321_v30  ;;  %10922 = vmatprep.subr.bf16.mxu1 %v18636_v47  ;;  %v3581_v19 = vmul.f32 %v11646_v62, %v14531_v10  ;;  %v3331_v43 = vpop.xlane.xlu0 %3330 }
 0x58e   :  { %11657 = vrcp.f32 %v3295_v55  ;;  %v10899_v54 = vpack.c.bf16 %v3565_v26, %v3564_v11  ;;  %v18762_v55 = vld [vmem:[#allocation103_spill] sm:$0xff] }
 0x58f   :  { %v11648_v57 = vpop.eup %11647 }
 0x590   :  { %v3293_v13 = vpop.xlane.xlu1 %3292  ;;  %v3580_v20 = vmul.f32 %v11648_v57, %v14646_v56  ;;  %v11650_v40 = vpop.eup %11649  ;;  %10900 = vmatpush3.bf16.xpose.msra.mxu0 %v10899_v54 }
 0x591   :  { %11659 = vrcp.f32 %v3293_v13  ;;  %10901 = vmatprep.subr.bf16.mxu0 %v18636_v47  ;;  %v3567_v24 = vmul.f32 %v11650_v40, %v14545_v52 }
 0x592   :  { %v10923_v60 = vpack.c.bf16 %v3581_v19, %v3580_v20  ;;  %11661 = vrcp.f32 %v3327_v48  ;;  %v10946_v48 = vpack.c.bf16 %v8701_v46, %v8700_v18  ;;  %v18814_v46 = vld [vmem:[#allocation13_spill] sm:$0xff] }
 0x593   :  { %v11652_v29 = vpop.eup %11651 }
 0x594   :  { %v3325_v7 = vpop.xlane.xlu1 %3324  ;;  %v3566_v16 = vmul.f32 %v11652_v29, %v14659_v32  ;;  %v11654_v50 = vpop.eup %11653  ;;  %10924 = vmatpush3.bf16.xpose.msra.mxu1 %v10923_v60 }
 0x595   :  { %11663 = vrcp.f32 %v3325_v7  ;;  %10925 = vmatprep.subr.bf16.mxu1 %v18636_v47  ;;  %v3583_v15 = vmul.f32 %v11654_v50, %v14566_v36 }
 0x596   :  { %v10902_v56 = vpack.c.bf16 %v3567_v24, %v3566_v16  ;;  %11665 = vrcp.f32 %v3299_v39 }
 0x597   :  { %v11656_v10 = vpop.eup %11655 }
 0x598   :  { %v3297_v44 = vpop.xlane.xlu1 %3296  ;;  %v3582_v3 = vmul.f32 %v11656_v10, %v14670_v6  ;;  %v11658_v4 = vpop.eup %11657  ;;  %10903 = vmatpush3.bf16.xpose.msra.mxu0 %v10902_v56  ;;  %v18757_v6 = vld [vmem:[#allocation105_spill] sm:$0xff] }
 0x599   :  { %11667 = vrcp.f32 %v3297_v44  ;;  %10904 = vmatprep.subr.bf16.mxu0 %v18636_v47  ;;  %v3569_v53 = vmul.f32 %v11658_v4, %v18756_v21 }
 0x59a   :  { %v10926_v32 = vpack.c.bf16 %v3583_v15, %v3582_v3  ;;  %11669 = vrcp.f32 %v3331_v43 }
 0x59b   :  { %v11660_v17 = vpop.eup %11659 }
 0x59c   :  { %v3329_v52 = vpop.xlane.xlu1 %3328  ;;  %v3568_v22 = vmul.f32 %v11660_v17, %v18755_v49  ;;  %v11662_v42 = vpop.eup %11661  ;;  %10927 = vmatpush3.bf16.xpose.msra.mxu1 %v10926_v32 }
 0x59d   :  { %11671 = vrcp.f32 %v3329_v52  ;;  %10928 = vmatprep.subr.bf16.mxu1 %v18636_v47  ;;  %v3585_v51 = vmul.f32 %v11662_v42, %v18758_v59  ;;  %v4305_v42 = vld [vmem:[%s17683_s0] sm:$0xff] }
 0x59e   :  { %v10905_v61 = vpack.c.bf16 %v3569_v53, %v3568_v22 }
 0x59f   :  { %v11664_v36 = vpop.eup %11663 }
 0x5a0   :  { %v3584_v12 = vmul.f32 %v11664_v36, %v18757_v6  ;;  %v11666_v37 = vpop.eup %11665  ;;  %10906 = vmatpush3.bf16.xpose.msra.mxu0 %v10905_v61  ;;  %v4306_v61 = vld [vmem:[%s17683_s0 + $0x8] sm:$0xff] }
 0x5a1   :  { %10907 = vmatprep.subr.bf16.mxu0 %v18636_v47  ;;  %v3571_v38 = vmul.f32 %v11666_v37, %v18760_v45  ;;  %v10950_v59 = vpack.c.bf16 %v4306_v61, %v4305_v42  ;;  %v4308_v37 = vld [vmem:[%s17683_s0 + $0x18] sm:$0xff] }
 0x5a2   :  { %v10929_v31 = vpack.c.bf16 %v3585_v51, %v3584_v12  ;;  %v4307_v51 = vld [vmem:[%s17683_s0 + $0x10] sm:$0xff]  ;;  %v18794_v45 = vld [vmem:[#allocation5_spill] sm:$0xff] }
 0x5a3   :  { %v11668_v23 = vpop.eup %11667 }
 0x5a4   :  { %v3570_v35 = vmul.f32 %v11668_v23, %v18759_v58  ;;  %v11670_v25 = vpop.eup %11669  ;;  %10930 = vmatpush3.bf16.xpose.msra.mxu1 %v10929_v31  ;;  %v10954_v31 = vpack.c.bf16 %v4308_v37, %v4307_v51  ;;  %v18788_v23 = vld [vmem:[#allocation3_spill] sm:$0xff]  ;;  %v18790_v58 = vld [vmem:[#allocation4_spill] sm:$0xff] }
 0x5a5   :  { %10931 = vmatprep.subr.bf16.mxu1 %v18636_v47  ;;  %v3587_v33 = vmul.f32 %v11670_v25, %v18762_v55  ;;  %v18807_v55 = vld [vmem:[#allocation10_spill] sm:$0xff] }
 0x5a6   :  { %v10908_v8 = vpack.c.bf16 %v3571_v38, %v3570_v35  ;;  %v18796_v38 = vld [vmem:[#allocation6_spill] sm:$0xff] }
 0x5a7   :  { %v11672_v2 = vpop.eup %11671 }
 0x5a8   :  { %v3586_v5 = vmul.f32 %v11672_v2, %v18761_v63  ;;  %10909 = vmatpush3.bf16.xpose.msra.mxu0 %v10908_v8  ;;  %v18799_v8 = vld [vmem:[#allocation7_spill] sm:$0xff]  ;;  %v18801_v2 = vld [vmem:[#allocation8_spill] sm:$0xff] }
 0x5aa   :  { %v10932_v41 = vpack.c.bf16 %v3587_v33, %v3586_v5  ;;  %v18805_v5 = vld [vmem:[#allocation9_spill] sm:$0xff] }
 0x5ac   :  { %10933 = vmatpush3.bf16.xpose.msra.mxu1 %v10932_v41  ;;  %v18810_v41 = vld [vmem:[#allocation11_spill] sm:$0xff] }
 0x5ad   :  { %10943 = vmatprep.subr.bf16.mxu1 %v10942_v34 }
 0x5af   :  { %10073 = vmatmul.mubr.f32.vlgmr.msra.gmra.mrb[86].mxu0 %v18763_v0  ;;  %v18816_v0 = vld [vmem:[#allocation14_spill] sm:$0xff] }
 0x5b0   :  { %10118 = vmatprep.mubr.msk.f32.mxu0 %vm18765_vm14, %v18764_v27  ;;  %vm18771_vm14 = vmmov %vm18769_vm10  ;;  %v18819_v27 = vld [vmem:[#allocation16_spill] sm:$0xff] }
 0x5b3   :  { %10108 = vmatmul.mubr.f32.vlgmr.msra.gmra.mrb[86].mxu1 %v445_v9  ;;  %v18818_v9 = vld [vmem:[#allocation15_spill] sm:$0xff] }
 0x5b4   :  { %10945 = vmatpush3.bf16.msra.mxu1 %v10942_v34  ;;  %v18812_v34 = vld [vmem:[#allocation12_spill] sm:$0xff] }
 0x5b5   :  { %10947 = vmatprep.subr.bf16.mxu1 %v10946_v48 }
 0x5b8   :  { %10949 = vmatpush3.bf16.msra.mxu1 %v10946_v48  ;;  %v18821_v48 = vld [vmem:[#allocation17_spill] sm:$0xff] }
 0x5c1   :  { %v14938_v30 = vpop.trf.xlu1 }
 0x5c2   :  { %18766 = vst [vmem:[#allocation109_spill] sm:$0xff] %v14938_v30  ;;  %10150 = vmatprep.mubr.msk.f32.mxu1 %vm18767_vm13, %v14938_v30  ;;  %v3654_v62 = vpop.f32.mrb[80].mxu0  ;;  %vm18777_vm13 = vmmov %vm18773_vm9 }
 0x5c3   :  { %v9864_v11 = vpop.f32.mrb[81].mxu0 }
 0x5c5   :  { %v14942_v26 = vpop.trf.xlu1 }
 0x5c6   :  { %18768 = vst [vmem:[#allocation110_spill] sm:$0xff] %v14942_v26  ;;  %v3724_v57 = vpop.f32.mrb[80].mxu1  ;;  %10151 = vmatmul.mubr.msk.f32.vlgmr.msra.gmra.mrb[88].mxu1 %vm18769_vm10, %v14942_v26  ;;  %vm18775_vm10 = vmmov %vm18773_vm9 }
 0x5c7   :  { %v4156_v54 = vcombine.low %v3654_v62, %v3724_v57  ;;  %v9899_v13 = vpop.f32.mrb[81].mxu1 }
 0x5c9   :  { %v14946_v20 = vpop.trf.xlu1 }
 0x5ca   :  { %18770 = vst [vmem:[#allocation112_spill] sm:$0xff] %v14946_v20  ;;  %10153 = vmatprep.mubr.msk.f32.mxu1 %vm18771_vm14, %v14946_v20  ;;  %vm18780_vm14 = vmmov %vm18773_vm9 }
 0x5cd   :  { %v14950_v19 = vpop.trf.xlu1 }
 0x5ce   :  { %18772 = vst [vmem:[#allocation113_spill] sm:$0xff] %v14950_v19  ;;  %10154 = vmatmul.mubr.msk.f32.gmra.mrb[90].mxu1 %vm18773_vm9, %v14950_v19 }
 0x5d1   :  { %v14954_v24 = vpop.trf.xlu1 }
 0x5d2   :  { %18774 = vst [vmem:[#allocation115_spill] sm:$0xff] %v14954_v24  ;;  %10156 = vmatprep.mubr.msk.f32.mxu1 %vm18775_vm10, %v14954_v24  ;;  %vm18784_vm10 = vmmov %vm18782_vm0 }
 0x5d5   :  { %v14958_v50 = vpop.trf.xlu1 }
 0x5d6   :  { %18776 = vst [vmem:[#allocation116_spill] sm:$0xff] %v14958_v50  ;;  %10157 = vmatmul.mubr.msk.f32.gmra.mrb[92].mxu1 %vm18777_vm13, %v14958_v50  ;;  %vm18786_vm13 = vmmov %vm18782_vm0 }
 0x5d9   :  { %v14962_v56 = vpop.trf.xlu1 }
 0x5da   :  { %18778 = vst [vmem:[#allocation119_spill] sm:$0xff] %v14962_v56  ;;  %10159 = vmatprep.mubr.msk.f32.mxu1 %vm18773_vm9, %v14962_v56  ;;  %vm18789_vm9 = vmmov %vm18782_vm0 }
 0x5dd   :  { %v14966_v10 = vpop.trf.xlu1 }
 0x5de   :  { %18779 = vst [vmem:[#allocation120_spill] sm:$0xff] %v14966_v10  ;;  %10160 = vmatmul.mubr.msk.f32.gmra.mrb[94].mxu1 %vm18780_vm14, %v14966_v10  ;;  %vm18791_vm14 = vmmov %vm18782_vm0 }
 0x5e1   :  { %v14970_v43 = vpop.trf.xlu1 }
 0x5e2   :  { %18781 = vst [vmem:[#allocation122_spill] sm:$0xff] %v14970_v43  ;;  %10162 = vmatprep.mubr.msk.f32.mxu1 %vm18782_vm0, %v14970_v43 }
 0x5e5   :  { %v14974_v44 = vpop.trf.xlu1 }
 0x5e6   :  { %18783 = vst [vmem:[#allocation123_spill] sm:$0xff] %v14974_v44  ;;  %10163 = vmatmul.mubr.msk.f32.gmra.mrb[96].mxu1 %vm18784_vm10, %v14974_v44  ;;  %vm18793_vm10 = vmmov %vm18782_vm0 }
 0x5e9   :  { %v14978_v52 = vpop.trf.xlu1 }
 0x5ea   :  { %18785 = vst [vmem:[#allocation124_spill] sm:$0xff] %v14978_v52  ;;  %10165 = vmatprep.mubr.msk.f32.mxu1 %vm18786_vm13, %v14978_v52  ;;  %vm18795_vm13 = vmmov %vm18782_vm0 }
 0x5ed   :  { %v14982_v21 = vpop.trf.xlu1 }
 0x5ee   :  { %18787 = vst [vmem:[#allocation127_spill] sm:$0xff] %v14982_v21  ;;  %10166 = vmatmul.mubr.msk.f32.gmra.mrb[98].mxu1 %vm18782_vm0, %v14982_v21 }
 0x5f1   :  { %v15002_v35 = vpop.trf.xlu1 }
 0x5f2   :  { %18792 = vst [vmem:[#allocation129_spill] sm:$0xff] %v15002_v35  ;;  %10168 = vmatprep.mubr.msk.f32.mxu1 %vm18793_vm10, %v15002_v35  ;;  %vm18804_vm10 = vmmov %vm18782_vm0 }
 0x5f5   :  { %v15010_v25 = vpop.trf.xlu1 }
 0x5f6   :  { %18797 = vst [vmem:[#allocation130_spill] sm:$0xff] %v15010_v25 }
 0x5f9   :  { %v15018_v14 = vpop.trf.xlu1 }
 0x5fa   :  { %18803 = vst [vmem:[#allocation133_spill] sm:$0xff] %v15018_v14 }
 0x5fd   :  { %v15026_v33 = vpop.trf.xlu1 }
 0x5fe   :  { %18808 = vst [vmem:[#allocation134_spill] sm:$0xff] %v15026_v33 }
 0x602   :  { %v3794_v40 = vpop.f32.mrb[82].mxu0 }
 0x603   :  { %v9934_v39 = vpop.f32.mrb[83].mxu0 }
 0x606   :  { %v3864_v60 = vpop.f32.mrb[82].mxu1 }
 0x607   :  { %v4157_v29 = vcombine.low %v3794_v40, %v3864_v60  ;;  %v9969_v7 = vpop.f32.mrb[83].mxu1 }
 0x609   :  { %v10934_v16 = vpack.c.bf16 %v4157_v29, %v4156_v54 }
 0x60b   :  { %10935 = vmatprep.subr.bf16.mxu0 %v10934_v16 }
 0x60c   :  { %10937 = vmatpush3.bf16.msra.mxu0 %v10934_v16 }
 0x642   :  { %v3934_v3 = vpop.f32.mrb[84].mxu0 }
 0x643   :  { %v10004_v15 = vpop.f32.mrb[85].mxu0 }
 0x646   :  { %v4004_v4 = vpop.f32.mrb[84].mxu1 }
 0x647   :  { %v4158_v32 = vcombine.low %v3934_v3, %v4004_v4  ;;  %v10039_v17 = vpop.f32.mrb[85].mxu1 }
 0x682   :  { %v4074_v49 = vpop.f32.mrb[86].mxu0 }
 0x683   :  { %v10074_v22 = vpop.f32.mrb[87].mxu0 }
 0x686   :  { %v4144_v53 = vpop.f32.mrb[86].mxu1 }
 0x687   :  { %v4159_v36 = vcombine.low %v4074_v49, %v4144_v53  ;;  %v10109_v6 = vpop.f32.mrb[87].mxu1 }
 0x689   :  { %v10938_v12 = vpack.c.bf16 %v4159_v36, %v4158_v32 }
 0x68b   :  { %10939 = vmatprep.subr.bf16.mxu0 %v10938_v12 }
 0x68c   :  { %10941 = vmatpush3.bf16.msra.mxu0 %v10938_v12 }
 0x68d   :  { %10951 = vmatprep.subr.bf16.mxu0 %v10950_v59 }
 0x68f   :  { %10119 = vmatmul.mubr.msk.f32.vlgmr.msra.gmra.mrb[88].mxu0 %vm18789_vm9, %v18788_v23  ;;  %vm18798_vm9 = vmmov %vm18782_vm0 }
 0x690   :  { %10121 = vmatprep.mubr.msk.f32.mxu0 %vm18791_vm14, %v18790_v58  ;;  %10953 = vmatpush3.bf16.msra.mxu0 %v10950_v59  ;;  %vm18800_vm14 = vmmov %vm18782_vm0 }
 0x691   :  { %10955 = vmatprep.subr.bf16.mxu0 %v10954_v31  ;;  %10169 = vmatmul.mubr.msk.f32.gmra.mrb[100].mxu1 %vm18798_vm9, %v15010_v25  ;;  %vm18809_vm9 = vmmov %vm18782_vm0 }
 0x692   :  { %10171 = vmatprep.mubr.msk.f32.mxu1 %vm18804_vm10, %v15018_v14  ;;  %vm18815_vm10 = vmmov %vm18782_vm0 }
 0x693   :  { %10122 = vmatmul.mubr.msk.f32.gmra.mrb[90].mxu0 %vm18795_vm13, %v18794_v45  ;;  %vm18806_vm13 = vmmov %vm18782_vm0 }
 0x694   :  { %10124 = vmatprep.mubr.msk.f32.mxu0 %vm18782_vm0, %v18796_v38  ;;  %10957 = vmatpush3.bf16.msra.mxu0 %v10954_v31 }
 0x695   :  { %10172 = vmatmul.mubr.msk.f32.gmra.mrb[102].mxu1 %vm18809_vm9, %v15026_v33  ;;  %vm18822_vm9 = vmmov %vm18782_vm0 }
 0x697   :  { %10125 = vmatmul.mubr.msk.f32.gmra.mrb[92].mxu0 %vm18800_vm14, %v18799_v8  ;;  %vm18813_vm14 = vmmov %vm18782_vm0 }
 0x698   :  { %10127 = vmatprep.mubr.msk.f32.mxu0 %vm18802_vm2, %v18801_v2  ;;  %vm18811_vm2 = vmmov %vm18782_vm0 }
 0x699   :  { %v10152_v1 = vpop.f32.mrb[88].mxu1 }
 0x69a   :  { %v4460_v63 = vpop.f32.mrb[89].mxu1  ;;  %5150 = vxpose.xlu1.b32.start.end [1/1] (short) %v10152_v1, 128  ;;  %v4669_v11 = vcombine.high %v10152_v1, %v10152_v1 }
 0x69b   :  { %10128 = vmatmul.mubr.msk.f32.gmra.mrb[94].mxu0 %vm18806_vm13, %v18805_v5  ;;  %4696 = vxpose.xlu0.b32.start.end [1/1] (short) %v4460_v63, 128  ;;  %vm18817_vm13 = vmmov %vm18782_vm0  ;;  %v4668_v29 = vcombine.high %v4460_v63, %v4460_v63 }
 0x69c   :  { %10130 = vmatprep.mubr.msk.f32.mxu0 %vm18782_vm0, %v18807_v55 }
 0x69f   :  { %10131 = vmatmul.mubr.msk.f32.gmra.mrb[96].mxu0 %vm18811_vm2, %v18810_v41  ;;  %vm18823_vm2 = vmmov %vm18782_vm0 }
 0x6a0   :  { %10133 = vmatprep.mubr.msk.f32.mxu0 %vm18813_vm14, %v18812_v34  ;;  %vm18824_vm14 = vmmov %vm18782_vm0 }
 0x6a1   :  { %v15034_v18 = vpop.f32.mrb[90].mxu1 }
 0x6a2   :  { %v15060_v62 = vpop.f32.mrb[91].mxu1  ;;  %v4671_v5 = vcombine.high %v15034_v18, %v15034_v18 }
 0x6a3   :  { %10134 = vmatmul.mubr.msk.f32.gmra.mrb[98].mxu0 %vm18815_vm10, %v18814_v46  ;;  %vm18825_vm10 = vmmov %vm18782_vm0 }
 0x6a4   :  { %10136 = vmatprep.mubr.msk.f32.mxu0 %vm18817_vm13, %v18816_v0  ;;  %vm18826_vm13 = vmmov %vm18782_vm0 }
 0x6a7   :  { %10137 = vmatmul.mubr.msk.f32.gmra.mrb[100].mxu0 %vm18782_vm0, %v18818_v9 }
 0x6a8   :  { %10139 = vmatprep.mubr.msk.f32.mxu0 %vm18820_vm12, %v18819_v27  ;;  %vm18827_vm12 = vmmov %vm18782_vm0 }
 0x6a9   :  { %v15081_v57 = vpop.f32.mrb[92].mxu1 }
 0x6aa   :  { %18837 = vst [vmem:[#allocation136_spill] sm:$0xff] %v15081_v57  ;;  %v15083_v54 = vpop.f32.mrb[93].mxu1 }
 0x6ab   :  { %10140 = vmatmul.mubr.msk.f32.gmra.mrb[102].mxu0 %vm18822_vm9, %v18821_v48  ;;  %vm18828_vm9 = vmmov %vm18782_vm0  ;;  %18838 = vst [vmem:[#allocation137_spill] sm:$0xff] %v15083_v54 }
 0x6ac   :  { %10182 = vmatprep.mubr.msk.f32.mxu0 %vm18823_vm2, %v14938_v30  ;;  %vm18829_vm2 = vmmov %vm18782_vm0 }
 0x6af   :  { %10183 = vmatmul.mubr.msk.f32.vlgmr.msra.gmra.mrb[104].mxu0 %vm18824_vm14, %v14942_v26  ;;  %vm18830_vm14 = vmmov %vm18782_vm0 }
 0x6b0   :  { %10185 = vmatprep.mubr.msk.f32.mxu0 %vm18825_vm10, %v14946_v20  ;;  %vm18831_vm10 = vmmov %vm18782_vm0 }
 0x6b1   :  { %v15085_v13 = vpop.f32.mrb[94].mxu1 }
 0x6b2   :  { %18839 = vst [vmem:[#allocation140_spill] sm:$0xff] %v15085_v13  ;;  %v15087_v40 = vpop.f32.mrb[95].mxu1 }
 0x6b3   :  { %10186 = vmatmul.mubr.msk.f32.gmra.mrb[106].mxu0 %vm18826_vm13, %v14950_v19  ;;  %vm18832_vm13 = vmmov %vm18782_vm0  ;;  %18840 = vst [vmem:[#allocation141_spill] sm:$0xff] %v15087_v40 }
 0x6b4   :  { %10188 = vmatprep.mubr.msk.f32.mxu0 %vm18782_vm0, %v14954_v24 }
 0x6b7   :  { %10189 = vmatmul.mubr.msk.f32.gmra.mrb[108].mxu0 %vm18827_vm12, %v14958_v50  ;;  %vm18833_vm12 = vmmov %vm18782_vm0 }
 0x6b8   :  { %10191 = vmatprep.mubr.msk.f32.mxu0 %vm18828_vm9, %v14962_v56  ;;  %vm18834_vm9 = vmmov %vm18782_vm0 }
 0x6b9   :  { %v10164_v39 = vpop.f32.mrb[96].mxu1 }
 0x6ba   :  { %v4500_v60 = vpop.f32.mrb[97].mxu1 }
 0x6bb   :  { %10192 = vmatmul.mubr.msk.f32.gmra.mrb[110].mxu0 %vm18829_vm2, %v14966_v10  ;;  %vm18835_vm2 = vmmov %vm18782_vm0 }
 0x6bc   :  { %10194 = vmatprep.mubr.msk.f32.mxu0 %vm18830_vm14, %v14970_v43  ;;  %vm18836_vm14 = vmmov %vm18782_vm0 }
 0x6bf   :  { %10195 = vmatmul.mubr.msk.f32.gmra.mrb[112].mxu0 %vm18831_vm10, %v14974_v44  ;;  %vm18841_vm10 = vcmask 31744  }
 0x6c0   :  { %10197 = vmatprep.mubr.msk.f32.mxu0 %vm18832_vm13, %v14978_v52  ;;  %vm18849_vm13 = vcmask 1043456  }
 0x6c1   :  { %v10167_v9 = vpop.f32.mrb[98].mxu1 }
 0x6c2   :  { %v4508_v27 = vpop.f32.mrb[99].mxu1 }
 0x6c3   :  { %10198 = vmatmul.mubr.msk.f32.gmra.mrb[114].mxu0 %vm18782_vm0, %v14982_v21  ;;  %vm18850_vm0 = vmmov %vm18849_vm13 }
 0x6c4   :  { %10200 = vmatprep.mubr.msk.f32.mxu0 %vm18833_vm12, %v15002_v35  ;;  %vm18851_vm12 = vmmov %vm18841_vm10 }
 0x6c7   :  { %10201 = vmatmul.mubr.msk.f32.gmra.mrb[116].mxu0 %vm18834_vm9, %v15010_v25  ;;  %vm18852_vm9 = vmmov %vm18850_vm0 }
 0x6c8   :  { %10203 = vmatprep.mubr.msk.f32.mxu0 %vm18835_vm2, %v15018_v14  ;;  %vm18854_vm2 = vmmov %vm18850_vm0 }
 0x6cb   :  { %10204 = vmatmul.mubr.msk.f32.gmra.mrb[118].mxu0 %vm18836_vm14, %v15026_v33  ;;  %vm18855_vm14 = vmmov %vm18841_vm10 }
 0x6d7   :  { %6058 = vxpose.xlu1.b32.start.end [1/1] (short) %v15034_v18, 128 }
 0x6d8   :  { %5377 = vxpose.xlu0.b32.start.end [1/1] (short) %v4669_v11, 128 }
 0x714   :  { %5604 = vxpose.xlu1.b32.start.end [1/1] (short) %v15060_v62, 128 }
 0x715   :  { %4923 = vxpose.xlu0.b32.start.end [1/1] (short) %v4668_v29, 128 }
 0x71a   :  { %v15090_v7 = vpop.trf.xlu1 }
 0x71b   :  { %v4712_v16 = vpop.trf.xlu0 }
 0x71c   :  { %10208 = vmatprep.mubr.msk.f32.mxu1 %vm18841_vm10, %v4712_v16  ;;  %vm18856_vm10 = vmmov %vm18850_vm0 }
 0x71e   :  { %v15093_v3 = vpop.trf.xlu1 }
 0x71f   :  { %v15095_v15 = vpop.trf.xlu0 }
 0x722   :  { %v15097_v4 = vpop.trf.xlu1 }
 0x723   :  { %v15099_v32 = vpop.trf.xlu0 }
 0x726   :  { %v15101_v17 = vpop.trf.xlu1 }
 0x727   :  { %v15103_v49 = vpop.trf.xlu0 }
 0x72a   :  { %v15105_v22 = vpop.trf.xlu1 }
 0x72b   :  { %v15107_v53 = vpop.trf.xlu0 }
 0x72e   :  { %v15109_v42 = vpop.trf.xlu1 }
 0x72f   :  { %v15111_v61 = vpop.trf.xlu0 }
 0x732   :  { %v15113_v36 = vpop.trf.xlu1 }
 0x733   :  { %v15115_v6 = vpop.trf.xlu0 }
 0x736   :  { %v15117_v12 = vpop.trf.xlu1 }
 0x737   :  { %v15119_v59 = vpop.trf.xlu0 }
 0x73a   :  { %v15121_v51 = vpop.trf.xlu1 }
 0x73b   :  { %v15123_v37 = vpop.trf.xlu0 }
 0x73e   :  { %v15125_v31 = vpop.trf.xlu1 }
 0x73f   :  { %v15127_v23 = vpop.trf.xlu0 }
 0x742   :  { %v15129_v58 = vpop.trf.xlu1 }
 0x743   :  { %v15131_v45 = vpop.trf.xlu0 }
 0x746   :  { %v15133_v38 = vpop.trf.xlu1 }
 0x747   :  { %v15135_v8 = vpop.trf.xlu0 }
 0x74a   :  { %v15137_v2 = vpop.trf.xlu1 }
 0x74b   :  { %v15139_v1 = vpop.trf.xlu0 }
 0x74e   :  { %v15141_v63 = vpop.trf.xlu1 }
 0x74f   :  { %v15145_v55 = vpop.trf.xlu0 }
 0x752   :  { %v15147_v41 = vpop.trf.xlu1 }
 0x753   :  { %v15149_v34 = vpop.trf.xlu0  ;;  %6285 = vxpose.xlu0.b32.start.end [1/1] (short) %v4671_v5, 128 }
 0x756   :  { %v15151_v46 = vpop.trf.xlu1 }
 0x757   :  { %v15153_v0 = vpop.trf.xlu0 }
 0x75a   :  { %v15155_v48 = vpop.trf.xlu1 }
 0x75b   :  { %v15157_v11 = vpop.trf.xlu0 }
 0x75e   :  { %v15159_v39 = vpop.trf.xlu1 }
 0x75f   :  { %v15161_v18 = vpop.trf.xlu0 }
 0x762   :  { %v10120_v60 = vpop.f32.mrb[88].mxu0  ;;  %v15163_v29 = vpop.trf.xlu1 }
 0x763   :  { %v4230_v16 = vpop.f32.mrb[89].mxu0  ;;  %v15165_v33 = vpop.trf.xlu0 }
 0x764   :  { %v10170_v27 = vpop.f32.mrb[100].mxu1 }
 0x765   :  { %v4516_v35 = vpop.f32.mrb[101].mxu1 }
 0x766   :  { %v10123_v5 = vpop.f32.mrb[90].mxu0  ;;  %v15167_v14 = vpop.trf.xlu1 }
 0x767   :  { %v4238_v25 = vpop.f32.mrb[91].mxu0  ;;  %v15169_v9 = vpop.trf.xlu0 }
 0x768   :  { %v10173_v5 = vpop.f32.mrb[102].mxu1 }
 0x769   :  { %v4524_v50 = vpop.f32.mrb[103].mxu1 }
 0x76a   :  { %v10126_v21 = vpop.f32.mrb[92].mxu0  ;;  %v15171_v52 = vpop.trf.xlu1 }
 0x76b   :  { %v4246_v44 = vpop.f32.mrb[93].mxu0  ;;  %v15173_v43 = vpop.trf.xlu0 }
 0x76e   :  { %v10129_v60 = vpop.f32.mrb[94].mxu0  ;;  %v15175_v10 = vpop.trf.xlu1 }
 0x76f   :  { %v4254_v16 = vpop.f32.mrb[95].mxu0  ;;  %v15177_v56 = vpop.trf.xlu0 }
 0x772   :  { %v10132_v24 = vpop.f32.mrb[96].mxu0  ;;  %v15179_v25 = vpop.trf.xlu1 }
 0x773   :  { %18842 = vst [vmem:[#allocation144_spill] sm:$0xff] %v15179_v25  ;;  %v4262_v19 = vpop.f32.mrb[97].mxu0  ;;  %v15181_v27 = vpop.trf.xlu0 }
 0x776   :  { %v10135_v21 = vpop.f32.mrb[98].mxu0  ;;  %v15183_v35 = vpop.trf.xlu1 }
 0x777   :  { %18843 = vst [vmem:[#allocation145_spill] sm:$0xff] %v15183_v35  ;;  %v4270_v44 = vpop.f32.mrb[99].mxu0  ;;  %v15185_v20 = vpop.trf.xlu0 }
 0x77a   :  { %v10138_v60 = vpop.f32.mrb[100].mxu0  ;;  %v15187_v26 = vpop.trf.xlu1 }
 0x77b   :  { %18844 = vst [vmem:[#allocation171_spill] sm:$0xff] %v15187_v26  ;;  %4298 = vst [vmem:[%s17684_s2 + $0x8] sm:$0xff] %v10138_v60  ;;  %v4278_v50 = vpop.f32.mrb[101].mxu0  ;;  %v15192_v24 = vpop.trf.xlu0 }
 0x77c   :  { %4297 = vst [vmem:[%s17684_s2] sm:$0xff] %v4278_v50 }
 0x77e   :  { %v10141_v19 = vpop.f32.mrb[102].mxu0  ;;  %v15197_v16 = vpop.trf.xlu1 }
 0x77f   :  { %18845 = vst [vmem:[#allocation148_spill] sm:$0xff] %v15197_v16  ;;  %4300 = vst [vmem:[%s17684_s2 + $0x18] sm:$0xff] %v10141_v19  ;;  %v4288_v5 = vpop.f32.mrb[103].mxu0  ;;  %v15202_v21 = vpop.trf.xlu0 }
 0x780   :  { %4299 = vst [vmem:[%s17684_s2 + $0x10] sm:$0xff] %v4288_v5 }
 0x782   :  { %v10184_v44 = vpop.f32.mrb[104].mxu0  ;;  %v15207_v60 = vpop.trf.xlu1 }
 0x783   :  { %18846 = vst [vmem:[#allocation29_spill] sm:$0xff] %v15207_v60  ;;  %v4597_v30 = vpop.f32.mrb[105].mxu0  ;;  %v15209_v13 = vpop.trf.xlu0 }
 0x784   :  { %v4670_v30 = vcombine.high %v15060_v62, %v15060_v62 }
 0x786   :  { %v10187_v50 = vpop.f32.mrb[106].mxu0  ;;  %v15211_v40 = vpop.trf.xlu1 }
 0x787   :  { %18847 = vst [vmem:[#allocation173_spill] sm:$0xff] %v15211_v40  ;;  %v4605_v57 = vpop.f32.mrb[107].mxu0  ;;  %v15213_v54 = vpop.trf.xlu0 }
 0x78a   :  { %v10190_v19 = vpop.f32.mrb[108].mxu0  ;;  %v15215_v28 = vpop.trf.xlu1 }
 0x78b   :  { %v4613_v16 = vpop.f32.mrb[109].mxu0  ;;  %v15217_v26 = vpop.trf.xlu0 }
 0x78e   :  { %v10193_v35 = vpop.f32.mrb[110].mxu0  ;;  %v15219_v5 = vpop.trf.xlu1 }
 0x78f   :  { %v4621_v44 = vpop.f32.mrb[111].mxu0  ;;  %v15221_v60 = vpop.trf.xlu0 }
 0x792   :  { %v10196_v50 = vpop.f32.mrb[112].mxu0  ;;  %v15225_v40 = vpop.trf.xlu1 }
 0x793   :  { %18848 = vst [vmem:[#allocation150_spill] sm:$0xff] %v15225_v40  ;;  %v4629_v57 = vpop.f32.mrb[113].mxu0  ;;  %v15227_v25 = vpop.trf.xlu0  ;;  %5831 = vxpose.xlu0.b32.start.end [1/1] (short) %v4670_v30, 128  ;;  %v4693_v16 = vcombine.high %v10196_v50, %v10196_v50 }
 0x794   :  { %v4692_v19 = vcombine.high %v4629_v57, %v4629_v57  ;;  %10206 = vmatprep.subr.msk.mxu1 %vm18849_vm13, %v4629_v57  ;;  %vm18857_vm13 = vmmov %vm18850_vm0 }
 0x795   :  { %10207 = vmatpush3.msk.msra.mxu1 %vm18850_vm0, %v4629_v57 }
 0x796   :  { %10209 = vmatmul.mubr.msk.f32.vlgmr.msra.gmra.mrb[104].mxu1 %vm18851_vm12, %v15095_v15  ;;  %10232 = vmatprep.subr.msk.mxu0 %vm18852_vm9, %v4692_v19  ;;  %v15234_v35 = vpop.trf.xlu1  ;;  %v15236_v62 = vpop.f32.mrb[114].mxu0  ;;  %vm18858_vm12 = vmmov %vm18850_vm0 }
 0x797   :  { %18853 = vst [vmem:[#allocation152_spill] sm:$0xff] %v15234_v35  ;;  %10258 = vmatprep.subr.msk.mxu1 %vm18854_vm2, %v10196_v50  ;;  %10211 = vmatprep.mubr.msk.f32.mxu1 %vm18855_vm14, %v15099_v32  ;;  %v15241_v44 = vpop.trf.xlu0  ;;  %v4639_v30 = vpop.f32.mrb[115].mxu0  ;;  %vm18859_vm9 = vmmov %vm18855_vm14 }
 0x798   :  { %10233 = vmatpush3.msk.msra.mxu0 %vm18856_vm10, %v4692_v19  ;;  %10259 = vmatpush3.msk.msra.mxu1 %vm18857_vm13, %v10196_v50  ;;  %vm18860_vm2 = vmmov %vm18859_vm9  ;;  %v15258_v19 = vcombine.high %v4639_v30, %v4639_v30 }
 0x799   :  { %10284 = vmatprep.subr.msk.mxu0 %vm18850_vm0, %v4693_v16  ;;  %10310 = vmatprep.subr.msk.mxu1 %vm18858_vm12, %v4639_v30  ;;  %vm18861_vm14 = vmmov %vm18860_vm2 }
 0x79a   :  { %10212 = vmatmul.mubr.msk.f32.gmra.mrb[106].mxu1 %vm18859_vm9, %v15103_v49  ;;  %v15249_v15 = vpop.trf.xlu1  ;;  %v10202_v57 = vpop.f32.mrb[116].mxu0  ;;  %vm18862_vm10 = vmmov %vm18860_vm2 }
 0x79b   :  { %10214 = vmatprep.mubr.msk.f32.mxu1 %vm18860_vm2, %v15107_v53  ;;  %v4939_v32 = vpop.trf.xlu0  ;;  %v4649_v35 = vpop.f32.mrb[117].mxu0  ;;  %vm18863_vm13 = vmmov %vm18860_vm2 }
 0x79c   :  { %10234 = vmatprep.mubr.msk.f32.mxu0 %vm18861_vm14, %v4939_v32  ;;  %vm18864_vm0 = vmmov %vm18860_vm2 }
 0x79d   :  { %vm18865_vm9 = vmmov %vm18864_vm0 }
 0x79e   :  { %10215 = vmatmul.mubr.msk.f32.gmra.mrb[108].mxu1 %vm18862_vm10, %v15111_v61  ;;  %v15256_v50 = vpop.trf.xlu1  ;;  %v10205_v40 = vpop.f32.mrb[118].mxu0  ;;  %vm18866_vm2 = vmmov %vm18858_vm12 }
 0x79f   :  { %10217 = vmatprep.mubr.msk.f32.mxu1 %vm18863_vm13, %v15115_v6  ;;  %v4940_v49 = vpop.trf.xlu0  ;;  %v4657_v57 = vpop.f32.mrb[119].mxu0  ;;  %vm18867_vm14 = vmmov %vm18864_vm0 }
 0x7a0   :  { %10235 = vmatmul.mubr.msk.f32.vlgmr.msra.gmra.mrb[120].mxu0 %vm18864_vm0, %v4940_v49  ;;  %vm18868_vm10 = vmmov %vm18864_vm0 }
 0x7a1   :  { %10285 = vmatpush3.msk.msra.mxu0 %vm18858_vm12, %v4693_v16  ;;  %vm18869_vm13 = vmmov %vm18864_vm0  ;;  %v18953_v16 = vld [vmem:[#allocation152_spill] sm:$0xff] }
 0x7a2   :  { %10218 = vmatmul.mubr.msk.f32.gmra.mrb[110].mxu1 %vm18865_vm9, %v15119_v59  ;;  %v15266_v53 = vpop.trf.xlu1  ;;  %10336 = vmatprep.subr.msk.mxu0 %vm18866_vm2, %v15258_v19  ;;  %vm18870_vm12 = vmmov %vm18864_vm0 }
 0x7a3   :  { %10220 = vmatprep.mubr.msk.f32.mxu1 %vm18867_vm14, %v15123_v37  ;;  %v4941_v40 = vpop.trf.xlu0  ;;  %vm18871_vm9 = vmmov %vm18864_vm0 }
 0x7a4   :  { %10237 = vmatprep.mubr.msk.f32.mxu0 %vm18868_vm10, %v4941_v40  ;;  %vm18872_vm2 = vmmov %vm18864_vm0 }
 0x7a5   :  { %vm18873_vm14 = vmmov %vm18864_vm0 }
 0x7a6   :  { %10221 = vmatmul.mubr.msk.f32.gmra.mrb[112].mxu1 %vm18869_vm13, %v15127_v23  ;;  %v15277_v6 = vpop.trf.xlu1  ;;  %vm18874_vm10 = vmmov %vm18864_vm0 }
 0x7a7   :  { %10223 = vmatprep.mubr.msk.f32.mxu1 %vm18864_vm0, %v15131_v45  ;;  %v4942_v61 = vpop.trf.xlu0  ;;  %vm18875_vm13 = vmmov %vm18864_vm0 }
 0x7a8   :  { %10238 = vmatmul.mubr.msk.f32.gmra.mrb[122].mxu0 %vm18870_vm12, %v4942_v61  ;;  %vm18876_vm12 = vmmov %vm18864_vm0 }
 0x7a9   :  { %vm18886_vm11 = vmmov %vm18864_vm0 }
 0x7aa   :  { %10224 = vmatmul.mubr.msk.f32.gmra.mrb[114].mxu1 %vm18871_vm9, %v15135_v8  ;;  %v5624_v37 = vpop.trf.xlu1  ;;  %vm18877_vm9 = vmmov %vm18864_vm0 }
 0x7ab   :  { %10226 = vmatprep.mubr.msk.f32.mxu1 %vm18872_vm2, %v15139_v1  ;;  %v4943_v59 = vpop.trf.xlu0  ;;  %vm18878_vm2 = vmmov %vm18864_vm0 }
 0x7ac   :  { %10240 = vmatprep.mubr.msk.f32.mxu0 %vm18873_vm14, %v4943_v59  ;;  %vm18879_vm14 = vmmov %vm18864_vm0 }
 0x7ae   :  { %10227 = vmatmul.mubr.msk.f32.gmra.mrb[116].mxu1 %vm18874_vm10, %v15145_v55  ;;  %v5625_v8 = vpop.trf.xlu1  ;;  %vm18880_vm10 = vmmov %vm18864_vm0 }
 0x7af   :  { %10229 = vmatprep.mubr.msk.f32.mxu1 %vm18875_vm13, %v15149_v34  ;;  %v4944_v23 = vpop.trf.xlu0  ;;  %vm18881_vm13 = vcmask 1043456  }
 0x7b0   :  { %10241 = vmatmul.mubr.msk.f32.gmra.mrb[124].mxu0 %vm18864_vm0, %v4944_v23 }
 0x7b2   :  { %10230 = vmatmul.mubr.msk.f32.gmra.mrb[118].mxu1 %vm18876_vm12, %v15153_v0  ;;  %vm18882_vm12 = vmmov %vm18881_vm13  ;;  %v5626_v55 = vpop.trf.xlu1 }
 0x7b3   :  { %v4945_v45 = vpop.trf.xlu0  ;;  %10260 = vmatprep.mubr.msk.f32.mxu1 %vm18877_vm9, %v15090_v7  ;;  %vm18883_vm9 = vmmov %vm18864_vm0 }
 0x7b4   :  { %10243 = vmatprep.mubr.msk.f32.mxu0 %vm18878_vm2, %v4945_v45  ;;  %vm18884_vm2 = vmmov %vm18864_vm0 }
 0x7b6   :  { %10261 = vmatmul.mubr.msk.f32.vlgmr.msra.gmra.mrb[120].mxu1 %vm18879_vm14, %v15093_v3  ;;  %vm18885_vm14 = vmmov %vm18864_vm0 }
 0x7b7   :  { %v4946_v1 = vpop.trf.xlu0  ;;  %10263 = vmatprep.mubr.msk.f32.mxu1 %vm18880_vm10, %v15097_v4  ;;  %10311 = vmatpush3.msk.msra.mxu1 %vm18881_vm13, %v4639_v30  ;;  %vm18887_vm10 = vmmov %vm18864_vm0  ;;  %v5627_v4 = vpop.trf.xlu1 }
 0x7b8   :  { %10244 = vmatmul.mubr.msk.f32.gmra.mrb[126].mxu0 %vm18864_vm0, %v4946_v1  ;;  %10362 = vmatprep.subr.msk.mxu1 %vm18882_vm12, %v15236_v62  ;;  %vm18888_vm13 = vmmov %vm18864_vm0 }
 0x7b9   :  { %vm18889_vm12 = vmmov %vm18864_vm0 }
 0x7ba   :  { %10264 = vmatmul.mubr.msk.f32.gmra.mrb[122].mxu1 %vm18883_vm9, %v15101_v17  ;;  %vm18890_vm9 = vmmov %vm18864_vm0 }
 0x7bb   :  { %v4947_v7 = vpop.trf.xlu0  ;;  %10266 = vmatprep.mubr.msk.f32.mxu1 %vm18884_vm2, %v15105_v22  ;;  %v5628_v22 = vpop.trf.xlu1  ;;  %vm18891_vm2 = vmmov %vm18864_vm0 }
 0x7bc   :  { %10246 = vmatprep.mubr.msk.f32.mxu0 %vm18885_vm14, %v4947_v7  ;;  %vm18893_vm14 = vmmov %vm18864_vm0 }
 0x7be   :  { %10267 = vmatmul.mubr.msk.f32.gmra.mrb[124].mxu1 %vm18886_vm11, %v15109_v42  ;;  %vm18892_vm11 = vmmov %vm18864_vm0 }
 0x7bf   :  { %v4948_v3 = vpop.trf.xlu0  ;;  %10269 = vmatprep.mubr.msk.f32.mxu1 %vm18887_vm10, %v15113_v36  ;;  %vm18894_vm10 = vmmov %vm18864_vm0 }
 0x7c0   :  { %10247 = vmatmul.mubr.msk.f32.gmra.mrb[128].mxu0 %vm18888_vm13, %v4948_v3  ;;  %vm18895_vm13 = vmmov %vm18864_vm0 }
 0x7c2   :  { %10270 = vmatmul.mubr.msk.f32.gmra.mrb[126].mxu1 %vm18864_vm0, %v15117_v12  ;;  %v5629_v12 = vpop.trf.xlu1 }
 0x7c3   :  { %v4949_v17 = vpop.trf.xlu0  ;;  %10272 = vmatprep.mubr.msk.f32.mxu1 %vm18889_vm12, %v15121_v51  ;;  %vm18896_vm12 = vmmov %vm18864_vm0 }
 0x7c4   :  { %10249 = vmatprep.mubr.msk.f32.mxu0 %vm18890_vm9, %v4949_v17  ;;  %vm18897_vm9 = vmmov %vm18864_vm0 }
 0x7c6   :  { %10273 = vmatmul.mubr.msk.f32.gmra.mrb[128].mxu1 %vm18891_vm2, %v15125_v31  ;;  %vm18898_vm2 = vmmov %vm18864_vm0  ;;  %v5630_v31 = vpop.trf.xlu1 }
 0x7c7   :  { %v4950_v42 = vpop.trf.xlu0  ;;  %10275 = vmatprep.mubr.msk.f32.mxu1 %vm18892_vm11, %v15129_v58  ;;  %vm18899_vm11 = vmmov %vm18864_vm0 }
 0x7c8   :  { %10250 = vmatmul.mubr.msk.f32.gmra.mrb[130].mxu0 %vm18893_vm14, %v4950_v42  ;;  %vm18900_vm14 = vmmov %vm18864_vm0 }
 0x7ca   :  { %10276 = vmatmul.mubr.msk.f32.gmra.mrb[130].mxu1 %vm18894_vm10, %v15133_v38  ;;  %vm18901_vm10 = vmmov %vm18864_vm0 }
 0x7cb   :  { %v4951_v36 = vpop.trf.xlu0  ;;  %10278 = vmatprep.mubr.msk.f32.mxu1 %vm18895_vm13, %v15137_v2  ;;  %vm18902_vm13 = vmmov %vm18864_vm0  ;;  %v5631_v2 = vpop.trf.xlu1 }
 0x7cc   :  { %10252 = vmatprep.mubr.msk.f32.mxu0 %vm18864_vm0, %v4951_v36 }
 0x7ce   :  { %10279 = vmatmul.mubr.msk.f32.gmra.mrb[132].mxu1 %vm18896_vm12, %v15141_v63  ;;  %vm18903_vm12 = vcmask 1043456   ;;  %v15350_v63 = vcombine.high %v15236_v62, %v15236_v62 }
 0x7cf   :  { %v4952_v51 = vpop.trf.xlu0  ;;  %10281 = vmatprep.mubr.msk.f32.mxu1 %vm18897_vm9, %v15147_v41  ;;  %vm18904_vm9 = vmmov %vm18864_vm0  ;;  %v5632_v34 = vpop.trf.xlu1 }
 0x7d0   :  { %10253 = vmatmul.mubr.msk.f32.gmra.mrb[132].mxu0 %vm18898_vm2, %v4952_v51  ;;  %vm18905_vm2 = vmmov %vm18864_vm0 }
 0x7d2   :  { %10282 = vmatmul.mubr.msk.f32.gmra.mrb[134].mxu1 %vm18899_vm11, %v15151_v46  ;;  %vm18906_vm11 = vmmov %vm18864_vm0 }
 0x7d3   :  { %v4953_v58 = vpop.trf.xlu0  ;;  %10312 = vmatprep.mubr.msk.f32.mxu1 %vm18900_vm14, %v15249_v15  ;;  %vm18907_vm14 = vmmov %vm18864_vm0  ;;  %v5633_v0 = vpop.trf.xlu1 }
 0x7d4   :  { %10255 = vmatprep.mubr.msk.f32.mxu0 %vm18901_vm10, %v4953_v58  ;;  %vm18908_vm10 = vmmov %vm18864_vm0 }
 0x7d6   :  { %10313 = vmatmul.mubr.msk.f32.vlgmr.msra.gmra.mrb[136].mxu1 %vm18902_vm13, %v15256_v50  ;;  %vm18909_vm13 = vmmov %vm18864_vm0 }
 0x7d7   :  { %v4954_v38 = vpop.trf.xlu0  ;;  %10315 = vmatprep.mubr.msk.f32.mxu1 %vm18864_vm0, %v15266_v53  ;;  %10363 = vmatpush3.msk.msra.mxu1 %vm18903_vm12, %v15236_v62  ;;  %vm18910_vm0 = vmmov %vm18903_vm12  ;;  %v18955_v62 = vmov 0.0  }
 0x7d8   :  { %10256 = vmatmul.mubr.msk.f32.gmra.mrb[134].mxu0 %vm18904_vm9, %v4954_v38  ;;  %10958 = vmatprep.subr.bf16.mxu1 %v18636_v47  ;;  %vm18911_vm12 = vmmov %vm18905_vm2 }
 0x7d9   :  { %10286 = vmatprep.mubr.msk.f32.mxu0 %vm18905_vm2, %v15157_v11  ;;  %vm18912_vm9 = vmmov %vm18910_vm0 }
 0x7da   :  { %10316 = vmatmul.mubr.msk.f32.gmra.mrb[138].mxu1 %vm18906_vm11, %v15277_v6  ;;  %vm18913_vm11 = vmmov %vm18905_vm2 }
 0x7db   :  { %v15354_v41 = vpop.trf.xlu0  ;;  %10318 = vmatprep.mubr.msk.f32.mxu1 %vm18907_vm14, %v5624_v37  ;;  %vm18914_vm14 = vmmov %vm18905_vm2 }
 0x7dc   :  { %10287 = vmatmul.mubr.msk.f32.vlgmr.msra.gmra.mrb[136].mxu0 %vm18908_vm10, %v15161_v18  ;;  %vm18915_vm10 = vmmov %vm18905_vm2 }
 0x7dd   :  { %10289 = vmatprep.mubr.msk.f32.mxu0 %vm18909_vm13, %v15165_v33  ;;  %10337 = vmatpush3.msk.msra.mxu0 %vm18910_vm0, %v15258_v19  ;;  %vm18916_vm13 = vmmov %vm18905_vm2 }
 0x7de   :  { %10319 = vmatmul.mubr.msk.f32.gmra.mrb[140].mxu1 %vm18911_vm12, %v5625_v8  ;;  %10388 = vmatprep.subr.msk.mxu0 %vm18912_vm9, %v15350_v63  ;;  %vm18917_vm0 = vmmov %vm18905_vm2 }
 0x7df   :  { %v15366_v46 = vpop.trf.xlu0  ;;  %10321 = vmatprep.mubr.msk.f32.mxu1 %vm18905_vm2, %v5626_v55  ;;  %vm18918_vm12 = vmmov %vm18917_vm0 }
 0x7e0   :  { %10290 = vmatmul.mubr.msk.f32.gmra.mrb[138].mxu0 %vm18913_vm11, %v15169_v9  ;;  %vm18919_vm9 = vmmov %vm18917_vm0 }
 0x7e1   :  { %10292 = vmatprep.mubr.msk.f32.mxu0 %vm18914_vm14, %v15173_v43  ;;  %vm18920_vm2 = vmmov %vm18917_vm0  ;;  %v5634_v43 = vpop.trf.xlu1 }
 0x7e2   :  { %10322 = vmatmul.mubr.msk.f32.gmra.mrb[142].mxu1 %vm18915_vm10, %v5627_v4  ;;  %vm18921_vm11 = vmmov %vm18917_vm0 }
 0x7e3   :  { %v15374_v33 = vpop.trf.xlu0  ;;  %10324 = vmatprep.mubr.msk.f32.mxu1 %vm18916_vm13, %v5628_v22  ;;  %vm18922_vm14 = vmmov %vm18917_vm0 }
 0x7e4   :  { %10293 = vmatmul.mubr.msk.f32.gmra.mrb[140].mxu0 %vm18917_vm0, %v15177_v56  ;;  %vm18923_vm10 = vmmov %vm18917_vm0 }
 0x7e5   :  { %10295 = vmatprep.mubr.msk.f32.mxu0 %vm18918_vm12, %v15181_v27  ;;  %vm18924_vm13 = vmmov %vm18917_vm0  ;;  %v18946_v27 = vld [vmem:[#allocation29_spill] sm:$0xff] }
 0x7e6   :  { %10325 = vmatmul.mubr.msk.f32.gmra.mrb[144].mxu1 %vm18919_vm9, %v5629_v12  ;;  %vm18925_vm12 = vmmov %vm18917_vm0 }
 0x7e7   :  { %v15382_v11 = vpop.trf.xlu0  ;;  %10327 = vmatprep.mubr.msk.f32.mxu1 %vm18920_vm2, %v5630_v31  ;;  %vm18926_vm9 = vmmov %vm18917_vm0 }
 0x7e8   :  { %10296 = vmatmul.mubr.msk.f32.gmra.mrb[142].mxu0 %vm18921_vm11, %v15185_v20  ;;  %vm18927_vm2 = vmmov %vm18917_vm0  ;;  %v5635_v20 = vpop.trf.xlu1 }
 0x7e9   :  { %10298 = vmatprep.mubr.msk.f32.mxu0 %vm18922_vm14, %v15192_v24  ;;  %vm18928_vm11 = vmmov %vm18917_vm0 }
 0x7ea   :  { %10328 = vmatmul.mubr.msk.f32.gmra.mrb[146].mxu1 %vm18923_vm10, %v5631_v2  ;;  %vm18929_vm14 = vmmov %vm18917_vm0 }
 0x7eb   :  { %v15390_v18 = vpop.trf.xlu0  ;;  %10330 = vmatprep.mubr.msk.f32.mxu1 %vm18924_vm13, %v5632_v34  ;;  %vm18930_vm10 = vmmov %vm18917_vm0 }
 0x7ec   :  { %10299 = vmatmul.mubr.msk.f32.gmra.mrb[144].mxu0 %vm18917_vm0, %v15202_v21  ;;  %vm18931_vm13 = vmmov %vm18917_vm0 }
 0x7ed   :  { %10301 = vmatprep.mubr.msk.f32.mxu0 %vm18925_vm12, %v15209_v13  ;;  %vm18932_vm12 = vmmov %vm18917_vm0 }
 0x7ee   :  { %10331 = vmatmul.mubr.msk.f32.gmra.mrb[148].mxu1 %vm18926_vm9, %v5633_v0  ;;  %vm18933_vm9 = vmmov %vm18917_vm0 }
 0x7ef   :  { %v15398_v56 = vpop.trf.xlu0  ;;  %10333 = vmatprep.mubr.msk.f32.mxu1 %vm18927_vm2, %v5634_v43  ;;  %vm18934_vm2 = vmmov %vm18917_vm0 }
 0x7f0   :  { %10302 = vmatmul.mubr.msk.f32.gmra.mrb[146].mxu0 %vm18928_vm11, %v15213_v54  ;;  %vm18935_vm11 = vmmov %vm18917_vm0 }
 0x7f1   :  { %10304 = vmatprep.mubr.msk.f32.mxu0 %vm18929_vm14, %v15217_v26  ;;  %vm18936_vm14 = vmmov %vm18917_vm0 }
 0x7f2   :  { %10334 = vmatmul.mubr.msk.f32.gmra.mrb[150].mxu1 %vm18930_vm10, %v5635_v20  ;;  %vm18937_vm10 = vmmov %vm18917_vm0 }
 0x7f3   :  { %v15406_v9 = vpop.trf.xlu0  ;;  %10364 = vmatprep.mubr.msk.f32.mxu1 %vm18931_vm13, %v15155_v48  ;;  %vm18938_vm13 = vmmov %vm18917_vm0  ;;  %v18939_v48 = vld [vmem:[#allocation144_spill] sm:$0xff] }
 0x7f4   :  { %10305 = vmatmul.mubr.msk.f32.gmra.mrb[148].mxu0 %vm18917_vm0, %v15221_v60  ;;  %v18952_v60 = vld [vmem:[#allocation150_spill] sm:$0xff] }
 0x7f5   :  { %10307 = vmatprep.mubr.msk.f32.mxu0 %vm18932_vm12, %v15227_v25  ;;  %vm18941_vm12 = vmmov %vm18917_vm0  ;;  %v18942_v25 = vld [vmem:[#allocation171_spill] sm:$0xff] }
 0x7f6   :  { %10365 = vmatmul.mubr.msk.f32.vlgmr.msra.gmra.mrb[152].mxu1 %vm18933_vm9, %v15159_v39  ;;  %v18940_v39 = vld [vmem:[#allocation145_spill] sm:$0xff]  ;;  %vm18943_vm9 = vmmov %vm18917_vm0 }
 0x7f7   :  { %v15416_v54 = vpop.trf.xlu0  ;;  %10367 = vmatprep.mubr.msk.f32.mxu1 %vm18934_vm2, %v15163_v29  ;;  %vm18945_vm2 = vmmov %vm18917_vm0 }
 0x7f8   :  { %10308 = vmatmul.mubr.msk.f32.gmra.mrb[150].mxu0 %vm18935_vm11, %v15241_v44  ;;  %vm18947_vm11 = vmmov %vm18917_vm0 }
 0x7fa   :  { %10368 = vmatmul.mubr.msk.f32.gmra.mrb[154].mxu1 %vm18936_vm14, %v15167_v14  ;;  %v18944_v14 = vld [vmem:[#allocation148_spill] sm:$0xff]  ;;  %vm18949_vm14 = vmmov %vm18917_vm0 }
 0x7fb   :  { %v15424_v26 = vpop.trf.xlu0  ;;  %10370 = vmatprep.mubr.msk.f32.mxu1 %vm18937_vm10, %v15171_v52  ;;  %vm18950_vm10 = vmmov %vm18917_vm0 }
 0x7fe   :  { %10371 = vmatmul.mubr.msk.f32.gmra.mrb[156].mxu1 %vm18938_vm13, %v15175_v10  ;;  %v18948_v10 = vld [vmem:[#allocation173_spill] sm:$0xff]  ;;  %vm18951_vm13 = vmmov %vm18917_vm0 }
 0x7ff   :  { %v15430_v13 = vpop.trf.xlu0  ;;  %10373 = vmatprep.mubr.msk.f32.mxu1 %vm18917_vm0, %v18939_v48 }
 0x802   :  { %10374 = vmatmul.mubr.msk.f32.gmra.mrb[158].mxu1 %vm18941_vm12, %v18940_v39  ;;  %vm18954_vm12 = vmmov %vm18917_vm0 }
 0x803   :  { %v15436_v29 = vpop.trf.xlu0  ;;  %10376 = vmatprep.mubr.msk.f32.mxu1 %vm18943_vm9, %v18942_v25  ;;  %vm18956_vm9 = vmmov 0  }
 0x806   :  { %10377 = vmatmul.mubr.msk.f32.gmra.mrb[160].mxu1 %vm18945_vm2, %v18944_v14  ;;  %vm18957_vm2 = vmmov %vm18917_vm0 }
 0x807   :  { %v15442_v52 = vpop.trf.xlu0  ;;  %10379 = vmatprep.mubr.msk.f32.mxu1 %vm18947_vm11, %v18946_v27  ;;  %vm18958_vm11 = vmmov %vm18917_vm0 }
 0x80a   :  { %10380 = vmatmul.mubr.msk.f32.gmra.mrb[162].mxu1 %vm18949_vm14, %v18948_v10  ;;  %vm18959_vm14 = vcmask 1043456  }
 0x80b   :  { %v15448_v24 = vpop.trf.xlu0  ;;  %10382 = vmatprep.mubr.msk.f32.mxu1 %vm18950_vm10, %v15215_v28  ;;  %vm18960_vm10 = vmmov %vm18917_vm0 }
 0x80e   :  { %10383 = vmatmul.mubr.msk.f32.gmra.mrb[164].mxu1 %vm18951_vm13, %v15219_v5  ;;  %vm18961_vm13 = vmmov %vm18917_vm0 }
 0x80f   :  { %v15454_v21 = vpop.trf.xlu0  ;;  %10385 = vmatprep.mubr.msk.f32.mxu1 %vm18917_vm0, %v18952_v60 }
 0x812   :  { %10386 = vmatmul.mubr.msk.f32.gmra.mrb[166].mxu1 %vm18954_vm12, %v18953_v16  ;;  %vm18962_vm12 = vmmov %vm18917_vm0 }
 0x813   :  { %v15460_v35 = vpop.trf.xlu0  ;;  %10446 = vmatprep.mubr.msk.f32.mxu1 %vm18956_vm9, %v18955_v62 }
 0x817   :  { %v15464_v44 = vpop.trf.xlu0 }
 0x81b   :  { %v5847_v30 = vpop.trf.xlu0 }
 0x81c   :  { %10338 = vmatprep.mubr.msk.f32.mxu0 %vm18957_vm2, %v5847_v30  ;;  %vm18963_vm2 = vmmov %vm18917_vm0 }
 0x81f   :  { %v5848_v28 = vpop.trf.xlu0 }
 0x820   :  { %10339 = vmatmul.mubr.msk.f32.vlgmr.msra.gmra.mrb[152].mxu0 %vm18958_vm11, %v5848_v28  ;;  %vm18964_vm11 = vmmov %vm18917_vm0 }
 0x821   :  { %10389 = vmatpush3.msk.msra.mxu0 %vm18959_vm14, %v15350_v63  ;;  %vm18965_vm14 = vmmov %vm18917_vm0 }
 0x822   :  { %10982 = vmatprep.subr.bf16.mxu0 %v18636_v47  ;;  %v19024_v47 = vld [vmem:[#allocation33_spill] sm:$0xff] }
 0x823   :  { %v5849_v5 = vpop.trf.xlu0 }
 0x824   :  { %10341 = vmatprep.mubr.msk.f32.mxu0 %vm18960_vm10, %v5849_v5  ;;  %vm18966_vm10 = vmmov %vm18917_vm0 }
 0x827   :  { %v5850_v15 = vpop.trf.xlu0 }
 0x828   :  { %10342 = vmatmul.mubr.msk.f32.gmra.mrb[154].mxu0 %vm18961_vm13, %v5850_v15  ;;  %vm18967_vm13 = vmmov %vm18917_vm0 }
 0x82b   :  { %v5851_v32 = vpop.trf.xlu0 }
 0x82c   :  { %10344 = vmatprep.mubr.msk.f32.mxu0 %vm18917_vm0, %v5851_v32 }
 0x82f   :  { %v5852_v50 = vpop.trf.xlu0 }
 0x830   :  { %10345 = vmatmul.mubr.msk.f32.gmra.mrb[156].mxu0 %vm18962_vm12, %v5852_v50  ;;  %vm18968_vm12 = vmmov %vm18917_vm0 }
 0x833   :  { %v5853_v19 = vpop.trf.xlu0 }
 0x834   :  { %10347 = vmatprep.mubr.msk.f32.mxu0 %vm18963_vm2, %v5853_v19  ;;  %vm18969_vm2 = vmmov %vm18917_vm0 }
 0x837   :  { %v5854_v49 = vpop.trf.xlu0 }
 0x838   :  { %10348 = vmatmul.mubr.msk.f32.gmra.mrb[158].mxu0 %vm18964_vm11, %v5854_v49  ;;  %vm18970_vm11 = vmmov %vm18917_vm0 }
 0x83b   :  { %v5855_v57 = vpop.trf.xlu0 }
 0x83c   :  { %10350 = vmatprep.mubr.msk.f32.mxu0 %vm18965_vm14, %v5855_v57  ;;  %vm18971_vm14 = vmmov %vm18917_vm0 }
 0x83f   :  { %v5856_v53 = vpop.trf.xlu0 }
 0x840   :  { %10351 = vmatmul.mubr.msk.f32.gmra.mrb[160].mxu0 %vm18966_vm10, %v5856_v53  ;;  %vm18972_vm10 = vmmov %vm18917_vm0 }
 0x843   :  { %v5857_v40 = vpop.trf.xlu0 }
 0x844   :  { %10353 = vmatprep.mubr.msk.f32.mxu0 %vm18967_vm13, %v5857_v40  ;;  %vm18973_vm13 = vmmov %vm18917_vm0 }
 0x847   :  { %v5858_v61 = vpop.trf.xlu0 }
 0x848   :  { %10354 = vmatmul.mubr.msk.f32.gmra.mrb[162].mxu0 %vm18917_vm0, %v5858_v61 }
 0x84b   :  { %v5859_v6 = vpop.trf.xlu0 }
 0x84c   :  { %10356 = vmatprep.mubr.msk.f32.mxu0 %vm18968_vm12, %v5859_v6  ;;  %vm18974_vm12 = vmmov %vm18917_vm0 }
 0x84f   :  { %v5860_v59 = vpop.trf.xlu0 }
 0x850   :  { %10357 = vmatmul.mubr.msk.f32.gmra.mrb[164].mxu0 %vm18969_vm2, %v5860_v59  ;;  %vm18975_vm2 = vmmov %vm18917_vm0  ;;  %v19008_v59 = vld [vmem:[#allocation38_spill] sm:$0xff] }
 0x853   :  { %v5861_v37 = vpop.trf.xlu0 }
 0x854   :  { %10359 = vmatprep.mubr.msk.f32.mxu0 %vm18970_vm11, %v5861_v37  ;;  %vm18976_vm11 = vmmov %vm18917_vm0 }
 0x857   :  { %v5862_v23 = vpop.trf.xlu0 }
 0x858   :  { %10360 = vmatmul.mubr.msk.f32.gmra.mrb[166].mxu0 %vm18971_vm14, %v5862_v23  ;;  %vm18977_vm14 = vmmov %vm18917_vm0 }
 0x859   :  { %10390 = vmatprep.mubr.msk.f32.mxu0 %vm18972_vm10, %v15354_v41  ;;  %vm18978_vm10 = vmmov %vm18917_vm0 }
 0x85c   :  { %10391 = vmatmul.mubr.msk.f32.vlgmr.msra.gmra.mrb[168].mxu0 %vm18973_vm13, %v15366_v46  ;;  %vm18979_vm13 = vmmov %vm18917_vm0 }
 0x85d   :  { %10393 = vmatprep.mubr.msk.f32.mxu0 %vm18917_vm0, %v15374_v33 }
 0x860   :  { %10394 = vmatmul.mubr.msk.f32.gmra.mrb[170].mxu0 %vm18974_vm12, %v15382_v11  ;;  %vm18984_vm12 = vmmov %vm18917_vm0 }
 0x861   :  { %10396 = vmatprep.mubr.msk.f32.mxu0 %vm18975_vm2, %v15390_v18  ;;  %vm18985_vm2 = vmmov %vm18917_vm0 }
 0x864   :  { %10397 = vmatmul.mubr.msk.f32.gmra.mrb[172].mxu0 %vm18976_vm11, %v15398_v56  ;;  %vm18986_vm11 = vmmov %vm18917_vm0 }
 0x865   :  { %10399 = vmatprep.mubr.msk.f32.mxu0 %vm18977_vm14, %v15406_v9  ;;  %vm18988_vm14 = vmmov %vm18917_vm0 }
 0x868   :  { %10400 = vmatmul.mubr.msk.f32.gmra.mrb[174].mxu0 %vm18978_vm10, %v15416_v54  ;;  %vm18989_vm10 = vmmov %vm18917_vm0 }
 0x869   :  { %v10210_v45 = vpop.f32.mrb[104].mxu1  ;;  %10402 = vmatprep.mubr.msk.f32.mxu0 %vm18979_vm13, %v15424_v26  ;;  %vm18991_vm13 = vmmov %vm18917_vm0 }
 0x86a   :  { %v15505_v1 = vsel %vm12639_vm3, %v10210_v45, -1e+30  ;;  %v4844_v55 = vpop.f32.mrb[105].mxu1 }
 0x86b   :  { %18981 = vst [vmem:[#allocation36_spill] sm:$0xff] %v15505_v1  ;;  %v15509_v3 = vsel %vm12643_vm4, %v4844_v55, -1e+30  ;;  %6642 = vmax.xlane.f32.xlu0 %v15505_v1 }
 0x86c   :  { %18983 = vst [vmem:[#allocation175_spill] sm:$0xff] %v15509_v3  ;;  %6640 = vmax.xlane.f32.xlu1 %v15509_v3  ;;  %10403 = vmatmul.mubr.msk.f32.gmra.mrb[176].mxu0 %vm18917_vm0, %v15430_v13  ;;  %vm19009_vm0 = vnez %v19008_v59 }
 0x86d   :  { %v10213_v4 = vpop.f32.mrb[106].mxu1  ;;  %10405 = vmatprep.mubr.msk.f32.mxu0 %vm18984_vm12, %v15436_v29 }
 0x86e   :  { %v4854_v17 = vpop.f32.mrb[107].mxu1  ;;  %v15545_v46 = vsel %vm12793_vm5, %v10213_v4, -1e+30 }
 0x86f   :  { %18993 = vst [vmem:[#allocation32_spill] sm:$0xff] %v15545_v46  ;;  %v15552_v18 = vsel %vm12810_vm6, %v4854_v17, -1e+30  ;;  %v19012_v17 = vld [vmem:[#allocation40_spill] sm:$0xff] }
 0x870   :  { %10406 = vmatmul.mubr.msk.f32.gmra.mrb[178].mxu0 %vm18985_vm2, %v15442_v52  ;;  %18995 = vst [vmem:[#allocation25_spill] sm:$0xff] %v15552_v18  ;;  %vm19013_vm12 = vnez %v19012_v17 }
 0x871   :  { %v10216_v22 = vpop.f32.mrb[108].mxu1  ;;  %10408 = vmatprep.mubr.msk.f32.mxu0 %vm18986_vm11, %v15448_v24 }
 0x872   :  { %v4864_v42 = vpop.f32.mrb[109].mxu1  ;;  %v15575_v27 = vsel %vm12845_vm7, %v10216_v22, -1e+30 }
 0x873   :  { %v10236_v36 = vpop.f32.mrb[120].mxu0  ;;  %18999 = vst [vmem:[#allocation178_spill] sm:$0xff] %v15575_v27  ;;  %v15584_v16 = vsel %vm12862_vm8, %v4864_v42, -1e+30  ;;  %v19015_v42 = vld [vmem:[#allocation59_spill] sm:$0xff] }
 0x874   :  { %v15523_v12 = vsel %vm12639_vm3, %v10236_v36, -1e+30  ;;  %10409 = vmatmul.mubr.msk.f32.gmra.mrb[180].mxu0 %vm18988_vm14, %v15454_v21  ;;  %v5071_v51 = vpop.f32.mrb[121].mxu0  ;;  %19001 = vst [vmem:[#allocation157_spill] sm:$0xff] %v15584_v16  ;;  %vm19016_vm2 = vnez %v19015_v42  ;;  %vm19025_vm14 = vnez %v19024_v47 }
 0x875   :  { %18987 = vst [vmem:[#allocation154_spill] sm:$0xff] %v15523_v12  ;;  %v10219_v31 = vpop.f32.mrb[110].mxu1  ;;  %10411 = vmatprep.mubr.msk.f32.mxu0 %vm18989_vm10, %v15460_v35  ;;  %6674 = vmax.xlane.f32.xlu1 %v15523_v12  ;;  %v15532_v38 = vsel %vm12643_vm4, %v5071_v51, -1e+30 }
 0x876   :  { %v4874_v58 = vpop.f32.mrb[111].mxu1  ;;  %18990 = vst [vmem:[#allocation155_spill] sm:$0xff] %v15532_v38  ;;  %v15621_v37 = vsel %vm19009_vm0, %v10219_v31, -1e+30 }
 0x877   :  { %19010 = vst [vmem:[#allocation160_spill] sm:$0xff] %v15621_v37  ;;  %v15635_v22 = vsel %vm19013_vm12, %v4874_v58, -1e+30 }
 0x878   :  { %10412 = vmatmul.mubr.msk.f32.gmra.mrb[182].mxu0 %vm18991_vm13, %v15464_v44  ;;  %19014 = vst [vmem:[#allocation114_spill] sm:$0xff] %v15635_v22 }
 0x879   :  { %v15536_v2 = vpop.f32.mrb[112].mxu1  ;;  %6672 = vmax.xlane.f32.xlu1 %v15532_v38  ;;  %10481 = vmatprep.mubr.msk.f32.mxu0 %vm18956_vm9, %v18955_v62 }
 0x87a   :  { %v15541_v63 = vpop.f32.mrb[113].mxu1 }
 0x87b   :  { %v10239_v41 = vpop.f32.mrb[122].mxu0 }
 0x87c   :  { %v5081_v33 = vpop.f32.mrb[123].mxu0  ;;  %v15559_v9 = vsel %vm12793_vm5, %v10239_v41, -1e+30 }
 0x87d   :  { %v15547_v0 = vpop.f32.mrb[114].mxu1  ;;  %6646 = vmax.xlane.f32.xlu1 %v15545_v46  ;;  %18996 = vst [vmem:[#allocation156_spill] sm:$0xff] %v15559_v9  ;;  %v15566_v39 = vsel %vm12810_vm6, %v5081_v33, -1e+30 }
 0x87e   :  { %v4894_v11 = vpop.f32.mrb[115].mxu1  ;;  %18997 = vst [vmem:[#allocation39_spill] sm:$0xff] %v15566_v39 }
 0x87f   :  { %v15611_v53 = vsel %vm13021_vm1, %v4894_v11, -1e+30 }
 0x880   :  { %19007 = vst [vmem:[#allocation159_spill] sm:$0xff] %v15611_v53 }
 0x881   :  { %v15554_v56 = vpop.f32.mrb[116].mxu1  ;;  %6644 = vmax.xlane.f32.xlu1 %v15552_v18 }
 0x882   :  { %v4904_v20 = vpop.f32.mrb[117].mxu1 }
 0x883   :  { %v10242_v54 = vpop.f32.mrb[124].mxu0  ;;  %v15639_v36 = vsel %vm19016_vm2, %v4904_v20, -1e+30 }
 0x884   :  { %v5091_v26 = vpop.f32.mrb[125].mxu0  ;;  %v15591_v44 = vsel %vm12845_vm7, %v10242_v54, -1e+30  ;;  %19017 = vst [vmem:[#allocation161_spill] sm:$0xff] %v15639_v36 }
 0x885   :  { %v15561_v13 = vpop.f32.mrb[118].mxu1  ;;  %6678 = vmax.xlane.f32.xlu1 %v15559_v9  ;;  %19002 = vst [vmem:[#allocation158_spill] sm:$0xff] %v15591_v44  ;;  %v15607_v49 = vsel %vm12862_vm8, %v5091_v26, -1e+30 }
 0x886   :  { %v4914_v48 = vpop.f32.mrb[119].mxu1  ;;  %19005 = vst [vmem:[#allocation101_spill] sm:$0xff] %v15607_v49 }
 0x889   :  { %6676 = vmax.xlane.f32.xlu1 %v15566_v39  ;;  %v15569_v29 = vpop.f32.mrb[120].mxu1 }
 0x88a   :  { %v15571_v25 = vpop.f32.mrb[121].mxu1 }
 0x88b   :  { %v10245_v14 = vpop.f32.mrb[126].mxu0 }
 0x88c   :  { %v5101_v10 = vpop.f32.mrb[127].mxu0  ;;  %v15646_v31 = vsel %vm19009_vm0, %v10245_v14, -1e+30  ;;  %v19021_v14 = vld [vmem:[#allocation64_spill] sm:$0xff] }
 0x88d   :  { %6650 = vmax.xlane.f32.xlu1 %v15575_v27  ;;  %v15578_v24 = vpop.f32.mrb[122].mxu1  ;;  %19018 = vst [vmem:[#allocation42_spill] sm:$0xff] %v15646_v31  ;;  %v15663_v26 = vsel %vm19013_vm12, %v5101_v10, -1e+30  ;;  %vm19022_vm11 = vnez %v19021_v14 }
 0x88e   :  { %v15580_v21 = vpop.f32.mrb[123].mxu1  ;;  %19020 = vst [vmem:[#allocation162_spill] sm:$0xff] %v15663_v26 }
 0x891   :  { %6648 = vmax.xlane.f32.xlu1 %v15584_v16  ;;  %v15587_v35 = vpop.f32.mrb[124].mxu1 }
 0x892   :  { %v15593_v30 = vpop.f32.mrb[125].mxu1 }
 0x893   :  { %v10248_v28 = vpop.f32.mrb[128].mxu0 }
 0x894   :  { %v5111_v5 = vpop.f32.mrb[129].mxu0 }
 0x895   :  { %v15597_v32 = vsel %vm12992_vm15, %v5111_v5, -1e+30  ;;  %6682 = vmax.xlane.f32.xlu1 %v15591_v44  ;;  %v15600_v50 = vpop.f32.mrb[126].mxu1  ;;  %v15667_v5 = vsel %vm19022_vm11, %v4914_v48, -1e+30 }
 0x896   :  { %19004 = vst [vmem:[#allocation37_spill] sm:$0xff] %v15597_v32  ;;  %6688 = vmax.xlane.f32.xlu0 %v15597_v32  ;;  %v15603_v19 = vpop.f32.mrb[127].mxu1  ;;  %19023 = vst [vmem:[#allocation163_spill] sm:$0xff] %v15667_v5 }
 0x899   :  { %6680 = vmax.xlane.f32.xlu1 %v15607_v49  ;;  %v15614_v40 = vpop.f32.mrb[128].mxu1 }
 0x89a   :  { %6660 = vmax.xlane.f32.xlu0 %v15611_v53  ;;  %v15617_v61 = vpop.f32.mrb[129].mxu1 }
 0x89b   :  { %v10251_v6 = vpop.f32.mrb[130].mxu0 }
 0x89c   :  { %v5121_v23 = vpop.f32.mrb[131].mxu0 }
 0x89d   :  { %v15625_v45 = vsel %vm13021_vm1, %v5121_v23, -1e+30  ;;  %6654 = vmax.xlane.f32.xlu1 %v15621_v37  ;;  %v15628_v55 = vpop.f32.mrb[130].mxu1 }
 0x89e   :  { %19011 = vst [vmem:[#allocation43_spill] sm:$0xff] %v15625_v45  ;;  %6692 = vmax.xlane.f32.xlu0 %v15625_v45  ;;  %v15631_v4 = vpop.f32.mrb[131].mxu1 }
 0x8a1   :  { %6652 = vmax.xlane.f32.xlu1 %v15635_v22  ;;  %v15642_v51 = vpop.f32.mrb[132].mxu1 }
 0x8a2   :  { %6664 = vmax.xlane.f32.xlu0 %v15639_v36  ;;  %v15649_v41 = vpop.f32.mrb[133].mxu1 }
 0x8a3   :  { %v10254_v33 = vpop.f32.mrb[132].mxu0 }
 0x8a4   :  { %v5131_v11 = vpop.f32.mrb[133].mxu0 }
 0x8a5   :  { %v15653_v58 = vsel %vm19016_vm2, %v5131_v11, -1e+30  ;;  %6686 = vmax.xlane.f32.xlu1 %v15646_v31  ;;  %v15656_v20 = vpop.f32.mrb[134].mxu1  ;;  %v15678_v31 = vsel %vm19025_vm14, %v15536_v2, -1e+30 }
 0x8a6   :  { %19019 = vst [vmem:[#allocation106_spill] sm:$0xff] %v15653_v58  ;;  %6696 = vmax.xlane.f32.xlu0 %v15653_v58  ;;  %v15659_v54 = vpop.f32.mrb[135].mxu1  ;;  %19026 = vst [vmem:[#allocation131_spill] sm:$0xff] %v15678_v31  ;;  %v15695_v2 = vsel %vm12992_vm15, %v15541_v63, -1e+30 }
 0x8a7   :  { %19028 = vst [vmem:[#allocation24_spill] sm:$0xff] %v15695_v2 }
 0x8a9   :  { %6684 = vmax.xlane.f32.xlu1 %v15663_v26  ;;  %v15670_v23 = vpop.f32.mrb[136].mxu1 }
 0x8aa   :  { %6668 = vmax.xlane.f32.xlu0 %v15667_v5  ;;  %v15673_v11 = vpop.f32.mrb[137].mxu1 }
 0x8ab   :  { %v10257_v62 = vpop.f32.mrb[134].mxu0 }
 0x8ac   :  { %v5141_v10 = vpop.f32.mrb[135].mxu0 }
 0x8ad   :  { %v15682_v37 = vsel %vm19022_vm11, %v5141_v10, -1e+30  ;;  %6658 = vmax.xlane.f32.xlu1 %v15678_v31  ;;  %v15685_v48 = vpop.f32.mrb[138].mxu1  ;;  %v15700_v10 = vsel %vm12643_vm4, %v15571_v25, -1e+30 }
 0x8ae   :  { %19027 = vst [vmem:[#allocation118_spill] sm:$0xff] %v15682_v37  ;;  %6700 = vmax.xlane.f32.xlu0 %v15682_v37  ;;  %v15688_v5 = vpop.f32.mrb[139].mxu1  ;;  %19029 = vst [vmem:[#allocation164_spill] sm:$0xff] %v15700_v10  ;;  %v15707_v37 = vsel %vm19025_vm14, %v10248_v28, -1e+30 }
 0x8af   :  { %v15690_v58 = vpop.f32.mrb[136].mxu0  ;;  %19030 = vst [vmem:[#allocation132_spill] sm:$0xff] %v15707_v37 }
 0x8b0   :  { %v5525_v44 = vpop.f32.mrb[137].mxu0 }
 0x8b1   :  { %6656 = vmax.xlane.f32.xlu1 %v15695_v2  ;;  %v15703_v31 = vpop.f32.mrb[140].mxu1  ;;  %v15716_v45 = vsel %vm12643_vm4, %v5525_v44, -1e+30  ;;  %v15734_v44 = vsel %vm12810_vm6, %v15580_v21, -1e+30 }
 0x8b2   :  { %6704 = vmax.xlane.f32.xlu0 %v15700_v10  ;;  %v15710_v36 = vpop.f32.mrb[141].mxu1  ;;  %19031 = vst [vmem:[#allocation111_spill] sm:$0xff] %v15716_v45  ;;  %v19032_v10 = vld [vmem:[#allocation35_spill] sm:$0xff]  ;;  %19035 = vst [vmem:[#allocation135_spill] sm:$0xff] %v15734_v44 }
 0x8b3   :  { %v15712_v63 = vpop.f32.mrb[138].mxu0  ;;  %vm19033_vm10 = vnez %v19032_v10 }
 0x8b4   :  { %v5535_v27 = vpop.f32.mrb[139].mxu0  ;;  %v15729_v53 = vsel %vm19033_vm10, %v15547_v0, -1e+30 }
 0x8b5   :  { %6690 = vmax.xlane.f32.xlu1 %v15707_v37  ;;  %v15719_v25 = vpop.f32.mrb[142].mxu1  ;;  %19034 = vst [vmem:[#allocation165_spill] sm:$0xff] %v15729_v53  ;;  %v15750_v2 = vsel %vm12810_vm6, %v5535_v27, -1e+30  ;;  %v15768_v27 = vsel %vm12862_vm8, %v15593_v30, -1e+30 }
 0x8b6   :  { %6736 = vmax.xlane.f32.xlu0 %v15716_v45  ;;  %v15722_v9 = vpop.f32.mrb[143].mxu1  ;;  %v15741_v45 = vsel %vm19033_vm10, %v10251_v6, -1e+30  ;;  %19037 = vst [vmem:[#allocation166_spill] sm:$0xff] %v15750_v2  ;;  %19041 = vst [vmem:[#allocation138_spill] sm:$0xff] %v15768_v27 }
 0x8b7   :  { %v15724_v28 = vpop.f32.mrb[140].mxu0  ;;  %19036 = vst [vmem:[#allocation121_spill] sm:$0xff] %v15741_v45 }
 0x8b8   :  { %v5545_v46 = vpop.f32.mrb[141].mxu0 }
 0x8b9   :  { %6662 = vmax.xlane.f32.xlu1 %v15729_v53  ;;  %v15737_v37 = vpop.f32.mrb[144].mxu1  ;;  %v15784_v16 = vsel %vm12862_vm8, %v5545_v46, -1e+30  ;;  %v15802_v46 = vsel %vm19013_vm12, %v15603_v19, -1e+30 }
 0x8ba   :  { %6708 = vmax.xlane.f32.xlu0 %v15734_v44  ;;  %v15744_v32 = vpop.f32.mrb[145].mxu1  ;;  %v19038_v44 = vld [vmem:[#allocation41_spill] sm:$0xff]  ;;  %19043 = vst [vmem:[#allocation168_spill] sm:$0xff] %v15784_v16  ;;  %19048 = vst [vmem:[#allocation126_spill] sm:$0xff] %v15802_v46 }
 0x8bb   :  { %v15746_v0 = vpop.f32.mrb[142].mxu0  ;;  %vm19039_vm13 = vnez %v19038_v44 }
 0x8bc   :  { %v5555_v12 = vpop.f32.mrb[143].mxu0  ;;  %v15763_v1 = vsel %vm19039_vm13, %v15554_v56, -1e+30 }
 0x8bd   :  { %6694 = vmax.xlane.f32.xlu1 %v15741_v45  ;;  %v15753_v21 = vpop.f32.mrb[146].mxu1  ;;  %19040 = vst [vmem:[#allocation167_spill] sm:$0xff] %v15763_v1 }
 0x8be   :  { %6740 = vmax.xlane.f32.xlu0 %v15750_v2  ;;  %v15756_v53 = vpop.f32.mrb[147].mxu1  ;;  %v15775_v2 = vsel %vm19039_vm13, %v10254_v33, -1e+30 }
 0x8bf   :  { %v15758_v6 = vpop.f32.mrb[144].mxu0  ;;  %19042 = vst [vmem:[#allocation117_spill] sm:$0xff] %v15775_v2 }
 0x8c0   :  { %v5565_v26 = vpop.f32.mrb[145].mxu0 }
 0x8c1   :  { %6666 = vmax.xlane.f32.xlu1 %v15763_v1  ;;  %v15771_v45 = vpop.f32.mrb[148].mxu1 }
 0x8c2   :  { %6712 = vmax.xlane.f32.xlu0 %v15768_v27  ;;  %v15778_v22 = vpop.f32.mrb[149].mxu1  ;;  %v19045_v27 = vld [vmem:[#allocation45_spill] sm:$0xff] }
 0x8c3   :  { %v15780_v56 = vpop.f32.mrb[146].mxu0  ;;  %vm19046_vm9 = vnez %v19045_v27 }
 0x8c4   :  { %v5575_v49 = vpop.f32.mrb[147].mxu0  ;;  %v15797_v39 = vsel %vm19046_vm9, %v15561_v13, -1e+30 }
 0x8c5   :  { %6698 = vmax.xlane.f32.xlu1 %v15775_v2  ;;  %v15787_v30 = vpop.f32.mrb[150].mxu1  ;;  %19047 = vst [vmem:[#allocation139_spill] sm:$0xff] %v15797_v39 }
 0x8c6   :  { %19044 = vst [vmem:[#allocation169_spill] sm:$0xff] %v15787_v30  ;;  %6744 = vmax.xlane.f32.xlu0 %v15784_v16  ;;  %v15790_v1 = vpop.f32.mrb[151].mxu1  ;;  %v15809_v16 = vsel %vm19046_vm9, %v10257_v62, -1e+30  ;;  %v15818_v30 = vsel %vm19013_vm12, %v5555_v12, -1e+30 }
 0x8c7   :  { %v15792_v33 = vpop.f32.mrb[148].mxu0  ;;  %19049 = vst [vmem:[#allocation170_spill] sm:$0xff] %v15809_v16  ;;  %19050 = vst [vmem:[#allocation142_spill] sm:$0xff] %v15818_v30  ;;  %v15829_v62 = vsel %vm12639_vm3, %v15569_v29, -1e+30 }
 0x8c8   :  { %v5585_v18 = vpop.f32.mrb[149].mxu0  ;;  %19051 = vst [vmem:[#allocation125_spill] sm:$0xff] %v15829_v62  ;;  %v15849_v29 = vsel %vm12992_vm15, %v5565_v26, -1e+30 }
 0x8c9   :  { %6670 = vmax.xlane.f32.xlu1 %v15797_v39  ;;  %v15805_v2 = vpop.f32.mrb[152].mxu1  ;;  %19054 = vst [vmem:[#allocation128_spill] sm:$0xff] %v15849_v29 }
 0x8ca   :  { %6716 = vmax.xlane.f32.xlu0 %v15802_v46  ;;  %v15812_v38 = vpop.f32.mrb[153].mxu1  ;;  %v15834_v46 = vsel %vm12992_vm15, %v15617_v61, -1e+30 }
 0x8cb   :  { %v15814_v13 = vpop.f32.mrb[150].mxu0  ;;  %19052 = vst [vmem:[#allocation172_spill] sm:$0xff] %v15834_v46 }
 0x8cc   :  { %v5595_v3 = vpop.f32.mrb[151].mxu0 }
 0x8cd   :  { %6702 = vmax.xlane.f32.xlu1 %v15809_v16  ;;  %v15821_v19 = vpop.f32.mrb[154].mxu1 }
 0x8ce   :  { %6748 = vmax.xlane.f32.xlu0 %v15818_v30  ;;  %v15824_v39 = vpop.f32.mrb[155].mxu1  ;;  %v15845_v30 = vsel %vm12639_vm3, %v15690_v58, -1e+30  ;;  %v15865_v58 = vsel %vm13021_vm1, %v15631_v4, -1e+30 }
 0x8cf   :  { %19053 = vst [vmem:[#allocation143_spill] sm:$0xff] %v15845_v30  ;;  %19056 = vst [vmem:[#allocation174_spill] sm:$0xff] %v15865_v58  ;;  %v16202_v7 = vsel %vm12810_vm6, %v15824_v39, -1e+30  ;;  %v16224_v39 = vsel %vm19039_vm13, %v15771_v45, -1e+30 }
 0x8d0   :  { %19109 = vst [vmem:[#allocation88_spill] sm:$0xff] %v16202_v7  ;;  %19114 = vst [vmem:[#allocation97_spill] sm:$0xff] %v16224_v39 }
 0x8d1   :  { %6706 = vmax.xlane.f32.xlu1 %v15829_v62  ;;  %v15837_v12 = vpop.f32.mrb[156].mxu1 }
 0x8d2   :  { %6720 = vmax.xlane.f32.xlu0 %v15834_v46  ;;  %v15840_v16 = vpop.f32.mrb[157].mxu1  ;;  %v15860_v46 = vsel %vm12793_vm5, %v15578_v24, -1e+30  ;;  %v15880_v24 = vsel %vm13021_vm1, %v5575_v49, -1e+30 }
 0x8d3   :  { %19055 = vst [vmem:[#allocation82_spill] sm:$0xff] %v15860_v46  ;;  %19058 = vst [vmem:[#allocation44_spill] sm:$0xff] %v15880_v24  ;;  %v16236_v43 = vsel %vm12862_vm8, %v15840_v16, -1e+30  ;;  %v19121_v16 = vld [vmem:[#allocation169_spill] sm:$0xff] }
 0x8d4   :  { %19116 = vst [vmem:[#allocation98_spill] sm:$0xff] %v16236_v43  ;;  %v16361_v34 = vsel %vm12845_vm7, %v15837_v12, -1e+30 }
 0x8d5   :  { %6738 = vmax.xlane.f32.xlu1 %v15845_v30  ;;  %v15852_v61 = vpop.f32.mrb[158].mxu1  ;;  %19137 = vst [vmem:[#allocation10_spill] sm:$0xff] %v16361_v34 }
 0x8d6   :  { %6752 = vmax.xlane.f32.xlu0 %v15849_v29  ;;  %v15855_v62 = vpop.f32.mrb[159].mxu1  ;;  %v15876_v29 = vsel %vm12793_vm5, %v15712_v63, -1e+30  ;;  %v15896_v63 = vsel %vm19016_vm2, %v15649_v41, -1e+30 }
 0x8d7   :  { %19057 = vst [vmem:[#allocation146_spill] sm:$0xff] %v15876_v29  ;;  %19060 = vst [vmem:[#allocation176_spill] sm:$0xff] %v15896_v63  ;;  %v16270_v60 = vsel %vm19013_vm12, %v15855_v62, -1e+30  ;;  %v16396_v52 = vsel %vm19009_vm0, %v15852_v61, -1e+30 }
 0x8d8   :  { %19125 = vst [vmem:[#allocation108_spill] sm:$0xff] %v16270_v60  ;;  %19143 = vst [vmem:[#allocation14_spill] sm:$0xff] %v16396_v52 }
 0x8d9   :  { %6710 = vmax.xlane.f32.xlu1 %v15860_v46  ;;  %v15868_v26 = vpop.f32.mrb[160].mxu1 }
 0x8da   :  { %6724 = vmax.xlane.f32.xlu0 %v15865_v58  ;;  %v15871_v30 = vpop.f32.mrb[161].mxu1  ;;  %v15891_v58 = vsel %vm12845_vm7, %v15587_v35, -1e+30  ;;  %v15911_v35 = vsel %vm19016_vm2, %v5585_v18, -1e+30 }
 0x8db   :  { %19059 = vst [vmem:[#allocation85_spill] sm:$0xff] %v15891_v58  ;;  %19062 = vst [vmem:[#allocation47_spill] sm:$0xff] %v15911_v35  ;;  %v15934_v18 = vsel %vm19009_vm0, %v15746_v0, -1e+30  ;;  %v15957_v0 = vsel %vm19025_vm14, %v15758_v6, -1e+30 }
 0x8dc   :  { %19065 = vst [vmem:[#allocation57_spill] sm:$0xff] %v15934_v18  ;;  %19069 = vst [vmem:[#allocation48_spill] sm:$0xff] %v15957_v0  ;;  %v16431_v59 = vsel %vm19025_vm14, %v15868_v26, -1e+30 }
 0x8dd   :  { %6742 = vmax.xlane.f32.xlu1 %v15876_v29  ;;  %v15883_v4 = vpop.f32.mrb[162].mxu1  ;;  %19149 = vst [vmem:[#allocation144_spill] sm:$0xff] %v16431_v59 }
 0x8de   :  { %6756 = vmax.xlane.f32.xlu0 %v15880_v24  ;;  %v15886_v46 = vpop.f32.mrb[163].mxu1  ;;  %v15907_v24 = vsel %vm12845_vm7, %v15724_v28, -1e+30  ;;  %v15927_v28 = vsel %vm19022_vm11, %v15659_v54, -1e+30 }
 0x8df   :  { %19061 = vst [vmem:[#allocation147_spill] sm:$0xff] %v15907_v24  ;;  %19064 = vst [vmem:[#allocation19_spill] sm:$0xff] %v15927_v28  ;;  %v15950_v54 = vsel %vm19025_vm14, %v15614_v40, -1e+30  ;;  %v15968_v40 = vsel %vm12810_vm6, %v15688_v5, -1e+30 }
 0x8e0   :  { %19068 = vst [vmem:[#allocation58_spill] sm:$0xff] %v15950_v54  ;;  %19071 = vst [vmem:[#allocation153_spill] sm:$0xff] %v15968_v40  ;;  %v16333_v8 = vsel %vm13021_vm1, %v15886_v46, -1e+30  ;;  %v16461_v47 = vsel %vm19033_vm10, %v15883_v4, -1e+30 }
 0x8e1   :  { %6714 = vmax.xlane.f32.xlu1 %v15891_v58  ;;  %v15899_v49 = vpop.f32.mrb[164].mxu1  ;;  %19133 = vst [vmem:[#allocation7_spill] sm:$0xff] %v16333_v8  ;;  %19155 = vst [vmem:[#allocation29_spill] sm:$0xff] %v16461_v47 }
 0x8e2   :  { %6728 = vmax.xlane.f32.xlu0 %v15896_v63  ;;  %v15902_v29 = vpop.f32.mrb[165].mxu1  ;;  %v15922_v63 = vsel %vm19009_vm0, %v15600_v50, -1e+30  ;;  %v15945_v50 = vsel %vm12643_vm4, %v15673_v11, -1e+30 }
 0x8e3   :  { %19063 = vst [vmem:[#allocation177_spill] sm:$0xff] %v15922_v63  ;;  %19067 = vst [vmem:[#allocation149_spill] sm:$0xff] %v15945_v50  ;;  %v16366_v57 = vsel %vm19016_vm2, %v15902_v29, -1e+30  ;;  %v16493_v10 = vsel %vm19039_vm13, %v15899_v49, -1e+30 }
 0x8e4   :  { %19138 = vst [vmem:[#allocation11_spill] sm:$0xff] %v16366_v57  ;;  %19162 = vst [vmem:[#allocation22_spill] sm:$0xff] %v16493_v10 }
 0x8e5   :  { %6746 = vmax.xlane.f32.xlu1 %v15907_v24  ;;  %v15914_v41 = vpop.f32.mrb[166].mxu1 }
 0x8e6   :  { %6760 = vmax.xlane.f32.xlu0 %v15911_v35  ;;  %v15917_v58 = vpop.f32.mrb[167].mxu1  ;;  %v15938_v35 = vsel %vm19022_vm11, %v5595_v3, -1e+30 }
 0x8e7   :  { %19066 = vst [vmem:[#allocation46_spill] sm:$0xff] %v15938_v35  ;;  %v16401_v42 = vsel %vm19022_vm11, %v15917_v58, -1e+30 }
 0x8e8   :  { %19144 = vst [vmem:[#allocation15_spill] sm:$0xff] %v16401_v42 }
 0x8e9   :  { %6718 = vmax.xlane.f32.xlu1 %v15922_v63 }
 0x8ea   :  { %6732 = vmax.xlane.f32.xlu0 %v15927_v28 }
 0x8ed   :  { %6750 = vmax.xlane.f32.xlu1 %v15934_v18 }
 0x8ee   :  { %6764 = vmax.xlane.f32.xlu0 %v15938_v35 }
 0x8f1   :  { %6722 = vmax.xlane.f32.xlu1 %v15950_v54 }
 0x8f2   :  { %6768 = vmax.xlane.f32.xlu0 %v15945_v50  ;;  %v15973_v50 = vsel %vm19033_vm10, %v15628_v55, -1e+30  ;;  %v15993_v55 = vsel %vm12862_vm8, %v15710_v36, -1e+30 }
 0x8f3   :  { %v10340_v3 = vpop.f32.mrb[152].mxu0  ;;  %19072 = vst [vmem:[#allocation50_spill] sm:$0xff] %v15973_v50  ;;  %19075 = vst [vmem:[#allocation51_spill] sm:$0xff] %v15993_v55 }
 0x8f4   :  { %v5979_v35 = vpop.f32.mrb[153].mxu0 }
 0x8f5   :  { %v15961_v11 = vsel %vm12643_vm4, %v5979_v35, -1e+30  ;;  %6754 = vmax.xlane.f32.xlu1 %v15957_v0  ;;  %v15980_v35 = vsel %vm19033_vm10, %v15780_v56, -1e+30  ;;  %v15998_v56 = vsel %vm19039_vm13, %v15642_v51, -1e+30 }
 0x8f6   :  { %19070 = vst [vmem:[#allocation28_spill] sm:$0xff] %v15961_v11  ;;  %6800 = vmax.xlane.f32.xlu0 %v15961_v11  ;;  %19073 = vst [vmem:[#allocation34_spill] sm:$0xff] %v15980_v35 }
 0x8f7   :  { %19076 = vst [vmem:[#allocation65_spill] sm:$0xff] %v15998_v56 }
 0x8f9   :  { %6726 = vmax.xlane.f32.xlu1 %v15973_v50  ;;  %v15987_v0 = vpop.xlane.xlu1 %6640 }
 0x8fa   :  { %6772 = vmax.xlane.f32.xlu0 %v15968_v40 }
 0x8fb   :  { %v10343_v6 = vpop.f32.mrb[154].mxu0 }
 0x8fc   :  { %v5989_v11 = vpop.f32.mrb[155].mxu0 }
 0x8fd   :  { %v15984_v5 = vsel %vm12810_vm6, %v5989_v11, -1e+30  ;;  %6758 = vmax.xlane.f32.xlu1 %v15980_v35 }
 0x8fe   :  { %19074 = vst [vmem:[#allocation62_spill] sm:$0xff] %v15984_v5  ;;  %6804 = vmax.xlane.f32.xlu0 %v15984_v5  ;;  %v16007_v5 = vsel %vm19039_vm13, %v15792_v33, -1e+30  ;;  %v16025_v33 = vsel %vm19046_vm9, %v15656_v20, -1e+30 }
 0x8ff   :  { %19077 = vst [vmem:[#allocation52_spill] sm:$0xff] %v16007_v5  ;;  %19080 = vst [vmem:[#allocation69_spill] sm:$0xff] %v16025_v33  ;;  %v16044_v20 = vsel %vm12639_vm3, %v15670_v23, -1e+30 }
 0x900   :  { %19083 = vst [vmem:[#allocation56_spill] sm:$0xff] %v16044_v20 }
 0x901   :  { %6730 = vmax.xlane.f32.xlu1 %v15998_v56 }
 0x902   :  { %6776 = vmax.xlane.f32.xlu0 %v15993_v55  ;;  %v16002_v11 = vpop.xlane.xlu1 %6674  ;;  %v16020_v55 = vsel %vm19013_vm12, %v15722_v9, -1e+30 }
 0x903   :  { %v10346_v35 = vpop.f32.mrb[156].mxu0  ;;  %19079 = vst [vmem:[#allocation53_spill] sm:$0xff] %v16020_v55 }
 0x904   :  { %v5999_v40 = vpop.f32.mrb[157].mxu0 }
 0x905   :  { %v16011_v36 = vsel %vm12862_vm8, %v5999_v40, -1e+30  ;;  %6762 = vmax.xlane.f32.xlu1 %v16007_v5 }
 0x906   :  { %19078 = vst [vmem:[#allocation67_spill] sm:$0xff] %v16011_v36  ;;  %6808 = vmax.xlane.f32.xlu0 %v16011_v36  ;;  %v16015_v51 = vpop.xlane.xlu1 %6672  ;;  %v16034_v36 = vsel %vm19046_vm9, %v15814_v13, -1e+30  ;;  %v16052_v13 = vsel %vm12992_vm15, %v15744_v32, -1e+30 }
 0x907   :  { %19081 = vst [vmem:[#allocation55_spill] sm:$0xff] %v16034_v36  ;;  %19084 = vst [vmem:[#allocation72_spill] sm:$0xff] %v16052_v13  ;;  %v16070_v32 = vsel %vm12793_vm5, %v15685_v48, -1e+30 }
 0x908   :  { %19087 = vst [vmem:[#allocation60_spill] sm:$0xff] %v16070_v32 }
 0x909   :  { %6734 = vmax.xlane.f32.xlu1 %v16025_v33 }
 0x90a   :  { %6780 = vmax.xlane.f32.xlu0 %v16020_v55  ;;  %v16029_v40 = vpop.xlane.xlu1 %6646 }
 0x90b   :  { %v10349_v5 = vpop.f32.mrb[158].mxu0 }
 0x90c   :  { %v6009_v56 = vpop.f32.mrb[159].mxu0 }
 0x90d   :  { %v16038_v9 = vsel %vm19013_vm12, %v6009_v56, -1e+30  ;;  %6766 = vmax.xlane.f32.xlu1 %v16034_v36  ;;  %v16057_v56 = vsel %vm12639_vm3, %v10340_v3, -1e+30 }
 0x90e   :  { %19082 = vst [vmem:[#allocation71_spill] sm:$0xff] %v16038_v9  ;;  %6812 = vmax.xlane.f32.xlu0 %v16038_v9  ;;  %v16047_v55 = vpop.xlane.xlu1 %6644  ;;  %19085 = vst [vmem:[#allocation151_spill] sm:$0xff] %v16057_v56 }
 0x911   :  { %6770 = vmax.xlane.f32.xlu1 %v16044_v20 }
 0x912   :  { %6784 = vmax.xlane.f32.xlu0 %v16052_v13  ;;  %v16060_v36 = vpop.xlane.xlu1 %6678  ;;  %v16078_v13 = vsel %vm13021_vm1, %v15756_v53, -1e+30  ;;  %v16096_v53 = vsel %vm12845_vm7, %v15703_v31, -1e+30 }
 0x913   :  { %v10352_v23 = vpop.f32.mrb[160].mxu0  ;;  %19088 = vst [vmem:[#allocation76_spill] sm:$0xff] %v16078_v13  ;;  %19091 = vst [vmem:[#allocation63_spill] sm:$0xff] %v16096_v53 }
 0x914   :  { %v6019_v33 = vpop.f32.mrb[161].mxu0 }
 0x915   :  { %v16064_v9 = vsel %vm12992_vm15, %v6019_v33, -1e+30  ;;  %6802 = vmax.xlane.f32.xlu1 %v16057_v56  ;;  %v16083_v33 = vsel %vm12793_vm5, %v10343_v6, -1e+30 }
 0x916   :  { %19086 = vst [vmem:[#allocation74_spill] sm:$0xff] %v16064_v9  ;;  %6816 = vmax.xlane.f32.xlu0 %v16064_v9  ;;  %v16073_v3 = vpop.xlane.xlu1 %6676  ;;  %19089 = vst [vmem:[#allocation61_spill] sm:$0xff] %v16083_v33 }
 0x919   :  { %6774 = vmax.xlane.f32.xlu1 %v16070_v32  ;;  %v16106_v32 = vpop.xlane.xlu0 %6642 }
 0x91a   :  { %6788 = vmax.xlane.f32.xlu0 %v16078_v13  ;;  %v16086_v56 = vpop.xlane.xlu1 %6650  ;;  %v16104_v13 = vsel %vm19016_vm2, %v15778_v22, -1e+30 }
 0x91b   :  { %v10355_v48 = vpop.f32.mrb[162].mxu0  ;;  %19092 = vst [vmem:[#allocation80_spill] sm:$0xff] %v16104_v13 }
 0x91c   :  { %v6029_v20 = vpop.f32.mrb[163].mxu0 }
 0x91d   :  { %v16090_v9 = vsel %vm13021_vm1, %v6029_v20, -1e+30  ;;  %6806 = vmax.xlane.f32.xlu1 %v16083_v33  ;;  %v16111_v20 = vsel %vm12845_vm7, %v10346_v35, -1e+30 }
 0x91e   :  { %19090 = vst [vmem:[#allocation78_spill] sm:$0xff] %v16090_v9  ;;  %6820 = vmax.xlane.f32.xlu0 %v16090_v9  ;;  %v16099_v6 = vpop.xlane.xlu1 %6648  ;;  %19093 = vst [vmem:[#allocation66_spill] sm:$0xff] %v16111_v20 }
 0x921   :  { %6778 = vmax.xlane.f32.xlu1 %v16096_v53  ;;  %v16126_v53 = vsel %vm19009_vm0, %v15719_v25, -1e+30 }
 0x922   :  { %6792 = vmax.xlane.f32.xlu0 %v16104_v13  ;;  %v16114_v31 = vpop.xlane.xlu1 %6682  ;;  %19096 = vst [vmem:[#allocation86_spill] sm:$0xff] %v16126_v53  ;;  %v16134_v13 = vsel %vm19022_vm11, %v15790_v1, -1e+30 }
 0x923   :  { %19094 = vst [vmem:[#allocation83_spill] sm:$0xff] %v16114_v31  ;;  %v10358_v9 = vpop.f32.mrb[164].mxu0  ;;  %v16116_v33 = vpop.xlane.xlu0 %6688  ;;  %19097 = vst [vmem:[#allocation70_spill] sm:$0xff] %v16134_v13 }
 0x924   :  { %v6039_v50 = vpop.f32.mrb[165].mxu0  ;;  %v16241_v45 = vsel %vm19039_vm13, %v10358_v9, -1e+30  ;;  %v16258_v9 = vsel %vm19046_vm9, %v19121_v16, -1e+30 }
 0x925   :  { %v16120_v22 = vsel %vm19016_vm2, %v6039_v50, -1e+30  ;;  %6810 = vmax.xlane.f32.xlu1 %v16111_v20  ;;  %v16141_v50 = vsel %vm19009_vm0, %v10349_v5, -1e+30  ;;  %19117 = vst [vmem:[#allocation21_spill] sm:$0xff] %v16241_v45  ;;  %19122 = vst [vmem:[#allocation100_spill] sm:$0xff] %v16258_v9 }
 0x926   :  { %19095 = vst [vmem:[#allocation68_spill] sm:$0xff] %v16120_v22  ;;  %6824 = vmax.xlane.f32.xlu0 %v16120_v22  ;;  %v16129_v35 = vpop.xlane.xlu1 %6680  ;;  %19098 = vst [vmem:[#allocation73_spill] sm:$0xff] %v16141_v50 }
 0x927   :  { %v16136_v54 = vpop.xlane.xlu0 %6660 }
 0x929   :  { %6782 = vmax.xlane.f32.xlu1 %v16126_v53  ;;  %v16156_v53 = vsel %vm19025_vm14, %v15737_v37, -1e+30  ;;  %v16173_v37 = vsel %vm19025_vm14, %v10352_v23, -1e+30 }
 0x92a   :  { %6796 = vmax.xlane.f32.xlu0 %v16134_v13  ;;  %v16144_v25 = vpop.xlane.xlu1 %6654  ;;  %19101 = vst [vmem:[#allocation77_spill] sm:$0xff] %v16156_v53  ;;  %19103 = vst [vmem:[#allocation81_spill] sm:$0xff] %v16173_v37 }
 0x92b   :  { %19099 = vst [vmem:[#allocation18_spill] sm:$0xff] %v16144_v25  ;;  %v10361_v22 = vpop.f32.mrb[166].mxu0  ;;  %v16146_v20 = vpop.xlane.xlu0 %6692 }
 0x92c   :  { %v6049_v18 = vpop.f32.mrb[167].mxu0 }
 0x92d   :  { %v16150_v1 = vsel %vm19022_vm11, %v6049_v18, -1e+30  ;;  %6814 = vmax.xlane.f32.xlu1 %v16141_v50  ;;  %v16168_v18 = vsel %vm12643_vm4, %v15812_v38, -1e+30  ;;  %v16190_v38 = vsel %vm19033_vm10, %v15753_v21, -1e+30 }
 0x92e   :  { %19100 = vst [vmem:[#allocation75_spill] sm:$0xff] %v16150_v1  ;;  %6828 = vmax.xlane.f32.xlu0 %v16150_v1  ;;  %v16159_v5 = vpop.xlane.xlu1 %6652  ;;  %19102 = vst [vmem:[#allocation79_spill] sm:$0xff] %v16168_v18  ;;  %v16207_v21 = vsel %vm19033_vm10, %v10355_v48, -1e+30 }
 0x92f   :  { %v16161_v13 = vpop.f32.mrb[168].mxu0  ;;  %v16163_v28 = vpop.xlane.xlu0 %6664  ;;  %19107 = vst [vmem:[#allocation87_spill] sm:$0xff] %v16190_v38  ;;  %19110 = vst [vmem:[#allocation90_spill] sm:$0xff] %v16207_v21 }
 0x930   :  { %v6433_v63 = vpop.f32.mrb[169].mxu0 }
 0x931   :  { %6786 = vmax.xlane.f32.xlu1 %v16156_v53  ;;  %v16184_v31 = vsel %vm12643_vm4, %v6433_v63, -1e+30 }
 0x932   :  { %6832 = vmax.xlane.f32.xlu0 %v16168_v18  ;;  %v16176_v1 = vpop.xlane.xlu1 %6686  ;;  %19106 = vst [vmem:[#allocation95_spill] sm:$0xff] %v16184_v31 }
 0x933   :  { %19104 = vst [vmem:[#allocation92_spill] sm:$0xff] %v16176_v1  ;;  %v16178_v50 = vpop.f32.mrb[170].mxu0  ;;  %v16180_v24 = vpop.xlane.xlu0 %6696 }
 0x934   :  { %19105 = vst [vmem:[#allocation84_spill] sm:$0xff] %v16180_v24  ;;  %v6443_v25 = vpop.f32.mrb[171].mxu0 }
 0x935   :  { %6818 = vmax.xlane.f32.xlu1 %v16173_v37  ;;  %v16218_v24 = vsel %vm12810_vm6, %v6443_v25, -1e+30 }
 0x936   :  { %6864 = vmax.xlane.f32.xlu0 %v16184_v31  ;;  %v16193_v23 = vpop.xlane.xlu1 %6684  ;;  %19113 = vst [vmem:[#allocation94_spill] sm:$0xff] %v16218_v24 }
 0x937   :  { %v16195_v18 = vpop.f32.mrb[172].mxu0  ;;  %v16197_v53 = vpop.xlane.xlu0 %6668 }
 0x938   :  { %19108 = vst [vmem:[#allocation89_spill] sm:$0xff] %v16197_v53  ;;  %v6453_v1 = vpop.f32.mrb[173].mxu0  ;;  %v16379_v12 = vsel %vm12845_vm7, %v16195_v18, -1e+30 }
 0x939   :  { %6790 = vmax.xlane.f32.xlu1 %v16190_v38  ;;  %19140 = vst [vmem:[#allocation12_spill] sm:$0xff] %v16379_v12 }
 0x93a   :  { %6836 = vmax.xlane.f32.xlu0 %v16202_v7  ;;  %v16210_v63 = vpop.xlane.xlu1 %6658 }
 0x93b   :  { %19111 = vst [vmem:[#allocation91_spill] sm:$0xff] %v16210_v63  ;;  %v16212_v31 = vpop.f32.mrb[174].mxu0  ;;  %v16214_v37 = vpop.xlane.xlu0 %6700 }
 0x93c   :  { %19112 = vst [vmem:[#allocation93_spill] sm:$0xff] %v16214_v37  ;;  %v6463_v53 = vpop.f32.mrb[175].mxu0  ;;  %v16252_v37 = vsel %vm12862_vm8, %v6453_v1, -1e+30  ;;  %v16275_v1 = vsel %vm19046_vm9, %v10361_v22, -1e+30 }
 0x93d   :  { %6822 = vmax.xlane.f32.xlu1 %v16207_v21  ;;  %19120 = vst [vmem:[#allocation105_spill] sm:$0xff] %v16252_v37  ;;  %19126 = vst [vmem:[#allocation103_spill] sm:$0xff] %v16275_v1  ;;  %v16414_v61 = vsel %vm19009_vm0, %v16212_v31, -1e+30 }
 0x93e   :  { %6868 = vmax.xlane.f32.xlu0 %v16218_v24  ;;  %v16227_v48 = vpop.xlane.xlu1 %6656  ;;  %19146 = vst [vmem:[#allocation16_spill] sm:$0xff] %v16414_v61 }
 0x93f   :  { %v16229_v7 = vpop.f32.mrb[176].mxu0  ;;  %v16231_v38 = vpop.xlane.xlu0 %6704 }
 0x940   :  { %19115 = vst [vmem:[#allocation96_spill] sm:$0xff] %v16231_v38  ;;  %v6473_v63 = vpop.f32.mrb[177].mxu0  ;;  %v16446_v26 = vsel %vm19025_vm14, %v16229_v7, -1e+30 }
 0x941   :  { %6794 = vmax.xlane.f32.xlu1 %v16224_v39  ;;  %19152 = vst [vmem:[#allocation171_spill] sm:$0xff] %v16446_v26 }
 0x942   :  { %6840 = vmax.xlane.f32.xlu0 %v16236_v43  ;;  %v16244_v25 = vpop.xlane.xlu1 %6690 }
 0x943   :  { %19118 = vst [vmem:[#allocation104_spill] sm:$0xff] %v16244_v25  ;;  %v16246_v24 = vpop.f32.mrb[178].mxu0  ;;  %v16248_v21 = vpop.xlane.xlu0 %6736 }
 0x944   :  { %19119 = vst [vmem:[#allocation99_spill] sm:$0xff] %v16248_v21  ;;  %v6483_v38 = vpop.f32.mrb[179].mxu0  ;;  %v16476_v4 = vsel %vm19033_vm10, %v16246_v24, -1e+30 }
 0x945   :  { %6826 = vmax.xlane.f32.xlu1 %v16241_v45  ;;  %19158 = vst [vmem:[#allocation150_spill] sm:$0xff] %v16476_v4 }
 0x946   :  { %6872 = vmax.xlane.f32.xlu0 %v16252_v37  ;;  %v16261_v43 = vpop.xlane.xlu1 %6662 }
 0x947   :  { %19123 = vst [vmem:[#allocation107_spill] sm:$0xff] %v16261_v43  ;;  %v16263_v39 = vpop.f32.mrb[180].mxu0  ;;  %v16265_v25 = vpop.xlane.xlu0 %6708  ;;  %v16286_v43 = vsel %vm19013_vm12, %v6463_v53, -1e+30 }
 0x948   :  { %19124 = vst [vmem:[#allocation102_spill] sm:$0xff] %v16265_v25  ;;  %v6493_v21 = vpop.f32.mrb[181].mxu0  ;;  %19127 = vst [vmem:[#allocation20_spill] sm:$0xff] %v16286_v43  ;;  %v16510_v49 = vsel %vm19039_vm13, %v16263_v39, -1e+30 }
 0x949   :  { %6798 = vmax.xlane.f32.xlu1 %v16258_v9  ;;  %v16302_v9 = vsel %vm12992_vm15, %v15871_v30, -1e+30  ;;  %v16383_v29 = vsel %vm19016_vm2, %v6493_v21, -1e+30  ;;  %v19145_v21 = vld [vmem:[#allocation39_spill] sm:$0xff]  ;;  %19166 = vst [vmem:[#allocation26_spill] sm:$0xff] %v16510_v49 }
 0x94a   :  { %6844 = vmax.xlane.f32.xlu0 %v16270_v60  ;;  %v16278_v16 = vpop.xlane.xlu1 %6694  ;;  %v16297_v60 = vsel %vm12639_vm3, %v15805_v2, -1e+30  ;;  %19129 = vst [vmem:[#allocation3_spill] sm:$0xff] %v16302_v9  ;;  %v16317_v2 = vsel %vm12992_vm15, %v6473_v63, -1e+30  ;;  %19141 = vst [vmem:[#allocation13_spill] sm:$0xff] %v16383_v29 }
 0x94b   :  { %v16280_v37 = vpop.f32.mrb[182].mxu0  ;;  %v16282_v45 = vpop.xlane.xlu0 %6740  ;;  %19128 = vst [vmem:[#allocation2_spill] sm:$0xff] %v16297_v60  ;;  %19131 = vst [vmem:[#allocation5_spill] sm:$0xff] %v16317_v2  ;;  %v16344_v63 = vsel %vm12793_vm5, %v16178_v50, -1e+30 }
 0x94c   :  { %v6503_v25 = vpop.f32.mrb[183].mxu0  ;;  %19134 = vst [vmem:[#allocation8_spill] sm:$0xff] %v16344_v63  ;;  %v16527_v39 = vsel %vm19046_vm9, %v15914_v41, -1e+30 }
 0x94d   :  { %6830 = vmax.xlane.f32.xlu1 %v16275_v1  ;;  %v16418_v58 = vsel %vm19022_vm11, %v6503_v25, -1e+30  ;;  %19170 = vst [vmem:[#allocation30_spill] sm:$0xff] %v16527_v39 }
 0x94e   :  { %6876 = vmax.xlane.f32.xlu0 %v16286_v43  ;;  %v16290_v62 = vpop.xlane.xlu1 %6666  ;;  %v16313_v43 = vsel %vm12639_vm3, %v16161_v13, -1e+30  ;;  %19147 = vst [vmem:[#allocation17_spill] sm:$0xff] %v16418_v58  ;;  %vm19482_vm3 = vcmask 261120  }
 0x94f   :  { %v16292_v22 = vpop.xlane.xlu0 %6712  ;;  %19130 = vst [vmem:[#allocation4_spill] sm:$0xff] %v16313_v43  ;;  %vm19484_vm4 = vmmov %vm19482_vm3 }
 0x950   :  { %vm19488_vm6 = vmmov %vm19482_vm3 }
 0x951   :  { %6834 = vmax.xlane.f32.xlu1 %v16297_v60  ;;  %v16328_v60 = vsel %vm12793_vm5, %v15821_v19, -1e+30  ;;  %v16348_v19 = vsel %vm13021_vm1, %v6483_v38, -1e+30  ;;  %vm19417_vm1 = vmmov 0   ;;  %vm19486_vm5 = vmmov %vm19482_vm3 }
 0x952   :  { %6848 = vmax.xlane.f32.xlu0 %v16302_v9  ;;  %v16306_v17 = vpop.xlane.xlu1 %6698  ;;  %19132 = vst [vmem:[#allocation6_spill] sm:$0xff] %v16328_v60  ;;  %19135 = vst [vmem:[#allocation9_spill] sm:$0xff] %v16348_v19 }
 0x953   :  { %v16308_v53 = vpop.xlane.xlu0 %6744  ;;  %vm19490_vm7 = vmmov %vm19482_vm3 }
 0x954   :  { %vm19492_vm8 = vmmov %vm19482_vm3 }
 0x955   :  { %6866 = vmax.xlane.f32.xlu1 %v16313_v43  ;;  %vm19494_vm15 = vmmov %vm19482_vm3 }
 0x956   :  { %6880 = vmax.xlane.f32.xlu0 %v16317_v2  ;;  %v16321_v30 = vpop.xlane.xlu1 %6670  ;;  %vm19498_vm0 = vmmov %vm19482_vm3 }
 0x957   :  { %v16323_v9 = vpop.xlane.xlu0 %6716  ;;  %vm19500_vm12 = vmmov %vm19498_vm0 }
 0x958   :  { %vm19502_vm2 = vmmov %vm19498_vm0 }
 0x959   :  { %6838 = vmax.xlane.f32.xlu1 %v16328_v60  ;;  %vm19504_vm11 = vmmov %vm19498_vm0 }
 0x95a   :  { %6852 = vmax.xlane.f32.xlu0 %v16333_v8  ;;  %v16337_v15 = vpop.xlane.xlu1 %6702  ;;  %v19136_v8 = vld [vmem:[#allocation175_spill] sm:$0xff]  ;;  %vm19506_vm14 = vmmov %vm19498_vm0 }
 0x95b   :  { %v16339_v13 = vpop.xlane.xlu0 %6748  ;;  %v6896_v60 = vsub.f32 %v19136_v8, %v15987_v0  ;;  %v19139_v0 = vld [vmem:[#allocation155_spill] sm:$0xff]  ;;  %vm19508_vm10 = vmmov %vm19498_vm0 }
 0x95c   :  { %v6912_v8 = vsub.f32 %v19139_v0, %v16015_v51  ;;  %v19142_v51 = vld [vmem:[#allocation25_spill] sm:$0xff]  ;;  %vm19510_vm13 = vmmov %vm19498_vm0 }
 0x95d   :  { %6870 = vmax.xlane.f32.xlu1 %v16344_v63  ;;  %v7024_v38 = vmul.f32 1.442695, %v6896_v60  ;;  %v6898_v0 = vsub.f32 %v19142_v51, %v16047_v55 }
 0x95e   :  { %6884 = vmax.xlane.f32.xlu0 %v16348_v19  ;;  %v16352_v46 = vpop.xlane.xlu1 %6706  ;;  %v7056_v60 = vmul.f32 1.442695, %v6912_v8 }
 0x95f   :  { %v16356_v2 = vpop.xlane.xlu0 %6720  ;;  %11673 = vpow2.f32 %v7024_v38  ;;  %v7028_v55 = vmul.f32 1.442695, %v6898_v0  ;;  %v6914_v38 = vsub.f32 %v19145_v21, %v16073_v3  ;;  %v19148_v3 = vld [vmem:[#allocation157_spill] sm:$0xff] }
 0x960   :  { %11675 = vpow2.f32 %v7056_v60  ;;  %v6900_v0 = vsub.f32 %v19148_v3, %v16099_v6 }
 0x961   :  { %6842 = vmax.xlane.f32.xlu1 %v16361_v34  ;;  %11677 = vpow2.f32 %v7028_v55  ;;  %v7060_v51 = vmul.f32 1.442695, %v6914_v38  ;;  %v19151_v55 = vld [vmem:[#allocation101_spill] sm:$0xff] }
 0x962   :  { %6856 = vmax.xlane.f32.xlu0 %v16366_v57  ;;  %v16370_v50 = vpop.xlane.xlu1 %6738  ;;  %v7032_v25 = vmul.f32 1.442695, %v6900_v0  ;;  %v6916_v6 = vsub.f32 %v19151_v55, %v16129_v35  ;;  %v19154_v0 = vld [vmem:[#allocation114_spill] sm:$0xff] }
 0x963   :  { %v16374_v19 = vpop.xlane.xlu0 %6752  ;;  %11679 = vpow2.f32 %v7060_v51  ;;  %v6902_v35 = vsub.f32 %v19154_v0, %v16159_v5 }
 0x964   :  { %11681 = vpow2.f32 %v7032_v25  ;;  %v7064_v51 = vmul.f32 1.442695, %v6916_v6  ;;  %v19157_v6 = vld [vmem:[#allocation162_spill] sm:$0xff] }
 0x965   :  { %6874 = vmax.xlane.f32.xlu1 %v16379_v12  ;;  %v7036_v25 = vmul.f32 1.442695, %v6902_v35  ;;  %v6918_v5 = vsub.f32 %v19157_v6, %v16193_v23  ;;  %v19161_v35 = vld [vmem:[#allocation24_spill] sm:$0xff] }
 0x966   :  { %6888 = vmax.xlane.f32.xlu0 %v16383_v29  ;;  %v16387_v57 = vpop.xlane.xlu1 %6710  ;;  %11683 = vpow2.f32 %v7064_v51  ;;  %v6904_v6 = vsub.f32 %v19161_v35, %v16227_v48  ;;  %v19165_v48 = vld [vmem:[#allocation37_spill] sm:$0xff] }
 0x967   :  { %v16391_v34 = vpop.xlane.xlu0 %6724  ;;  %11685 = vpow2.f32 %v7036_v25  ;;  %v7068_v23 = vmul.f32 1.442695, %v6918_v5  ;;  %v6920_v5 = vsub.f32 %v19165_v48, %v16116_v33 }
 0x968   :  { %v7040_v35 = vmul.f32 1.442695, %v6904_v6  ;;  %v19169_v6 = vld [vmem:[#allocation159_spill] sm:$0xff] }
 0x969   :  { %6846 = vmax.xlane.f32.xlu1 %v16396_v52  ;;  %v16433_v14 = vpop.eup %11673  ;;  %11687 = vpow2.f32 %v7068_v23  ;;  %v7072_v23 = vmul.f32 1.442695, %v6920_v5  ;;  %v6906_v48 = vsub.f32 %v19169_v6, %v16136_v54 }
 0x96a   :  { %6860 = vmax.xlane.f32.xlu0 %v16401_v42  ;;  %v16405_v18 = vpop.xlane.xlu1 %6742  ;;  %19150 = vst [vmem:[#allocation145_spill] sm:$0xff] %v16433_v14  ;;  %v16448_v3 = vpop.eup %11675 }
 0x96b   :  { %v16409_v8 = vpop.xlane.xlu0 %6756  ;;  %19153 = vst [vmem:[#allocation148_spill] sm:$0xff] %v16448_v3  ;;  %v16463_v7 = vpop.eup %11677 }
 0x96c   :  { %19156 = vst [vmem:[#allocation173_spill] sm:$0xff] %v16463_v7 }
 0x96d   :  { %6878 = vmax.xlane.f32.xlu1 %v16414_v61 }
 0x96e   :  { %6892 = vmax.xlane.f32.xlu0 %v16418_v58  ;;  %v16422_v60 = vpop.xlane.xlu1 %6714  ;;  %v16478_v58 = vpop.eup %11679 }
 0x96f   :  { %v16426_v21 = vpop.xlane.xlu0 %6728  ;;  %19159 = vst [vmem:[#allocation152_spill] sm:$0xff] %v16478_v58  ;;  %v16495_v24 = vpop.eup %11681 }
 0x970   :  { %19163 = vst [vmem:[#allocation23_spill] sm:$0xff] %v16495_v24 }
 0x971   :  { %6850 = vmax.xlane.f32.xlu1 %v16431_v59 }
 0x972   :  { %7280 = vadd.xlane.f32.xlu0 %v16433_v14  ;;  %v16437_v31 = vpop.xlane.xlu1 %6746 }
 0x973   :  { %v16441_v38 = vpop.xlane.xlu0 %6760 }
 0x975   :  { %6882 = vmax.xlane.f32.xlu1 %v16446_v26 }
 0x976   :  { %7312 = vadd.xlane.f32.xlu0 %v16448_v3  ;;  %v16452_v59 = vpop.xlane.xlu1 %6718 }
 0x977   :  { %v16456_v55 = vpop.xlane.xlu0 %6732 }
 0x979   :  { %6854 = vmax.xlane.f32.xlu1 %v16461_v47  ;;  %v19160_v47 = vld [vmem:[#allocation36_spill] sm:$0xff] }
 0x97a   :  { %7284 = vadd.xlane.f32.xlu0 %v16463_v7  ;;  %v16467_v26 = vpop.xlane.xlu1 %6750  ;;  %v6897_v61 = vsub.f32 %v19160_v47, %v16106_v32  ;;  %v19164_v47 = vld [vmem:[#allocation154_spill] sm:$0xff] }
 0x97b   :  { %v16471_v0 = vpop.xlane.xlu0 %6764 }
 0x97c   :  { %v7026_v32 = vmul.f32 1.442695, %v6897_v61  ;;  %v16512_v61 = vpop.eup %11683 }
 0x97d   :  { %6886 = vmax.xlane.f32.xlu1 %v16476_v4  ;;  %v6913_v4 = vsub.f32 %v19164_v47, %v16002_v11  ;;  %19167 = vst [vmem:[#allocation27_spill] sm:$0xff] %v16512_v61  ;;  %v19168_v47 = vld [vmem:[#allocation32_spill] sm:$0xff] }
 0x97e   :  { %7316 = vadd.xlane.f32.xlu0 %v16478_v58  ;;  %v16484_v51 = vpop.xlane.xlu1 %6722  ;;  %11689 = vpow2.f32 %v7026_v32  ;;  %v19172_v32 = vld [vmem:[#allocation156_spill] sm:$0xff] }
 0x97f   :  { %v16488_v42 = vpop.xlane.xlu0 %6768  ;;  %v7058_v11 = vmul.f32 1.442695, %v6913_v4  ;;  %11691 = vpow2.f32 %v7040_v35  ;;  %v16529_v4 = vpop.eup %11685  ;;  %v6915_v5 = vsub.f32 %v19172_v32, %v16060_v36  ;;  %v7044_v35 = vmul.f32 1.442695, %v6906_v48  ;;  %v19177_v32 = vld [vmem:[#allocation161_spill] sm:$0xff] }
 0x980   :  { %19171 = vst [vmem:[#allocation31_spill] sm:$0xff] %v16529_v4  ;;  %v6908_v27 = vsub.f32 %v19177_v32, %v16163_v28  ;;  %v19182_v28 = vld [vmem:[#allocation84_spill] sm:$0xff]  ;;  %v19183_v32 = vld [vmem:[#allocation106_spill] sm:$0xff] }
 0x981   :  { %6858 = vmax.xlane.f32.xlu1 %v16493_v10  ;;  %v6899_v10 = vsub.f32 %v19168_v47, %v16029_v40  ;;  %11693 = vpow2.f32 %v7058_v11  ;;  %v19173_v47 = vld [vmem:[#allocation43_spill] sm:$0xff]  ;;  %v7062_v36 = vmul.f32 1.442695, %v6915_v5  ;;  %v19176_v11 = vld [vmem:[#allocation178_spill] sm:$0xff] }
 0x982   :  { %7288 = vadd.xlane.f32.xlu0 %v16495_v24  ;;  %v16501_v25 = vpop.xlane.xlu1 %6754  ;;  %11695 = vpow2.f32 %v7072_v23  ;;  %v6922_v6 = vsub.f32 %v19173_v47, %v16146_v20  ;;  %v6901_v23 = vsub.f32 %v19176_v11, %v16086_v56  ;;  %v19180_v56 = vld [vmem:[#allocation83_spill] sm:$0xff]  ;;  %v19181_v5 = vld [vmem:[#allocation158_spill] sm:$0xff] }
 0x983   :  { %v16505_v52 = vpop.xlane.xlu0 %6800  ;;  %v7030_v40 = vmul.f32 1.442695, %v6899_v10  ;;  %v16546_v10 = vpop.eup %11687  ;;  %v6917_v11 = vsub.f32 %v19181_v5, %v19180_v56  ;;  %v19187_v56 = vld [vmem:[#allocation160_spill] sm:$0xff] }
 0x984   :  { %19175 = vst [vmem:[#allocation54_spill] sm:$0xff] %v16546_v10  ;;  %v7076_v20 = vmul.f32 1.442695, %v6922_v6  ;;  %v7048_v6 = vmul.f32 1.442695, %v6908_v27 }
 0x985   :  { %6890 = vmax.xlane.f32.xlu1 %v16510_v49  ;;  %11697 = vpow2.f32 %v7030_v40  ;;  %v7034_v40 = vmul.f32 1.442695, %v6901_v23  ;;  %v19186_v23 = vld [vmem:[#allocation18_spill] sm:$0xff] }
 0x986   :  { %7320 = vadd.xlane.f32.xlu0 %v16512_v61  ;;  %v16518_v33 = vpop.xlane.xlu1 %6726  ;;  %11699 = vpow2.f32 %v7044_v35  ;;  %v6903_v5 = vsub.f32 %v19187_v56, %v19186_v23  ;;  %v19193_v23 = vld [vmem:[#allocation42_spill] sm:$0xff] }
 0x987   :  { %v16522_v44 = vpop.xlane.xlu0 %6772  ;;  %11701 = vpow2.f32 %v7062_v36  ;;  %v7066_v36 = vmul.f32 1.442695, %v6917_v11  ;;  %v19192_v11 = vld [vmem:[#allocation92_spill] sm:$0xff] }
 0x988   :  { %v16558_v47 = vpop.eup %11689  ;;  %11703 = vpow2.f32 %v7076_v20  ;;  %v6919_v56 = vsub.f32 %v19193_v23, %v19192_v11  ;;  %v19199_v11 = vld [vmem:[#allocation131_spill] sm:$0xff] }
 0x989   :  { %6862 = vmax.xlane.f32.xlu1 %v16527_v39  ;;  %v16544_v39 = vsel %vm19046_vm9, %v16280_v37, -1e+30  ;;  %19178 = vst [vmem:[#allocation38_spill] sm:$0xff] %v16558_v47  ;;  %v16560_v49 = vpop.eup %11691  ;;  %11705 = vpow2.f32 %v7034_v40  ;;  %v7038_v40 = vmul.f32 1.442695, %v6903_v5  ;;  %v19198_v5 = vld [vmem:[#allocation91_spill] sm:$0xff]  ;;  %vm19496_vm9 = vmmov %vm19482_vm3 }
 0x98a   :  { %7292 = vadd.xlane.f32.xlu0 %v16529_v4  ;;  %v16535_v54 = vpop.xlane.xlu1 %6758  ;;  %19174 = vst [vmem:[#allocation49_spill] sm:$0xff] %v16544_v39  ;;  %19179 = vst [vmem:[#allocation40_spill] sm:$0xff] %v16560_v49  ;;  %11707 = vpow2.f32 %v7048_v6  ;;  %v6905_v23 = vsub.f32 %v19199_v11, %v19198_v5  ;;  %v19205_v5 = vld [vmem:[#allocation132_spill] sm:$0xff] }
 0x98b   :  { %v16539_v41 = vpop.xlane.xlu0 %6804  ;;  %v16572_v12 = vpop.eup %11693  ;;  %11709 = vpow2.f32 %v7066_v36  ;;  %v7070_v36 = vmul.f32 1.442695, %v6919_v56  ;;  %v19204_v56 = vld [vmem:[#allocation104_spill] sm:$0xff] }
 0x98c   :  { %19184 = vst [vmem:[#allocation59_spill] sm:$0xff] %v16572_v12  ;;  %v6921_v11 = vsub.f32 %v19205_v5, %v19204_v56  ;;  %v19211_v56 = vld [vmem:[#allocation165_spill] sm:$0xff] }
 0x98d   :  { %6894 = vmax.xlane.f32.xlu1 %v16544_v39  ;;  %v6924_v39 = vsub.f32 %v19183_v32, %v19182_v28  ;;  %v19188_v28 = vld [vmem:[#allocation89_spill] sm:$0xff]  ;;  %v19189_v32 = vld [vmem:[#allocation163_spill] sm:$0xff] }
 0x98e   :  { %7324 = vadd.xlane.f32.xlu0 %v16546_v10  ;;  %v16552_v48 = vpop.xlane.xlu1 %6730  ;;  %v16574_v10 = vpop.eup %11695 }
 0x98f   :  { %v16556_v37 = vpop.xlane.xlu0 %6776  ;;  %19185 = vst [vmem:[#allocation64_spill] sm:$0xff] %v16574_v10  ;;  %v7080_v27 = vmul.f32 1.442695, %v6924_v39  ;;  %v16586_v4 = vpop.eup %11697 }
 0x990   :  { %19190 = vst [vmem:[#allocation33_spill] sm:$0xff] %v16586_v4  ;;  %v16588_v61 = vpop.eup %11699 }
 0x991   :  { %7282 = vadd.xlane.f32.xlu1 %v16558_v47  ;;  %19191 = vst [vmem:[#allocation35_spill] sm:$0xff] %v16588_v61  ;;  %11711 = vpow2.f32 %v7080_v27  ;;  %v16600_v43 = vpop.eup %11701 }
 0x992   :  { %7296 = vadd.xlane.f32.xlu0 %v16560_v49  ;;  %v16566_v35 = vpop.xlane.xlu1 %6762  ;;  %v6910_v49 = vsub.f32 %v19189_v32, %v19188_v28  ;;  %v19194_v28 = vld [vmem:[#allocation93_spill] sm:$0xff]  ;;  %v19195_v32 = vld [vmem:[#allocation118_spill] sm:$0xff]  ;;  %19196 = vst [vmem:[#allocation41_spill] sm:$0xff] %v16600_v43  ;;  %v16602_v58 = vpop.eup %11703  ;;  %11713 = vpow2.f32 %v7038_v40  ;;  %v7042_v40 = vmul.f32 1.442695, %v6905_v23  ;;  %v19210_v23 = vld [vmem:[#allocation107_spill] sm:$0xff] }
 0x993   :  { %v16570_v29 = vpop.xlane.xlu0 %6808  ;;  %19197 = vst [vmem:[#allocation45_spill] sm:$0xff] %v16602_v58  ;;  %v16614_v7 = vpop.eup %11705  ;;  %v6907_v5 = vsub.f32 %v19211_v56, %v19210_v23  ;;  %v19217_v56 = vld [vmem:[#allocation166_spill] sm:$0xff] }
 0x994   :  { %v7052_v39 = vmul.f32 1.442695, %v6910_v49  ;;  %19202 = vst [vmem:[#allocation169_spill] sm:$0xff] %v16614_v7  ;;  %v16616_v1 = vpop.eup %11707 }
 0x995   :  { %7314 = vadd.xlane.f32.xlu1 %v16572_v12  ;;  %19203 = vst [vmem:[#allocation175_spill] sm:$0xff] %v16616_v1  ;;  %v16628_v12 = vpop.eup %11709 }
 0x996   :  { %7328 = vadd.xlane.f32.xlu0 %v16574_v10  ;;  %v16580_v20 = vpop.xlane.xlu1 %6734  ;;  %v6926_v10 = vsub.f32 %v19195_v32, %v19194_v28  ;;  %11715 = vpow2.f32 %v7052_v39  ;;  %v19200_v28 = vld [vmem:[#allocation96_spill] sm:$0xff]  ;;  %19208 = vst [vmem:[#allocation155_spill] sm:$0xff] %v16628_v12 }
 0x997   :  { %v16584_v63 = vpop.xlane.xlu0 %6780  ;;  %v19201_v32 = vld [vmem:[#allocation164_spill] sm:$0xff]  ;;  %11717 = vpow2.f32 %v7070_v36  ;;  %v7074_v36 = vmul.f32 1.442695, %v6921_v11  ;;  %v19216_v11 = vld [vmem:[#allocation121_spill] sm:$0xff] }
 0x998   :  { %v7084_v49 = vmul.f32 1.442695, %v6926_v10  ;;  %v6923_v23 = vsub.f32 %v19216_v11, %v16278_v16  ;;  %v19220_v16 = vld [vmem:[#allocation167_spill] sm:$0xff] }
 0x999   :  { %7286 = vadd.xlane.f32.xlu1 %v16586_v4 }
 0x99a   :  { %7300 = vadd.xlane.f32.xlu0 %v16588_v61  ;;  %v16594_v6 = vpop.xlane.xlu1 %6766  ;;  %v6928_v61 = vsub.f32 %v19201_v32, %v19200_v28  ;;  %11719 = vpow2.f32 %v7084_v49  ;;  %v19206_v28 = vld [vmem:[#allocation99_spill] sm:$0xff] }
 0x99b   :  { %v16598_v24 = vpop.xlane.xlu0 %6812  ;;  %v19207_v32 = vld [vmem:[#allocation111_spill] sm:$0xff]  ;;  %v16630_v3 = vpop.eup %11711  ;;  %11721 = vpow2.f32 %v7042_v40  ;;  %v7046_v40 = vmul.f32 1.442695, %v6907_v5  ;;  %v6909_v5 = vsub.f32 %v19220_v16, %v16290_v62  ;;  %v19224_v62 = vld [vmem:[#allocation117_spill] sm:$0xff] }
 0x99c   :  { %v7088_v10 = vmul.f32 1.442695, %v6928_v61  ;;  %19209 = vst [vmem:[#allocation25_spill] sm:$0xff] %v16630_v3  ;;  %v16642_v47 = vpop.eup %11713 }
 0x99d   :  { %7318 = vadd.xlane.f32.xlu1 %v16600_v43  ;;  %19214 = vst [vmem:[#allocation39_spill] sm:$0xff] %v16642_v47 }
 0x99e   :  { %7332 = vadd.xlane.f32.xlu0 %v16602_v58  ;;  %v16608_v27 = vpop.xlane.xlu1 %6770  ;;  %v6944_v58 = vsub.f32 %v19207_v32, %v19206_v28  ;;  %11723 = vpow2.f32 %v7088_v10  ;;  %v19212_v28 = vld [vmem:[#allocation102_spill] sm:$0xff]  ;;  %v19213_v32 = vld [vmem:[#allocation135_spill] sm:$0xff] }
 0x99f   :  { %v16612_v4 = vpop.xlane.xlu0 %6784  ;;  %11725 = vpow2.f32 %v7074_v36  ;;  %v7078_v36 = vmul.f32 1.442695, %v6923_v23  ;;  %v6925_v23 = vsub.f32 %v19224_v62, %v16306_v17  ;;  %v19228_v17 = vld [vmem:[#allocation139_spill] sm:$0xff] }
 0x9a0   :  { %v7120_v61 = vmul.f32 1.442695, %v6944_v58  ;;  %v16644_v14 = vpop.eup %11715 }
 0x9a1   :  { %7290 = vadd.xlane.f32.xlu1 %v16614_v7  ;;  %19215 = vst [vmem:[#allocation157_spill] sm:$0xff] %v16644_v14 }
 0x9a2   :  { %7304 = vadd.xlane.f32.xlu0 %v16616_v1  ;;  %v16622_v39 = vpop.xlane.xlu1 %6802  ;;  %v6930_v1 = vsub.f32 %v19213_v32, %v19212_v28  ;;  %11727 = vpow2.f32 %v7120_v61  ;;  %v6946_v28 = vsub.f32 %v19217_v56, %v16282_v45  ;;  %v19221_v45 = vld [vmem:[#allocation138_spill] sm:$0xff] }
 0x9a3   :  { %v16626_v43 = vpop.xlane.xlu0 %6816  ;;  %11729 = vpow2.f32 %v7046_v40  ;;  %v6932_v11 = vsub.f32 %v19221_v45, %v16292_v22  ;;  %v7050_v40 = vmul.f32 1.442695, %v6909_v5  ;;  %v19225_v22 = vld [vmem:[#allocation168_spill] sm:$0xff]  ;;  %v6911_v5 = vsub.f32 %v19228_v17, %v16321_v30  ;;  %v19232_v30 = vld [vmem:[#allocation170_spill] sm:$0xff] }
 0x9a4   :  { %v7092_v58 = vmul.f32 1.442695, %v6930_v1  ;;  %v7124_v1 = vmul.f32 1.442695, %v6946_v28  ;;  %v6948_v16 = vsub.f32 %v19225_v22, %v16308_v53  ;;  %v19229_v53 = vld [vmem:[#allocation126_spill] sm:$0xff] }
 0x9a5   :  { %7322 = vadd.xlane.f32.xlu1 %v16628_v12  ;;  %v7096_v28 = vmul.f32 1.442695, %v6932_v11  ;;  %v6934_v62 = vsub.f32 %v19229_v53, %v16323_v9  ;;  %v19233_v9 = vld [vmem:[#allocation142_spill] sm:$0xff] }
 0x9a6   :  { %7336 = vadd.xlane.f32.xlu0 %v16630_v3  ;;  %v16636_v49 = vpop.xlane.xlu1 %6774  ;;  %v16656_v3 = vpop.eup %11717  ;;  %11731 = vpow2.f32 %v7092_v58  ;;  %v7128_v11 = vmul.f32 1.442695, %v6948_v16  ;;  %v6950_v17 = vsub.f32 %v19233_v9, %v16339_v13  ;;  %v19237_v13 = vld [vmem:[#allocation172_spill] sm:$0xff] }
 0x9a7   :  { %v16640_v7 = vpop.xlane.xlu0 %6788  ;;  %19218 = vst [vmem:[#allocation101_spill] sm:$0xff] %v16656_v3  ;;  %v16658_v12 = vpop.eup %11719  ;;  %11733 = vpow2.f32 %v7078_v36  ;;  %v7082_v36 = vmul.f32 1.442695, %v6925_v23  ;;  %v6927_v23 = vsub.f32 %v19232_v30, %v16337_v15  ;;  %v7100_v16 = vmul.f32 1.442695, %v6934_v62  ;;  %v19236_v15 = vld [vmem:[#allocation125_spill] sm:$0xff] }
 0x9a8   :  { %19219 = vst [vmem:[#allocation114_spill] sm:$0xff] %v16658_v12  ;;  %11735 = vpow2.f32 %v7124_v1  ;;  %v7132_v62 = vmul.f32 1.442695, %v6950_v17  ;;  %v6936_v30 = vsub.f32 %v19237_v13, %v16356_v2  ;;  %v19241_v2 = vld [vmem:[#allocation128_spill] sm:$0xff] }
 0x9a9   :  { %7294 = vadd.xlane.f32.xlu1 %v16642_v47  ;;  %11737 = vpow2.f32 %v7050_v40  ;;  %v7054_v40 = vmul.f32 1.442695, %v6911_v5  ;;  %v6929_v5 = vsub.f32 %v19236_v15, %v16352_v46  ;;  %v19240_v46 = vld [vmem:[#allocation143_spill] sm:$0xff]  ;;  %v6952_v15 = vsub.f32 %v19241_v2, %v16374_v19  ;;  %v19245_v19 = vld [vmem:[#allocation174_spill] sm:$0xff] }
 0x9aa   :  { %7308 = vadd.xlane.f32.xlu0 %v16644_v14  ;;  %v16650_v10 = vpop.xlane.xlu1 %6806  ;;  %v16670_v14 = vpop.eup %11721  ;;  %11739 = vpow2.f32 %v7096_v28  ;;  %v7104_v17 = vmul.f32 1.442695, %v6936_v30 }
 0x9ab   :  { %v16654_v32 = vpop.xlane.xlu0 %6820  ;;  %19222 = vst [vmem:[#allocation162_spill] sm:$0xff] %v16670_v14  ;;  %v16672_v47 = vpop.eup %11723  ;;  %11741 = vpow2.f32 %v7082_v36  ;;  %v7086_v36 = vmul.f32 1.442695, %v6927_v23  ;;  %v6945_v23 = vsub.f32 %v19240_v46, %v16370_v50  ;;  %v19244_v50 = vld [vmem:[#allocation82_spill] sm:$0xff]  ;;  %v7136_v30 = vmul.f32 1.442695, %v6952_v15 }
 0x9ac   :  { %19223 = vst [vmem:[#allocation36_spill] sm:$0xff] %v16672_v47  ;;  %11743 = vpow2.f32 %v7128_v11  ;;  %v6938_v46 = vsub.f32 %v19245_v19, %v16391_v34  ;;  %v19249_v34 = vld [vmem:[#allocation44_spill] sm:$0xff] }
 0x9ad   :  { %7326 = vadd.xlane.f32.xlu1 %v16656_v3  ;;  %11745 = vpow2.f32 %v7054_v40  ;;  %v7090_v40 = vmul.f32 1.442695, %v6929_v5  ;;  %v6931_v5 = vsub.f32 %v19244_v50, %v16387_v57  ;;  %v19248_v57 = vld [vmem:[#allocation146_spill] sm:$0xff]  ;;  %v6954_v50 = vsub.f32 %v19249_v34, %v16409_v8  ;;  %v19253_v8 = vld [vmem:[#allocation176_spill] sm:$0xff] }
 0x9ae   :  { %7340 = vadd.xlane.f32.xlu0 %v16658_v12  ;;  %v16664_v61 = vpop.xlane.xlu1 %6778  ;;  %v16684_v12 = vpop.eup %11725  ;;  %11747 = vpow2.f32 %v7100_v16  ;;  %v7108_v15 = vmul.f32 1.442695, %v6938_v46 }
 0x9af   :  { %v16668_v56 = vpop.xlane.xlu0 %6792  ;;  %19226 = vst [vmem:[#allocation24_spill] sm:$0xff] %v16684_v12  ;;  %v16686_v3 = vpop.eup %11727  ;;  %11749 = vpow2.f32 %v7086_v36  ;;  %v7122_v36 = vmul.f32 1.442695, %v6945_v23  ;;  %v6947_v23 = vsub.f32 %v19248_v57, %v16405_v18  ;;  %v19252_v18 = vld [vmem:[#allocation85_spill] sm:$0xff]  ;;  %v7140_v46 = vmul.f32 1.442695, %v6954_v50 }
 0x9b0   :  { %19227 = vst [vmem:[#allocation154_spill] sm:$0xff] %v16686_v3  ;;  %11751 = vpow2.f32 %v7132_v62  ;;  %v6940_v57 = vsub.f32 %v19253_v8, %v16426_v21  ;;  %v19257_v21 = vld [vmem:[#allocation47_spill] sm:$0xff] }
 0x9b1   :  { %7298 = vadd.xlane.f32.xlu1 %v16670_v14  ;;  %11753 = vpow2.f32 %v7090_v40  ;;  %v7094_v40 = vmul.f32 1.442695, %v6931_v5  ;;  %v6933_v5 = vsub.f32 %v19252_v18, %v16422_v60  ;;  %v19256_v60 = vld [vmem:[#allocation147_spill] sm:$0xff]  ;;  %v6956_v18 = vsub.f32 %v19257_v21, %v16441_v38 }
 0x9b2   :  { %7344 = vadd.xlane.f32.xlu0 %v16672_v47  ;;  %v16678_v58 = vpop.xlane.xlu1 %6810  ;;  %v16698_v47 = vpop.eup %11729  ;;  %11755 = vpow2.f32 %v7104_v17  ;;  %v7112_v50 = vmul.f32 1.442695, %v6940_v57  ;;  %v19261_v38 = vld [vmem:[#allocation19_spill] sm:$0xff] }
 0x9b3   :  { %v16682_v45 = vpop.xlane.xlu0 %6824  ;;  %19230 = vst [vmem:[#allocation37_spill] sm:$0xff] %v16698_v47  ;;  %v16700_v14 = vpop.eup %11731  ;;  %11757 = vpow2.f32 %v7122_v36  ;;  %v7126_v36 = vmul.f32 1.442695, %v6947_v23  ;;  %v6949_v23 = vsub.f32 %v19256_v60, %v16437_v31  ;;  %v19260_v31 = vld [vmem:[#allocation177_spill] sm:$0xff]  ;;  %v7144_v57 = vmul.f32 1.442695, %v6956_v18 }
 0x9b4   :  { %19231 = vst [vmem:[#allocation32_spill] sm:$0xff] %v16700_v14  ;;  %11759 = vpow2.f32 %v7136_v30  ;;  %v6942_v60 = vsub.f32 %v19261_v38, %v16456_v55  ;;  %v19265_v55 = vld [vmem:[#allocation46_spill] sm:$0xff] }
 0x9b5   :  { %7330 = vadd.xlane.f32.xlu1 %v16684_v12  ;;  %11761 = vpow2.f32 %v7094_v40  ;;  %v7098_v40 = vmul.f32 1.442695, %v6933_v5  ;;  %v6935_v5 = vsub.f32 %v19260_v31, %v16452_v59  ;;  %v19264_v59 = vld [vmem:[#allocation57_spill] sm:$0xff]  ;;  %v6958_v31 = vsub.f32 %v19265_v55, %v16471_v0 }
 0x9b6   :  { %7376 = vadd.xlane.f32.xlu0 %v16686_v3  ;;  %v16692_v1 = vpop.xlane.xlu1 %6782  ;;  %v16712_v3 = vpop.eup %11733  ;;  %11763 = vpow2.f32 %v7108_v15  ;;  %v7116_v18 = vmul.f32 1.442695, %v6942_v60  ;;  %v19269_v0 = vld [vmem:[#allocation149_spill] sm:$0xff] }
 0x9b7   :  { %v16696_v22 = vpop.xlane.xlu0 %6796  ;;  %19234 = vst [vmem:[#allocation159_spill] sm:$0xff] %v16712_v3  ;;  %v16714_v12 = vpop.eup %11735  ;;  %11765 = vpow2.f32 %v7126_v36  ;;  %v7130_v36 = vmul.f32 1.442695, %v6949_v23  ;;  %v6951_v23 = vsub.f32 %v19264_v59, %v16467_v26  ;;  %v19268_v26 = vld [vmem:[#allocation58_spill] sm:$0xff]  ;;  %v7148_v60 = vmul.f32 1.442695, %v6958_v31 }
 0x9b8   :  { %19235 = vst [vmem:[#allocation156_spill] sm:$0xff] %v16714_v12  ;;  %11767 = vpow2.f32 %v7140_v46  ;;  %v6960_v59 = vsub.f32 %v19269_v0, %v16488_v42  ;;  %v19273_v42 = vld [vmem:[#allocation28_spill] sm:$0xff] }
 0x9b9   :  { %7302 = vadd.xlane.f32.xlu1 %v16698_v47 }
 0x9ba   :  { %7348 = vadd.xlane.f32.xlu0 %v16700_v14  ;;  %v16706_v28 = vpop.xlane.xlu1 %6814  ;;  %v16726_v14 = vpop.eup %11737  ;;  %11769 = vpow2.f32 %v7098_v40  ;;  %v7102_v40 = vmul.f32 1.442695, %v6935_v5  ;;  %v6937_v5 = vsub.f32 %v19268_v26, %v16484_v51  ;;  %v19272_v51 = vld [vmem:[#allocation48_spill] sm:$0xff]  ;;  %v7152_v31 = vmul.f32 1.442695, %v6960_v59 }
 0x9bb   :  { %v16710_v53 = vpop.xlane.xlu0 %6828  ;;  %19238 = vst [vmem:[#allocation43_spill] sm:$0xff] %v16726_v14  ;;  %v16728_v47 = vpop.eup %11739  ;;  %11771 = vpow2.f32 %v7112_v50  ;;  %v6976_v26 = vsub.f32 %v19273_v42, %v16505_v52  ;;  %v19277_v52 = vld [vmem:[#allocation153_spill] sm:$0xff] }
 0x9bc   :  { %19239 = vst [vmem:[#allocation178_spill] sm:$0xff] %v16728_v47 }
 0x9bd   :  { %7334 = vadd.xlane.f32.xlu1 %v16712_v3  ;;  %v7184_v59 = vmul.f32 1.442695, %v6976_v26 }
 0x9be   :  { %7380 = vadd.xlane.f32.xlu0 %v16714_v12  ;;  %v16720_v11 = vpop.xlane.xlu1 %6786  ;;  %v16740_v12 = vpop.eup %11741  ;;  %11773 = vpow2.f32 %v7130_v36  ;;  %v7134_v36 = vmul.f32 1.442695, %v6951_v23  ;;  %v6953_v23 = vsub.f32 %v19272_v51, %v16501_v25  ;;  %v19276_v25 = vld [vmem:[#allocation50_spill] sm:$0xff]  ;;  %v6962_v51 = vsub.f32 %v19277_v52, %v16522_v44 }
 0x9bf   :  { %v16724_v9 = vpop.xlane.xlu0 %6832  ;;  %19242 = vst [vmem:[#allocation161_spill] sm:$0xff] %v16740_v12  ;;  %v16742_v3 = vpop.eup %11743  ;;  %11775 = vpow2.f32 %v7144_v57  ;;  %v19281_v44 = vld [vmem:[#allocation62_spill] sm:$0xff] }
 0x9c0   :  { %19243 = vst [vmem:[#allocation83_spill] sm:$0xff] %v16742_v3  ;;  %v7156_v26 = vmul.f32 1.442695, %v6962_v51 }
 0x9c1   :  { %7306 = vadd.xlane.f32.xlu1 %v16726_v14 }
 0x9c2   :  { %7352 = vadd.xlane.f32.xlu0 %v16728_v47  ;;  %v16734_v16 = vpop.xlane.xlu1 %6818  ;;  %v16754_v47 = vpop.eup %11745  ;;  %11777 = vpow2.f32 %v7102_v40  ;;  %v7106_v40 = vmul.f32 1.442695, %v6937_v5  ;;  %v6939_v5 = vsub.f32 %v19276_v25, %v16518_v33  ;;  %v19280_v33 = vld [vmem:[#allocation34_spill] sm:$0xff]  ;;  %v6978_v25 = vsub.f32 %v19281_v44, %v16539_v41  ;;  %v19285_v41 = vld [vmem:[#allocation51_spill] sm:$0xff] }
 0x9c3   :  { %v16738_v13 = vpop.xlane.xlu0 %6864  ;;  %19246 = vst [vmem:[#allocation158_spill] sm:$0xff] %v16754_v47  ;;  %v16756_v14 = vpop.eup %11747  ;;  %11779 = vpow2.f32 %v7116_v18 }
 0x9c4   :  { %19247 = vst [vmem:[#allocation84_spill] sm:$0xff] %v16756_v14  ;;  %v7188_v51 = vmul.f32 1.442695, %v6978_v25 }
 0x9c5   :  { %7338 = vadd.xlane.f32.xlu1 %v16740_v12 }
 0x9c6   :  { %7384 = vadd.xlane.f32.xlu0 %v16742_v3  ;;  %v16748_v62 = vpop.xlane.xlu1 %6790  ;;  %v16768_v3 = vpop.eup %11749  ;;  %11781 = vpow2.f32 %v7134_v36  ;;  %v7138_v36 = vmul.f32 1.442695, %v6953_v23  ;;  %v6955_v23 = vsub.f32 %v19280_v33, %v16535_v54  ;;  %v19284_v54 = vld [vmem:[#allocation65_spill] sm:$0xff]  ;;  %v6964_v33 = vsub.f32 %v19285_v41, %v16556_v37  ;;  %v19289_v37 = vld [vmem:[#allocation67_spill] sm:$0xff] }
 0x9c7   :  { %v16752_v2 = vpop.xlane.xlu0 %6836  ;;  %19250 = vst [vmem:[#allocation106_spill] sm:$0xff] %v16768_v3  ;;  %v16770_v12 = vpop.eup %11751  ;;  %11783 = vpow2.f32 %v7148_v60 }
 0x9c8   :  { %19251 = vst [vmem:[#allocation18_spill] sm:$0xff] %v16770_v12  ;;  %v7160_v25 = vmul.f32 1.442695, %v6964_v33 }
 0x9c9   :  { %7310 = vadd.xlane.f32.xlu1 %v16754_v47 }
 0x9ca   :  { %7356 = vadd.xlane.f32.xlu0 %v16756_v14  ;;  %v16762_v17 = vpop.xlane.xlu1 %6822  ;;  %v16782_v14 = vpop.eup %11753  ;;  %11785 = vpow2.f32 %v7106_v40  ;;  %v7110_v40 = vmul.f32 1.442695, %v6939_v5  ;;  %v6941_v5 = vsub.f32 %v19284_v54, %v16552_v48  ;;  %v19288_v48 = vld [vmem:[#allocation52_spill] sm:$0xff]  ;;  %v6980_v54 = vsub.f32 %v19289_v37, %v16570_v29  ;;  %v19293_v29 = vld [vmem:[#allocation53_spill] sm:$0xff] }
 0x9cb   :  { %v16766_v19 = vpop.xlane.xlu0 %6868  ;;  %19254 = vst [vmem:[#allocation160_spill] sm:$0xff] %v16782_v14  ;;  %v16784_v47 = vpop.eup %11755  ;;  %11787 = vpow2.f32 %v7152_v31 }
 0x9cc   :  { %19255 = vst [vmem:[#allocation89_spill] sm:$0xff] %v16784_v47  ;;  %v7192_v33 = vmul.f32 1.442695, %v6980_v54 }
 0x9cd   :  { %7342 = vadd.xlane.f32.xlu1 %v16768_v3 }
 0x9ce   :  { %7388 = vadd.xlane.f32.xlu0 %v16770_v12  ;;  %v16776_v30 = vpop.xlane.xlu1 %6794  ;;  %v16796_v12 = vpop.eup %11757  ;;  %11789 = vpow2.f32 %v7138_v36  ;;  %v7142_v36 = vmul.f32 1.442695, %v6955_v23  ;;  %v6957_v23 = vsub.f32 %v19288_v48, %v16566_v35  ;;  %v19292_v35 = vld [vmem:[#allocation69_spill] sm:$0xff]  ;;  %v6966_v48 = vsub.f32 %v19293_v29, %v16584_v63  ;;  %v19297_v63 = vld [vmem:[#allocation71_spill] sm:$0xff] }
 0x9cf   :  { %v16780_v34 = vpop.xlane.xlu0 %6840  ;;  %19258 = vst [vmem:[#allocation163_spill] sm:$0xff] %v16796_v12  ;;  %v16798_v3 = vpop.eup %11759  ;;  %11791 = vpow2.f32 %v7184_v59 }
 0x9d0   :  { %19259 = vst [vmem:[#allocation92_spill] sm:$0xff] %v16798_v3  ;;  %v7164_v54 = vmul.f32 1.442695, %v6966_v48 }
 0x9d1   :  { %7346 = vadd.xlane.f32.xlu1 %v16782_v14 }
 0x9d2   :  { %7360 = vadd.xlane.f32.xlu0 %v16784_v47  ;;  %v16790_v15 = vpop.xlane.xlu1 %6826  ;;  %v16810_v47 = vpop.eup %11761  ;;  %11793 = vpow2.f32 %v7110_v40  ;;  %v7114_v40 = vmul.f32 1.442695, %v6941_v5  ;;  %v6943_v5 = vsub.f32 %v19292_v35, %v16580_v20  ;;  %v19296_v20 = vld [vmem:[#allocation55_spill] sm:$0xff]  ;;  %v6982_v35 = vsub.f32 %v19297_v63, %v16598_v24  ;;  %v19301_v24 = vld [vmem:[#allocation72_spill] sm:$0xff] }
 0x9d3   :  { %v16794_v8 = vpop.xlane.xlu0 %6872  ;;  %19262 = vst [vmem:[#allocation42_spill] sm:$0xff] %v16810_v47  ;;  %v16812_v14 = vpop.eup %11763  ;;  %11795 = vpow2.f32 %v7156_v26 }
 0x9d4   :  { %19263 = vst [vmem:[#allocation93_spill] sm:$0xff] %v16812_v14  ;;  %v7196_v48 = vmul.f32 1.442695, %v6982_v35 }
 0x9d5   :  { %7378 = vadd.xlane.f32.xlu1 %v16796_v12 }
 0x9d6   :  { %7392 = vadd.xlane.f32.xlu0 %v16798_v3  ;;  %v16804_v46 = vpop.xlane.xlu1 %6798  ;;  %v16824_v3 = vpop.eup %11765  ;;  %11797 = vpow2.f32 %v7142_v36  ;;  %v7146_v36 = vmul.f32 1.442695, %v6957_v23  ;;  %v6959_v23 = vsub.f32 %v19296_v20, %v16594_v6  ;;  %v19300_v6 = vld [vmem:[#allocation56_spill] sm:$0xff]  ;;  %v6968_v20 = vsub.f32 %v19301_v24, %v16612_v4  ;;  %v19305_v4 = vld [vmem:[#allocation74_spill] sm:$0xff] }
 0x9d7   :  { %v16808_v21 = vpop.xlane.xlu0 %6844  ;;  %19266 = vst [vmem:[#allocation118_spill] sm:$0xff] %v16824_v3  ;;  %v16826_v12 = vpop.eup %11767  ;;  %11799 = vpow2.f32 %v7188_v51 }
 0x9d8   :  { %19267 = vst [vmem:[#allocation91_spill] sm:$0xff] %v16826_v12  ;;  %v7168_v35 = vmul.f32 1.442695, %v6968_v20 }
 0x9d9   :  { %7350 = vadd.xlane.f32.xlu1 %v16810_v47 }
 0x9da   :  { %7364 = vadd.xlane.f32.xlu0 %v16812_v14  ;;  %v16818_v50 = vpop.xlane.xlu1 %6830  ;;  %v16838_v14 = vpop.eup %11769  ;;  %11801 = vpow2.f32 %v7114_v40  ;;  %v7118_v40 = vmul.f32 1.442695, %v6943_v5  ;;  %v6961_v5 = vsub.f32 %v19300_v6, %v16608_v27  ;;  %v19304_v27 = vld [vmem:[#allocation151_spill] sm:$0xff]  ;;  %v6984_v6 = vsub.f32 %v19305_v4, %v16626_v43  ;;  %v19310_v43 = vld [vmem:[#allocation76_spill] sm:$0xff] }
 0x9db   :  { %v16822_v38 = vpop.xlane.xlu0 %6876  ;;  %19270 = vst [vmem:[#allocation131_spill] sm:$0xff] %v16838_v14  ;;  %v16840_v47 = vpop.eup %11771  ;;  %11803 = vpow2.f32 %v7160_v25 }
 0x9dc   :  { %19271 = vst [vmem:[#allocation96_spill] sm:$0xff] %v16840_v47  ;;  %v7200_v20 = vmul.f32 1.442695, %v6984_v6 }
 0x9dd   :  { %7382 = vadd.xlane.f32.xlu1 %v16824_v3 }
 0x9de   :  { %7396 = vadd.xlane.f32.xlu0 %v16826_v12  ;;  %v16832_v57 = vpop.xlane.xlu1 %6834  ;;  %v16852_v12 = vpop.eup %11773  ;;  %11805 = vpow2.f32 %v7146_v36  ;;  %v7150_v36 = vmul.f32 1.442695, %v6959_v23  ;;  %v6977_v23 = vsub.f32 %v19304_v27, %v16622_v39  ;;  %v19308_v39 = vld [vmem:[#allocation60_spill] sm:$0xff]  ;;  %v6970_v27 = vsub.f32 %v19310_v43, %v16640_v7  ;;  %v19315_v43 = vld [vmem:[#allocation63_spill] sm:$0xff] }
 0x9df   :  { %v16836_v55 = vpop.xlane.xlu0 %6848  ;;  %19274 = vst [vmem:[#allocation164_spill] sm:$0xff] %v16852_v12  ;;  %v16854_v3 = vpop.eup %11775  ;;  %11807 = vpow2.f32 %v7192_v33 }
 0x9e0   :  { %19275 = vst [vmem:[#allocation104_spill] sm:$0xff] %v16854_v3  ;;  %v7172_v7 = vmul.f32 1.442695, %v6970_v27  ;;  %v19319_v27 = vld [vmem:[#allocation68_spill] sm:$0xff] }
 0x9e1   :  { %7354 = vadd.xlane.f32.xlu1 %v16838_v14 }
 0x9e2   :  { %7368 = vadd.xlane.f32.xlu0 %v16840_v47  ;;  %v16846_v18 = vpop.xlane.xlu1 %6866  ;;  %v16866_v47 = vpop.eup %11777  ;;  %11809 = vpow2.f32 %v7118_v40  ;;  %v7154_v40 = vmul.f32 1.442695, %v6961_v5  ;;  %v6963_v5 = vsub.f32 %v19308_v39, %v16636_v49  ;;  %v19314_v39 = vld [vmem:[#allocation78_spill] sm:$0xff] }
 0x9e3   :  { %v16850_v0 = vpop.xlane.xlu0 %6880  ;;  %19278 = vst [vmem:[#allocation132_spill] sm:$0xff] %v16866_v47  ;;  %v16868_v14 = vpop.eup %11779  ;;  %11811 = vpow2.f32 %v7164_v54 }
 0x9e4   :  { %19279 = vst [vmem:[#allocation99_spill] sm:$0xff] %v16868_v14  ;;  %v7158_v49 = vmul.f32 1.442695, %v6963_v5 }
 0x9e5   :  { %7386 = vadd.xlane.f32.xlu1 %v16852_v12 }
 0x9e6   :  { %7400 = vadd.xlane.f32.xlu0 %v16854_v3  ;;  %v16860_v60 = vpop.xlane.xlu1 %6838  ;;  %v16880_v3 = vpop.eup %11781  ;;  %11813 = vpow2.f32 %v7150_v36  ;;  %v7186_v36 = vmul.f32 1.442695, %v6977_v23 }
 0x9e7   :  { %v16864_v42 = vpop.xlane.xlu0 %6852  ;;  %19282 = vst [vmem:[#allocation111_spill] sm:$0xff] %v16880_v3  ;;  %v16882_v12 = vpop.eup %11783  ;;  %11815 = vpow2.f32 %v7196_v48 }
 0x9e8   :  { %19283 = vst [vmem:[#allocation107_spill] sm:$0xff] %v16882_v12 }
 0x9e9   :  { %7358 = vadd.xlane.f32.xlu1 %v16866_v47 }
 0x9ea   :  { %7372 = vadd.xlane.f32.xlu0 %v16868_v14  ;;  %v16874_v31 = vpop.xlane.xlu1 %6870  ;;  %v16894_v14 = vpop.eup %11785  ;;  %11817 = vpow2.f32 %v7154_v40  ;;  %v19313_v40 = vld [vmem:[#allocation61_spill] sm:$0xff] }
 0x9eb   :  { %v16878_v52 = vpop.xlane.xlu0 %6884  ;;  %19286 = vst [vmem:[#allocation165_spill] sm:$0xff] %v16894_v14  ;;  %v16896_v47 = vpop.eup %11787  ;;  %11819 = vpow2.f32 %v7168_v35  ;;  %v6979_v23 = vsub.f32 %v19313_v40, %v16650_v10  ;;  %v6986_v35 = vsub.f32 %v19314_v39, %v16654_v32  ;;  %v19316_v10 = vld [vmem:[#allocation80_spill] sm:$0xff]  ;;  %v19318_v32 = vld [vmem:[#allocation66_spill] sm:$0xff] }
 0x9ec   :  { %19287 = vst [vmem:[#allocation102_spill] sm:$0xff] %v16896_v47  ;;  %v6981_v39 = vsub.f32 %v19318_v32, %v16678_v58 }
 0x9ed   :  { %7390 = vadd.xlane.f32.xlu1 %v16880_v3  ;;  %v7190_v40 = vmul.f32 1.442695, %v6979_v23 }
 0x9ee   :  { %7404 = vadd.xlane.f32.xlu0 %v16882_v12  ;;  %v16888_v59 = vpop.xlane.xlu1 %6842  ;;  %v16908_v12 = vpop.eup %11789  ;;  %11821 = vpow2.f32 %v7186_v36  ;;  %v6972_v36 = vsub.f32 %v19316_v10, %v16668_v56  ;;  %v19320_v56 = vld [vmem:[#allocation86_spill] sm:$0xff] }
 0x9ef   :  { %v16892_v44 = vpop.xlane.xlu0 %6856  ;;  %19290 = vst [vmem:[#allocation135_spill] sm:$0xff] %v16908_v12  ;;  %v16910_v3 = vpop.eup %11791  ;;  %11823 = vpow2.f32 %v7200_v20  ;;  %v7204_v20 = vmul.f32 1.442695, %v6986_v35  ;;  %v6967_v10 = vsub.f32 %v19320_v56, %v16692_v1  ;;  %v19324_v1 = vld [vmem:[#allocation75_spill] sm:$0xff]  ;;  %v19325_v56 = vld [vmem:[#allocation77_spill] sm:$0xff] }
 0x9f0   :  { %19291 = vst [vmem:[#allocation121_spill] sm:$0xff] %v16910_v3  ;;  %v7176_v58 = vmul.f32 1.442695, %v6972_v36 }
 0x9f1   :  { %7362 = vadd.xlane.f32.xlu1 %v16894_v14 }
 0x9f2   :  { %7408 = vadd.xlane.f32.xlu0 %v16896_v47  ;;  %v16902_v26 = vpop.xlane.xlu1 %6874  ;;  %v16922_v47 = vpop.eup %11793  ;;  %11825 = vpow2.f32 %v7158_v49  ;;  %v19321_v49 = vld [vmem:[#allocation70_spill] sm:$0xff] }
 0x9f3   :  { %v16906_v41 = vpop.xlane.xlu0 %6888  ;;  %19294 = vst [vmem:[#allocation166_spill] sm:$0xff] %v16922_v47  ;;  %v16924_v14 = vpop.eup %11795  ;;  %11827 = vpow2.f32 %v7172_v7  ;;  %v6974_v35 = vsub.f32 %v19321_v49, %v16696_v22  ;;  %v6990_v7 = vsub.f32 %v19324_v1, %v16710_v53  ;;  %v7166_v22 = vmul.f32 1.442695, %v6967_v10  ;;  %v19328_v1 = vld [vmem:[#allocation81_spill] sm:$0xff] }
 0x9f4   :  { %19295 = vst [vmem:[#allocation167_spill] sm:$0xff] %v16924_v14 }
 0x9f5   :  { %7394 = vadd.xlane.f32.xlu1 %v16908_v12 }
 0x9f6   :  { %7440 = vadd.xlane.f32.xlu0 %v16910_v3  ;;  %v16916_v51 = vpop.xlane.xlu1 %6846  ;;  %v16936_v3 = vpop.eup %11797  ;;  %11829 = vpow2.f32 %v7190_v40  ;;  %v6969_v40 = vsub.f32 %v19325_v56, %v16720_v11  ;;  %v7212_v11 = vmul.f32 1.442695, %v6990_v7  ;;  %v19331_v7 = vld [vmem:[#allocation87_spill] sm:$0xff] }
 0x9f7   :  { %v16920_v37 = vpop.xlane.xlu0 %6860  ;;  %19298 = vst [vmem:[#allocation138_spill] sm:$0xff] %v16936_v3  ;;  %v16938_v12 = vpop.eup %11799  ;;  %11831 = vpow2.f32 %v7204_v20  ;;  %v19326_v20 = vld [vmem:[#allocation79_spill] sm:$0xff] }
 0x9f8   :  { %19299 = vst [vmem:[#allocation117_spill] sm:$0xff] %v16938_v12 }
 0x9f9   :  { %7366 = vadd.xlane.f32.xlu1 %v16922_v47 }
 0x9fa   :  { %7412 = vadd.xlane.f32.xlu0 %v16924_v14  ;;  %v16930_v25 = vpop.xlane.xlu1 %6878  ;;  %v16950_v14 = vpop.eup %11801 }
 0x9fb   :  { %v16934_v29 = vpop.xlane.xlu0 %6892  ;;  %19302 = vst [vmem:[#allocation168_spill] sm:$0xff] %v16950_v14  ;;  %v16952_v47 = vpop.eup %11803 }
 0x9fc   :  { %19303 = vst [vmem:[#allocation139_spill] sm:$0xff] %v16952_v47 }
 0x9fd   :  { %7398 = vadd.xlane.f32.xlu1 %v16936_v3 }
 0x9fe   :  { %7444 = vadd.xlane.f32.xlu0 %v16938_v12  ;;  %v16944_v33 = vpop.xlane.xlu1 %6850  ;;  %v16964_v12 = vpop.eup %11805 }
 0x9ff   :  { %v16948_v63 = vpop.xlane.xlu0 %7280  ;;  %19306 = vst [vmem:[#allocation126_spill] sm:$0xff] %v16964_v12  ;;  %v16966_v3 = vpop.eup %11807 }
 0xa00   :  { %19307 = vst [vmem:[#allocation170_spill] sm:$0xff] %v16966_v3 }
 0xa01   :  { %7370 = vadd.xlane.f32.xlu1 %v16950_v14 }
 0xa02   :  { %7416 = vadd.xlane.f32.xlu0 %v16952_v47  ;;  %v16958_v54 = vpop.xlane.xlu1 %6882  ;;  %v16978_v47 = vpop.eup %11809 }
 0xa03   :  { %v16962_v24 = vpop.xlane.xlu0 %7312  ;;  %19311 = vst [vmem:[#allocation125_spill] sm:$0xff] %v16978_v47  ;;  %v16980_v14 = vpop.eup %11811 }
 0xa04   :  { %19312 = vst [vmem:[#allocation172_spill] sm:$0xff] %v16980_v14 }
 0xa05   :  { %7402 = vadd.xlane.f32.xlu1 %v16964_v12 }
 0xa06   :  { %7448 = vadd.xlane.f32.xlu0 %v16966_v3  ;;  %v16972_v48 = vpop.xlane.xlu1 %6854  ;;  %v6965_v3 = vsub.f32 %v19315_v43, %v16664_v61  ;;  %v6988_v61 = vsub.f32 %v19319_v27, %v16682_v45  ;;  %v7194_v45 = vmul.f32 1.442695, %v6981_v39  ;;  %v19323_v27 = vld [vmem:[#allocation73_spill] sm:$0xff] }
 0xa07   :  { %19309 = vst [vmem:[#allocation142_spill] sm:$0xff] %v16972_v48  ;;  %v16976_v4 = vpop.xlane.xlu0 %7284  ;;  %v16994_v48 = vpop.eup %11813 }
 0xa08   :  { %v16998_v5 = vpop.eup %11815 }
 0xa09   :  { %7374 = vadd.xlane.f32.xlu1 %v16978_v47  ;;  %19317 = vst [vmem:[#allocation143_spill] sm:$0xff] %v16998_v5  ;;  %v17012_v47 = vpop.eup %11817 }
 0xa0a   :  { %7420 = vadd.xlane.f32.xlu0 %v16980_v14  ;;  %v16988_v6 = vpop.xlane.xlu1 %6886  ;;  %v7162_v14 = vmul.f32 1.442695, %v6965_v3  ;;  %v17016_v32 = vpop.eup %11819  ;;  %v7208_v3 = vmul.f32 1.442695, %v6988_v61  ;;  %v6992_v61 = vsub.f32 %v19326_v20, %v16724_v9 }
 0xa0b   :  { %v16992_v12 = vpop.xlane.xlu0 %7316  ;;  %19322 = vst [vmem:[#allocation128_spill] sm:$0xff] %v17016_v32  ;;  %v17030_v49 = vpop.eup %11821 }
 0xa0c   :  { %11833 = vpow2.f32 %v7162_v14  ;;  %v6985_v14 = vsub.f32 %v19328_v1, %v16734_v16 }
 0xa0d   :  { %7406 = vadd.xlane.f32.xlu1 %v16994_v48  ;;  %11835 = vpow2.f32 %v7176_v58  ;;  %v7170_v58 = vmul.f32 1.442695, %v6969_v40 }
 0xa0e   :  { %7452 = vadd.xlane.f32.xlu0 %v16998_v5  ;;  %v17006_v43 = vpop.xlane.xlu1 %6858  ;;  %v6983_v5 = vsub.f32 %v19323_v27, %v16706_v28  ;;  %v7180_v28 = vmul.f32 1.442695, %v6974_v35  ;;  %v17034_v27 = vpop.eup %11823  ;;  %11837 = vpow2.f32 %v7194_v45  ;;  %v19329_v35 = vld [vmem:[#allocation95_spill] sm:$0xff] }
 0xa0f   :  { %v17010_v23 = vpop.xlane.xlu0 %7288  ;;  %19327 = vst [vmem:[#allocation82_spill] sm:$0xff] %v17034_v27  ;;  %11839 = vpow2.f32 %v7208_v3  ;;  %v7008_v9 = vsub.f32 %v19329_v35, %v16738_v13  ;;  %v17046_v45 = vpop.eup %11825  ;;  %v7202_v3 = vmul.f32 1.442695, %v6985_v14  ;;  %v19336_v35 = vld [vmem:[#allocation90_spill] sm:$0xff] }
 0xa10   :  { %v7198_v53 = vmul.f32 1.442695, %v6983_v5  ;;  %11841 = vpow2.f32 %v7166_v22  ;;  %v7216_v5 = vmul.f32 1.442695, %v6992_v61  ;;  %v17048_v16 = vpop.eup %11827  ;;  %v6971_v22 = vsub.f32 %v19331_v7, %v16748_v62 }
 0xa11   :  { %7410 = vadd.xlane.f32.xlu1 %v17012_v47  ;;  %11843 = vpow2.f32 %v7180_v28  ;;  %19330 = vst [vmem:[#allocation174_spill] sm:$0xff] %v17048_v16  ;;  %v17056_v13 = vpop.eup %11829  ;;  %v7248_v20 = vmul.f32 1.442695, %v7008_v9 }
 0xa12   :  { %7424 = vadd.xlane.f32.xlu0 %v17016_v32  ;;  %v17024_v36 = vpop.xlane.xlu1 %6890  ;;  %11845 = vpow2.f32 %v7198_v53  ;;  %v17060_v61 = vpop.eup %11831  ;;  %v19333_v53 = vld [vmem:[#allocation88_spill] sm:$0xff] }
 0xa13   :  { %v17028_v39 = vpop.xlane.xlu0 %7320  ;;  %11847 = vpow2.f32 %v7212_v11  ;;  %19332 = vst [vmem:[#allocation146_spill] sm:$0xff] %v17060_v61  ;;  %v6994_v1 = vsub.f32 %v19333_v53, %v16752_v2  ;;  %v7174_v11 = vmul.f32 1.442695, %v6971_v22  ;;  %v19339_v53 = vld [vmem:[#allocation94_spill] sm:$0xff] }
 0xa14   :  { %11849 = vpow2.f32 %v7170_v58  ;;  %v6987_v58 = vsub.f32 %v19336_v35, %v16762_v17 }
 0xa15   :  { %7442 = vadd.xlane.f32.xlu1 %v17030_v49  ;;  %11851 = vpow2.f32 %v7216_v5 }
 0xa16   :  { %7456 = vadd.xlane.f32.xlu0 %v17034_v27  ;;  %v17040_v10 = vpop.xlane.xlu1 %6862  ;;  %v17064_v14 = vpop.eup %11833  ;;  %11853 = vpow2.f32 %v7202_v3  ;;  %v7220_v3 = vmul.f32 1.442695, %v6994_v1 }
 0xa17   :  { %v17044_v56 = vpop.xlane.xlu0 %7292  ;;  %19334 = vst [vmem:[#allocation44_spill] sm:$0xff] %v17064_v14  ;;  %v17067_v62 = vpop.eup %11835  ;;  %11855 = vrcp.f32 %v16948_v63  ;;  %v7206_v63 = vmul.f32 1.442695, %v6987_v58 }
 0xa18   :  { %19335 = vst [vmem:[#allocation85_spill] sm:$0xff] %v17067_v62  ;;  %v17073_v5 = vpop.eup %11837  ;;  %11857 = vpow2.f32 %v7248_v20  ;;  %v19342_v20 = vld [vmem:[#allocation97_spill] sm:$0xff] }
 0xa19   :  { %7414 = vadd.xlane.f32.xlu1 %v17046_v45  ;;  %19337 = vst [vmem:[#allocation176_spill] sm:$0xff] %v17073_v5  ;;  %v17077_v7 = vpop.eup %11839  ;;  %v6973_v35 = vsub.f32 %v19342_v20, %v16776_v30  ;;  %v19346_v20 = vld [vmem:[#allocation21_spill] sm:$0xff] }
 0xa1a   :  { %7428 = vadd.xlane.f32.xlu0 %v17048_v16  ;;  %v17054_v40 = vpop.xlane.xlu1 %6894  ;;  %19338 = vst [vmem:[#allocation147_spill] sm:$0xff] %v17077_v7  ;;  %v7010_v16 = vsub.f32 %v19339_v53, %v16766_v19  ;;  %v17081_v22 = vpop.eup %11841  ;;  %v19344_v53 = vld [vmem:[#allocation98_spill] sm:$0xff] }
 0xa1b   :  { %v17058_v28 = vpop.xlane.xlu0 %7324  ;;  %19340 = vst [vmem:[#allocation47_spill] sm:$0xff] %v17081_v22  ;;  %v17085_v17 = vpop.eup %11843  ;;  %v6996_v27 = vsub.f32 %v19344_v53, %v16780_v34  ;;  %v7178_v58 = vmul.f32 1.442695, %v6973_v35 }
 0xa1c   :  { %19341 = vst [vmem:[#allocation177_spill] sm:$0xff] %v17085_v17 }
 0xa1d   :  { %7446 = vadd.xlane.f32.xlu1 %v17056_v13 }
 0xa1e   :  { %7460 = vadd.xlane.f32.xlu0 %v17060_v61  ;;  %v7283_v9 = vpop.xlane.xlu1 %7282  ;;  %v17090_v61 = vpop.eup %11845 }
 0xa1f   :  { %v17075_v2 = vpop.xlane.xlu0 %7296  ;;  %11859 = vrcp.f32 %v7283_v9  ;;  %v17094_v9 = vpop.eup %11847 }
 0xa20   :  { %11861 = vrcp.f32 %v16962_v24  ;;  %19343 = vst [vmem:[#allocation19_spill] sm:$0xff] %v17094_v9  ;;  %v7252_v24 = vmul.f32 1.442695, %v7010_v16 }
 0xa21   :  { %7418 = vadd.xlane.f32.xlu1 %v17064_v14  ;;  %11863 = vpow2.f32 %v7174_v11  ;;  %v17098_v11 = vpop.eup %11849 }
 0xa22   :  { %7432 = vadd.xlane.f32.xlu0 %v17067_v62  ;;  %v7315_v1 = vpop.xlane.xlu1 %7314  ;;  %v17102_v30 = vpop.eup %11851  ;;  %v19347_v62 = vld [vmem:[#allocation105_spill] sm:$0xff] }
 0xa23   :  { %11865 = vrcp.f32 %v7315_v1  ;;  %v17092_v19 = vpop.xlane.xlu0 %7328  ;;  %19345 = vst [vmem:[#allocation57_spill] sm:$0xff] %v17102_v30  ;;  %v6989_v1 = vsub.f32 %v19346_v20, %v16790_v15  ;;  %v17107_v16 = vpop.eup %11853  ;;  %v7012_v32 = vsub.f32 %v19347_v62, %v16794_v8 }
 0xa24   :  { %11867 = vpow2.f32 %v7220_v3  ;;  %v11856_v53 = vpop.eup %11855 }
 0xa25   :  { %11869 = vrcp.f32 %v16976_v4  ;;  %7450 = vadd.xlane.f32.xlu1 %v17073_v5  ;;  %v7224_v4 = vmul.f32 1.442695, %v6996_v27  ;;  %v17113_v5 = vpop.eup %11857  ;;  %v19348_v27 = vld [vmem:[#allocation145_spill] sm:$0xff] }
 0xa26   :  { %11871 = vpow2.f32 %v7206_v63  ;;  %7464 = vadd.xlane.f32.xlu0 %v17077_v7  ;;  %v7287_v3 = vpop.xlane.xlu1 %7286  ;;  %v7210_v63 = vmul.f32 1.442695, %v6989_v1  ;;  %v19349_v7 = vld [vmem:[#allocation38_spill] sm:$0xff] }
 0xa27   :  { %11873 = vrcp.f32 %v7287_v3  ;;  %v17109_v34 = vpop.xlane.xlu0 %7300 }
 0xa28   :  { %11875 = vpow2.f32 %v7252_v24  ;;  %v7664_v24 = vmul.f32 %v11856_v53, %v19348_v27  ;;  %v19351_v53 = vld [vmem:[#allocation108_spill] sm:$0xff] }
 0xa29   :  { %11877 = vrcp.f32 %v16992_v12  ;;  %7422 = vadd.xlane.f32.xlu1 %v17081_v22  ;;  %v11860_v15 = vpop.eup %11859  ;;  %v7256_v12 = vmul.f32 1.442695, %v7012_v32  ;;  %v19350_v22 = vld [vmem:[#allocation100_spill] sm:$0xff]  ;;  %v6998_v27 = vsub.f32 %v19351_v53, %v16808_v21  ;;  %v19355_v53 = vmov 0.0|0.0  }
 0xa2a   :  { %11879 = vpow2.f32 %v7178_v58  ;;  %7436 = vadd.xlane.f32.xlu0 %v17085_v17  ;;  %v7319_v35 = vpop.xlane.xlu1 %7318  ;;  %v11862_v20 = vpop.eup %11861  ;;  %v7665_v8 = vmul.f32 %v11860_v15, %v19349_v7  ;;  %v6975_v14 = vsub.f32 %v19350_v22, %v16804_v46  ;;  %v19353_v15 = vld [vmem:[#allocation59_spill] sm:$0xff] }
 0xa2b   :  { %11881 = vrcp.f32 %v7319_v35  ;;  %v17118_v3 = vpop.xlane.xlu0 %7332  ;;  %v17122_v62 = vpop.eup %11863 }
 0xa2c   :  { %11883 = vpow2.f32 %v7224_v4  ;;  %v10959_v1 = vpack.c.bf16 %v7665_v8, %v7664_v24  ;;  %v19352_v4 = vld [vmem:[#allocation148_spill] sm:$0xff]  ;;  %v7182_v24 = vmul.f32 1.442695, %v6975_v14 }
 0xa2d   :  { %v11866_v58 = vpop.eup %11865  ;;  %11885 = vrcp.f32 %v17010_v23  ;;  %7454 = vadd.xlane.f32.xlu1 %v17090_v61  ;;  %v7680_v32 = vmul.f32 %v11862_v20, %v19352_v4 }
 0xa2e   :  { %v17128_v35 = vpop.eup %11867  ;;  %11887 = vpow2.f32 %v7210_v63  ;;  %7468 = vadd.xlane.f32.xlu0 %v17094_v9  ;;  %v7291_v7 = vpop.xlane.xlu1 %7290  ;;  %v7681_v17 = vmul.f32 %v11866_v58, %v19353_v15  ;;  %10960 = vmatpush3.bf16.xpose.msra.mxu1 %v10959_v1  ;;  %v19354_v63 = vld [vmem:[#allocation103_spill] sm:$0xff]  ;;  %v7228_v58 = vmul.f32 1.442695, %v6998_v27  ;;  %v19356_v1 = vld [vmem:[#allocation20_spill] sm:$0xff] }
 0xa2f   :  { %v11870_v46 = vpop.eup %11869  ;;  %11889 = vrcp.f32 %v7291_v7  ;;  %v17135_v23 = vpop.xlane.xlu0 %7304  ;;  %v6991_v8 = vsub.f32 %v19354_v63, %v16818_v50  ;;  %10961 = vmatprep.subr.bf16.mxu1 %v19355_v53  ;;  %v7014_v7 = vsub.f32 %v19356_v1, %v16822_v38  ;;  %v19359_v38 = vld [vmem:[#allocation2_spill] sm:$0xff] }
 0xa30   :  { %v17137_v22 = vpop.eup %11871  ;;  %11891 = vpow2.f32 %v7256_v12  ;;  %v10983_v21 = vpack.c.bf16 %v7681_v17, %v7680_v32  ;;  %v19357_v12 = vld [vmem:[#allocation173_spill] sm:$0xff]  ;;  %v6993_v63 = vsub.f32 %v19359_v38, %v16832_v57 }
 0xa31   :  { %v11874_v9 = vpop.eup %11873  ;;  %11893 = vrcp.f32 %v17028_v39  ;;  %7426 = vadd.xlane.f32.xlu1 %v17098_v11  ;;  %v7666_v50 = vmul.f32 %v11870_v46, %v19357_v12  ;;  %v19358_v17 = vld [vmem:[#allocation33_spill] sm:$0xff]  ;;  %v7214_v27 = vmul.f32 1.442695, %v6991_v8  ;;  %v7260_v46 = vmul.f32 1.442695, %v7014_v7  ;;  %v19360_v12 = vld [vmem:[#allocation152_spill] sm:$0xff] }
 0xa32   :  { %v17144_v20 = vpop.eup %11875  ;;  %7472 = vadd.xlane.f32.xlu0 %v17102_v30  ;;  %10984 = vmatpush3.bf16.xpose.msra.mxu0 %v10983_v21  ;;  %v7323_v14 = vpop.xlane.xlu1 %7322  ;;  %v7667_v4 = vmul.f32 %v11874_v9, %v19358_v17 }
 0xa33   :  { %v11878_v32 = vpop.eup %11877  ;;  %11895 = vrcp.f32 %v7323_v14  ;;  %v17151_v15 = vpop.xlane.xlu0 %7336  ;;  %10985 = vmatprep.subr.bf16.mxu0 %v19355_v53 }
 0xa34   :  { %v17154_v39 = vpop.eup %11879  ;;  %11897 = vpow2.f32 %v7182_v24  ;;  %v10962_v1 = vpack.c.bf16 %v7667_v4, %v7666_v50  ;;  %v7682_v17 = vmul.f32 %v11878_v32, %v19360_v12  ;;  %v19361_v24 = vld [vmem:[#allocation41_spill] sm:$0xff]  ;;  %v19362_v4 = vld [vmem:[#allocation3_spill] sm:$0xff] }
 0xa35   :  { %v11882_v21 = vpop.eup %11881  ;;  %11899 = vrcp.f32 %v17044_v56  ;;  %7458 = vadd.xlane.f32.xlu1 %v17107_v16  ;;  %v7218_v56 = vmul.f32 1.442695, %v6993_v63  ;;  %v19364_v63 = vld [vmem:[#allocation23_spill] sm:$0xff] }
 0xa36   :  { %v17160_v9 = vpop.eup %11883  ;;  %11901 = vpow2.f32 %v7228_v58  ;;  %7504 = vadd.xlane.f32.xlu0 %v17113_v5  ;;  %v7295_v14 = vpop.xlane.xlu1 %7294  ;;  %v7683_v8 = vmul.f32 %v11882_v21, %v19361_v24  ;;  %10963 = vmatpush3.bf16.xpose.msra.mxu1 %v10962_v1  ;;  %v7000_v58 = vsub.f32 %v19362_v4, %v16836_v55  ;;  %v19363_v1 = vld [vmem:[#allocation4_spill] sm:$0xff] }
 0xa37   :  { %v11886_v30 = vpop.eup %11885  ;;  %11903 = vrcp.f32 %v7295_v14  ;;  %v17165_v57 = vpop.xlane.xlu0 %7308  ;;  %10964 = vmatprep.subr.bf16.mxu1 %v19355_v53  ;;  %v7009_v21 = vsub.f32 %v19363_v1, %v16846_v18  ;;  %v19365_v14 = vld [vmem:[#allocation169_spill] sm:$0xff] }
 0xa38   :  { %v17167_v50 = vpop.eup %11887  ;;  %11905 = vpow2.f32 %v7214_v27  ;;  %v10986_v7 = vpack.c.bf16 %v7683_v8, %v7682_v17  ;;  %v7668_v55 = vmul.f32 %v11886_v30, %v19364_v63  ;;  %v19369_v63 = vld [vmem:[#allocation155_spill] sm:$0xff] }
 0xa39   :  { %v11890_v38 = vpop.eup %11889  ;;  %11907 = vrcp.f32 %v17058_v28  ;;  %7430 = vadd.xlane.f32.xlu1 %v17122_v62  ;;  %v7232_v28 = vmul.f32 1.442695, %v7000_v58 }
 0xa3a   :  { %v17174_v32 = vpop.eup %11891  ;;  %11909 = vpow2.f32 %v7260_v46  ;;  %7476 = vadd.xlane.f32.xlu0 %v17128_v35  ;;  %10987 = vmatpush3.bf16.xpose.msra.mxu0 %v10986_v7  ;;  %v7327_v27 = vpop.xlane.xlu1 %7326  ;;  %v7669_v12 = vmul.f32 %v11890_v38, %v19365_v14  ;;  %v19366_v46 = vld [vmem:[#allocation5_spill] sm:$0xff]  ;;  %v7250_v7 = vmul.f32 1.442695, %v7009_v21  ;;  %v19367_v38 = vld [vmem:[#allocation6_spill] sm:$0xff]  ;;  %v19370_v21 = vld [vmem:[#allocation7_spill] sm:$0xff] }
 0xa3b   :  { %v11894_v17 = vpop.eup %11893  ;;  %11911 = vrcp.f32 %v7327_v27  ;;  %v17181_v24 = vpop.xlane.xlu0 %7340  ;;  %10988 = vmatprep.subr.bf16.mxu0 %v19355_v53  ;;  %v7016_v8 = vsub.f32 %v19366_v46, %v16850_v0  ;;  %v6995_v1 = vsub.f32 %v19367_v38, %v16860_v60  ;;  %v7002_v46 = vsub.f32 %v19370_v21, %v16864_v42 }
 0xa3c   :  { %11913 = vpow2.f32 %v7218_v56  ;;  %v10965_v18 = vpack.c.bf16 %v7669_v12, %v7668_v55  ;;  %v19368_v56 = vld [vmem:[#allocation27_spill] sm:$0xff] }
 0xa3d   :  { %v11896_v4 = vpop.eup %11895  ;;  %11915 = vrcp.f32 %v17075_v2  ;;  %7462 = vadd.xlane.f32.xlu1 %v17137_v22  ;;  %v7684_v58 = vmul.f32 %v11894_v17, %v19368_v56  ;;  %v7264_v12 = vmul.f32 1.442695, %v7016_v8  ;;  %v19371_v8 = vld [vmem:[#allocation31_spill] sm:$0xff] }
 0xa3e   :  { %v17188_v30 = vpop.eup %11897  ;;  %7508 = vadd.xlane.f32.xlu0 %v17144_v20  ;;  %v7299_v27 = vpop.xlane.xlu1 %7298  ;;  %v7685_v14 = vmul.f32 %v11896_v4, %v19369_v63  ;;  %10966 = vmatpush3.bf16.xpose.msra.mxu1 %v10965_v18  ;;  %v7222_v18 = vmul.f32 1.442695, %v6995_v1  ;;  %v7236_v63 = vmul.f32 1.442695, %v7002_v46 }
 0xa3f   :  { %v11900_v0 = vpop.eup %11899  ;;  %11917 = vrcp.f32 %v7299_v27  ;;  %v17195_v55 = vpop.xlane.xlu0 %7344  ;;  %10967 = vmatprep.subr.bf16.mxu1 %v19355_v53  ;;  %v19372_v27 = vld [vmem:[#allocation39_spill] sm:$0xff] }
 0xa40   :  { %v17197_v2 = vpop.eup %11901  ;;  %11919 = vpow2.f32 %v7232_v28  ;;  %v10989_v60 = vpack.c.bf16 %v7685_v14, %v7684_v58  ;;  %v7670_v4 = vmul.f32 %v11900_v0, %v19371_v8  ;;  %v19376_v8 = vld [vmem:[#allocation101_spill] sm:$0xff] }
 0xa41   :  { %v11904_v38 = vpop.eup %11903  ;;  %11921 = vrcp.f32 %v17092_v19  ;;  %7434 = vadd.xlane.f32.xlu1 %v17154_v39 }
 0xa42   :  { %v17204_v17 = vpop.eup %11905  ;;  %11923 = vpow2.f32 %v7250_v7  ;;  %7480 = vadd.xlane.f32.xlu0 %v17160_v9  ;;  %10990 = vmatpush3.bf16.xpose.msra.mxu0 %v10989_v60  ;;  %v7331_v28 = vpop.xlane.xlu1 %7330  ;;  %v7671_v42 = vmul.f32 %v11904_v38, %v19372_v27  ;;  %v19373_v7 = vld [vmem:[#allocation8_spill] sm:$0xff]  ;;  %v19374_v60 = vld [vmem:[#allocation9_spill] sm:$0xff] }
 0xa43   :  { %v11908_v56 = vpop.eup %11907  ;;  %11925 = vrcp.f32 %v7331_v28  ;;  %v17209_v58 = vpop.xlane.xlu0 %7376  ;;  %10991 = vmatprep.subr.bf16.mxu0 %v19355_v53  ;;  %v7011_v1 = vsub.f32 %v19373_v7, %v16874_v31  ;;  %v7018_v38 = vsub.f32 %v19374_v60, %v16878_v52 }
 0xa44   :  { %v17212_v19 = vpop.eup %11909  ;;  %11927 = vpow2.f32 %v7264_v12  ;;  %v10968_v14 = vpack.c.bf16 %v7671_v42, %v7670_v4  ;;  %v19375_v12 = vld [vmem:[#allocation54_spill] sm:$0xff] }
 0xa45   :  { %v11912_v21 = vpop.eup %11911  ;;  %11929 = vrcp.f32 %v17109_v34  ;;  %7466 = vadd.xlane.f32.xlu1 %v17167_v50  ;;  %v7686_v46 = vmul.f32 %v11908_v56, %v19375_v12  ;;  %v7254_v34 = vmul.f32 1.442695, %v7011_v1  ;;  %v19377_v42 = vld [vmem:[#allocation10_spill] sm:$0xff]  ;;  %v19379_v1 = vld [vmem:[#allocation40_spill] sm:$0xff] }
 0xa46   :  { %v17218_v0 = vpop.eup %11913  ;;  %11931 = vpow2.f32 %v7222_v18  ;;  %7512 = vadd.xlane.f32.xlu0 %v17174_v32  ;;  %v7303_v28 = vpop.xlane.xlu1 %7302  ;;  %v7687_v27 = vmul.f32 %v11912_v21, %v19376_v8  ;;  %10969 = vmatpush3.bf16.xpose.msra.mxu1 %v10968_v14  ;;  %v6997_v18 = vsub.f32 %v19377_v42, %v16888_v59  ;;  %v7268_v21 = vmul.f32 1.442695, %v7018_v38  ;;  %v19378_v14 = vld [vmem:[#allocation11_spill] sm:$0xff] }
 0xa47   :  { %v11916_v31 = vpop.eup %11915  ;;  %11933 = vrcp.f32 %v7303_v28  ;;  %v17225_v4 = vpop.xlane.xlu0 %7348  ;;  %10970 = vmatprep.subr.bf16.mxu1 %v19355_v53  ;;  %v7004_v60 = vsub.f32 %v19378_v14, %v16892_v44  ;;  %v19380_v28 = vld [vmem:[#allocation162_spill] sm:$0xff]  ;;  %v19381_v44 = vld [vmem:[#allocation12_spill] sm:$0xff] }
 0xa48   :  { %11935 = vpow2.f32 %v7236_v63  ;;  %v10992_v7 = vpack.c.bf16 %v7687_v27, %v7686_v46  ;;  %v7672_v59 = vmul.f32 %v11916_v31, %v19379_v1  ;;  %v7226_v38 = vmul.f32 1.442695, %v6997_v18 }
 0xa49   :  { %v11918_v52 = vpop.eup %11917  ;;  %11937 = vrcp.f32 %v17118_v3  ;;  %7438 = vadd.xlane.f32.xlu1 %v17188_v30  ;;  %v7013_v27 = vsub.f32 %v19381_v44, %v16902_v26 }
 0xa4a   :  { %v17232_v56 = vpop.eup %11919  ;;  %7484 = vadd.xlane.f32.xlu0 %v17197_v2  ;;  %10993 = vmatpush3.bf16.xpose.msra.mxu0 %v10992_v7  ;;  %v7335_v63 = vpop.xlane.xlu1 %7334  ;;  %v7673_v12 = vmul.f32 %v11918_v52, %v19380_v28  ;;  %v7240_v52 = vmul.f32 1.442695, %v7004_v60 }
 0xa4b   :  { %v11922_v46 = vpop.eup %11921  ;;  %11939 = vrcp.f32 %v7335_v63  ;;  %v17239_v8 = vpop.xlane.xlu0 %7380  ;;  %10994 = vmatprep.subr.bf16.mxu0 %v19355_v53  ;;  %v19382_v63 = vld [vmem:[#allocation64_spill] sm:$0xff] }
 0xa4c   :  { %v17242_v3 = vpop.eup %11923  ;;  %11941 = vpow2.f32 %v7254_v34  ;;  %v10971_v42 = vpack.c.bf16 %v7673_v12, %v7672_v59  ;;  %v7688_v1 = vmul.f32 %v11922_v46, %v19382_v63  ;;  %v19383_v34 = vld [vmem:[#allocation24_spill] sm:$0xff]  ;;  %v19384_v12 = vld [vmem:[#allocation13_spill] sm:$0xff] }
 0xa4d   :  { %v11926_v7 = vpop.eup %11925  ;;  %11943 = vrcp.f32 %v17135_v23  ;;  %7470 = vadd.xlane.f32.xlu1 %v17204_v17  ;;  %v7258_v23 = vmul.f32 1.442695, %v7013_v27  ;;  %v19386_v27 = vld [vmem:[#allocation35_spill] sm:$0xff] }
 0xa4e   :  { %v17248_v31 = vpop.eup %11927  ;;  %11945 = vpow2.f32 %v7268_v21  ;;  %7516 = vadd.xlane.f32.xlu0 %v17212_v19  ;;  %v7307_v14 = vpop.xlane.xlu1 %7306  ;;  %v7689_v18 = vmul.f32 %v11926_v7, %v19383_v34  ;;  %10972 = vmatpush3.bf16.xpose.msra.mxu1 %v10971_v42  ;;  %v7020_v21 = vsub.f32 %v19384_v12, %v16906_v41  ;;  %v19385_v42 = vld [vmem:[#allocation14_spill] sm:$0xff] }
 0xa4f   :  { %v11930_v28 = vpop.eup %11929  ;;  %11947 = vrcp.f32 %v7307_v14  ;;  %v17253_v26 = vpop.xlane.xlu0 %7352  ;;  %10973 = vmatprep.subr.bf16.mxu1 %v19355_v53  ;;  %v6999_v7 = vsub.f32 %v19385_v42, %v16916_v51  ;;  %v19387_v14 = vld [vmem:[#allocation37_spill] sm:$0xff] }
 0xa50   :  { %v17255_v59 = vpop.eup %11931  ;;  %11949 = vpow2.f32 %v7226_v38  ;;  %v10995_v60 = vpack.c.bf16 %v7689_v18, %v7688_v1  ;;  %v7674_v41 = vmul.f32 %v11930_v28, %v19386_v27  ;;  %v19391_v27 = vld [vmem:[#allocation159_spill] sm:$0xff] }
 0xa51   :  { %v11934_v44 = vpop.eup %11933  ;;  %11951 = vrcp.f32 %v17151_v15  ;;  %7474 = vadd.xlane.f32.xlu1 %v17218_v0  ;;  %v7272_v15 = vmul.f32 1.442695, %v7020_v21 }
 0xa52   :  { %v17262_v46 = vpop.eup %11935  ;;  %11953 = vpow2.f32 %v7240_v52  ;;  %7488 = vadd.xlane.f32.xlu0 %v17232_v56  ;;  %10996 = vmatpush3.bf16.xpose.msra.mxu0 %v10995_v60  ;;  %v7339_v38 = vpop.xlane.xlu1 %7338  ;;  %v7675_v63 = vmul.f32 %v11934_v44, %v19387_v14  ;;  %v19388_v52 = vld [vmem:[#allocation15_spill] sm:$0xff]  ;;  %v7230_v60 = vmul.f32 1.442695, %v6999_v7  ;;  %v19389_v44 = vld [vmem:[#allocation16_spill] sm:$0xff]  ;;  %v19393_v7 = vld [vmem:[#allocation17_spill] sm:$0xff] }
 0xa53   :  { %v11938_v1 = vpop.eup %11937  ;;  %11955 = vrcp.f32 %v7339_v38  ;;  %v17269_v34 = vpop.xlane.xlu0 %7384  ;;  %10997 = vmatprep.subr.bf16.mxu0 %v19355_v53  ;;  %v7006_v18 = vsub.f32 %v19388_v52, %v16920_v37  ;;  %v7015_v42 = vsub.f32 %v19389_v44, %v16930_v25  ;;  %v7022_v52 = vsub.f32 %v19393_v7, %v16934_v29 }
 0xa54   :  { %11957 = vpow2.f32 %v7258_v23  ;;  %v10974_v51 = vpack.c.bf16 %v7675_v63, %v7674_v41  ;;  %v19390_v23 = vld [vmem:[#allocation45_spill] sm:$0xff] }
 0xa55   :  { %v11940_v12 = vpop.eup %11939  ;;  %11959 = vrcp.f32 %v17165_v57  ;;  %7506 = vadd.xlane.f32.xlu1 %v17242_v3  ;;  %v7690_v21 = vmul.f32 %v11938_v1, %v19390_v23  ;;  %v7244_v63 = vmul.f32 1.442695, %v7006_v18  ;;  %v19394_v18 = vld [vmem:[#allocation175_spill] sm:$0xff] }
 0xa56   :  { %v17276_v28 = vpop.eup %11941  ;;  %7520 = vadd.xlane.f32.xlu0 %v17248_v31  ;;  %v7311_v38 = vpop.xlane.xlu1 %7310  ;;  %v7691_v14 = vmul.f32 %v11940_v12, %v19391_v27  ;;  %10975 = vmatpush3.bf16.xpose.msra.mxu1 %v10974_v51  ;;  %v7262_v51 = vmul.f32 1.442695, %v7015_v42  ;;  %v7276_v27 = vmul.f32 1.442695, %v7022_v52 }
 0xa57   :  { %v11944_v37 = vpop.eup %11943  ;;  %11961 = vrcp.f32 %v7311_v38  ;;  %v17283_v41 = vpop.xlane.xlu0 %7356  ;;  %10976 = vmatprep.subr.bf16.mxu1 %v19355_v53  ;;  %v19395_v38 = vld [vmem:[#allocation43_spill] sm:$0xff] }
 0xa58   :  { %v17285_v57 = vpop.eup %11945  ;;  %11963 = vpow2.f32 %v7272_v15  ;;  %v10998_v25 = vpack.c.bf16 %v7691_v14, %v7690_v21  ;;  %v7676_v12 = vmul.f32 %v11944_v37, %v19394_v18  ;;  %v19397_v37 = vld [vmem:[#allocation144_spill] sm:$0xff]  ;;  %v19399_v18 = vld [vmem:[#allocation161_spill] sm:$0xff] }
 0xa59   :  { %19392 = vst [vmem:[#allocation46_spill] sm:$0xff] %v17285_v57  ;;  %v11948_v44 = vpop.eup %11947  ;;  %11965 = vrcp.f32 %v17181_v24  ;;  %7478 = vadd.xlane.f32.xlu1 %v17255_v59  ;;  %v7001_v7 = vsub.f32 %v19397_v37, %v16944_v33  ;;  %v19402_v37 = vld [vmem:[#allocation158_spill] sm:$0xff] }
 0xa5a   :  { %v17292_v1 = vpop.eup %11949  ;;  %11967 = vpow2.f32 %v7230_v60  ;;  %7492 = vadd.xlane.f32.xlu0 %v17262_v46  ;;  %10999 = vmatpush3.bf16.xpose.msra.mxu0 %v10998_v25  ;;  %v7343_v15 = vpop.xlane.xlu1 %7342  ;;  %v7677_v29 = vmul.f32 %v11948_v44, %v19395_v38  ;;  %v19398_v44 = vld [vmem:[#allocation25_spill] sm:$0xff] }
 0xa5b   :  { %v11952_v23 = vpop.eup %11951  ;;  %11969 = vrcp.f32 %v7343_v15  ;;  %v17297_v21 = vpop.xlane.xlu0 %7388  ;;  %11000 = vmatprep.subr.bf16.mxu0 %v19355_v53  ;;  %v7234_v38 = vmul.f32 1.442695, %v7001_v7  ;;  %v19403_v7 = vld [vmem:[#allocation142_spill] sm:$0xff] }
 0xa5c   :  { %v17300_v24 = vpop.eup %11953  ;;  %11971 = vpow2.f32 %v7244_v63  ;;  %v10977_v60 = vpack.c.bf16 %v7677_v29, %v7676_v12  ;;  %v7692_v15 = vmul.f32 %v11952_v23, %v19398_v44  ;;  %v19400_v29 = vld [vmem:[#allocation171_spill] sm:$0xff] }
 0xa5d   :  { %19396 = vst [vmem:[#allocation58_spill] sm:$0xff] %v17300_v24  ;;  %v11956_v42 = vpop.eup %11955  ;;  %11973 = vrcp.f32 %v17195_v55  ;;  %7510 = vadd.xlane.f32.xlu1 %v17276_v28  ;;  %v7017_v23 = vsub.f32 %v19400_v29, %v16958_v54 }
 0xa5e   :  { %v17304_v14 = vpop.eup %11957  ;;  %11975 = vpow2.f32 %v7262_v51  ;;  %7524 = vadd.xlane.f32.xlu0 %v17285_v57  ;;  %v7347_v25 = vpop.xlane.xlu1 %7346  ;;  %v7693_v63 = vmul.f32 %v11956_v42, %v19399_v18  ;;  %10978 = vmatpush3.bf16.xpose.msra.mxu1 %v10977_v60  ;;  %v19401_v42 = vld [vmem:[#allocation157_spill] sm:$0xff] }
 0xa5f   :  { %v11960_v52 = vpop.eup %11959  ;;  %11977 = vrcp.f32 %v7347_v25  ;;  %v17311_v12 = vpop.xlane.xlu0 %7360  ;;  %10979 = vmatprep.subr.bf16.mxu1 %v19355_v53  ;;  %v19404_v18 = vld [vmem:[#allocation29_spill] sm:$0xff] }
 0xa60   :  { %11979 = vpow2.f32 %v7276_v27  ;;  %v11001_v55 = vpack.c.bf16 %v7693_v63, %v7692_v15  ;;  %v7678_v27 = vmul.f32 %v11960_v52, %v19401_v42  ;;  %v7003_v63 = vsub.f32 %v19404_v18, %v19403_v7 }
 0xa61   :  { %v11962_v51 = vpop.eup %11961  ;;  %11981 = vrcp.f32 %v17209_v58  ;;  %7482 = vadd.xlane.f32.xlu1 %v17292_v1 }
 0xa62   :  { %v17316_v33 = vpop.eup %11963  ;;  %7496 = vadd.xlane.f32.xlu0 %v17300_v24  ;;  %11002 = vmatpush3.bf16.xpose.msra.mxu0 %v11001_v55  ;;  %v7379_v60 = vpop.xlane.xlu1 %7378  ;;  %v7679_v25 = vmul.f32 %v11962_v51, %v19402_v37  ;;  %v7266_v55 = vmul.f32 1.442695, %v7017_v23  ;;  %v19407_v37 = vld [vmem:[#allocation106_spill] sm:$0xff] }
 0xa63   :  { %v11966_v44 = vpop.eup %11965  ;;  %11983 = vrcp.f32 %v7379_v60  ;;  %v17323_v15 = vpop.xlane.xlu0 %7392  ;;  %11003 = vmatprep.subr.bf16.mxu0 %v19355_v53  ;;  %v19406_v60 = vld [vmem:[#allocation114_spill] sm:$0xff] }
 0xa64   :  { %v17326_v58 = vpop.eup %11967  ;;  %v10980_v54 = vpack.c.bf16 %v7679_v25, %v7678_v27  ;;  %11985 = vrcp.f32 %v17225_v4  ;;  %v7694_v42 = vmul.f32 %v11966_v44, %v19406_v60  ;;  %v7238_v4 = vmul.f32 1.442695, %v7003_v63  ;;  %v19409_v44 = vld [vmem:[#allocation150_spill] sm:$0xff] }
 0xa65   :  { %v11970_v29 = vpop.eup %11969  ;;  %7514 = vadd.xlane.f32.xlu1 %v17304_v14  ;;  %11987 = vpow2.f32 %v7234_v38  ;;  %v7019_v18 = vsub.f32 %v19409_v44, %v16988_v6  ;;  %v19414_v44 = vld [vmem:[#allocation154_spill] sm:$0xff] }
 0xa66   :  { %v17332_v52 = vpop.eup %11971  ;;  %7528 = vadd.xlane.f32.xlu0 %v17316_v33  ;;  %v7351_v51 = vpop.xlane.xlu1 %7350  ;;  %v7695_v24 = vmul.f32 %v11970_v29, %v19407_v37  ;;  %10981 = vmatpush3.bf16.xpose.msra.mxu1 %v10980_v54  ;;  %v19410_v29 = vld [vmem:[#allocation36_spill] sm:$0xff]  ;;  %v19412_v37 = vld [vmem:[#allocation22_spill] sm:$0xff] }
 0xa67   :  { %19405 = vst [vmem:[#allocation149_spill] sm:$0xff] %v17332_v52  ;;  %v11974_v57 = vpop.eup %11973  ;;  %11989 = vrcp.f32 %v7351_v51  ;;  %v17337_v27 = vpop.xlane.xlu0 %7364  ;;  %11006 = vmatprep.subr.bf16.mxu1 %v19355_v53  ;;  %v7270_v6 = vmul.f32 1.442695, %v7019_v18  ;;  %v19416_v18 = vmov 0.0  }
 0xa68   :  { %v17339_v25 = vpop.eup %11975  ;;  %v11004_v7 = vpack.c.bf16 %v7695_v24, %v7694_v42  ;;  %11991 = vrcp.f32 %v17239_v8  ;;  %v7696_v63 = vmul.f32 %v11974_v57, %v19410_v29  ;;  %v19411_v24 = vld [vmem:[#allocation160_spill] sm:$0xff]  ;;  %v19413_v57 = vld [vmem:[#allocation137_spill] sm:$0xff]  ;;  %v19415_v29 = vld [vmem:[#allocation163_spill] sm:$0xff] }
 0xa69   :  { %v11978_v38 = vpop.eup %11977  ;;  %7486 = vadd.xlane.f32.xlu1 %v17326_v58  ;;  %11993 = vpow2.f32 %v7266_v55 }
 0xa6a   :  { %v17344_v23 = vpop.eup %11979  ;;  %7500 = vadd.xlane.f32.xlu0 %v17332_v52  ;;  %11005 = vmatpush3.bf16.xpose.msra.mxu0 %v11004_v7  ;;  %v7383_v54 = vpop.xlane.xlu1 %7382  ;;  %v7697_v51 = vmul.f32 %v11978_v38, %v19411_v24  ;;  %v7005_v7 = vsub.f32 %v19412_v37, %v17006_v43 }
 0xa6b   :  { %19408 = vst [vmem:[#allocation48_spill] sm:$0xff] %v17344_v23  ;;  %v11982_v60 = vpop.eup %11981  ;;  %11995 = vrcp.f32 %v7383_v54  ;;  %v17351_v42 = vpop.xlane.xlu0 %7396  ;;  %11030 = vmatprep.subr.bf16.mxu0 %v19355_v53 }
 0xa6c   :  { %11997 = vpow2.f32 %v7238_v4  ;;  %v11007_v8 = vpack.c.bf16 %v7697_v51, %v7696_v63  ;;  %v7712_v54 = vmul.f32 %v11982_v60, %v19414_v44  ;;  %v4680_v63 = vcombine.high %v19413_v57, %v19413_v57  ;;  %v19418_v51 = vld [vmem:[#allocation26_spill] sm:$0xff] }
 0xa6d   :  { %v11984_v55 = vpop.eup %11983  ;;  %11999 = vrcp.f32 %v17253_v26  ;;  %7518 = vadd.xlane.f32.xlu1 %v17339_v25  ;;  %10447 = vmatmul.mubr.f32.vlgmr.msra.gmra.mrb[168].mxu1 %v19413_v57  ;;  %v7021_v37 = vsub.f32 %v19418_v51, %v17024_v36  ;;  %v19419_v57 = vld [vmem:[#allocation32_spill] sm:$0xff]  ;;  %v19420_v44 = vld [vmem:[#allocation42_spill] sm:$0xff] }
 0xa6e   :  { %7532 = vadd.xlane.f32.xlu0 %v17344_v23  ;;  %v7355_v38 = vpop.xlane.xlu1 %7354  ;;  %v7713_v24 = vmul.f32 %v11984_v55, %v19415_v29  ;;  %v11986_v4 = vpop.eup %11985  ;;  %11008 = vmatpush3.bf16.xpose.msra.mxu1 %v11007_v8  ;;  %v7242_v8 = vmul.f32 1.442695, %v7005_v7 }
 0xa6f   :  { %12001 = vrcp.f32 %v7355_v38  ;;  %v17364_v26 = vpop.xlane.xlu0 %7368  ;;  %10516 = vmatprep.mubr.msk.f32.mxu1 %vm19417_vm1, %v19416_v18  ;;  %v17368_v43 = vpop.eup %11987  ;;  %11009 = vmatprep.subr.bf16.mxu1 %v19355_v53  ;;  %v7698_v38 = vmul.f32 %v11986_v4, %v19419_v57  ;;  %v19421_v4 = vld [vmem:[#allocation30_spill] sm:$0xff] }
 0xa70   :  { %v11031_v23 = vpack.c.bf16 %v7713_v24, %v7712_v54  ;;  %12003 = vrcp.f32 %v17269_v34  ;;  %v7274_v24 = vmul.f32 1.442695, %v7021_v37  ;;  %v19423_v57 = vld [vmem:[#allocation118_spill] sm:$0xff] }
 0xa71   :  { %v11990_v60 = vpop.eup %11989  ;;  %7490 = vadd.xlane.f32.xlu1 %v17368_v43  ;;  %10482 = vmatmul.mubr.f32.vlgmr.msra.gmra.mrb[184].mxu0 %v4680_v63  ;;  %12005 = vpow2.f32 %v7270_v6  ;;  %v7007_v63 = vsub.f32 %v19421_v4, %v17040_v10  ;;  %v19426_v4 = vld [vmem:[#allocation131_spill] sm:$0xff] }
 0xa72   :  { %11032 = vmatpush3.bf16.xpose.msra.mxu0 %v11031_v23  ;;  %v7387_v55 = vpop.xlane.xlu1 %7386  ;;  %v7699_v29 = vmul.f32 %v11990_v60, %v19420_v44  ;;  %10551 = vmatprep.mubr.msk.f32.mxu0 %vm19417_vm1, %v19416_v18  ;;  %v11992_v36 = vpop.eup %11991  ;;  %v19422_v60 = vld [vmem:[#allocation156_spill] sm:$0xff] }
 0xa73   :  { %12007 = vrcp.f32 %v7387_v55  ;;  %v17379_v54 = vpop.xlane.xlu0 %7400  ;;  %11033 = vmatprep.subr.bf16.mxu0 %v19355_v53  ;;  %v17382_v34 = vpop.eup %11993  ;;  %v7714_v55 = vmul.f32 %v11992_v36, %v19422_v60  ;;  %v7246_v10 = vmul.f32 1.442695, %v7007_v63 }
 0xa74   :  { %v11010_v6 = vpack.c.bf16 %v7699_v29, %v7698_v38  ;;  %12009 = vrcp.f32 %v17283_v41 }
 0xa75   :  { %v11996_v7 = vpop.eup %11995  ;;  %7522 = vadd.xlane.f32.xlu1 %v17382_v34  ;;  %12011 = vpow2.f32 %v7242_v8  ;;  %v19424_v8 = vld [vmem:[#allocation49_spill] sm:$0xff] }
 0xa76   :  { %v17386_v23 = vpop.eup %11997  ;;  %v7359_v51 = vpop.xlane.xlu1 %7358  ;;  %v7715_v44 = vmul.f32 %v11996_v7, %v19423_v57  ;;  %11011 = vmatpush3.bf16.xpose.msra.mxu1 %v11010_v6  ;;  %v7023_v29 = vsub.f32 %v19424_v8, %v17054_v40  ;;  %v19425_v7 = vld [vmem:[#allocation178_spill] sm:$0xff] }
 0xa77   :  { %v12000_v52 = vpop.eup %11999  ;;  %12013 = vrcp.f32 %v7359_v51  ;;  %v17392_v37 = vpop.xlane.xlu0 %7372  ;;  %11012 = vmatprep.subr.bf16.mxu1 %v19355_v53 }
 0xa78   :  { %12015 = vpow2.f32 %v7274_v24  ;;  %v11034_v41 = vpack.c.bf16 %v7715_v44, %v7714_v55  ;;  %v7700_v6 = vmul.f32 %v12000_v52, %v19425_v7  ;;  %v7278_v40 = vmul.f32 1.442695, %v7023_v29  ;;  %v19427_v52 = vld [vmem:[#allocation83_spill] sm:$0xff] }
 0xa79   :  { %v12002_v38 = vpop.eup %12001  ;;  %12017 = vrcp.f32 %v17297_v21  ;;  %7494 = vadd.xlane.f32.xlu1 %v17386_v23 }
 0xa7a   :  { %11035 = vmatpush3.bf16.xpose.msra.mxu0 %v11034_v41  ;;  %v7391_v36 = vpop.xlane.xlu1 %7390  ;;  %v7701_v51 = vmul.f32 %v12002_v38, %v19426_v4  ;;  %v12004_v60 = vpop.eup %12003  ;;  %v19428_v41 = vld [vmem:[#allocation164_spill] sm:$0xff] }
 0xa7b   :  { %12019 = vrcp.f32 %v7391_v36  ;;  %v17401_v24 = vpop.xlane.xlu0 %7404  ;;  %11036 = vmatprep.subr.bf16.mxu0 %v19355_v53  ;;  %v17404_v55 = vpop.eup %12005  ;;  %v7716_v44 = vmul.f32 %v12004_v60, %v19427_v52  ;;  %v19430_v4 = vld [vmem:[#allocation84_spill] sm:$0xff] }
 0xa7c   :  { %v11013_v21 = vpack.c.bf16 %v7701_v51, %v7700_v6  ;;  %12021 = vrcp.f32 %v17311_v12  ;;  %v19431_v60 = vld [vmem:[#allocation132_spill] sm:$0xff] }
 0xa7d   :  { %v12008_v57 = vpop.eup %12007  ;;  %7526 = vadd.xlane.f32.xlu1 %v17404_v55  ;;  %12023 = vpow2.f32 %v7246_v10 }
 0xa7e   :  { %v7363_v63 = vpop.xlane.xlu1 %7362  ;;  %v7717_v38 = vmul.f32 %v12008_v57, %v19428_v41  ;;  %v12010_v8 = vpop.eup %12009  ;;  %11014 = vmatpush3.bf16.xpose.msra.mxu1 %v11013_v21 }
 0xa7f   :  { %12025 = vrcp.f32 %v7363_v63  ;;  %v17410_v36 = vpop.xlane.xlu0 %7408  ;;  %v17412_v7 = vpop.eup %12011  ;;  %11015 = vmatprep.subr.bf16.mxu1 %v19355_v53  ;;  %v7702_v51 = vmul.f32 %v12010_v8, %v19430_v4 }
 0xa80   :  { %v11037_v6 = vpack.c.bf16 %v7717_v38, %v7716_v44  ;;  %12027 = vrcp.f32 %v17323_v15  ;;  %v19433_v38 = vld [vmem:[#allocation111_spill] sm:$0xff] }
 0xa81   :  { %v12014_v12 = vpop.eup %12013  ;;  %7498 = vadd.xlane.f32.xlu1 %v17412_v7  ;;  %12029 = vpow2.f32 %v7278_v40  ;;  %v19432_v40 = vld [vmem:[#allocation18_spill] sm:$0xff] }
 0xa82   :  { %v17417_v10 = vpop.eup %12015  ;;  %11038 = vmatpush3.bf16.xpose.msra.mxu0 %v11037_v6  ;;  %v7395_v29 = vpop.xlane.xlu1 %7394  ;;  %v7703_v21 = vmul.f32 %v12014_v12, %v19431_v60  ;;  %v19435_v60 = vld [vmem:[#allocation89_spill] sm:$0xff] }
 0xa83   :  { %19429 = vst [vmem:[#allocation28_spill] sm:$0xff] %v17417_v10  ;;  %v12018_v57 = vpop.eup %12017  ;;  %12031 = vrcp.f32 %v7395_v29  ;;  %v17421_v63 = vpop.xlane.xlu0 %7440  ;;  %11039 = vmatprep.subr.bf16.mxu0 %v19355_v53 }
 0xa84   :  { %v11016_v52 = vpack.c.bf16 %v7703_v21, %v7702_v51  ;;  %12033 = vrcp.f32 %v17337_v27  ;;  %v7718_v41 = vmul.f32 %v12018_v57, %v19432_v40  ;;  %v19436_v57 = vld [vmem:[#allocation165_spill] sm:$0xff] }
 0xa85   :  { %v12020_v44 = vpop.eup %12019  ;;  %7530 = vadd.xlane.f32.xlu1 %v17417_v10 }
 0xa86   :  { %v7367_v15 = vpop.xlane.xlu1 %7366  ;;  %v7719_v6 = vmul.f32 %v12020_v44, %v19433_v38  ;;  %v12022_v8 = vpop.eup %12021  ;;  %11017 = vmatpush3.bf16.xpose.msra.mxu1 %v11016_v52 }
 0xa87   :  { %12035 = vrcp.f32 %v7367_v15  ;;  %v17428_v12 = vpop.xlane.xlu0 %7412  ;;  %v17430_v29 = vpop.eup %12023  ;;  %11018 = vmatprep.subr.bf16.mxu1 %v19355_v53  ;;  %v7704_v21 = vmul.f32 %v12022_v8, %v19435_v60  ;;  %v19439_v8 = vld [vmem:[#allocation135_spill] sm:$0xff] }
 0xa88   :  { %19434 = vst [vmem:[#allocation50_spill] sm:$0xff] %v17430_v29  ;;  %v11040_v4 = vpack.c.bf16 %v7719_v6, %v7718_v41  ;;  %12037 = vrcp.f32 %v17351_v42  ;;  %v19438_v6 = vld [vmem:[#allocation92_spill] sm:$0xff] }
 0xa89   :  { %v12026_v51 = vpop.eup %12025  ;;  %7502 = vadd.xlane.f32.xlu1 %v17430_v29 }
 0xa8a   :  { %11041 = vmatpush3.bf16.xpose.msra.mxu0 %v11040_v4  ;;  %v7399_v27 = vpop.xlane.xlu1 %7398  ;;  %v7705_v44 = vmul.f32 %v12026_v51, %v19436_v57  ;;  %v12028_v52 = vpop.eup %12027 }
 0xa8b   :  { %12039 = vrcp.f32 %v7399_v27  ;;  %v17437_v15 = vpop.xlane.xlu0 %7444  ;;  %11042 = vmatprep.subr.bf16.mxu0 %v19355_v53  ;;  %v17440_v40 = vpop.eup %12029  ;;  %v7720_v4 = vmul.f32 %v12028_v52, %v19438_v6 }
 0xa8c   :  { %19437 = vst [vmem:[#allocation153_spill] sm:$0xff] %v17440_v40  ;;  %v11019_v41 = vpack.c.bf16 %v7705_v44, %v7704_v21  ;;  %12041 = vrcp.f32 %v17364_v26  ;;  %v19440_v21 = vld [vmem:[#allocation93_spill] sm:$0xff] }
 0xa8d   :  { %v12032_v38 = vpop.eup %12031  ;;  %7534 = vadd.xlane.f32.xlu1 %v17440_v40  ;;  %v19441_v40 = vld [vmem:[#allocation166_spill] sm:$0xff] }
 0xa8e   :  { %v7371_v42 = vpop.xlane.xlu1 %7370  ;;  %v7721_v60 = vmul.f32 %v12032_v38, %v19439_v8  ;;  %v12034_v51 = vpop.eup %12033  ;;  %11020 = vmatpush3.bf16.xpose.msra.mxu1 %v11019_v41 }
 0xa8f   :  { %12043 = vrcp.f32 %v7371_v42  ;;  %v17446_v27 = vpop.xlane.xlu0 %7416  ;;  %11021 = vmatprep.subr.bf16.mxu1 %v19355_v53  ;;  %v7706_v44 = vmul.f32 %v12034_v51, %v19440_v21  ;;  %v19445_v21 = vld [vmem:[#allocation168_spill] sm:$0xff] }
 0xa90   :  { %v11043_v57 = vpack.c.bf16 %v7721_v60, %v7720_v4  ;;  %12045 = vrcp.f32 %v17379_v54  ;;  %v19442_v4 = vld [vmem:[#allocation91_spill] sm:$0xff]  ;;  %v19443_v54 = vld [vmem:[#allocation138_spill] sm:$0xff] }
 0xa91   :  { %v12036_v29 = vpop.eup %12035 }
 0xa92   :  { %11044 = vmatpush3.bf16.xpose.msra.mxu0 %v11043_v57  ;;  %v7403_v26 = vpop.xlane.xlu1 %7402  ;;  %v7707_v10 = vmul.f32 %v12036_v29, %v19441_v40  ;;  %v12038_v52 = vpop.eup %12037 }
 0xa93   :  { %12047 = vrcp.f32 %v7403_v26  ;;  %v17452_v38 = vpop.xlane.xlu0 %7448  ;;  %11045 = vmatprep.subr.bf16.mxu0 %v19355_v53  ;;  %v7722_v8 = vmul.f32 %v12038_v52, %v19442_v4  ;;  %v19444_v26 = vld [vmem:[#allocation96_spill] sm:$0xff] }
 0xa94   :  { %v11022_v41 = vpack.c.bf16 %v7707_v10, %v7706_v44  ;;  %12049 = vrcp.f32 %v17392_v37 }
 0xa95   :  { %v12040_v42 = vpop.eup %12039 }
 0xa96   :  { %v7375_v6 = vpop.xlane.xlu1 %7374  ;;  %v7723_v60 = vmul.f32 %v12040_v42, %v19443_v54  ;;  %v12042_v57 = vpop.eup %12041  ;;  %11023 = vmatpush3.bf16.xpose.msra.mxu1 %v11022_v41 }
 0xa97   :  { %12051 = vrcp.f32 %v7375_v6  ;;  %v17458_v51 = vpop.xlane.xlu0 %7420  ;;  %11024 = vmatprep.subr.bf16.mxu1 %v19355_v53  ;;  %v7708_v37 = vmul.f32 %v12042_v57, %v19444_v26 }
 0xa98   :  { %v11046_v29 = vpack.c.bf16 %v7723_v60, %v7722_v8  ;;  %12053 = vrcp.f32 %v17401_v24  ;;  %v19446_v8 = vld [vmem:[#allocation104_spill] sm:$0xff]  ;;  %v19447_v24 = vld [vmem:[#allocation126_spill] sm:$0xff] }
 0xa99   :  { %v12044_v40 = vpop.eup %12043 }
 0xa9a   :  { %11047 = vmatpush3.bf16.xpose.msra.mxu0 %v11046_v29  ;;  %v7407_v10 = vpop.xlane.xlu1 %7406  ;;  %v7709_v44 = vmul.f32 %v12044_v40, %v19445_v21  ;;  %v12046_v52 = vpop.eup %12045  ;;  %v19449_v21 = vld [vmem:[#allocation125_spill] sm:$0xff] }
 0xa9b   :  { %12055 = vrcp.f32 %v7407_v10  ;;  %v17464_v42 = vpop.xlane.xlu0 %7452  ;;  %11048 = vmatprep.subr.bf16.mxu0 %v19355_v53  ;;  %v7724_v54 = vmul.f32 %v12046_v52, %v19446_v8 }
 0xa9c   :  { %v11025_v41 = vpack.c.bf16 %v7709_v44, %v7708_v37  ;;  %12057 = vrcp.f32 %v17410_v36  ;;  %v19448_v37 = vld [vmem:[#allocation99_spill] sm:$0xff] }
 0xa9d   :  { %v12048_v6 = vpop.eup %12047 }
 0xa9e   :  { %v7411_v4 = vpop.xlane.xlu1 %7410  ;;  %v7725_v60 = vmul.f32 %v12048_v6, %v19447_v24  ;;  %v12050_v29 = vpop.eup %12049  ;;  %11026 = vmatpush3.bf16.xpose.msra.mxu1 %v11025_v41 }
 0xa9f   :  { %12059 = vrcp.f32 %v7411_v4  ;;  %v17470_v57 = vpop.xlane.xlu0 %7424  ;;  %11027 = vmatprep.subr.bf16.mxu1 %v19355_v53  ;;  %v7710_v36 = vmul.f32 %v12050_v29, %v19448_v37  ;;  %v19451_v37 = vld [vmem:[#allocation102_spill] sm:$0xff] }
 0xaa0   :  { %v11049_v40 = vpack.c.bf16 %v7725_v60, %v7724_v54  ;;  %12061 = vrcp.f32 %v17421_v63  ;;  %v19450_v54 = vld [vmem:[#allocation107_spill] sm:$0xff] }
 0xaa1   :  { %v12052_v10 = vpop.eup %12051 }
 0xaa2   :  { %11050 = vmatpush3.bf16.xpose.msra.mxu0 %v11049_v40  ;;  %v7443_v26 = vpop.xlane.xlu1 %7442  ;;  %v7711_v44 = vmul.f32 %v12052_v10, %v19449_v21  ;;  %v12054_v52 = vpop.eup %12053 }
 0xaa3   :  { %12063 = vrcp.f32 %v7443_v26  ;;  %v17476_v6 = vpop.xlane.xlu0 %7456  ;;  %11051 = vmatprep.subr.bf16.mxu0 %v19355_v53  ;;  %v7726_v24 = vmul.f32 %v12054_v52, %v19450_v54 }
 0xaa4   :  { %v11028_v41 = vpack.c.bf16 %v7711_v44, %v7710_v36  ;;  %12065 = vrcp.f32 %v17428_v12 }
 0xaa5   :  { %v12056_v4 = vpop.eup %12055 }
 0xaa6   :  { %v7415_v8 = vpop.xlane.xlu1 %7414  ;;  %v7727_v63 = vmul.f32 %v12056_v4, %v16994_v48  ;;  %v12058_v60 = vpop.eup %12057  ;;  %11029 = vmatpush3.bf16.xpose.msra.mxu1 %v11028_v41  ;;  %v19452_v41 = vld [vmem:[#allocation136_spill] sm:$0xff] }
 0xaa7   :  { %12067 = vrcp.f32 %v7415_v8  ;;  %v17482_v29 = vpop.xlane.xlu0 %7428  ;;  %11054 = vmatprep.subr.bf16.mxu1 %v19355_v53  ;;  %v7728_v12 = vmul.f32 %v12058_v60, %v19451_v37 }
 0xaa8   :  { %v11052_v40 = vpack.c.bf16 %v7727_v63, %v7726_v24  ;;  %12069 = vrcp.f32 %v17437_v15  ;;  %v19453_v15 = vld [vmem:[#allocation121_spill] sm:$0xff] }
 0xaa9   :  { %v12060_v10 = vpop.eup %12059 }
 0xaaa   :  { %11053 = vmatpush3.bf16.xpose.msra.mxu0 %v11052_v40  ;;  %v7447_v26 = vpop.xlane.xlu1 %7446  ;;  %v7729_v36 = vmul.f32 %v12060_v10, %v17012_v47  ;;  %v12062_v21 = vpop.eup %12061  ;;  %v4681_v47 = vcombine.high %v19452_v41, %v19452_v41  ;;  %v19454_v40 = vld [vmem:[#allocation167_spill] sm:$0xff] }
 0xaab   :  { %12071 = vrcp.f32 %v7447_v26  ;;  %v17488_v48 = vpop.xlane.xlu0 %7460  ;;  %11078 = vmatprep.subr.bf16.mxu0 %v19355_v53  ;;  %v7744_v8 = vmul.f32 %v12062_v21, %v19453_v15 }
 0xaac   :  { %v11055_v44 = vpack.c.bf16 %v7729_v36, %v7728_v12  ;;  %12073 = vrcp.f32 %v17446_v27 }
 0xaad   :  { %v12064_v52 = vpop.eup %12063  ;;  %10517 = vmatmul.mubr.f32.vlgmr.msra.gmra.mrb[170].mxu1 %v19452_v41 }
 0xaae   :  { %v7419_v4 = vpop.xlane.xlu1 %7418  ;;  %v7745_v54 = vmul.f32 %v12064_v52, %v17030_v49  ;;  %v12066_v24 = vpop.eup %12065  ;;  %11056 = vmatpush3.bf16.xpose.msra.mxu1 %v11055_v44  ;;  %10586 = vmatprep.mubr.msk.f32.mxu1 %vm19417_vm1, %v19416_v18  ;;  %v19455_v44 = vld [vmem:[#allocation117_spill] sm:$0xff] }
 0xaaf   :  { %12075 = vrcp.f32 %v7419_v4  ;;  %v17497_v63 = vpop.xlane.xlu0 %7432  ;;  %11057 = vmatprep.subr.bf16.mxu1 %v19355_v53  ;;  %v7730_v10 = vmul.f32 %v12066_v24, %v19454_v40  ;;  %v19456_v24 = vld [vmem:[#allocation139_spill] sm:$0xff] }
 0xab0   :  { %v11079_v60 = vpack.c.bf16 %v7745_v54, %v7744_v8  ;;  %12077 = vrcp.f32 %v17452_v38 }
 0xab1   :  { %v12068_v27 = vpop.eup %12067  ;;  %10552 = vmatmul.mubr.f32.vlgmr.msra.gmra.mrb[186].mxu0 %v4681_v47  ;;  %v19457_v47 = vld [vmem:[#allocation44_spill] sm:$0xff] }
 0xab2   :  { %11080 = vmatpush3.bf16.xpose.msra.mxu0 %v11079_v60  ;;  %v7451_v49 = vpop.xlane.xlu1 %7450  ;;  %v7731_v26 = vmul.f32 %v12068_v27, %v17046_v45  ;;  %10621 = vmatprep.mubr.msk.f32.mxu0 %vm19417_vm1, %v19416_v18  ;;  %v12070_v37 = vpop.eup %12069 }
 0xab3   :  { %12079 = vrcp.f32 %v7451_v49  ;;  %v17507_v12 = vpop.xlane.xlu0 %7464  ;;  %11081 = vmatprep.subr.bf16.mxu0 %v19355_v53  ;;  %v7746_v52 = vmul.f32 %v12070_v37, %v19455_v44 }
 0xab4   :  { %v11058_v36 = vpack.c.bf16 %v7731_v26, %v7730_v10  ;;  %12081 = vrcp.f32 %v17458_v51  ;;  %v19458_v26 = vld [vmem:[#allocation170_spill] sm:$0xff] }
 0xab5   :  { %v12072_v21 = vpop.eup %12071 }
 0xab6   :  { %v7423_v38 = vpop.xlane.xlu1 %7422  ;;  %v7747_v41 = vmul.f32 %v12072_v21, %v17056_v13  ;;  %v12074_v4 = vpop.eup %12073  ;;  %11059 = vmatpush3.bf16.xpose.msra.mxu1 %v11058_v36 }
 0xab7   :  { %12083 = vrcp.f32 %v7423_v38  ;;  %v17513_v45 = vpop.xlane.xlu0 %7436  ;;  %11060 = vmatprep.subr.bf16.mxu1 %v19355_v53  ;;  %v7732_v51 = vmul.f32 %v12074_v4, %v19456_v24  ;;  %v19460_v4 = vld [vmem:[#allocation172_spill] sm:$0xff] }
 0xab8   :  { %v11082_v15 = vpack.c.bf16 %v7747_v41, %v7746_v52  ;;  %12085 = vrcp.f32 %v17464_v42  ;;  %v19459_v42 = vld [vmem:[#allocation176_spill] sm:$0xff] }
 0xab9   :  { %v12076_v8 = vpop.eup %12075 }
 0xaba   :  { %11083 = vmatpush3.bf16.xpose.msra.mxu0 %v11082_v15  ;;  %v7455_v54 = vpop.xlane.xlu1 %7454  ;;  %v7733_v60 = vmul.f32 %v12076_v8, %v19457_v47  ;;  %v12078_v27 = vpop.eup %12077  ;;  %v19461_v15 = vld [vmem:[#allocation47_spill] sm:$0xff] }
 0xabb   :  { %12087 = vrcp.f32 %v7455_v54  ;;  %v17519_v13 = vpop.xlane.xlu0 %7468  ;;  %11084 = vmatprep.subr.bf16.mxu0 %v19355_v53  ;;  %v7748_v37 = vmul.f32 %v12078_v27, %v19458_v26  ;;  %v19462_v27 = vld [vmem:[#allocation143_spill] sm:$0xff] }
 0xabc   :  { %v11061_v49 = vpack.c.bf16 %v7733_v60, %v7732_v51  ;;  %12089 = vrcp.f32 %v17470_v57 }
 0xabd   :  { %v12080_v40 = vpop.eup %12079 }
 0xabe   :  { %v7427_v10 = vpop.xlane.xlu1 %7426  ;;  %v7749_v36 = vmul.f32 %v12080_v40, %v19459_v42  ;;  %v12082_v21 = vpop.eup %12081  ;;  %11062 = vmatpush3.bf16.xpose.msra.mxu1 %v11061_v49 }
 0xabf   :  { %12091 = vrcp.f32 %v7427_v10  ;;  %v17525_v38 = vpop.xlane.xlu0 %7472  ;;  %11063 = vmatprep.subr.bf16.mxu1 %v19355_v53  ;;  %v7734_v57 = vmul.f32 %v12082_v21, %v19460_v4 }
 0xac0   :  { %v11085_v44 = vpack.c.bf16 %v7749_v36, %v7748_v37  ;;  %12093 = vrcp.f32 %v17476_v6  ;;  %v19463_v36 = vld [vmem:[#allocation128_spill] sm:$0xff] }
 0xac1   :  { %v12084_v52 = vpop.eup %12083 }
 0xac2   :  { %11086 = vmatpush3.bf16.xpose.msra.mxu0 %v11085_v44  ;;  %v7459_v41 = vpop.xlane.xlu1 %7458  ;;  %v7735_v8 = vmul.f32 %v12084_v52, %v19461_v15  ;;  %v12086_v54 = vpop.eup %12085 }
 0xac3   :  { %12095 = vrcp.f32 %v7459_v41  ;;  %v17531_v24 = vpop.xlane.xlu0 %7504  ;;  %11087 = vmatprep.subr.bf16.mxu0 %v19355_v53  ;;  %v7750_v49 = vmul.f32 %v12086_v54, %v19462_v27 }
 0xac4   :  { %v11064_v51 = vpack.c.bf16 %v7735_v8, %v7734_v57  ;;  %12097 = vrcp.f32 %v17482_v29  ;;  %v19464_v57 = vld [vmem:[#allocation82_spill] sm:$0xff] }
 0xac5   :  { %v12088_v47 = vpop.eup %12087 }
 0xac6   :  { %v7431_v60 = vpop.xlane.xlu1 %7430  ;;  %v7751_v6 = vmul.f32 %v12088_v47, %v17090_v61  ;;  %v12090_v40 = vpop.eup %12089  ;;  %11065 = vmatpush3.bf16.xpose.msra.mxu1 %v11064_v51  ;;  %v19465_v47 = vld [vmem:[#allocation174_spill] sm:$0xff] }
 0xac7   :  { %12099 = vrcp.f32 %v7431_v60  ;;  %v17537_v10 = vpop.xlane.xlu0 %7476  ;;  %11066 = vmatprep.subr.bf16.mxu1 %v19355_v53  ;;  %v7736_v29 = vmul.f32 %v12090_v40, %v19463_v36 }
 0xac8   :  { %v11088_v26 = vpack.c.bf16 %v7751_v6, %v7750_v49  ;;  %12101 = vrcp.f32 %v17488_v48 }
 0xac9   :  { %v12092_v37 = vpop.eup %12091 }
 0xaca   :  { %11089 = vmatpush3.bf16.xpose.msra.mxu0 %v11088_v26  ;;  %v7463_v42 = vpop.xlane.xlu1 %7462  ;;  %v7737_v21 = vmul.f32 %v12092_v37, %v17098_v11  ;;  %v12094_v44 = vpop.eup %12093  ;;  %v19466_v26 = vld [vmem:[#allocation146_spill] sm:$0xff] }
 0xacb   :  { %12103 = vrcp.f32 %v7463_v42  ;;  %11090 = vmatprep.subr.bf16.mxu0 %v19355_v53  ;;  %v17545_v41 = vpop.xlane.xlu0 %7508  ;;  %v7752_v15 = vmul.f32 %v12094_v44, %v19464_v57  ;;  %v19467_v44 = vld [vmem:[#allocation85_spill] sm:$0xff] }
 0xacc   :  { %v11067_v61 = vpack.c.bf16 %v7737_v21, %v7736_v29  ;;  %12105 = vrcp.f32 %v17497_v63 }
 0xacd   :  { %v12096_v52 = vpop.eup %12095 }
 0xace   :  { %v7435_v4 = vpop.xlane.xlu1 %7434  ;;  %v7753_v48 = vmul.f32 %v12096_v52, %v17107_v16  ;;  %v12098_v8 = vpop.eup %12097  ;;  %11068 = vmatpush3.bf16.xpose.msra.mxu1 %v11067_v61 }
 0xacf   :  { %12107 = vrcp.f32 %v7435_v4  ;;  %11069 = vmatprep.subr.bf16.mxu1 %v19355_v53  ;;  %v7738_v63 = vmul.f32 %v12098_v8, %v19465_v47  ;;  %v17554_v16 = vpop.xlane.xlu0 %7480  ;;  %v19469_v47 = vld [vmem:[#allocation177_spill] sm:$0xff] }
 0xad0   :  { %v11091_v54 = vpack.c.bf16 %v7753_v48, %v7752_v15  ;;  %12109 = vrcp.f32 %v17507_v12  ;;  %v19468_v15 = vld [vmem:[#allocation147_spill] sm:$0xff] }
 0xad1   :  { %v12100_v11 = vpop.eup %12099 }
 0xad2   :  { %11092 = vmatpush3.bf16.xpose.msra.mxu0 %v11091_v54  ;;  %v7467_v51 = vpop.xlane.xlu1 %7466  ;;  %v7739_v60 = vmul.f32 %v12100_v11, %v17122_v62  ;;  %v12102_v27 = vpop.eup %12101 }
 0xad3   :  { %12111 = vrcp.f32 %v7467_v51  ;;  %11093 = vmatprep.subr.bf16.mxu0 %v19355_v53  ;;  %v7754_v37 = vmul.f32 %v12102_v27, %v19466_v26  ;;  %v17561_v29 = vpop.xlane.xlu0 %7512 }
 0xad4   :  { %v11070_v49 = vpack.c.bf16 %v7739_v60, %v7738_v63  ;;  %12113 = vrcp.f32 %v17513_v45 }
 0xad5   :  { %v12104_v6 = vpop.eup %12103 }
 0xad6   :  { %v7439_v40 = vpop.xlane.xlu1 %7438  ;;  %v7755_v12 = vmul.f32 %v12104_v6, %v17137_v22  ;;  %v12106_v42 = vpop.eup %12105  ;;  %11071 = vmatpush3.bf16.xpose.msra.mxu1 %v11070_v49 }
 0xad7   :  { %12115 = vrcp.f32 %v7439_v40  ;;  %11072 = vmatprep.subr.bf16.mxu1 %v19355_v53  ;;  %v7740_v45 = vmul.f32 %v12106_v42, %v19467_v44  ;;  %v7485_v54 = vpop.xlane.xlu0 %7484  ;;  %v19470_v40 = vld [vmem:[#allocation19_spill] sm:$0xff] }
 0xad8   :  { %v11094_v36 = vpack.c.bf16 %v7755_v12, %v7754_v37  ;;  %12117 = vrcp.f32 %v17519_v13 }
 0xad9   :  { %v12108_v62 = vpop.eup %12107 }
 0xada   :  { %11095 = vmatpush3.bf16.xpose.msra.mxu0 %v11094_v36  ;;  %v7471_v21 = vpop.xlane.xlu1 %7470  ;;  %v7741_v61 = vmul.f32 %v12108_v62, %v17154_v39  ;;  %v12110_v52 = vpop.eup %12109  ;;  %v19471_v36 = vld [vmem:[#allocation57_spill] sm:$0xff] }
 0xadb   :  { %12119 = vrcp.f32 %v7471_v21  ;;  %11096 = vmatprep.subr.bf16.mxu0 %v19355_v53  ;;  %v7756_v48 = vmul.f32 %v12110_v52, %v19468_v15  ;;  %v7517_v49 = vpop.xlane.xlu0 %7516 }
 0xadc   :  { %v11073_v22 = vpack.c.bf16 %v7741_v61, %v7740_v45  ;;  %12121 = vrcp.f32 %v17525_v38  ;;  %v19472_v61 = vld [vmem:[#allocation141_spill] sm:$0xff] }
 0xadd   :  { %v12112_v4 = vpop.eup %12111 }
 0xade   :  { %v7475_v57 = vpop.xlane.xlu1 %7474  ;;  %v7757_v13 = vmul.f32 %v12112_v4, %v17167_v50  ;;  %v12114_v8 = vpop.eup %12113  ;;  %11074 = vmatpush3.bf16.xpose.msra.mxu1 %v11073_v22 }
 0xadf   :  { %12123 = vrcp.f32 %v7475_v57  ;;  %11075 = vmatprep.subr.bf16.mxu1 %v19355_v53  ;;  %v7742_v63 = vmul.f32 %v12114_v8, %v19469_v47 }
 0xae0   :  { %v11097_v11 = vpack.c.bf16 %v7757_v13, %v7756_v48  ;;  %12125 = vrcp.f32 %v17531_v24 }
 0xae1   :  { %v12116_v39 = vpop.eup %12115 }
 0xae2   :  { %11098 = vmatpush3.bf16.xpose.msra.mxu0 %v11097_v11  ;;  %v7507_v51 = vpop.xlane.xlu1 %7506  ;;  %v7743_v38 = vmul.f32 %v12116_v39, %v17188_v30  ;;  %v12118_v60 = vpop.eup %12117 }
 0xae3   :  { %12127 = vrcp.f32 %v7507_v51  ;;  %11099 = vmatprep.subr.bf16.mxu0 %v19355_v53  ;;  %v7758_v26 = vmul.f32 %v12118_v60, %v19470_v40 }
 0xae4   :  { %v11076_v50 = vpack.c.bf16 %v7743_v38, %v7742_v63  ;;  %12129 = vrcp.f32 %v17537_v10 }
 0xae5   :  { %v12120_v27 = vpop.eup %12119 }
 0xae6   :  { %v7479_v6 = vpop.xlane.xlu1 %7478  ;;  %v7759_v24 = vmul.f32 %v12120_v27, %v17204_v17  ;;  %v12122_v37 = vpop.eup %12121  ;;  %11077 = vmatpush3.bf16.xpose.msra.mxu1 %v11076_v50 }
 0xae7   :  { %12131 = vrcp.f32 %v7479_v6  ;;  %11102 = vmatprep.subr.bf16.mxu1 %v19355_v53  ;;  %v7760_v62 = vmul.f32 %v12122_v37, %v19471_v36  ;;  %v7489_v17 = vpop.xlane.xlu0 %7488 }
 0xae8   :  { %v11100_v12 = vpack.c.bf16 %v7759_v24, %v7758_v26  ;;  %12133 = vrcp.f32 %v17545_v41 }
 0xae9   :  { %v12124_v30 = vpop.eup %12123 }
 0xaea   :  { %11101 = vmatpush3.bf16.xpose.msra.mxu0 %v11100_v12  ;;  %v7511_v42 = vpop.xlane.xlu1 %7510  ;;  %v7761_v10 = vmul.f32 %v12124_v30, %v17218_v0  ;;  %v12126_v21 = vpop.eup %12125  ;;  %v4682_v0 = vcombine.high %v19472_v61, %v19472_v61 }
 0xaeb   :  { %12135 = vrcp.f32 %v7511_v42  ;;  %11126 = vmatprep.subr.bf16.mxu0 %v19355_v53  ;;  %v7776_v41 = vmul.f32 %v12126_v21, %v17113_v5  ;;  %v7521_v15 = vpop.xlane.xlu0 %7520 }
 0xaec   :  { %v11103_v44 = vpack.c.bf16 %v7761_v10, %v7760_v62  ;;  %12137 = vrcp.f32 %v17554_v16 }
 0xaed   :  { %v12128_v45 = vpop.eup %12127  ;;  %10587 = vmatmul.mubr.f32.vlgmr.msra.gmra.mrb[172].mxu1 %v19472_v61 }
 0xaee   :  { %v7483_v52 = vpop.xlane.xlu1 %7482  ;;  %v7777_v22 = vmul.f32 %v12128_v45, %v17242_v3  ;;  %v12130_v4 = vpop.eup %12129  ;;  %11104 = vmatpush3.bf16.xpose.msra.mxu1 %v11103_v44  ;;  %10656 = vmatprep.mubr.msk.f32.mxu1 %vm19417_vm1, %v19416_v18 }
 0xaef   :  { %12139 = vrcp.f32 %v7483_v52  ;;  %11105 = vmatprep.subr.bf16.mxu1 %v19355_v53  ;;  %v7762_v3 = vmul.f32 %v12130_v4, %v17128_v35  ;;  %v7493_v35 = vpop.xlane.xlu0 %7492 }
 0xaf0   :  { %v11127_v57 = vpack.c.bf16 %v7777_v22, %v7776_v41  ;;  %12141 = vrcp.f32 %v17561_v29 }
 0xaf1   :  { %v12132_v16 = vpop.eup %12131  ;;  %10622 = vmatmul.mubr.f32.vlgmr.msra.gmra.mrb[188].mxu0 %v4682_v0 }
 0xaf2   :  { %11128 = vmatpush3.bf16.xpose.msra.mxu0 %v11127_v57  ;;  %v7515_v5 = vpop.xlane.xlu1 %7514  ;;  %v7763_v48 = vmul.f32 %v12132_v16, %v17255_v59  ;;  %10691 = vmatprep.mubr.msk.f32.mxu0 %vm19417_vm1, %v19416_v18  ;;  %v12134_v13 = vpop.eup %12133  ;;  %vm19512_vm1 = vmmov %vm19498_vm0 }
 0xaf3   :  { %12143 = vrcp.f32 %v7515_v5  ;;  %11129 = vmatprep.subr.bf16.mxu0 %v19355_v53  ;;  %v7778_v29 = vmul.f32 %v12134_v13, %v17144_v20  ;;  %v7525_v50 = vpop.xlane.xlu0 %7524  ;;  %v19473_v13 = vld [vmem:[#allocation46_spill] sm:$0xff] }
 0xaf4   :  { %v11106_v8 = vpack.c.bf16 %v7763_v48, %v7762_v3  ;;  %12145 = vrcp.f32 %v7485_v54 }
 0xaf5   :  { %v12136_v11 = vpop.eup %12135 }
 0xaf6   :  { %v7487_v39 = vpop.xlane.xlu1 %7486  ;;  %v7779_v51 = vmul.f32 %v12136_v11, %v17276_v28  ;;  %v12138_v47 = vpop.eup %12137  ;;  %11107 = vmatpush3.bf16.xpose.msra.mxu1 %v11106_v8 }
 0xaf7   :  { %12147 = vrcp.f32 %v7487_v39  ;;  %11108 = vmatprep.subr.bf16.mxu1 %v19355_v53  ;;  %v7764_v38 = vmul.f32 %v12138_v47, %v17160_v9 }
 0xaf8   :  { %v11130_v59 = vpack.c.bf16 %v7779_v51, %v7778_v29  ;;  %12149 = vrcp.f32 %v7517_v49  ;;  %v19474_v51 = vld [vmem:[#allocation58_spill] sm:$0xff] }
 0xaf9   :  { %v12140_v18 = vpop.eup %12139 }
 0xafa   :  { %11131 = vmatpush3.bf16.xpose.msra.mxu0 %v11130_v59  ;;  %v7519_v63 = vpop.xlane.xlu1 %7518  ;;  %v7765_v54 = vmul.f32 %v12140_v18, %v17292_v1  ;;  %v12142_v60 = vpop.eup %12141 }
 0xafb   :  { %12151 = vrcp.f32 %v7519_v63  ;;  %11132 = vmatprep.subr.bf16.mxu0 %v19355_v53  ;;  %v7780_v6 = vmul.f32 %v12142_v60, %v17174_v32  ;;  %v7497_v32 = vpop.xlane.xlu0 %7496 }
 0xafc   :  { %v11109_v20 = vpack.c.bf16 %v7765_v54, %v7764_v38  ;;  %12153 = vrcp.f32 %v7489_v17  ;;  %v19475_v38 = vld [vmem:[#allocation28_spill] sm:$0xff] }
 0xafd   :  { %v12144_v28 = vpop.eup %12143 }
 0xafe   :  { %v7491_v27 = vpop.xlane.xlu1 %7490  ;;  %v7781_v40 = vmul.f32 %v12144_v28, %v17304_v14  ;;  %v12146_v49 = vpop.eup %12145  ;;  %11110 = vmatpush3.bf16.xpose.msra.mxu1 %v11109_v20 }
 0xaff   :  { %12155 = vrcp.f32 %v7491_v27  ;;  %11111 = vmatprep.subr.bf16.mxu1 %v19355_v53  ;;  %v7766_v24 = vmul.f32 %v12146_v49, %v17197_v2 }
 0xb00   :  { %v11133_v26 = vpack.c.bf16 %v7781_v40, %v7780_v6  ;;  %12157 = vrcp.f32 %v7521_v15 }
 0xb01   :  { %v12148_v9 = vpop.eup %12147 }
 0xb02   :  { %11134 = vmatpush3.bf16.xpose.msra.mxu0 %v11133_v26  ;;  %v7523_v1 = vpop.xlane.xlu1 %7522  ;;  %v7767_v37 = vmul.f32 %v12148_v9, %v17326_v58  ;;  %v12150_v12 = vpop.eup %12149  ;;  %v19478_v9 = vld [vmem:[#allocation48_spill] sm:$0xff] }
 0xb03   :  { %12159 = vrcp.f32 %v7523_v1  ;;  %11135 = vmatprep.subr.bf16.mxu0 %v19355_v53  ;;  %v7782_v36 = vmul.f32 %v12150_v12, %v17212_v19  ;;  %v7529_v58 = vpop.xlane.xlu0 %7528  ;;  %v19479_v1 = vld [vmem:[#allocation153_spill] sm:$0xff]  ;;  %v19480_v12 = vld [vmem:[#allocation140_spill] sm:$0xff] }
 0xb04   :  { %v11112_v14 = vpack.c.bf16 %v7767_v37, %v7766_v24  ;;  %12161 = vrcp.f32 %v7493_v35 }
 0xb05   :  { %v12152_v30 = vpop.eup %12151 }
 0xb06   :  { %v7495_v42 = vpop.xlane.xlu1 %7494  ;;  %v7783_v62 = vmul.f32 %v12152_v30, %v17339_v25  ;;  %v12154_v10 = vpop.eup %12153  ;;  %11113 = vmatpush3.bf16.xpose.msra.mxu1 %v11112_v14  ;;  %v19481_v14 = vld [vmem:[#allocation109_spill] sm:$0xff] }
 0xb07   :  { %12163 = vrcp.f32 %v7495_v42  ;;  %11114 = vmatprep.subr.bf16.mxu1 %v19355_v53  ;;  %v7768_v44 = vmul.f32 %v12154_v10, %v17232_v56  ;;  %v7501_v0 = vpop.xlane.xlu0 %7500 }
 0xb08   :  { %v11136_v21 = vpack.c.bf16 %v7783_v62, %v7782_v36  ;;  %12165 = vrcp.f32 %v7525_v50  ;;  %v19476_v50 = vld [vmem:[#allocation149_spill] sm:$0xff] }
 0xb09   :  { %v12156_v2 = vpop.eup %12155 }
 0xb0a   :  { %11137 = vmatpush3.bf16.xpose.msra.mxu0 %v11136_v21  ;;  %v7527_v17 = vpop.xlane.xlu1 %7526  ;;  %v7769_v45 = vmul.f32 %v12156_v2, %v17368_v43  ;;  %v12158_v61 = vpop.eup %12157 }
 0xb0b   :  { %12167 = vrcp.f32 %v7527_v17  ;;  %11138 = vmatprep.subr.bf16.mxu0 %v19355_v53  ;;  %v7784_v41 = vmul.f32 %v12158_v61, %v17248_v31  ;;  %v7533_v3 = vpop.xlane.xlu0 %7532 }
 0xb0c   :  { %v11115_v19 = vpack.c.bf16 %v7769_v45, %v7768_v44  ;;  %12169 = vrcp.f32 %v7497_v32  ;;  %v4683_v32 = vcombine.high %v19480_v12, %v19480_v12 }
 0xb0d   :  { %v12160_v25 = vpop.eup %12159 }
 0xb0e   :  { %v7499_v52 = vpop.xlane.xlu1 %7498  ;;  %v7785_v22 = vmul.f32 %v12160_v25, %v17382_v34  ;;  %v12162_v4 = vpop.eup %12161  ;;  %11116 = vmatpush3.bf16.xpose.msra.mxu1 %v11115_v19 }
 0xb0f   :  { %12171 = vrcp.f32 %v7499_v52  ;;  %11117 = vmatprep.subr.bf16.mxu1 %v19355_v53  ;;  %v7770_v16 = vmul.f32 %v12162_v4, %v17262_v46 }
 0xb10   :  { %v11139_v57 = vpack.c.bf16 %v7785_v22, %v7784_v41  ;;  %12173 = vrcp.f32 %v7529_v58 }
 0xb11   :  { %v12164_v56 = vpop.eup %12163 }
 0xb12   :  { %11140 = vmatpush3.bf16.xpose.msra.mxu0 %v11139_v57  ;;  %v7531_v43 = vpop.xlane.xlu1 %7530  ;;  %v7771_v15 = vmul.f32 %v12164_v56, %v17386_v23  ;;  %v12166_v5 = vpop.eup %12165 }
 0xb13   :  { %12175 = vrcp.f32 %v7531_v43  ;;  %11141 = vmatprep.subr.bf16.mxu0 %v19355_v53  ;;  %v7786_v8 = vmul.f32 %v12166_v5, %v19473_v13  ;;  %v19483_v43 = vld [vmem:[#allocation110_spill] sm:$0xff]  ;;  %v19489_v5 = vld [vmem:[#allocation115_spill] sm:$0xff] }
 0xb14   :  { %v11118_v31 = vpack.c.bf16 %v7771_v15, %v7770_v16  ;;  %12177 = vrcp.f32 %v7501_v0  ;;  %v19485_v16 = vld [vmem:[#allocation112_spill] sm:$0xff]  ;;  %v19487_v15 = vld [vmem:[#allocation113_spill] sm:$0xff]  ;;  %v19499_v13 = vld [vmem:[#allocation123_spill] sm:$0xff] }
 0xb15   :  { %v12168_v34 = vpop.eup %12167 }
 0xb16   :  { %v7503_v48 = vpop.xlane.xlu1 %7502  ;;  %v7787_v11 = vmul.f32 %v12168_v34, %v17404_v55  ;;  %v12170_v39 = vpop.eup %12169  ;;  %11119 = vmatpush3.bf16.xpose.msra.mxu1 %v11118_v31  ;;  %v19491_v31 = vld [vmem:[#allocation116_spill] sm:$0xff]  ;;  %v19493_v34 = vld [vmem:[#allocation119_spill] sm:$0xff] }
 0xb17   :  { %12179 = vrcp.f32 %v7503_v48  ;;  %11120 = vmatprep.subr.bf16.mxu1 %v19355_v53  ;;  %v7772_v47 = vmul.f32 %v12170_v39, %v19474_v51  ;;  %v19497_v48 = vld [vmem:[#allocation122_spill] sm:$0xff]  ;;  %v19505_v39 = vld [vmem:[#allocation129_spill] sm:$0xff] }
 0xb18   :  { %v11142_v29 = vpack.c.bf16 %v7787_v11, %v7786_v8  ;;  %12181 = vrcp.f32 %v7533_v3  ;;  %v19495_v3 = vld [vmem:[#allocation120_spill] sm:$0xff]  ;;  %v19503_v11 = vld [vmem:[#allocation127_spill] sm:$0xff] }
 0xb19   :  { %v12172_v46 = vpop.eup %12171  ;;  %v19501_v8 = vld [vmem:[#allocation124_spill] sm:$0xff] }
 0xb1a   :  { %11143 = vmatpush3.bf16.xpose.msra.mxu0 %v11142_v29  ;;  %v7535_v23 = vpop.xlane.xlu1 %7534  ;;  %v7773_v35 = vmul.f32 %v12172_v46, %v17412_v7  ;;  %v12174_v59 = vpop.eup %12173  ;;  %v19477_v7 = vld [vmem:[#allocation50_spill] sm:$0xff]  ;;  %v19509_v46 = vld [vmem:[#allocation133_spill] sm:$0xff] }
 0xb1b   :  { %12183 = vrcp.f32 %v7535_v23  ;;  %11144 = vmatprep.subr.bf16.mxu0 %v19355_v53  ;;  %v7788_v63 = vmul.f32 %v12174_v59, %v17316_v33  ;;  %v19507_v29 = vld [vmem:[#allocation130_spill] sm:$0xff] }
 0xb1c   :  { %v11121_v18 = vpack.c.bf16 %v7773_v35, %v7772_v47  ;;  %v19511_v23 = vld [vmem:[#allocation134_spill] sm:$0xff] }
 0xb1d   :  { %v12176_v55 = vpop.eup %12175 }
 0xb1e   :  { %v7789_v54 = vmul.f32 %v12176_v55, %v19475_v38  ;;  %v12178_v60 = vpop.eup %12177  ;;  %11122 = vmatpush3.bf16.xpose.msra.mxu1 %v11121_v18 }
 0xb1f   :  { %11123 = vmatprep.subr.bf16.mxu1 %v19355_v53  ;;  %v7774_v27 = vmul.f32 %v12178_v60, %v19476_v50 }
 0xb20   :  { %v11145_v20 = vpack.c.bf16 %v7789_v54, %v7788_v63 }
 0xb21   :  { %v12180_v28 = vpop.eup %12179 }
 0xb22   :  { %11146 = vmatpush3.bf16.xpose.msra.mxu0 %v11145_v20  ;;  %v7775_v6 = vmul.f32 %v12180_v28, %v19477_v7  ;;  %v12182_v40 = vpop.eup %12181 }
 0xb23   :  { %11147 = vmatprep.subr.bf16.mxu0 %v19355_v53  ;;  %v7790_v33 = vmul.f32 %v12182_v40, %v19478_v9 }
 0xb24   :  { %v11124_v49 = vpack.c.bf16 %v7775_v6, %v7774_v27 }
 0xb25   :  { %v12184_v26 = vpop.eup %12183 }
 0xb26   :  { %v7791_v24 = vmul.f32 %v12184_v26, %v19479_v1  ;;  %11125 = vmatpush3.bf16.xpose.msra.mxu1 %v11124_v49 }
 0xb28   :  { %v11148_v37 = vpack.c.bf16 %v7791_v24, %v7790_v33 }
 0xb2a   :  { %11149 = vmatpush3.bf16.xpose.msra.mxu0 %v11148_v37 }
 0xb2d   :  { %10657 = vmatmul.mubr.f32.vlgmr.msra.gmra.mrb[174].mxu1 %v19480_v12 }
 0xb2e   :  { %10702 = vmatprep.mubr.msk.f32.mxu1 %vm19482_vm3, %v19481_v14 }
 0xb31   :  { %10692 = vmatmul.mubr.f32.vlgmr.msra.gmra.mrb[190].mxu0 %v4683_v32 }
 0xb40   :  { %v7858_v30 = vpop.f32.mrb[168].mxu1 }
 0xb41   :  { %v10448_v53 = vpop.f32.mrb[169].mxu1 }
 0xb44   :  { %v7928_v42 = vpop.f32.mrb[184].mxu0 }
 0xb45   :  { %v8360_v36 = vcombine.low %v7858_v30, %v7928_v42  ;;  %v10483_v62 = vpop.f32.mrb[185].mxu0 }
 0xb80   :  { %v7998_v10 = vpop.f32.mrb[170].mxu1 }
 0xb81   :  { %v10518_v21 = vpop.f32.mrb[171].mxu1 }
 0xb84   :  { %v8068_v2 = vpop.f32.mrb[186].mxu0 }
 0xb85   :  { %v8361_v58 = vcombine.low %v7998_v10, %v8068_v2  ;;  %v10553_v17 = vpop.f32.mrb[187].mxu0 }
 0xb87   :  { %v11150_v44 = vpack.c.bf16 %v8361_v58, %v8360_v36 }
 0xb89   :  { %11151 = vmatprep.subr.bf16.mxu1 %v11150_v44 }
 0xb8a   :  { %11153 = vmatpush3.bf16.msra.mxu1 %v11150_v44 }
 0xbc0   :  { %v8138_v45 = vpop.f32.mrb[172].mxu1 }
 0xbc1   :  { %v10588_v61 = vpop.f32.mrb[173].mxu1 }
 0xbc4   :  { %v8208_v19 = vpop.f32.mrb[188].mxu0 }
 0xbc5   :  { %v8362_v25 = vcombine.low %v8138_v45, %v8208_v19  ;;  %v10623_v52 = vpop.f32.mrb[189].mxu0 }
 0xc00   :  { %v8278_v41 = vpop.f32.mrb[174].mxu1 }
 0xc01   :  { %v10658_v22 = vpop.f32.mrb[175].mxu1 }
 0xc04   :  { %v8348_v4 = vpop.f32.mrb[190].mxu0 }
 0xc05   :  { %v8363_v0 = vcombine.low %v8278_v41, %v8348_v4  ;;  %v10693_v57 = vpop.f32.mrb[191].mxu0 }
 0xc07   :  { %v11154_v56 = vpack.c.bf16 %v8363_v0, %v8362_v25 }
 0xc09   :  { %11155 = vmatprep.subr.bf16.mxu1 %v11154_v56 }
 0xc0a   :  { %11157 = vmatpush3.bf16.msra.mxu1 %v11154_v56 }
 0xc0d   :  { %10703 = vmatmul.mubr.msk.f32.vlgmr.msra.gmra.mrb[176].mxu1 %vm19484_vm4, %v19483_v43 }
 0xc0e   :  { %10705 = vmatprep.mubr.msk.f32.mxu1 %vm19486_vm5, %v19485_v16 }
 0xc11   :  { %10706 = vmatmul.mubr.msk.f32.gmra.mrb[178].mxu1 %vm19488_vm6, %v19487_v15 }
 0xc12   :  { %10708 = vmatprep.mubr.msk.f32.mxu1 %vm19490_vm7, %v19489_v5 }
 0xc15   :  { %10709 = vmatmul.mubr.msk.f32.gmra.mrb[180].mxu1 %vm19492_vm8, %v19491_v31 }
 0xc16   :  { %10711 = vmatprep.mubr.msk.f32.mxu1 %vm19494_vm15, %v19493_v34 }
 0xc19   :  { %10712 = vmatmul.mubr.msk.f32.gmra.mrb[182].mxu1 %vm19496_vm9, %v19495_v3 }
 0xc1a   :  { %10714 = vmatprep.mubr.msk.f32.mxu1 %vm19498_vm0, %v19497_v48 }
 0xc1d   :  { %10715 = vmatmul.mubr.msk.f32.gmra.mrb[184].mxu1 %vm19500_vm12, %v19499_v13 }
 0xc1e   :  { %10717 = vmatprep.mubr.msk.f32.mxu1 %vm19502_vm2, %v19501_v8 }
 0xc21   :  { %10718 = vmatmul.mubr.msk.f32.gmra.mrb[186].mxu1 %vm19504_vm11, %v19503_v11 }
 0xc22   :  { %10720 = vmatprep.mubr.msk.f32.mxu1 %vm19506_vm14, %v19505_v39 }
 0xc25   :  { %10721 = vmatmul.mubr.msk.f32.gmra.mrb[188].mxu1 %vm19508_vm10, %v19507_v29 }
 0xc26   :  { %10723 = vmatprep.mubr.msk.f32.mxu1 %vm19510_vm13, %v19509_v46 }
 0xc29   :  { %10724 = vmatmul.mubr.msk.f32.gmra.mrb[190].mxu1 %vm19512_vm1, %v19511_v23 }
 0xce0   :  { %v10704_v51 = vpop.f32.mrb[176].mxu1 }
 0xce1   :  { %v8434_v47 = vpop.f32.mrb[177].mxu1 }
 0xce4   :  { %v10707_v35 = vpop.f32.mrb[178].mxu1 }
 0xce5   :  { %v8442_v59 = vpop.f32.mrb[179].mxu1 }
 0xce8   :  { %v10710_v18 = vpop.f32.mrb[180].mxu1 }
 0xce9   :  { %v8450_v55 = vpop.f32.mrb[181].mxu1 }
 0xcec   :  { %v10713_v63 = vpop.f32.mrb[182].mxu1 }
 0xced   :  { %v8458_v38 = vpop.f32.mrb[183].mxu1 }
 0xcf0   :  { %v10716_v54 = vpop.f32.mrb[184].mxu1 }
 0xcf1   :  { %v8466_v60 = vpop.f32.mrb[185].mxu1 }
 0xcf4   :  { %v10719_v20 = vpop.f32.mrb[186].mxu1 }
 0xcf5   :  { %v8474_v28 = vpop.f32.mrb[187].mxu1 }
 0xcf8   :  { %v10722_v50 = vpop.f32.mrb[188].mxu1 }
 0xcf9   :  { %8891 = vst [vmem:[%s17684_s2 + $0x28] sm:$0xff] %v10722_v50  ;;  %v8482_v27 = vpop.f32.mrb[189].mxu1 }
 0xcfa   :  { %8890 = vst [vmem:[%s17684_s2 + $0x20] sm:$0xff] %v8482_v27 }
 0xcfc   :  { %v10725_v7 = vpop.f32.mrb[190].mxu1 }
 0xcfd   :  { %8893 = vst [vmem:[%s17684_s2 + $0x38] sm:$0xff] %v10725_v7  ;;  %v8492_v6 = vpop.f32.mrb[191].mxu1 }
 0xcfe   :  { %8892 = vst [vmem:[%s17684_s2 + $0x30] sm:$0xff] %v8492_v6 }

</bundles_post_ra>
